<compile_context>
chip_gen: v6e
topology: v6e:2x2x1
jax: 0.10.0
libtpu: 0.0.40
codegen_flags: <defaults>
</compile_context>

<pallas_src>
import jax
import jax.numpy as jnp
from jax import lax
from jax.experimental import pallas as pl
from jax.experimental.pallas import tpu as pltpu

# ----------------------------- config ---------------------------------------
B = 2
C = 3
IMG = 16
PATCH = 8
N_PATCH = (IMG // PATCH) * (IMG // PATCH)      # 4
N_VIS = N_PATCH + 1                            # 5 real visual tokens (CLS + patches)
NV_PAD = 8                                     # padded to an 8-sublane tile
D_V = 32
VIT_DEPTH = 2
VIT_HEADS = 4
VIT_MLP = 4 * D_V

D_T = 32
TXT_LAYERS = 2
TXT_HEADS = 4
INTER = 64
VOCAB = 100
V_PAD = 128                                    # lane-dense padded vocab
T = 8
MAX_POS = 16

PAD_ID = 0
BOS_ID = 1
# len(tokenizer('a picture of ').input_ids) - 1 == 4 for the real BERT tokenizer
PROMPT_LEN = 4
LABEL_SMOOTHING = 0.1  # BLIP's BertLMHeadModel uses CrossEntropyLoss(label_smoothing=0.1)

NEG_INF = -1e9


# --------------------------- common helpers ---------------------------------
def _const_spec(shape):
    """Whole-array block, same block for every depth step (stays resident)."""
    nd = len(shape)
    return pl.BlockSpec(shape, lambda l, _nd=nd: (0,) * _nd)


def _stk_spec(shape):
    """Per-layer weight stacked on a leading depth axis: block l along dim 0."""
    nd = len(shape)
    return pl.BlockSpec((1,) + tuple(shape[1:]),
                        lambda l, _nd=nd: (l,) + (0,) * (_nd - 1))


def _mmf(a_bf16, w_bf16):
    """MXU matmul on bf16 operands with f32 accumulation."""
    return jnp.dot(a_bf16, w_bf16, preferred_element_type=jnp.float32)


def _ln(x2d, g, b, eps):
    """LayerNorm over the last dim (f32 math; g/b are [1, D])."""
    x = x2d.astype(jnp.float32)
    mu = jnp.mean(x, axis=-1, keepdims=True)
    var = jnp.mean(jnp.square(x - mu), axis=-1, keepdims=True)
    return (x - mu) * lax.rsqrt(var + eps) * g + b


def _softmax(s):
    """Row softmax; reciprocal goes to the EUP slot (attention path only)."""
    s = s - jnp.max(s, axis=-1, keepdims=True)
    p = jnp.exp(s)
    return p * pl.reciprocal(jnp.sum(p, axis=-1, keepdims=True), approx=True)


def _mha(q2d, k2d, v2d, b, tq, tk, heads, dh, add_mask):
    """Multi-head attention on bf16 slabs [b*tq, H*dh] / [b*tk, H*dh].

    Per-head score/context einsums use a single batch dim (Mosaic-safe); the
    head contexts are concatenated so the caller applies ONE full-width
    out-projection matmul (review item) instead of H tiny per-head matmuls.
    """
    scale = dh ** -0.5
    ctx = []
    for h in range(heads):
        lo = h * dh
        q = q2d[:, lo:lo + dh].reshape(b, tq, dh)
        k = k2d[:, lo:lo + dh].reshape(b, tk, dh)
        v = v2d[:, lo:lo + dh].reshape(b, tk, dh)
        s = jnp.einsum("bqd,bkd->bqk", q, k,
                       preferred_element_type=jnp.float32) * scale + add_mask
        p = _softmax(s).astype(jnp.bfloat16)
        c = jnp.einsum("bqk,bkd->bqd", p, v, preferred_element_type=jnp.float32)
        ctx.append(c.reshape(b * tq, dh))
    return jnp.concatenate(ctx, axis=-1)          # [b*tq, H*dh], f32


# --------------------------- ViT stack kernel --------------------------------
def _vit_stack_kernel(*refs):
    (patches_ref, pw_ref, pb_ref, base_ref, fng_ref, fnb_ref,
     n1g, n1b, qkvw, qkvb, projw, projb, n2g, n2b,
     f1w, f1b, f2w, f2b,
     enc_ref) = refs

    l = pl.program_id(0)
    n_layers = pl.num_programs(0)
    dh = D_V // VIT_HEADS
    bf16 = jnp.bfloat16

    # ---- l == 0: patch embedding + CLS token + pos embed (folded into stack) ----
    @pl.when(l == 0)
    def _():
        pe = _mmf(patches_ref[...].astype(bf16), pw_ref[...].astype(bf16)) + pb_ref[...]
        pe = pe.reshape(B, N_PATCH, D_V)
        x0 = jnp.concatenate(
            [jnp.zeros((B, 1, D_V), jnp.float32), pe,
             jnp.zeros((B, NV_PAD - 1 - N_PATCH, D_V), jnp.float32)], axis=1)
        enc_ref[...] = x0 + base_ref[...][None]          # base = [cls+pos0, pos1..4, 0..]

    x = enc_ref[...].astype(jnp.float32)                 # running state (resident block)
    xf = x.reshape(B * NV_PAD, D_V)

    # hide padded visual key tokens (only N_VIS of NV_PAD rows are real)
    kidx = lax.broadcasted_iota(jnp.int32, (1, 1, NV_PAD), 2)
    vis_add = jnp.where(kidx < N_VIS, 0.0, NEG_INF).astype(jnp.float32)

    # ---- pre-norm attention ----
    h1 = _ln(xf, n1g[0], n1b[0], 1e-6)
    qkv = (_mmf(h1.astype(bf16), qkvw[0].astype(bf16)) + qkvb[0]).astype(bf16)
    ctx = _mha(qkv[:, :D_V], qkv[:, D_V:2 * D_V], qkv[:, 2 * D_V:],
               B, NV_PAD, NV_PAD, VIT_HEADS, dh, vis_add)
    attn = _mmf(ctx.astype(bf16), projw[0].astype(bf16)) + projb[0]
    xr = xf + attn

    # ---- pre-norm MLP ----
    h2 = _ln(xr, n2g[0], n2b[0], 1e-6)
    # TODO(synk): HF/timm use exact erf-GELU; tanh approximation kept for TPU-safe lowering.
    m = jax.nn.gelu(_mmf(h2.astype(bf16), f1w[0].astype(bf16)) + f1b[0], approximate=True)
    xr = xr + _mmf(m.astype(bf16), f2w[0].astype(bf16)) + f2b[0]

    @pl.when(l < n_layers - 1)
    def _():
        enc_ref[...] = xr.reshape(B, NV_PAD, D_V)

    @pl.when(l == n_layers - 1)
    def _():
        y = _ln(xr, fng_ref[...], fnb_ref[...], 1e-6)    # final ViT LayerNorm fused in
        enc_ref[...] = y.reshape(B, NV_PAD, D_V)


def vit_encode(p, patches, base):
    v = p["vit"]
    const_args = [patches, p["patch_w"], p["patch_b"], base,
                  p["vit_norm_g"], p["vit_norm_b"]]
    stk_args = [v["n1_g"], v["n1_b"], v["qkv_w"], v["qkv_b"], v["proj_w"], v["proj_b"],
                v["n2_g"], v["n2_b"], v["fc1_w"], v["fc1_b"], v["fc2_w"], v["fc2_b"]]
    in_specs = ([_const_spec(a.shape) for a in const_args] +
                [_stk_spec(a.shape) for a in stk_args])
    return pl.pallas_call(
        _vit_stack_kernel,
        grid=(VIT_DEPTH,),
        in_specs=in_specs,
        out_specs=pl.BlockSpec((B, NV_PAD, D_V), lambda l: (0, 0, 0)),
        out_shape=jax.ShapeDtypeStruct((B, NV_PAD, D_V), jnp.float32),
        compiler_params=pltpu.CompilerParams(dimension_semantics=("arbitrary",)),
    )(*const_args, *stk_args)


# --------------------- BERT decoder stack + LM-loss kernel -------------------
def _text_stack_kernel(*refs):
    (we_ref, pos_ref, eg_ref, eb_ref, enc_ref, mask_ref,
     sqkv_w, sqkv_b, so_w, so_b, sln_g, sln_b,
     cq_w, cq_b, ckv_w, ckv_b, co_w, co_b, cln_g, cln_b,
     i_w, i_b, o_w, o_b, oln_g, oln_b,
     tw_ref, tb_ref, lg_ref, lb_ref, dw_ref, db_ref,
     tgt_ref,
     loss_ref, x_ref) = refs

    l = pl.program_id(0)
    n_layers = pl.num_programs(0)
    dh = D_T // TXT_HEADS
    bf16 = jnp.bfloat16

    # ---- l == 0: BERT embeddings (word + pos, LayerNorm) into VMEM scratch ----
    @pl.when(l == 0)
    def _():
        x0 = we_ref[...].astype(jnp.float32) + pos_ref[...][None]
        x_ref[...] = _ln(x0.reshape(B * T, D_T), eg_ref[...], eb_ref[...],
                         1e-12).reshape(B, T, D_T)
        loss_ref[...] = jnp.zeros((1, 1), jnp.float32)

    x = x_ref[...]
    xf = x.reshape(B * T, D_T)

    # in-kernel masks (never materialized at [B, H, T, T])
    qpos = lax.broadcasted_iota(jnp.int32, (T, T), 0)
    kpos = lax.broadcasted_iota(jnp.int32, (T, T), 1)
    causal = kpos <= qpos
    key_ok = mask_ref[...] > 0.5                                     # [B, T]
    self_add = jnp.where(jnp.logical_and(causal[None], key_ok[:, None, :]),
                         0.0, NEG_INF).astype(jnp.float32)           # [B, T, T]
    # image_atts == ones over the 5 real visual tokens -> only alignment pads masked
    vidx = lax.broadcasted_iota(jnp.int32, (1, 1, NV_PAD), 2)
    cross_add = jnp.where(vidx < N_VIS, 0.0, NEG_INF).astype(jnp.float32)

    # ---- causal self-attention (fused qkv, one full-width out-projection) ----
    qkv = (_mmf(xf.astype(bf16), sqkv_w[0].astype(bf16)) + sqkv_b[0]).astype(bf16)
    ctx = _mha(qkv[:, :D_T], qkv[:, D_T:2 * D_T], qkv[:, 2 * D_T:],
               B, T, T, TXT_HEADS, dh, self_add)
    attn = _mmf(ctx.astype(bf16), so_w[0].astype(bf16)) + so_b[0]
    x1 = _ln(attn + xf, sln_g[0], sln_b[0], 1e-12)

    # ---- cross-attention to image embeddings (fused k/v) ----
    encf = enc_ref[...].astype(bf16).reshape(B * NV_PAD, D_V)
    qx = (_mmf(x1.astype(bf16), cq_w[0].astype(bf16)) + cq_b[0]).astype(bf16)
    kv = (_mmf(encf, ckv_w[0].astype(bf16)) + ckv_b[0]).astype(bf16)
    ctx = _mha(qx, kv[:, :D_T], kv[:, D_T:], B, T, NV_PAD, TXT_HEADS, dh, cross_add)
    cattn = _mmf(ctx.astype(bf16), co_w[0].astype(bf16)) + co_b[0]
    x2 = _ln(cattn + x1, cln_g[0], cln_b[0], 1e-12)

    # ---- feed-forward ----
    h = jax.nn.gelu(_mmf(x2.astype(bf16), i_w[0].astype(bf16)) + i_b[0], approximate=True)
    y = _mmf(h.astype(bf16), o_w[0].astype(bf16)) + o_b[0]
    x3 = _ln(y + x2, oln_g[0], oln_b[0], 1e-12)
    x_ref[...] = x3.reshape(B, T, D_T)

    # ---- l == last: LM head + masked, shifted, label-smoothed CE (fused) ----
    @pl.when(l == n_layers - 1)
    def _():
        # head computed on all B*T aligned rows; last positions excluded via valid=0
        h2 = jax.nn.gelu(_mmf(x3.astype(bf16), tw_ref[...].astype(bf16)) + tb_ref[...],
                         approximate=True)
        h2 = _ln(h2, lg_ref[...], lb_ref[...], 1e-12)
        logits = _mmf(h2.astype(bf16), dw_ref[...].astype(bf16)) + db_ref[...]  # [N, V_PAD]

        n = B * T
        col = lax.broadcasted_iota(jnp.int32, (n, V_PAD), 1)
        in_vocab = col < VOCAB
        logits = jnp.where(in_vocab, logits, -1e30)          # hide padded vocab lanes
        mx = jnp.max(logits, axis=-1, keepdims=True)
        z = logits - mx
        lse = jnp.log(jnp.sum(jnp.exp(z), axis=-1, keepdims=True))   # exact on loss path
        logp = z - lse
        smooth = -jnp.sum(jnp.where(in_vocab, logp, 0.0),
                          axis=-1, keepdims=True) / float(VOCAB)     # [N, 1]

        # shifted labels read as per-row scalars from SMEM (-100 == ignore)
        col1 = lax.broadcasted_iota(jnp.int32, (1, V_PAD), 1)
        hot_rows, valid_rows = [], []
        for bi in range(B):
            for qi in range(T):
                if qi < T - 1:
                    lbl = tgt_ref[bi, qi + 1]
                    hot_rows.append((col1 == lbl).astype(jnp.float32))
                    valid_rows.append(jnp.full((1, 1), (lbl >= 0).astype(jnp.float32)))
                else:  # no label for the last position
                    hot_rows.append(jnp.zeros((1, V_PAD), jnp.float32))
                    valid_rows.append(jnp.zeros((1, 1), jnp.float32))
        onehot = jnp.concatenate(hot_rows, axis=0)           # [N, V_PAD]
        valid = jnp.concatenate(valid_rows, axis=0)          # [N, 1]

        nll = -jnp.sum(logp * onehot, axis=-1, keepdims=True)
        per_tok = (1.0 - LABEL_SMOOTHING) * nll + LABEL_SMOOTHING * smooth
        total = jnp.sum(per_tok * valid, keepdims=True)      # [1, 1]
        count = jnp.sum(valid, keepdims=True)                # [1, 1]
        loss_ref[...] = total / jnp.maximum(count, 1.0)


def text_decode_loss(p, we, pos, enc, mask_f, targets, dec_w_pad, dec_b_pad):
    t = p["txt"]
    const_args = [we, pos, p["emb_ln_g"], p["emb_ln_b"], enc, mask_f]
    stk_args = [t["sqkv_w"], t["sqkv_b"], t["so_w"], t["so_b"], t["sln_g"], t["sln_b"],
                t["cq_w"], t["cq_b"], t["ckv_w"], t["ckv_b"], t["co_w"], t["co_b"],
                t["cln_g"], t["cln_b"],
                t["i_w"], t["i_b"], t["o_w"], t["o_b"], t["oln_g"], t["oln_b"]]
    head_args = [p["cls_t_w"], p["cls_t_b"], p["cls_ln_g"], p["cls_ln_b"],
                 dec_w_pad, dec_b_pad]
    in_specs = ([_const_spec(a.shape) for a in const_args] +
                [_stk_spec(a.shape) for a in stk_args] +
                [_const_spec(a.shape) for a in head_args] +
                [pl.BlockSpec(memory_space=pltpu.MemorySpace.SMEM)])   # targets in SMEM
    loss = pl.pallas_call(
        _text_stack_kernel,
        grid=(TXT_LAYERS,),
        in_specs=in_specs,
        out_specs=pl.BlockSpec((1, 1), lambda l: (0, 0)),
        out_shape=jax.ShapeDtypeStruct((1, 1), jnp.float32),
        scratch_shapes=[pltpu.VMEM((B, T, D_T), jnp.float32)],   # resident activation
        compiler_params=pltpu.CompilerParams(dimension_semantics=("arbitrary",)),
    )(*const_args, *stk_args, *head_args, targets)
    return loss[0, 0]


# ----------------------------- parameters -----------------------------------
def init_params(key):
    keys = jax.random.split(key, 64)
    it = iter(keys)

    def nrm(shape, scale=0.02):
        return jax.random.normal(next(it), shape, jnp.float32) * scale

    zeros = lambda s: jnp.zeros(s, jnp.float32)
    ones = lambda s: jnp.ones(s, jnp.float32)
    L, Lt = VIT_DEPTH, TXT_LAYERS

    p = {
        "patch_w": nrm((C * PATCH * PATCH, D_V)), "patch_b": zeros((1, D_V)),
        "cls_token": nrm((1, D_V)), "pos_embed": nrm((N_VIS, D_V)),
        "vit_norm_g": ones((1, D_V)), "vit_norm_b": zeros((1, D_V)),
        "vit": dict(   # per-layer weights stacked along a leading depth axis
            n1_g=ones((L, 1, D_V)), n1_b=zeros((L, 1, D_V)),
            qkv_w=nrm((L, D_V, 3 * D_V)), qkv_b=zeros((L, 1, 3 * D_V)),
            proj_w=nrm((L, D_V, D_V)), proj_b=zeros((L, 1, D_V)),
            n2_g=ones((L, 1, D_V)), n2_b=zeros((L, 1, D_V)),
            fc1_w=nrm((L, D_V, VIT_MLP)), fc1_b=zeros((L, 1, VIT_MLP)),
            fc2_w=nrm((L, VIT_MLP, D_V)), fc2_b=zeros((L, 1, D_V)),
        ),
        "word_emb": nrm((VOCAB, D_T)), "pos_emb": nrm((MAX_POS, D_T)),
        "emb_ln_g": ones((1, D_T)), "emb_ln_b": zeros((1, D_T)),
        "txt": dict(
            sqkv_w=nrm((Lt, D_T, 3 * D_T)), sqkv_b=zeros((Lt, 1, 3 * D_T)),
            so_w=nrm((Lt, D_T, D_T)), so_b=zeros((Lt, 1, D_T)),
            sln_g=ones((Lt, 1, D_T)), sln_b=zeros((Lt, 1, D_T)),
            cq_w=nrm((Lt, D_T, D_T)), cq_b=zeros((Lt, 1, D_T)),
            ckv_w=nrm((Lt, D_V, 2 * D_T)), ckv_b=zeros((Lt, 1, 2 * D_T)),
            co_w=nrm((Lt, D_T, D_T)), co_b=zeros((Lt, 1, D_T)),
            cln_g=ones((Lt, 1, D_T)), cln_b=zeros((Lt, 1, D_T)),
            i_w=nrm((Lt, D_T, INTER)), i_b=zeros((Lt, 1, INTER)),
            o_w=nrm((Lt, INTER, D_T)), o_b=zeros((Lt, 1, D_T)),
            oln_g=ones((Lt, 1, D_T)), oln_b=zeros((Lt, 1, D_T)),
        ),
        "cls_t_w": nrm((D_T, D_T)), "cls_t_b": zeros((1, D_T)),
        "cls_ln_g": ones((1, D_T)), "cls_ln_b": zeros((1, D_T)),
        "dec_w": nrm((D_T, VOCAB)), "dec_b": zeros((1, VOCAB)),
    }
    return p


# ------------------------------ model forward -------------------------------
@jax.jit
def blip_decoder_forward(params, image, input_ids, attention_mask):
    """Mirrors BLIP_Decoder.forward: returns the LM loss (scalar)."""
    # ---- ViT visual encoder (pallas_call #1) ----
    Pp = PATCH
    x = image.reshape(B, C, IMG // Pp, Pp, IMG // Pp, Pp)
    patches = x.transpose(0, 2, 4, 1, 3, 5).reshape(B * N_PATCH, C * Pp * Pp)
    # additive base row vector: row0 = cls + pos0, rows 1..4 = pos, pad rows = 0
    base = jnp.zeros((NV_PAD, D_V), jnp.float32).at[:N_VIS].set(params["pos_embed"])
    base = base.at[0].add(params["cls_token"][0])
    image_embeds = vit_encode(params, patches, base)           # [B, NV_PAD, D_V]
    # image_atts = torch.ones(...) -> all-ones mask over real visual tokens; only
    # the alignment pad rows are masked inside the cross-attention kernel.

    # ---- text side (tokenizer is host-side string glue; ids precomputed) ----
    input_ids = input_ids.at[:, 0].set(BOS_ID)                 # text.input_ids[:,0]=bos
    targets = jnp.where(input_ids == PAD_ID, -100, input_ids)  # masked_fill(pad, -100)
    targets = targets.at[:, :PROMPT_LEN].set(-100).astype(jnp.int32)

    we = jnp.take(params["word_emb"], input_ids, axis=0)       # embedding gather
    pos = params["pos_emb"][:T]
    mask_f = attention_mask.astype(jnp.float32)
    # lane-dense LM-head weights: pad vocab 100 -> 128 (masked in-kernel)
    dec_w_pad = jnp.zeros((D_T, V_PAD), jnp.float32).at[:, :VOCAB].set(params["dec_w"])
    dec_b_pad = jnp.zeros((1, V_PAD), jnp.float32).at[:, :VOCAB].set(params["dec_b"])

    # ---- BERT decoder stack + LM head + loss (pallas_call #2) ----
    return text_decode_loss(params, we, pos, image_embeds, mask_f, targets,
                            dec_w_pad, dec_b_pad)


# --------------------------------- main --------------------------------------
if __name__ == "__main__":
    root = jax.random.PRNGKey(0)
    k_params, k_img, k_tok = jax.random.split(root, 3)

    params = init_params(k_params)
    image = jax.random.normal(k_img, (B, C, IMG, IMG), jnp.float32)   # NCHW
    input_ids = jax.random.randint(k_tok, (B, T), 2, VOCAB, dtype=jnp.int32)
    attention_mask = jnp.array([[1] * T, [1] * (T - 2) + [0, 0]], jnp.int32)
    input_ids = jnp.where(attention_mask == 0, PAD_ID, input_ids)

    loss = blip_decoder_forward(params, image, input_ids, attention_mask)
    jax.block_until_ready(loss)
    assert loss.shape == () and bool(jnp.isfinite(loss))
    print("KERNEL_OK")
</pallas_src>

<mosaic_0001>
module attributes {stable_mosaic.version = 11 : i64} {
  func.func @_vit_stack_kernel(%arg0: i32, %arg1: memref<8x192xf32, #tpu.memory_space<vmem>>, %arg2: memref<192x32xf32, #tpu.memory_space<vmem>>, %arg3: memref<1x32xf32, #tpu.memory_space<vmem>>, %arg4: memref<8x32xf32, #tpu.memory_space<vmem>>, %arg5: memref<1x32xf32, #tpu.memory_space<vmem>>, %arg6: memref<1x32xf32, #tpu.memory_space<vmem>>, %arg7: memref<1x1x32xf32, #tpu.memory_space<vmem>>, %arg8: memref<1x1x32xf32, #tpu.memory_space<vmem>>, %arg9: memref<1x32x96xf32, #tpu.memory_space<vmem>>, %arg10: memref<1x1x96xf32, #tpu.memory_space<vmem>>, %arg11: memref<1x32x32xf32, #tpu.memory_space<vmem>>, %arg12: memref<1x1x32xf32, #tpu.memory_space<vmem>>, %arg13: memref<1x1x32xf32, #tpu.memory_space<vmem>>, %arg14: memref<1x1x32xf32, #tpu.memory_space<vmem>>, %arg15: memref<1x32x128xf32, #tpu.memory_space<vmem>>, %arg16: memref<1x1x128xf32, #tpu.memory_space<vmem>>, %arg17: memref<1x128x32xf32, #tpu.memory_space<vmem>>, %arg18: memref<1x1x32xf32, #tpu.memory_space<vmem>>, %arg19: memref<2x8x32xf32, #tpu.memory_space<vmem>>) attributes {dimension_semantics = [#tpu.dimension_semantics<arbitrary>], iteration_bounds = array<i64: 2>, scalar_prefetch = 0 : i64, scratch_operands = 0 : i64, tpu.core_type = #tpu.core_type<tc>, window_params = [{pipeline_mode = #tpu.pipeline_mode<synchronous>, transform_indices = @transform_0, window_bounds = array<i64: 8, 192>}, {pipeline_mode = #tpu.pipeline_mode<synchronous>, transform_indices = @transform_1, window_bounds = array<i64: 192, 32>}, {pipeline_mode = #tpu.pipeline_mode<synchronous>, transform_indices = @transform_2, window_bounds = array<i64: 1, 32>}, {pipeline_mode = #tpu.pipeline_mode<synchronous>, transform_indices = @transform_3, window_bounds = array<i64: 8, 32>}, {pipeline_mode = #tpu.pipeline_mode<synchronous>, transform_indices = @transform_4, window_bounds = array<i64: 1, 32>}, {pipeline_mode = #tpu.pipeline_mode<synchronous>, transform_indices = @transform_5, window_bounds = array<i64: 1, 32>}, {transform_indices = @transform_6, window_bounds = array<i64: 1, 1, 32>}, {transform_indices = @transform_7, window_bounds = array<i64: 1, 1, 32>}, {transform_indices = @transform_8, window_bounds = array<i64: 1, 32, 96>}, {transform_indices = @transform_9, window_bounds = array<i64: 1, 1, 96>}, {transform_indices = @transform_10, window_bounds = array<i64: 1, 32, 32>}, {transform_indices = @transform_11, window_bounds = array<i64: 1, 1, 32>}, {transform_indices = @transform_12, window_bounds = array<i64: 1, 1, 32>}, {transform_indices = @transform_13, window_bounds = array<i64: 1, 1, 32>}, {transform_indices = @transform_14, window_bounds = array<i64: 1, 32, 128>}, {transform_indices = @transform_15, window_bounds = array<i64: 1, 1, 128>}, {transform_indices = @transform_16, window_bounds = array<i64: 1, 128, 32>}, {transform_indices = @transform_17, window_bounds = array<i64: 1, 1, 32>}, {pipeline_mode = #tpu.pipeline_mode<synchronous>, transform_indices = @transform_18, window_bounds = array<i64: 2, 8, 32>}]} {
    %c0_i32 = arith.constant 0 : i32
    %0 = arith.cmpi eq, %arg0, %c0_i32 : i32
    %1 = arith.extui %0 : i1 to i32
    %c0_i32_0 = arith.constant 0 : i32
    %2 = arith.cmpi ne, %1, %c0_i32_0 : i32
    scf.if %2 {
      %c0_81 = arith.constant 0 : index
      %c0_82 = arith.constant 0 : index
      %221 = vector.load %arg1[%c0_81, %c0_82] : memref<8x192xf32, #tpu.memory_space<vmem>>, vector<8x192xf32>
      %222 = arith.truncf %221 : vector<8x192xf32> to vector<8x192xbf16>
      %c0_83 = arith.constant 0 : index
      %c0_84 = arith.constant 0 : index
      %223 = vector.load %arg2[%c0_83, %c0_84] : memref<192x32xf32, #tpu.memory_space<vmem>>, vector<192x32xf32>
      %224 = arith.truncf %223 : vector<192x32xf32> to vector<192x32xbf16>
      %cst_85 = arith.constant dense<0.000000e+00> : vector<8x32xf32>
      %225 = tpu.matmul %222, %224, %cst_85 {dimension_numbers = #tpu.dot_dimension_numbers<[1], [0], [0], [1], [0, 0, 1, 1], [], []>} : vector<8x192xbf16>, vector<192x32xbf16>, vector<8x32xf32> -> vector<8x32xf32>
      %c0_86 = arith.constant 0 : index
      %c0_87 = arith.constant 0 : index
      %226 = vector.load %arg3[%c0_86, %c0_87] : memref<1x32xf32, #tpu.memory_space<vmem>>, vector<1x32xf32>
      %227 = vector.broadcast %226 : vector<1x32xf32> to vector<8x32xf32>
      %228 = arith.addf %225, %227 : vector<8x32xf32>
      %229 = vector.shape_cast %228 : vector<8x32xf32> to vector<2x4x32xf32>
      %cst_88 = arith.constant 0.000000e+00 : f32
      %230 = vector.broadcast %cst_88 : f32 to vector<2x1x32xf32>
      %cst_89 = arith.constant 0.000000e+00 : f32
      %231 = vector.broadcast %cst_89 : f32 to vector<2x3x32xf32>
      %232 = tpu.concatenate %230, %229, %231 in 1 : vector<2x1x32xf32>, vector<2x4x32xf32>, vector<2x3x32xf32> -> vector<2x8x32xf32>
      %c0_90 = arith.constant 0 : index
      %c0_91 = arith.constant 0 : index
      %233 = vector.load %arg4[%c0_90, %c0_91] : memref<8x32xf32, #tpu.memory_space<vmem>>, vector<8x32xf32>
      %234 = vector.shape_cast %233 : vector<8x32xf32> to vector<1x8x32xf32>
      %235 = vector.broadcast %234 : vector<1x8x32xf32> to vector<2x8x32xf32>
      %236 = arith.addf %232, %235 : vector<2x8x32xf32>
      %c0_92 = arith.constant 0 : index
      %c0_93 = arith.constant 0 : index
      %c0_94 = arith.constant 0 : index
      %237 = vector.load %arg19[%c0_92, %c0_93, %c0_94] : memref<2x8x32xf32, #tpu.memory_space<vmem>>, vector<2x8x32xf32>
      tpu.vector_store %arg19[%c0_92, %c0_93, %c0_94], %236 {strides = array<i32>} : memref<2x8x32xf32, #tpu.memory_space<vmem>>, vector<2x8x32xf32>,
    } else {
    }
    %c0 = arith.constant 0 : index
    %c0_1 = arith.constant 0 : index
    %c0_2 = arith.constant 0 : index
    %3 = vector.load %arg19[%c0, %c0_1, %c0_2] : memref<2x8x32xf32, #tpu.memory_space<vmem>>, vector<2x8x32xf32>
    %4 = vector.shape_cast %3 : vector<2x8x32xf32> to vector<16x32xf32>
    %5 = tpu.iota {dimensions = array<i32: 2>} : vector<1x1x8xi32>
    %c5_i32 = arith.constant 5 : i32
    %6 = vector.broadcast %c5_i32 : i32 to vector<1x1x8xi32>
    %7 = arith.cmpi slt, %5, %6 : vector<1x1x8xi32>
    %cst = arith.constant 0.000000e+00 : f32
    %cst_3 = arith.constant -1.000000e+09 : f32
    %8 = vector.broadcast %cst : f32 to vector<1x1x8xf32>
    %9 = vector.broadcast %cst_3 : f32 to vector<1x1x8xf32>
    %10 = arith.select %7, %8, %9 : vector<1x1x8xi1>, vector<1x1x8xf32>
    %c0_4 = arith.constant 0 : index
    %c0_5 = arith.constant 0 : index
    %c0_6 = arith.constant 0 : index
    %11 = vector.load %arg7[%c0_4, %c0_5, %c0_6] : memref<1x1x32xf32, #tpu.memory_space<vmem>>, vector<1x1x32xf32>
    %12 = vector.shape_cast %11 : vector<1x1x32xf32> to vector<1x32xf32>
    %c0_7 = arith.constant 0 : index
    %c0_8 = arith.constant 0 : index
    %c0_9 = arith.constant 0 : index
    %13 = vector.load %arg8[%c0_7, %c0_8, %c0_9] : memref<1x1x32xf32, #tpu.memory_space<vmem>>, vector<1x1x32xf32>
    %14 = vector.shape_cast %13 : vector<1x1x32xf32> to vector<1x32xf32>
    %cst_10 = arith.constant dense<0.000000e+00> : vector<16xf32>
    %15 = vector.multi_reduction <add>, %4, %cst_10 [1] : vector<16x32xf32> to vector<16xf32>
    %16 = vector.shape_cast %15 : vector<16xf32> to vector<16x1xf32>
    %cst_11 = arith.constant 3.200000e+01 : f32
    %17 = vector.broadcast %cst_11 : f32 to vector<16x1xf32>
    %18 = arith.divf %16, %17 : vector<16x1xf32>
    %19 = vector.broadcast %18 : vector<16x1xf32> to vector<16x32xf32>
    %20 = arith.subf %4, %19 : vector<16x32xf32>
    %21 = arith.mulf %20, %20 : vector<16x32xf32>
    %cst_12 = arith.constant dense<0.000000e+00> : vector<16xf32>
    %22 = vector.multi_reduction <add>, %21, %cst_12 [1] : vector<16x32xf32> to vector<16xf32>
    %23 = vector.shape_cast %22 : vector<16xf32> to vector<16x1xf32>
    %cst_13 = arith.constant 3.200000e+01 : f32
    %24 = vector.broadcast %cst_13 : f32 to vector<16x1xf32>
    %25 = arith.divf %23, %24 : vector<16x1xf32>
    %26 = vector.broadcast %18 : vector<16x1xf32> to vector<16x32xf32>
    %27 = arith.subf %4, %26 : vector<16x32xf32>
    %cst_14 = arith.constant 9.99999997E-7 : f32
    %28 = vector.broadcast %cst_14 : f32 to vector<16x1xf32>
    %29 = arith.addf %25, %28 : vector<16x1xf32>
    %30 = math.rsqrt %29 : vector<16x1xf32>
    %31 = vector.broadcast %30 : vector<16x1xf32> to vector<16x32xf32>
    %32 = arith.mulf %27, %31 : vector<16x32xf32>
    %33 = vector.broadcast %12 : vector<1x32xf32> to vector<16x32xf32>
    %34 = arith.mulf %32, %33 : vector<16x32xf32>
    %35 = vector.broadcast %14 : vector<1x32xf32> to vector<16x32xf32>
    %36 = arith.addf %34, %35 : vector<16x32xf32>
    %37 = arith.truncf %36 : vector<16x32xf32> to vector<16x32xbf16>
    %c0_15 = arith.constant 0 : index
    %c0_16 = arith.constant 0 : index
    %c0_17 = arith.constant 0 : index
    %38 = vector.load %arg9[%c0_15, %c0_16, %c0_17] : memref<1x32x96xf32, #tpu.memory_space<vmem>>, vector<1x32x96xf32>
    %39 = vector.shape_cast %38 : vector<1x32x96xf32> to vector<32x96xf32>
    %40 = arith.truncf %39 : vector<32x96xf32> to vector<32x96xbf16>
    %cst_18 = arith.constant dense<0.000000e+00> : vector<16x96xf32>
    %41 = tpu.matmul %37, %40, %cst_18 {dimension_numbers = #tpu.dot_dimension_numbers<[1], [0], [0], [1], [0, 0, 1, 1], [], []>} : vector<16x32xbf16>, vector<32x96xbf16>, vector<16x96xf32> -> vector<16x96xf32>
    %c0_19 = arith.constant 0 : index
    %c0_20 = arith.constant 0 : index
    %c0_21 = arith.constant 0 : index
    %42 = vector.load %arg10[%c0_19, %c0_20, %c0_21] : memref<1x1x96xf32, #tpu.memory_space<vmem>>, vector<1x1x96xf32>
    %43 = vector.shape_cast %42 : vector<1x1x96xf32> to vector<1x96xf32>
    %44 = vector.broadcast %43 : vector<1x96xf32> to vector<16x96xf32>
    %45 = arith.addf %41, %44 : vector<16x96xf32>
    %46 = arith.truncf %45 : vector<16x96xf32> to vector<16x96xbf16>
    %47 = vector.extract_strided_slice %46 {offsets = [0, 0], sizes = [16, 32], strides = [1, 1]} : vector<16x96xbf16> to vector<16x32xbf16>
    %48 = vector.extract_strided_slice %46 {offsets = [0, 32], sizes = [16, 32], strides = [1, 1]} : vector<16x96xbf16> to vector<16x32xbf16>
    %49 = vector.extract_strided_slice %46 {offsets = [0, 64], sizes = [16, 32], strides = [1, 1]} : vector<16x96xbf16> to vector<16x32xbf16>
    %50 = vector.extract_strided_slice %47 {offsets = [0, 0], sizes = [16, 8], strides = [1, 1]} : vector<16x32xbf16> to vector<16x8xbf16>
    %51 = vector.shape_cast %50 : vector<16x8xbf16> to vector<2x8x8xbf16>
    %52 = vector.extract_strided_slice %48 {offsets = [0, 0], sizes = [16, 8], strides = [1, 1]} : vector<16x32xbf16> to vector<16x8xbf16>
    %53 = vector.shape_cast %52 : vector<16x8xbf16> to vector<2x8x8xbf16>
    %54 = vector.extract_strided_slice %49 {offsets = [0, 0], sizes = [16, 8], strides = [1, 1]} : vector<16x32xbf16> to vector<16x8xbf16>
    %55 = vector.shape_cast %54 : vector<16x8xbf16> to vector<2x8x8xbf16>
    "tpu.trace_start"() <{level = 10 : i32, message = "bqd,bkd->bqk"}> : () -> ()
    %cst_22 = arith.constant dense<0.000000e+00> : vector<2x8x8xf32>
    %56 = tpu.matmul %51, %53, %cst_22 {dimension_numbers = #tpu.dot_dimension_numbers<[2], [2], [1], [1], [0, 0, 0, 1, 1, 1], [0], [0]>} : vector<2x8x8xbf16>, vector<2x8x8xbf16>, vector<2x8x8xf32> -> vector<2x8x8xf32>
    "tpu.trace_stop"() : () -> ()
    %cst_23 = arith.constant 0.353553385 : f32
    %57 = vector.broadcast %cst_23 : f32 to vector<2x8x8xf32>
    %58 = arith.mulf %56, %57 : vector<2x8x8xf32>
    %59 = vector.broadcast %10 : vector<1x1x8xf32> to vector<2x8x8xf32>
    %60 = arith.addf %58, %59 : vector<2x8x8xf32>
    %cst_24 = arith.constant dense<0xFF800000> : vector<2x8xf32>
    %61 = vector.multi_reduction <maximumf>, %60, %cst_24 [2] : vector<2x8x8xf32> to vector<2x8xf32>
    %62 = vector.shape_cast %61 : vector<2x8xf32> to vector<2x8x1xf32>
    %63 = vector.broadcast %62 : vector<2x8x1xf32> to vector<2x8x8xf32>
    %64 = arith.subf %60, %63 : vector<2x8x8xf32>
    %65 = math.exp %64 : vector<2x8x8xf32>
    %cst_25 = arith.constant dense<0.000000e+00> : vector<2x8xf32>
    %66 = vector.multi_reduction <add>, %65, %cst_25 [2] : vector<2x8x8xf32> to vector<2x8xf32>
    %67 = vector.shape_cast %66 : vector<2x8xf32> to vector<2x8x1xf32>
    %68 = tpu.reciprocal %67 {approx = true} : vector<2x8x1xf32> -> vector<2x8x1xf32>
    %69 = vector.broadcast %68 : vector<2x8x1xf32> to vector<2x8x8xf32>
    %70 = arith.mulf %65, %69 : vector<2x8x8xf32>
    %71 = arith.truncf %70 : vector<2x8x8xf32> to vector<2x8x8xbf16>
    "tpu.trace_start"() <{level = 10 : i32, message = "bqk,bkd->bqd"}> : () -> ()
    %cst_26 = arith.constant dense<0.000000e+00> : vector<2x8x8xf32>
    %72 = tpu.matmul %71, %55, %cst_26 {dimension_numbers = #tpu.dot_dimension_numbers<[2], [1], [1], [2], [0, 0, 0, 1, 1, 2], [0], [0]>} : vector<2x8x8xbf16>, vector<2x8x8xbf16>, vector<2x8x8xf32> -> vector<2x8x8xf32>
    "tpu.trace_stop"() : () -> ()
    %73 = vector.shape_cast %72 : vector<2x8x8xf32> to vector<16x8xf32>
    %74 = vector.extract_strided_slice %47 {offsets = [0, 8], sizes = [16, 8], strides = [1, 1]} : vector<16x32xbf16> to vector<16x8xbf16>
    %75 = vector.shape_cast %74 : vector<16x8xbf16> to vector<2x8x8xbf16>
    %76 = vector.extract_strided_slice %48 {offsets = [0, 8], sizes = [16, 8], strides = [1, 1]} : vector<16x32xbf16> to vector<16x8xbf16>
    %77 = vector.shape_cast %76 : vector<16x8xbf16> to vector<2x8x8xbf16>
    %78 = vector.extract_strided_slice %49 {offsets = [0, 8], sizes = [16, 8], strides = [1, 1]} : vector<16x32xbf16> to vector<16x8xbf16>
    %79 = vector.shape_cast %78 : vector<16x8xbf16> to vector<2x8x8xbf16>
    "tpu.trace_start"() <{level = 10 : i32, message = "bqd,bkd->bqk"}> : () -> ()
    %cst_27 = arith.constant dense<0.000000e+00> : vector<2x8x8xf32>
    %80 = tpu.matmul %75, %77, %cst_27 {dimension_numbers = #tpu.dot_dimension_numbers<[2], [2], [1], [1], [0, 0, 0, 1, 1, 1], [0], [0]>} : vector<2x8x8xbf16>, vector<2x8x8xbf16>, vector<2x8x8xf32> -> vector<2x8x8xf32>
    "tpu.trace_stop"() : () -> ()
    %cst_28 = arith.constant 0.353553385 : f32
    %81 = vector.broadcast %cst_28 : f32 to vector<2x8x8xf32>
    %82 = arith.mulf %80, %81 : vector<2x8x8xf32>
    %83 = vector.broadcast %10 : vector<1x1x8xf32> to vector<2x8x8xf32>
    %84 = arith.addf %82, %83 : vector<2x8x8xf32>
    %cst_29 = arith.constant dense<0xFF800000> : vector<2x8xf32>
    %85 = vector.multi_reduction <maximumf>, %84, %cst_29 [2] : vector<2x8x8xf32> to vector<2x8xf32>
    %86 = vector.shape_cast %85 : vector<2x8xf32> to vector<2x8x1xf32>
    %87 = vector.broadcast %86 : vector<2x8x1xf32> to vector<2x8x8xf32>
    %88 = arith.subf %84, %87 : vector<2x8x8xf32>
    %89 = math.exp %88 : vector<2x8x8xf32>
    %cst_30 = arith.constant dense<0.000000e+00> : vector<2x8xf32>
    %90 = vector.multi_reduction <add>, %89, %cst_30 [2] : vector<2x8x8xf32> to vector<2x8xf32>
    %91 = vector.shape_cast %90 : vector<2x8xf32> to vector<2x8x1xf32>
    %92 = tpu.reciprocal %91 {approx = true} : vector<2x8x1xf32> -> vector<2x8x1xf32>
    %93 = vector.broadcast %92 : vector<2x8x1xf32> to vector<2x8x8xf32>
    %94 = arith.mulf %89, %93 : vector<2x8x8xf32>
    %95 = arith.truncf %94 : vector<2x8x8xf32> to vector<2x8x8xbf16>
    "tpu.trace_start"() <{level = 10 : i32, message = "bqk,bkd->bqd"}> : () -> ()
    %cst_31 = arith.constant dense<0.000000e+00> : vector<2x8x8xf32>
    %96 = tpu.matmul %95, %79, %cst_31 {dimension_numbers = #tpu.dot_dimension_numbers<[2], [1], [1], [2], [0, 0, 0, 1, 1, 2], [0], [0]>} : vector<2x8x8xbf16>, vector<2x8x8xbf16>, vector<2x8x8xf32> -> vector<2x8x8xf32>
    "tpu.trace_stop"() : () -> ()
    %97 = vector.shape_cast %96 : vector<2x8x8xf32> to vector<16x8xf32>
    %98 = vector.extract_strided_slice %47 {offsets = [0, 16], sizes = [16, 8], strides = [1, 1]} : vector<16x32xbf16> to vector<16x8xbf16>
    %99 = vector.shape_cast %98 : vector<16x8xbf16> to vector<2x8x8xbf16>
    %100 = vector.extract_strided_slice %48 {offsets = [0, 16], sizes = [16, 8], strides = [1, 1]} : vector<16x32xbf16> to vector<16x8xbf16>
    %101 = vector.shape_cast %100 : vector<16x8xbf16> to vector<2x8x8xbf16>
    %102 = vector.extract_strided_slice %49 {offsets = [0, 16], sizes = [16, 8], strides = [1, 1]} : vector<16x32xbf16> to vector<16x8xbf16>
    %103 = vector.shape_cast %102 : vector<16x8xbf16> to vector<2x8x8xbf16>
    "tpu.trace_start"() <{level = 10 : i32, message = "bqd,bkd->bqk"}> : () -> ()
    %cst_32 = arith.constant dense<0.000000e+00> : vector<2x8x8xf32>
    %104 = tpu.matmul %99, %101, %cst_32 {dimension_numbers = #tpu.dot_dimension_numbers<[2], [2], [1], [1], [0, 0, 0, 1, 1, 1], [0], [0]>} : vector<2x8x8xbf16>, vector<2x8x8xbf16>, vector<2x8x8xf32> -> vector<2x8x8xf32>
    "tpu.trace_stop"() : () -> ()
    %cst_33 = arith.constant 0.353553385 : f32
    %105 = vector.broadcast %cst_33 : f32 to vector<2x8x8xf32>
    %106 = arith.mulf %104, %105 : vector<2x8x8xf32>
    %107 = vector.broadcast %10 : vector<1x1x8xf32> to vector<2x8x8xf32>
    %108 = arith.addf %106, %107 : vector<2x8x8xf32>
    %cst_34 = arith.constant dense<0xFF800000> : vector<2x8xf32>
    %109 = vector.multi_reduction <maximumf>, %108, %cst_34 [2] : vector<2x8x8xf32> to vector<2x8xf32>
    %110 = vector.shape_cast %109 : vector<2x8xf32> to vector<2x8x1xf32>
    %111 = vector.broadcast %110 : vector<2x8x1xf32> to vector<2x8x8xf32>
    %112 = arith.subf %108, %111 : vector<2x8x8xf32>
    %113 = math.exp %112 : vector<2x8x8xf32>
    %cst_35 = arith.constant dense<0.000000e+00> : vector<2x8xf32>
    %114 = vector.multi_reduction <add>, %113, %cst_35 [2] : vector<2x8x8xf32> to vector<2x8xf32>
    %115 = vector.shape_cast %114 : vector<2x8xf32> to vector<2x8x1xf32>
    %116 = tpu.reciprocal %115 {approx = true} : vector<2x8x1xf32> -> vector<2x8x1xf32>
    %117 = vector.broadcast %116 : vector<2x8x1xf32> to vector<2x8x8xf32>
    %118 = arith.mulf %113, %117 : vector<2x8x8xf32>
    %119 = arith.truncf %118 : vector<2x8x8xf32> to vector<2x8x8xbf16>
    "tpu.trace_start"() <{level = 10 : i32, message = "bqk,bkd->bqd"}> : () -> ()
    %cst_36 = arith.constant dense<0.000000e+00> : vector<2x8x8xf32>
    %120 = tpu.matmul %119, %103, %cst_36 {dimension_numbers = #tpu.dot_dimension_numbers<[2], [1], [1], [2], [0, 0, 0, 1, 1, 2], [0], [0]>} : vector<2x8x8xbf16>, vector<2x8x8xbf16>, vector<2x8x8xf32> -> vector<2x8x8xf32>
    "tpu.trace_stop"() : () -> ()
    %121 = vector.shape_cast %120 : vector<2x8x8xf32> to vector<16x8xf32>
    %122 = vector.extract_strided_slice %47 {offsets = [0, 24], sizes = [16, 8], strides = [1, 1]} : vector<16x32xbf16> to vector<16x8xbf16>
    %123 = vector.shape_cast %122 : vector<16x8xbf16> to vector<2x8x8xbf16>
    %124 = vector.extract_strided_slice %48 {offsets = [0, 24], sizes = [16, 8], strides = [1, 1]} : vector<16x32xbf16> to vector<16x8xbf16>
    %125 = vector.shape_cast %124 : vector<16x8xbf16> to vector<2x8x8xbf16>
    %126 = vector.extract_strided_slice %49 {offsets = [0, 24], sizes = [16, 8], strides = [1, 1]} : vector<16x32xbf16> to vector<16x8xbf16>
    %127 = vector.shape_cast %126 : vector<16x8xbf16> to vector<2x8x8xbf16>
    "tpu.trace_start"() <{level = 10 : i32, message = "bqd,bkd->bqk"}> : () -> ()
    %cst_37 = arith.constant dense<0.000000e+00> : vector<2x8x8xf32>
    %128 = tpu.matmul %123, %125, %cst_37 {dimension_numbers = #tpu.dot_dimension_numbers<[2], [2], [1], [1], [0, 0, 0, 1, 1, 1], [0], [0]>} : vector<2x8x8xbf16>, vector<2x8x8xbf16>, vector<2x8x8xf32> -> vector<2x8x8xf32>
    "tpu.trace_stop"() : () -> ()
    %cst_38 = arith.constant 0.353553385 : f32
    %129 = vector.broadcast %cst_38 : f32 to vector<2x8x8xf32>
    %130 = arith.mulf %128, %129 : vector<2x8x8xf32>
    %131 = vector.broadcast %10 : vector<1x1x8xf32> to vector<2x8x8xf32>
    %132 = arith.addf %130, %131 : vector<2x8x8xf32>
    %cst_39 = arith.constant dense<0xFF800000> : vector<2x8xf32>
    %133 = vector.multi_reduction <maximumf>, %132, %cst_39 [2] : vector<2x8x8xf32> to vector<2x8xf32>
    %134 = vector.shape_cast %133 : vector<2x8xf32> to vector<2x8x1xf32>
    %135 = vector.broadcast %134 : vector<2x8x1xf32> to vector<2x8x8xf32>
    %136 = arith.subf %132, %135 : vector<2x8x8xf32>
    %137 = math.exp %136 : vector<2x8x8xf32>
    %cst_40 = arith.constant dense<0.000000e+00> : vector<2x8xf32>
    %138 = vector.multi_reduction <add>, %137, %cst_40 [2] : vector<2x8x8xf32> to vector<2x8xf32>
    %139 = vector.shape_cast %138 : vector<2x8xf32> to vector<2x8x1xf32>
    %140 = tpu.reciprocal %139 {approx = true} : vector<2x8x1xf32> -> vector<2x8x1xf32>
    %141 = vector.broadcast %140 : vector<2x8x1xf32> to vector<2x8x8xf32>
    %142 = arith.mulf %137, %141 : vector<2x8x8xf32>
    %143 = arith.truncf %142 : vector<2x8x8xf32> to vector<2x8x8xbf16>
    "tpu.trace_start"() <{level = 10 : i32, message = "bqk,bkd->bqd"}> : () -> ()
    %cst_41 = arith.constant dense<0.000000e+00> : vector<2x8x8xf32>
    %144 = tpu.matmul %143, %127, %cst_41 {dimension_numbers = #tpu.dot_dimension_numbers<[2], [1], [1], [2], [0, 0, 0, 1, 1, 2], [0], [0]>} : vector<2x8x8xbf16>, vector<2x8x8xbf16>, vector<2x8x8xf32> -> vector<2x8x8xf32>
    "tpu.trace_stop"() : () -> ()
    %145 = vector.shape_cast %144 : vector<2x8x8xf32> to vector<16x8xf32>
    %146 = tpu.concatenate %73, %97, %121, %145 in 1 : vector<16x8xf32>, vector<16x8xf32>, vector<16x8xf32>, vector<16x8xf32> -> vector<16x32xf32>
    %147 = arith.truncf %146 : vector<16x32xf32> to vector<16x32xbf16>
    %c0_42 = arith.constant 0 : index
    %c0_43 = arith.constant 0 : index
    %c0_44 = arith.constant 0 : index
    %148 = vector.load %arg11[%c0_42, %c0_43, %c0_44] : memref<1x32x32xf32, #tpu.memory_space<vmem>>, vector<1x32x32xf32>
    %149 = vector.shape_cast %148 : vector<1x32x32xf32> to vector<32x32xf32>
    %150 = arith.truncf %149 : vector<32x32xf32> to vector<32x32xbf16>
    %cst_45 = arith.constant dense<0.000000e+00> : vector<16x32xf32>
    %151 = tpu.matmul %147, %150, %cst_45 {dimension_numbers = #tpu.dot_dimension_numbers<[1], [0], [0], [1], [0, 0, 1, 1], [], []>} : vector<16x32xbf16>, vector<32x32xbf16>, vector<16x32xf32> -> vector<16x32xf32>
    %c0_46 = arith.constant 0 : index
    %c0_47 = arith.constant 0 : index
    %c0_48 = arith.constant 0 : index
    %152 = vector.load %arg12[%c0_46, %c0_47, %c0_48] : memref<1x1x32xf32, #tpu.memory_space<vmem>>, vector<1x1x32xf32>
    %153 = vector.shape_cast %152 : vector<1x1x32xf32> to vector<1x32xf32>
    %154 = vector.broadcast %153 : vector<1x32xf32> to vector<16x32xf32>
    %155 = arith.addf %151, %154 : vector<16x32xf32>
    %156 = arith.addf %4, %155 : vector<16x32xf32>
    %c0_49 = arith.constant 0 : index
    %c0_50 = arith.constant 0 : index
    %c0_51 = arith.constant 0 : index
    %157 = vector.load %arg13[%c0_49, %c0_50, %c0_51] : memref<1x1x32xf32, #tpu.memory_space<vmem>>, vector<1x1x32xf32>
    %158 = vector.shape_cast %157 : vector<1x1x32xf32> to vector<1x32xf32>
    %c0_52 = arith.constant 0 : index
    %c0_53 = arith.constant 0 : index
    %c0_54 = arith.constant 0 : index
    %159 = vector.load %arg14[%c0_52, %c0_53, %c0_54] : memref<1x1x32xf32, #tpu.memory_space<vmem>>, vector<1x1x32xf32>
    %160 = vector.shape_cast %159 : vector<1x1x32xf32> to vector<1x32xf32>
    %cst_55 = arith.constant dense<0.000000e+00> : vector<16xf32>
    %161 = vector.multi_reduction <add>, %156, %cst_55 [1] : vector<16x32xf32> to vector<16xf32>
    %162 = vector.shape_cast %161 : vector<16xf32> to vector<16x1xf32>
    %cst_56 = arith.constant 3.200000e+01 : f32
    %163 = vector.broadcast %cst_56 : f32 to vector<16x1xf32>
    %164 = arith.divf %162, %163 : vector<16x1xf32>
    %165 = vector.broadcast %164 : vector<16x1xf32> to vector<16x32xf32>
    %166 = arith.subf %156, %165 : vector<16x32xf32>
    %167 = arith.mulf %166, %166 : vector<16x32xf32>
    %cst_57 = arith.constant dense<0.000000e+00> : vector<16xf32>
    %168 = vector.multi_reduction <add>, %167, %cst_57 [1] : vector<16x32xf32> to vector<16xf32>
    %169 = vector.shape_cast %168 : vector<16xf32> to vector<16x1xf32>
    %cst_58 = arith.constant 3.200000e+01 : f32
    %170 = vector.broadcast %cst_58 : f32 to vector<16x1xf32>
    %171 = arith.divf %169, %170 : vector<16x1xf32>
    %172 = vector.broadcast %164 : vector<16x1xf32> to vector<16x32xf32>
    %173 = arith.subf %156, %172 : vector<16x32xf32>
    %cst_59 = arith.constant 9.99999997E-7 : f32
    %174 = vector.broadcast %cst_59 : f32 to vector<16x1xf32>
    %175 = arith.addf %171, %174 : vector<16x1xf32>
    %176 = math.rsqrt %175 : vector<16x1xf32>
    %177 = vector.broadcast %176 : vector<16x1xf32> to vector<16x32xf32>
    %178 = arith.mulf %173, %177 : vector<16x32xf32>
    %179 = vector.broadcast %158 : vector<1x32xf32> to vector<16x32xf32>
    %180 = arith.mulf %178, %179 : vector<16x32xf32>
    %181 = vector.broadcast %160 : vector<1x32xf32> to vector<16x32xf32>
    %182 = arith.addf %180, %181 : vector<16x32xf32>
    %183 = arith.truncf %182 : vector<16x32xf32> to vector<16x32xbf16>
    %c0_60 = arith.constant 0 : index
    %c0_61 = arith.constant 0 : index
    %c0_62 = arith.constant 0 : index
    %184 = vector.load %arg15[%c0_60, %c0_61, %c0_62] : memref<1x32x128xf32, #tpu.memory_space<vmem>>, vector<1x32x128xf32>
    %185 = vector.shape_cast %184 : vector<1x32x128xf32> to vector<32x128xf32>
    %186 = arith.truncf %185 : vector<32x128xf32> to vector<32x128xbf16>
    %cst_63 = arith.constant dense<0.000000e+00> : vector<16x128xf32>
    %187 = tpu.matmul %183, %186, %cst_63 {dimension_numbers = #tpu.dot_dimension_numbers<[1], [0], [0], [1], [0, 0, 1, 1], [], []>} : vector<16x32xbf16>, vector<32x128xbf16>, vector<16x128xf32> -> vector<16x128xf32>
    %c0_64 = arith.constant 0 : index
    %c0_65 = arith.constant 0 : index
    %c0_66 = arith.constant 0 : index
    %188 = vector.load %arg16[%c0_64, %c0_65, %c0_66] : memref<1x1x128xf32, #tpu.memory_space<vmem>>, vector<1x1x128xf32>
    %189 = vector.shape_cast %188 : vector<1x1x128xf32> to vector<1x128xf32>
    %190 = vector.broadcast %189 : vector<1x128xf32> to vector<16x128xf32>
    %191 = arith.addf %187, %190 : vector<16x128xf32>
    %192 = arith.mulf %191, %191 : vector<16x128xf32>
    %193 = arith.mulf %191, %192 : vector<16x128xf32>
    %cst_67 = arith.constant 4.471500e-02 : f32
    %194 = vector.broadcast %cst_67 : f32 to vector<16x128xf32>
    %195 = arith.mulf %194, %193 : vector<16x128xf32>
    %196 = arith.addf %191, %195 : vector<16x128xf32>
    %cst_68 = arith.constant 0.797884583 : f32
    %197 = vector.broadcast %cst_68 : f32 to vector<16x128xf32>
    %198 = arith.mulf %197, %196 : vector<16x128xf32>
    %199 = math.tanh %198 : vector<16x128xf32>
    %cst_69 = arith.constant 1.000000e+00 : f32
    %200 = vector.broadcast %cst_69 : f32 to vector<16x128xf32>
    %201 = arith.addf %200, %199 : vector<16x128xf32>
    %cst_70 = arith.constant 5.000000e-01 : f32
    %202 = vector.broadcast %cst_70 : f32 to vector<16x128xf32>
    %203 = arith.mulf %202, %201 : vector<16x128xf32>
    %204 = arith.mulf %191, %203 : vector<16x128xf32>
    %205 = arith.truncf %204 : vector<16x128xf32> to vector<16x128xbf16>
    %c0_71 = arith.constant 0 : index
    %c0_72 = arith.constant 0 : index
    %c0_73 = arith.constant 0 : index
    %206 = vector.load %arg17[%c0_71, %c0_72, %c0_73] : memref<1x128x32xf32, #tpu.memory_space<vmem>>, vector<1x128x32xf32>
    %207 = vector.shape_cast %206 : vector<1x128x32xf32> to vector<128x32xf32>
    %208 = arith.truncf %207 : vector<128x32xf32> to vector<128x32xbf16>
    %cst_74 = arith.constant dense<0.000000e+00> : vector<16x32xf32>
    %209 = tpu.matmul %205, %208, %cst_74 {dimension_numbers = #tpu.dot_dimension_numbers<[1], [0], [0], [1], [0, 0, 1, 1], [], []>} : vector<16x128xbf16>, vector<128x32xbf16>, vector<16x32xf32> -> vector<16x32xf32>
    %210 = arith.addf %156, %209 : vector<16x32xf32>
    %c0_75 = arith.constant 0 : index
    %c0_76 = arith.constant 0 : index
    %c0_77 = arith.constant 0 : index
    %211 = vector.load %arg18[%c0_75, %c0_76, %c0_77] : memref<1x1x32xf32, #tpu.memory_space<vmem>>, vector<1x1x32xf32>
    %212 = vector.shape_cast %211 : vector<1x1x32xf32> to vector<1x32xf32>
    %213 = vector.broadcast %212 : vector<1x32xf32> to vector<16x32xf32>
    %214 = arith.addf %210, %213 : vector<16x32xf32>
    %c1_i32 = arith.constant 1 : i32
    %215 = arith.cmpi slt, %arg0, %c1_i32 : i32
    %216 = arith.extui %215 : i1 to i32
    %c0_i32_78 = arith.constant 0 : i32
    %217 = arith.cmpi ne, %216, %c0_i32_78 : i32
    scf.if %217 {
      %221 = vector.shape_cast %214 : vector<16x32xf32> to vector<2x8x32xf32>
      %c0_81 = arith.constant 0 : index
      %c0_82 = arith.constant 0 : index
      %c0_83 = arith.constant 0 : index
      %222 = vector.load %arg19[%c0_81, %c0_82, %c0_83] : memref<2x8x32xf32, #tpu.memory_space<vmem>>, vector<2x8x32xf32>
      tpu.vector_store %arg19[%c0_81, %c0_82, %c0_83], %221 {strides = array<i32>} : memref<2x8x32xf32, #tpu.memory_space<vmem>>, vector<2x8x32xf32>,
    } else {
    }
    %c1_i32_79 = arith.constant 1 : i32
    %218 = arith.cmpi eq, %arg0, %c1_i32_79 : i32
    %219 = arith.extui %218 : i1 to i32
    %c0_i32_80 = arith.constant 0 : i32
    %220 = arith.cmpi ne, %219, %c0_i32_80 : i32
    scf.if %220 {
      %c0_81 = arith.constant 0 : index
      %c0_82 = arith.constant 0 : index
      %221 = vector.load %arg5[%c0_81, %c0_82] : memref<1x32xf32, #tpu.memory_space<vmem>>, vector<1x32xf32>
      %c0_83 = arith.constant 0 : index
      %c0_84 = arith.constant 0 : index
      %222 = vector.load %arg6[%c0_83, %c0_84] : memref<1x32xf32, #tpu.memory_space<vmem>>, vector<1x32xf32>
      %cst_85 = arith.constant dense<0.000000e+00> : vector<16xf32>
      %223 = vector.multi_reduction <add>, %214, %cst_85 [1] : vector<16x32xf32> to vector<16xf32>
      %224 = vector.shape_cast %223 : vector<16xf32> to vector<16x1xf32>
      %cst_86 = arith.constant 3.200000e+01 : f32
      %225 = vector.broadcast %cst_86 : f32 to vector<16x1xf32>
      %226 = arith.divf %224, %225 : vector<16x1xf32>
      %227 = vector.broadcast %226 : vector<16x1xf32> to vector<16x32xf32>
      %228 = arith.subf %214, %227 : vector<16x32xf32>
      %229 = arith.mulf %228, %228 : vector<16x32xf32>
      %cst_87 = arith.constant dense<0.000000e+00> : vector<16xf32>
      %230 = vector.multi_reduction <add>, %229, %cst_87 [1] : vector<16x32xf32> to vector<16xf32>
      %231 = vector.shape_cast %230 : vector<16xf32> to vector<16x1xf32>
      %cst_88 = arith.constant 3.200000e+01 : f32
      %232 = vector.broadcast %cst_88 : f32 to vector<16x1xf32>
      %233 = arith.divf %231, %232 : vector<16x1xf32>
      %234 = vector.broadcast %226 : vector<16x1xf32> to vector<16x32xf32>
      %235 = arith.subf %214, %234 : vector<16x32xf32>
      %cst_89 = arith.constant 9.99999997E-7 : f32
      %236 = vector.broadcast %cst_89 : f32 to vector<16x1xf32>
      %237 = arith.addf %233, %236 : vector<16x1xf32>
      %238 = math.rsqrt %237 : vector<16x1xf32>
      %239 = vector.broadcast %238 : vector<16x1xf32> to vector<16x32xf32>
      %240 = arith.mulf %235, %239 : vector<16x32xf32>
      %241 = vector.broadcast %221 : vector<1x32xf32> to vector<16x32xf32>
      %242 = arith.mulf %240, %241 : vector<16x32xf32>
      %243 = vector.broadcast %222 : vector<1x32xf32> to vector<16x32xf32>
      %244 = arith.addf %242, %243 : vector<16x32xf32>
      %245 = vector.shape_cast %244 : vector<16x32xf32> to vector<2x8x32xf32>
      %c0_90 = arith.constant 0 : index
      %c0_91 = arith.constant 0 : index
      %c0_92 = arith.constant 0 : index
      %246 = vector.load %arg19[%c0_90, %c0_91, %c0_92] : memref<2x8x32xf32, #tpu.memory_space<vmem>>, vector<2x8x32xf32>
      tpu.vector_store %arg19[%c0_90, %c0_91, %c0_92], %245 {strides = array<i32>} : memref<2x8x32xf32, #tpu.memory_space<vmem>>, vector<2x8x32xf32>,
    } else {
    }
    return
  }
  func.func @transform_0(%arg0: i32) -> (i32, i32) {
    %c0_i32 = arith.constant 0 : i32
    %c0_i32_0 = arith.constant 0 : i32
    %c0_i32_1 = arith.constant 0 : i32
    return %c0_i32, %c0_i32_0 : i32, i32
  }
  func.func @transform_1(%arg0: i32) -> (i32, i32) {
    %c0_i32 = arith.constant 0 : i32
    %c0_i32_0 = arith.constant 0 : i32
    %c0_i32_1 = arith.constant 0 : i32
    return %c0_i32, %c0_i32_0 : i32, i32
  }
  func.func @transform_2(%arg0: i32) -> (i32, i32) {
    %c0_i32 = arith.constant 0 : i32
    %c0_i32_0 = arith.constant 0 : i32
    %c0_i32_1 = arith.constant 0 : i32
    return %c0_i32, %c0_i32_0 : i32, i32
  }
  func.func @transform_3(%arg0: i32) -> (i32, i32) {
    %c0_i32 = arith.constant 0 : i32
    %c0_i32_0 = arith.constant 0 : i32
    %c0_i32_1 = arith.constant 0 : i32
    return %c0_i32, %c0_i32_0 : i32, i32
  }
  func.func @transform_4(%arg0: i32) -> (i32, i32) {
    %c0_i32 = arith.constant 0 : i32
    %c0_i32_0 = arith.constant 0 : i32
    %c0_i32_1 = arith.constant 0 : i32
    return %c0_i32, %c0_i32_0 : i32, i32
  }
  func.func @transform_5(%arg0: i32) -> (i32, i32) {
    %c0_i32 = arith.constant 0 : i32
    %c0_i32_0 = arith.constant 0 : i32
    %c0_i32_1 = arith.constant 0 : i32
    return %c0_i32, %c0_i32_0 : i32, i32
  }
  func.func @transform_6(%arg0: i32) -> (i32, i32, i32) {
    %c0_i32 = arith.constant 0 : i32
    %c0_i32_0 = arith.constant 0 : i32
    %c0_i32_1 = arith.constant 0 : i32
    return %arg0, %c0_i32, %c0_i32_0 : i32, i32, i32
  }
  func.func @transform_7(%arg0: i32) -> (i32, i32, i32) {
    %c0_i32 = arith.constant 0 : i32
    %c0_i32_0 = arith.constant 0 : i32
    %c0_i32_1 = arith.constant 0 : i32
    return %arg0, %c0_i32, %c0_i32_0 : i32, i32, i32
  }
  func.func @transform_8(%arg0: i32) -> (i32, i32, i32) {
    %c0_i32 = arith.constant 0 : i32
    %c0_i32_0 = arith.constant 0 : i32
    %c0_i32_1 = arith.constant 0 : i32
    return %arg0, %c0_i32, %c0_i32_0 : i32, i32, i32
  }
  func.func @transform_9(%arg0: i32) -> (i32, i32, i32) {
    %c0_i32 = arith.constant 0 : i32
    %c0_i32_0 = arith.constant 0 : i32
    %c0_i32_1 = arith.constant 0 : i32
    return %arg0, %c0_i32, %c0_i32_0 : i32, i32, i32
  }
  func.func @transform_10(%arg0: i32) -> (i32, i32, i32) {
    %c0_i32 = arith.constant 0 : i32
    %c0_i32_0 = arith.constant 0 : i32
    %c0_i32_1 = arith.constant 0 : i32
    return %arg0, %c0_i32, %c0_i32_0 : i32, i32, i32
  }
  func.func @transform_11(%arg0: i32) -> (i32, i32, i32) {
    %c0_i32 = arith.constant 0 : i32
    %c0_i32_0 = arith.constant 0 : i32
    %c0_i32_1 = arith.constant 0 : i32
    return %arg0, %c0_i32, %c0_i32_0 : i32, i32, i32
  }
  func.func @transform_12(%arg0: i32) -> (i32, i32, i32) {
    %c0_i32 = arith.constant 0 : i32
    %c0_i32_0 = arith.constant 0 : i32
    %c0_i32_1 = arith.constant 0 : i32
    return %arg0, %c0_i32, %c0_i32_0 : i32, i32, i32
  }
  func.func @transform_13(%arg0: i32) -> (i32, i32, i32) {
    %c0_i32 = arith.constant 0 : i32
    %c0_i32_0 = arith.constant 0 : i32
    %c0_i32_1 = arith.constant 0 : i32
    return %arg0, %c0_i32, %c0_i32_0 : i32, i32, i32
  }
  func.func @transform_14(%arg0: i32) -> (i32, i32, i32) {
    %c0_i32 = arith.constant 0 : i32
    %c0_i32_0 = arith.constant 0 : i32
    %c0_i32_1 = arith.constant 0 : i32
    return %arg0, %c0_i32, %c0_i32_0 : i32, i32, i32
  }
  func.func @transform_15(%arg0: i32) -> (i32, i32, i32) {
    %c0_i32 = arith.constant 0 : i32
    %c0_i32_0 = arith.constant 0 : i32
    %c0_i32_1 = arith.constant 0 : i32
    return %arg0, %c0_i32, %c0_i32_0 : i32, i32, i32
  }
  func.func @transform_16(%arg0: i32) -> (i32, i32, i32) {
    %c0_i32 = arith.constant 0 : i32
    %c0_i32_0 = arith.constant 0 : i32
    %c0_i32_1 = arith.constant 0 : i32
    return %arg0, %c0_i32, %c0_i32_0 : i32, i32, i32
  }
  func.func @transform_17(%arg0: i32) -> (i32, i32, i32) {
    %c0_i32 = arith.constant 0 : i32
    %c0_i32_0 = arith.constant 0 : i32
    %c0_i32_1 = arith.constant 0 : i32
    return %arg0, %c0_i32, %c0_i32_0 : i32, i32, i32
  }
  func.func @transform_18(%arg0: i32) -> (i32, i32, i32) {
    %c0_i32 = arith.constant 0 : i32
    %c0_i32_0 = arith.constant 0 : i32
    %c0_i32_1 = arith.constant 0 : i32
    %c0_i32_2 = arith.constant 0 : i32
    return %c0_i32, %c0_i32_0, %c0_i32_1 : i32, i32, i32
  }
}

module attributes {stable_mosaic.version = 11 : i64} {
  func.func @_text_stack_kernel(%arg0: i32, %arg1: memref<2x8x32xf32, #tpu.memory_space<vmem>>, %arg2: memref<8x32xf32, #tpu.memory_space<vmem>>, %arg3: memref<1x32xf32, #tpu.memory_space<vmem>>, %arg4: memref<1x32xf32, #tpu.memory_space<vmem>>, %arg5: memref<2x8x32xf32, #tpu.memory_space<vmem>>, %arg6: memref<2x8xf32, #tpu.memory_space<vmem>>, %arg7: memref<1x32x96xf32, #tpu.memory_space<vmem>>, %arg8: memref<1x1x96xf32, #tpu.memory_space<vmem>>, %arg9: memref<1x32x32xf32, #tpu.memory_space<vmem>>, %arg10: memref<1x1x32xf32, #tpu.memory_space<vmem>>, %arg11: memref<1x1x32xf32, #tpu.memory_space<vmem>>, %arg12: memref<1x1x32xf32, #tpu.memory_space<vmem>>, %arg13: memref<1x32x32xf32, #tpu.memory_space<vmem>>, %arg14: memref<1x1x32xf32, #tpu.memory_space<vmem>>, %arg15: memref<1x32x64xf32, #tpu.memory_space<vmem>>, %arg16: memref<1x1x64xf32, #tpu.memory_space<vmem>>, %arg17: memref<1x32x32xf32, #tpu.memory_space<vmem>>, %arg18: memref<1x1x32xf32, #tpu.memory_space<vmem>>, %arg19: memref<1x1x32xf32, #tpu.memory_space<vmem>>, %arg20: memref<1x1x32xf32, #tpu.memory_space<vmem>>, %arg21: memref<1x32x64xf32, #tpu.memory_space<vmem>>, %arg22: memref<1x1x64xf32, #tpu.memory_space<vmem>>, %arg23: memref<1x64x32xf32, #tpu.memory_space<vmem>>, %arg24: memref<1x1x32xf32, #tpu.memory_space<vmem>>, %arg25: memref<1x1x32xf32, #tpu.memory_space<vmem>>, %arg26: memref<1x1x32xf32, #tpu.memory_space<vmem>>, %arg27: memref<32x32xf32, #tpu.memory_space<vmem>>, %arg28: memref<1x32xf32, #tpu.memory_space<vmem>>, %arg29: memref<1x32xf32, #tpu.memory_space<vmem>>, %arg30: memref<1x32xf32, #tpu.memory_space<vmem>>, %arg31: memref<32x128xf32, #tpu.memory_space<vmem>>, %arg32: memref<1x128xf32, #tpu.memory_space<vmem>>, %arg33: memref<2x8xi32, #tpu.memory_space<smem>>, %arg34: memref<1x1xf32, #tpu.memory_space<vmem>>, %arg35: memref<2x8x32xf32, #tpu.memory_space<vmem>>) attributes {dimension_semantics = [#tpu.dimension_semantics<arbitrary>], iteration_bounds = array<i64: 2>, scalar_prefetch = 0 : i64, scratch_operands = 1 : i64, tpu.core_type = #tpu.core_type<tc>, window_params = [{pipeline_mode = #tpu.pipeline_mode<synchronous>, transform_indices = @transform_0, window_bounds = array<i64: 2, 8, 32>}, {pipeline_mode = #tpu.pipeline_mode<synchronous>, transform_indices = @transform_1, window_bounds = array<i64: 8, 32>}, {pipeline_mode = #tpu.pipeline_mode<synchronous>, transform_indices = @transform_2, window_bounds = array<i64: 1, 32>}, {pipeline_mode = #tpu.pipeline_mode<synchronous>, transform_indices = @transform_3, window_bounds = array<i64: 1, 32>}, {pipeline_mode = #tpu.pipeline_mode<synchronous>, transform_indices = @transform_4, window_bounds = array<i64: 2, 8, 32>}, {pipeline_mode = #tpu.pipeline_mode<synchronous>, transform_indices = @transform_5, window_bounds = array<i64: 2, 8>}, {transform_indices = @transform_6, window_bounds = array<i64: 1, 32, 96>}, {transform_indices = @transform_7, window_bounds = array<i64: 1, 1, 96>}, {transform_indices = @transform_8, window_bounds = array<i64: 1, 32, 32>}, {transform_indices = @transform_9, window_bounds = array<i64: 1, 1, 32>}, {transform_indices = @transform_10, window_bounds = array<i64: 1, 1, 32>}, {transform_indices = @transform_11, window_bounds = array<i64: 1, 1, 32>}, {transform_indices = @transform_12, window_bounds = array<i64: 1, 32, 32>}, {transform_indices = @transform_13, window_bounds = array<i64: 1, 1, 32>}, {transform_indices = @transform_14, window_bounds = array<i64: 1, 32, 64>}, {transform_indices = @transform_15, window_bounds = array<i64: 1, 1, 64>}, {transform_indices = @transform_16, window_bounds = array<i64: 1, 32, 32>}, {transform_indices = @transform_17, window_bounds = array<i64: 1, 1, 32>}, {transform_indices = @transform_18, window_bounds = array<i64: 1, 1, 32>}, {transform_indices = @transform_19, window_bounds = array<i64: 1, 1, 32>}, {transform_indices = @transform_20, window_bounds = array<i64: 1, 32, 64>}, {transform_indices = @transform_21, window_bounds = array<i64: 1, 1, 64>}, {transform_indices = @transform_22, window_bounds = array<i64: 1, 64, 32>}, {transform_indices = @transform_23, window_bounds = array<i64: 1, 1, 32>}, {transform_indices = @transform_24, window_bounds = array<i64: 1, 1, 32>}, {transform_indices = @transform_25, window_bounds = array<i64: 1, 1, 32>}, {pipeline_mode = #tpu.pipeline_mode<synchronous>, transform_indices = @transform_26, window_bounds = array<i64: 32, 32>}, {pipeline_mode = #tpu.pipeline_mode<synchronous>, transform_indices = @transform_27, window_bounds = array<i64: 1, 32>}, {pipeline_mode = #tpu.pipeline_mode<synchronous>, transform_indices = @transform_28, window_bounds = array<i64: 1, 32>}, {pipeline_mode = #tpu.pipeline_mode<synchronous>, transform_indices = @transform_29, window_bounds = array<i64: 1, 32>}, {pipeline_mode = #tpu.pipeline_mode<synchronous>, transform_indices = @transform_30, window_bounds = array<i64: 32, 128>}, {pipeline_mode = #tpu.pipeline_mode<synchronous>, transform_indices = @transform_31, window_bounds = array<i64: 1, 128>}, {transform_indices = @transform_32, window_bounds = array<i64: 2, 8>}, {pipeline_mode = #tpu.pipeline_mode<synchronous>, transform_indices = @transform_33, window_bounds = array<i64: 1, 1>}]} {
    %c0_i32 = arith.constant 0 : i32
    %0 = arith.cmpi eq, %arg0, %c0_i32 : i32
    %1 = arith.extui %0 : i1 to i32
    %c0_i32_0 = arith.constant 0 : i32
    %2 = arith.cmpi ne, %1, %c0_i32_0 : i32
    scf.if %2 {
      %c0_142 = arith.constant 0 : index
      %c0_143 = arith.constant 0 : index
      %c0_144 = arith.constant 0 : index
      %387 = vector.load %arg1[%c0_142, %c0_143, %c0_144] : memref<2x8x32xf32, #tpu.memory_space<vmem>>, vector<2x8x32xf32>
      %c0_145 = arith.constant 0 : index
      %c0_146 = arith.constant 0 : index
      %388 = vector.load %arg2[%c0_145, %c0_146] : memref<8x32xf32, #tpu.memory_space<vmem>>, vector<8x32xf32>
      %389 = vector.shape_cast %388 : vector<8x32xf32> to vector<1x8x32xf32>
      %390 = vector.broadcast %389 : vector<1x8x32xf32> to vector<2x8x32xf32>
      %391 = arith.addf %387, %390 : vector<2x8x32xf32>
      %392 = vector.shape_cast %391 : vector<2x8x32xf32> to vector<16x32xf32>
      %c0_147 = arith.constant 0 : index
      %c0_148 = arith.constant 0 : index
      %393 = vector.load %arg3[%c0_147, %c0_148] : memref<1x32xf32, #tpu.memory_space<vmem>>, vector<1x32xf32>
      %c0_149 = arith.constant 0 : index
      %c0_150 = arith.constant 0 : index
      %394 = vector.load %arg4[%c0_149, %c0_150] : memref<1x32xf32, #tpu.memory_space<vmem>>, vector<1x32xf32>
      %cst_151 = arith.constant dense<0.000000e+00> : vector<16xf32>
      %395 = vector.multi_reduction <add>, %392, %cst_151 [1] : vector<16x32xf32> to vector<16xf32>
      %396 = vector.shape_cast %395 : vector<16xf32> to vector<16x1xf32>
      %cst_152 = arith.constant 3.200000e+01 : f32
      %397 = vector.broadcast %cst_152 : f32 to vector<16x1xf32>
      %398 = arith.divf %396, %397 : vector<16x1xf32>
      %399 = vector.broadcast %398 : vector<16x1xf32> to vector<16x32xf32>
      %400 = arith.subf %392, %399 : vector<16x32xf32>
      %401 = arith.mulf %400, %400 : vector<16x32xf32>
      %cst_153 = arith.constant dense<0.000000e+00> : vector<16xf32>
      %402 = vector.multi_reduction <add>, %401, %cst_153 [1] : vector<16x32xf32> to vector<16xf32>
      %403 = vector.shape_cast %402 : vector<16xf32> to vector<16x1xf32>
      %cst_154 = arith.constant 3.200000e+01 : f32
      %404 = vector.broadcast %cst_154 : f32 to vector<16x1xf32>
      %405 = arith.divf %403, %404 : vector<16x1xf32>
      %406 = vector.broadcast %398 : vector<16x1xf32> to vector<16x32xf32>
      %407 = arith.subf %392, %406 : vector<16x32xf32>
      %cst_155 = arith.constant 9.99999996E-13 : f32
      %408 = vector.broadcast %cst_155 : f32 to vector<16x1xf32>
      %409 = arith.addf %405, %408 : vector<16x1xf32>
      %410 = math.rsqrt %409 : vector<16x1xf32>
      %411 = vector.broadcast %410 : vector<16x1xf32> to vector<16x32xf32>
      %412 = arith.mulf %407, %411 : vector<16x32xf32>
      %413 = vector.broadcast %393 : vector<1x32xf32> to vector<16x32xf32>
      %414 = arith.mulf %412, %413 : vector<16x32xf32>
      %415 = vector.broadcast %394 : vector<1x32xf32> to vector<16x32xf32>
      %416 = arith.addf %414, %415 : vector<16x32xf32>
      %417 = vector.shape_cast %416 : vector<16x32xf32> to vector<2x8x32xf32>
      %c0_156 = arith.constant 0 : index
      %c0_157 = arith.constant 0 : index
      %c0_158 = arith.constant 0 : index
      %418 = vector.load %arg35[%c0_156, %c0_157, %c0_158] : memref<2x8x32xf32, #tpu.memory_space<vmem>>, vector<2x8x32xf32>
      tpu.vector_store %arg35[%c0_156, %c0_157, %c0_158], %417 {strides = array<i32>} : memref<2x8x32xf32, #tpu.memory_space<vmem>>, vector<2x8x32xf32>,
      %cst_159 = arith.constant 0.000000e+00 : f32
      %419 = vector.broadcast %cst_159 : f32 to vector<1x1xf32>
      %c0_160 = arith.constant 0 : index
      %c0_161 = arith.constant 0 : index
      %420 = vector.load %arg34[%c0_160, %c0_161] : memref<1x1xf32, #tpu.memory_space<vmem>>, vector<1x1xf32>
      tpu.vector_store %arg34[%c0_160, %c0_161], %419 {strides = array<i32>} : memref<1x1xf32, #tpu.memory_space<vmem>>, vector<1x1xf32>,
    } else {
    }
    %c0 = arith.constant 0 : index
    %c0_1 = arith.constant 0 : index
    %c0_2 = arith.constant 0 : index
    %3 = vector.load %arg35[%c0, %c0_1, %c0_2] : memref<2x8x32xf32, #tpu.memory_space<vmem>>, vector<2x8x32xf32>
    %4 = vector.shape_cast %3 : vector<2x8x32xf32> to vector<16x32xf32>
    %5 = tpu.iota {dimensions = array<i32: 0>} : vector<8x8xi32>
    %6 = tpu.iota {dimensions = array<i32: 1>} : vector<8x8xi32>
    %7 = arith.cmpi sle, %6, %5 : vector<8x8xi32>
    %c0_3 = arith.constant 0 : index
    %c0_4 = arith.constant 0 : index
    %8 = vector.load %arg6[%c0_3, %c0_4] : memref<2x8xf32, #tpu.memory_space<vmem>>, vector<2x8xf32>
    %cst = arith.constant 5.000000e-01 : f32
    %9 = vector.broadcast %cst : f32 to vector<2x8xf32>
    %10 = arith.cmpf ogt, %8, %9 : vector<2x8xf32>
    %11 = vector.shape_cast %7 : vector<8x8xi1> to vector<1x8x8xi1>
    %12 = vector.shape_cast %10 : vector<2x8xi1> to vector<2x1x8xi1>
    %13 = vector.broadcast %11 : vector<1x8x8xi1> to vector<2x8x8xi1>
    %14 = vector.broadcast %12 : vector<2x1x8xi1> to vector<2x8x8xi1>
    %15 = arith.andi %13, %14 : vector<2x8x8xi1>
    %cst_5 = arith.constant 0.000000e+00 : f32
    %cst_6 = arith.constant -1.000000e+09 : f32
    %16 = vector.broadcast %cst_5 : f32 to vector<2x8x8xf32>
    %17 = vector.broadcast %cst_6 : f32 to vector<2x8x8xf32>
    %18 = arith.select %15, %16, %17 : vector<2x8x8xi1>, vector<2x8x8xf32>
    %19 = tpu.iota {dimensions = array<i32: 2>} : vector<1x1x8xi32>
    %c5_i32 = arith.constant 5 : i32
    %20 = vector.broadcast %c5_i32 : i32 to vector<1x1x8xi32>
    %21 = arith.cmpi slt, %19, %20 : vector<1x1x8xi32>
    %cst_7 = arith.constant 0.000000e+00 : f32
    %cst_8 = arith.constant -1.000000e+09 : f32
    %22 = vector.broadcast %cst_7 : f32 to vector<1x1x8xf32>
    %23 = vector.broadcast %cst_8 : f32 to vector<1x1x8xf32>
    %24 = arith.select %21, %22, %23 : vector<1x1x8xi1>, vector<1x1x8xf32>
    %25 = arith.truncf %4 : vector<16x32xf32> to vector<16x32xbf16>
    %c0_9 = arith.constant 0 : index
    %c0_10 = arith.constant 0 : index
    %c0_11 = arith.constant 0 : index
    %26 = vector.load %arg7[%c0_9, %c0_10, %c0_11] : memref<1x32x96xf32, #tpu.memory_space<vmem>>, vector<1x32x96xf32>
    %27 = vector.shape_cast %26 : vector<1x32x96xf32> to vector<32x96xf32>
    %28 = arith.truncf %27 : vector<32x96xf32> to vector<32x96xbf16>
    %cst_12 = arith.constant dense<0.000000e+00> : vector<16x96xf32>
    %29 = tpu.matmul %25, %28, %cst_12 {dimension_numbers = #tpu.dot_dimension_numbers<[1], [0], [0], [1], [0, 0, 1, 1], [], []>} : vector<16x32xbf16>, vector<32x96xbf16>, vector<16x96xf32> -> vector<16x96xf32>
    %c0_13 = arith.constant 0 : index
    %c0_14 = arith.constant 0 : index
    %c0_15 = arith.constant 0 : index
    %30 = vector.load %arg8[%c0_13, %c0_14, %c0_15] : memref<1x1x96xf32, #tpu.memory_space<vmem>>, vector<1x1x96xf32>
    %31 = vector.shape_cast %30 : vector<1x1x96xf32> to vector<1x96xf32>
    %32 = vector.broadcast %31 : vector<1x96xf32> to vector<16x96xf32>
    %33 = arith.addf %29, %32 : vector<16x96xf32>
    %34 = arith.truncf %33 : vector<16x96xf32> to vector<16x96xbf16>
    %35 = vector.extract_strided_slice %34 {offsets = [0, 0], sizes = [16, 32], strides = [1, 1]} : vector<16x96xbf16> to vector<16x32xbf16>
    %36 = vector.extract_strided_slice %34 {offsets = [0, 32], sizes = [16, 32], strides = [1, 1]} : vector<16x96xbf16> to vector<16x32xbf16>
    %37 = vector.extract_strided_slice %34 {offsets = [0, 64], sizes = [16, 32], strides = [1, 1]} : vector<16x96xbf16> to vector<16x32xbf16>
    %38 = vector.extract_strided_slice %35 {offsets = [0, 0], sizes = [16, 8], strides = [1, 1]} : vector<16x32xbf16> to vector<16x8xbf16>
    %39 = vector.shape_cast %38 : vector<16x8xbf16> to vector<2x8x8xbf16>
    %40 = vector.extract_strided_slice %36 {offsets = [0, 0], sizes = [16, 8], strides = [1, 1]} : vector<16x32xbf16> to vector<16x8xbf16>
    %41 = vector.shape_cast %40 : vector<16x8xbf16> to vector<2x8x8xbf16>
    %42 = vector.extract_strided_slice %37 {offsets = [0, 0], sizes = [16, 8], strides = [1, 1]} : vector<16x32xbf16> to vector<16x8xbf16>
    %43 = vector.shape_cast %42 : vector<16x8xbf16> to vector<2x8x8xbf16>
    "tpu.trace_start"() <{level = 10 : i32, message = "bqd,bkd->bqk"}> : () -> ()
    %cst_16 = arith.constant dense<0.000000e+00> : vector<2x8x8xf32>
    %44 = tpu.matmul %39, %41, %cst_16 {dimension_numbers = #tpu.dot_dimension_numbers<[2], [2], [1], [1], [0, 0, 0, 1, 1, 1], [0], [0]>} : vector<2x8x8xbf16>, vector<2x8x8xbf16>, vector<2x8x8xf32> -> vector<2x8x8xf32>
    "tpu.trace_stop"() : () -> ()
    %cst_17 = arith.constant 0.353553385 : f32
    %45 = vector.broadcast %cst_17 : f32 to vector<2x8x8xf32>
    %46 = arith.mulf %44, %45 : vector<2x8x8xf32>
    %47 = arith.addf %46, %18 : vector<2x8x8xf32>
    %cst_18 = arith.constant dense<0xFF800000> : vector<2x8xf32>
    %48 = vector.multi_reduction <maximumf>, %47, %cst_18 [2] : vector<2x8x8xf32> to vector<2x8xf32>
    %49 = vector.shape_cast %48 : vector<2x8xf32> to vector<2x8x1xf32>
    %50 = vector.broadcast %49 : vector<2x8x1xf32> to vector<2x8x8xf32>
    %51 = arith.subf %47, %50 : vector<2x8x8xf32>
    %52 = math.exp %51 : vector<2x8x8xf32>
    %cst_19 = arith.constant dense<0.000000e+00> : vector<2x8xf32>
    %53 = vector.multi_reduction <add>, %52, %cst_19 [2] : vector<2x8x8xf32> to vector<2x8xf32>
    %54 = vector.shape_cast %53 : vector<2x8xf32> to vector<2x8x1xf32>
    %55 = tpu.reciprocal %54 {approx = true} : vector<2x8x1xf32> -> vector<2x8x1xf32>
    %56 = vector.broadcast %55 : vector<2x8x1xf32> to vector<2x8x8xf32>
    %57 = arith.mulf %52, %56 : vector<2x8x8xf32>
    %58 = arith.truncf %57 : vector<2x8x8xf32> to vector<2x8x8xbf16>
    "tpu.trace_start"() <{level = 10 : i32, message = "bqk,bkd->bqd"}> : () -> ()
    %cst_20 = arith.constant dense<0.000000e+00> : vector<2x8x8xf32>
    %59 = tpu.matmul %58, %43, %cst_20 {dimension_numbers = #tpu.dot_dimension_numbers<[2], [1], [1], [2], [0, 0, 0, 1, 1, 2], [0], [0]>} : vector<2x8x8xbf16>, vector<2x8x8xbf16>, vector<2x8x8xf32> -> vector<2x8x8xf32>
    "tpu.trace_stop"() : () -> ()
    %60 = vector.shape_cast %59 : vector<2x8x8xf32> to vector<16x8xf32>
    %61 = vector.extract_strided_slice %35 {offsets = [0, 8], sizes = [16, 8], strides = [1, 1]} : vector<16x32xbf16> to vector<16x8xbf16>
    %62 = vector.shape_cast %61 : vector<16x8xbf16> to vector<2x8x8xbf16>
    %63 = vector.extract_strided_slice %36 {offsets = [0, 8], sizes = [16, 8], strides = [1, 1]} : vector<16x32xbf16> to vector<16x8xbf16>
    %64 = vector.shape_cast %63 : vector<16x8xbf16> to vector<2x8x8xbf16>
    %65 = vector.extract_strided_slice %37 {offsets = [0, 8], sizes = [16, 8], strides = [1, 1]} : vector<16x32xbf16> to vector<16x8xbf16>
    %66 = vector.shape_cast %65 : vector<16x8xbf16> to vector<2x8x8xbf16>
    "tpu.trace_start"() <{level = 10 : i32, message = "bqd,bkd->bqk"}> : () -> ()
    %cst_21 = arith.constant dense<0.000000e+00> : vector<2x8x8xf32>
    %67 = tpu.matmul %62, %64, %cst_21 {dimension_numbers = #tpu.dot_dimension_numbers<[2], [2], [1], [1], [0, 0, 0, 1, 1, 1], [0], [0]>} : vector<2x8x8xbf16>, vector<2x8x8xbf16>, vector<2x8x8xf32> -> vector<2x8x8xf32>
    "tpu.trace_stop"() : () -> ()
    %cst_22 = arith.constant 0.353553385 : f32
    %68 = vector.broadcast %cst_22 : f32 to vector<2x8x8xf32>
    %69 = arith.mulf %67, %68 : vector<2x8x8xf32>
    %70 = arith.addf %69, %18 : vector<2x8x8xf32>
    %cst_23 = arith.constant dense<0xFF800000> : vector<2x8xf32>
    %71 = vector.multi_reduction <maximumf>, %70, %cst_23 [2] : vector<2x8x8xf32> to vector<2x8xf32>
    %72 = vector.shape_cast %71 : vector<2x8xf32> to vector<2x8x1xf32>
    %73 = vector.broadcast %72 : vector<2x8x1xf32> to vector<2x8x8xf32>
    %74 = arith.subf %70, %73 : vector<2x8x8xf32>
    %75 = math.exp %74 : vector<2x8x8xf32>
    %cst_24 = arith.constant dense<0.000000e+00> : vector<2x8xf32>
    %76 = vector.multi_reduction <add>, %75, %cst_24 [2] : vector<2x8x8xf32> to vector<2x8xf32>
    %77 = vector.shape_cast %76 : vector<2x8xf32> to vector<2x8x1xf32>
    %78 = tpu.reciprocal %77 {approx = true} : vector<2x8x1xf32> -> vector<2x8x1xf32>
    %79 = vector.broadcast %78 : vector<2x8x1xf32> to vector<2x8x8xf32>
    %80 = arith.mulf %75, %79 : vector<2x8x8xf32>
    %81 = arith.truncf %80 : vector<2x8x8xf32> to vector<2x8x8xbf16>
    "tpu.trace_start"() <{level = 10 : i32, message = "bqk,bkd->bqd"}> : () -> ()
    %cst_25 = arith.constant dense<0.000000e+00> : vector<2x8x8xf32>
    %82 = tpu.matmul %81, %66, %cst_25 {dimension_numbers = #tpu.dot_dimension_numbers<[2], [1], [1], [2], [0, 0, 0, 1, 1, 2], [0], [0]>} : vector<2x8x8xbf16>, vector<2x8x8xbf16>, vector<2x8x8xf32> -> vector<2x8x8xf32>
    "tpu.trace_stop"() : () -> ()
    %83 = vector.shape_cast %82 : vector<2x8x8xf32> to vector<16x8xf32>
    %84 = vector.extract_strided_slice %35 {offsets = [0, 16], sizes = [16, 8], strides = [1, 1]} : vector<16x32xbf16> to vector<16x8xbf16>
    %85 = vector.shape_cast %84 : vector<16x8xbf16> to vector<2x8x8xbf16>
    %86 = vector.extract_strided_slice %36 {offsets = [0, 16], sizes = [16, 8], strides = [1, 1]} : vector<16x32xbf16> to vector<16x8xbf16>
    %87 = vector.shape_cast %86 : vector<16x8xbf16> to vector<2x8x8xbf16>
    %88 = vector.extract_strided_slice %37 {offsets = [0, 16], sizes = [16, 8], strides = [1, 1]} : vector<16x32xbf16> to vector<16x8xbf16>
    %89 = vector.shape_cast %88 : vector<16x8xbf16> to vector<2x8x8xbf16>
    "tpu.trace_start"() <{level = 10 : i32, message = "bqd,bkd->bqk"}> : () -> ()
    %cst_26 = arith.constant dense<0.000000e+00> : vector<2x8x8xf32>
    %90 = tpu.matmul %85, %87, %cst_26 {dimension_numbers = #tpu.dot_dimension_numbers<[2], [2], [1], [1], [0, 0, 0, 1, 1, 1], [0], [0]>} : vector<2x8x8xbf16>, vector<2x8x8xbf16>, vector<2x8x8xf32> -> vector<2x8x8xf32>
    "tpu.trace_stop"() : () -> ()
    %cst_27 = arith.constant 0.353553385 : f32
    %91 = vector.broadcast %cst_27 : f32 to vector<2x8x8xf32>
    %92 = arith.mulf %90, %91 : vector<2x8x8xf32>
    %93 = arith.addf %92, %18 : vector<2x8x8xf32>
    %cst_28 = arith.constant dense<0xFF800000> : vector<2x8xf32>
    %94 = vector.multi_reduction <maximumf>, %93, %cst_28 [2] : vector<2x8x8xf32> to vector<2x8xf32>
    %95 = vector.shape_cast %94 : vector<2x8xf32> to vector<2x8x1xf32>
    %96 = vector.broadcast %95 : vector<2x8x1xf32> to vector<2x8x8xf32>
    %97 = arith.subf %93, %96 : vector<2x8x8xf32>
    %98 = math.exp %97 : vector<2x8x8xf32>
    %cst_29 = arith.constant dense<0.000000e+00> : vector<2x8xf32>
    %99 = vector.multi_reduction <add>, %98, %cst_29 [2] : vector<2x8x8xf32> to vector<2x8xf32>
    %100 = vector.shape_cast %99 : vector<2x8xf32> to vector<2x8x1xf32>
    %101 = tpu.reciprocal %100 {approx = true} : vector<2x8x1xf32> -> vector<2x8x1xf32>
    %102 = vector.broadcast %101 : vector<2x8x1xf32> to vector<2x8x8xf32>
    %103 = arith.mulf %98, %102 : vector<2x8x8xf32>
    %104 = arith.truncf %103 : vector<2x8x8xf32> to vector<2x8x8xbf16>
    "tpu.trace_start"() <{level = 10 : i32, message = "bqk,bkd->bqd"}> : () -> ()
    %cst_30 = arith.constant dense<0.000000e+00> : vector<2x8x8xf32>
    %105 = tpu.matmul %104, %89, %cst_30 {dimension_numbers = #tpu.dot_dimension_numbers<[2], [1], [1], [2], [0, 0, 0, 1, 1, 2], [0], [0]>} : vector<2x8x8xbf16>, vector<2x8x8xbf16>, vector<2x8x8xf32> -> vector<2x8x8xf32>
    "tpu.trace_stop"() : () -> ()
    %106 = vector.shape_cast %105 : vector<2x8x8xf32> to vector<16x8xf32>
    %107 = vector.extract_strided_slice %35 {offsets = [0, 24], sizes = [16, 8], strides = [1, 1]} : vector<16x32xbf16> to vector<16x8xbf16>
    %108 = vector.shape_cast %107 : vector<16x8xbf16> to vector<2x8x8xbf16>
    %109 = vector.extract_strided_slice %36 {offsets = [0, 24], sizes = [16, 8], strides = [1, 1]} : vector<16x32xbf16> to vector<16x8xbf16>
    %110 = vector.shape_cast %109 : vector<16x8xbf16> to vector<2x8x8xbf16>
    %111 = vector.extract_strided_slice %37 {offsets = [0, 24], sizes = [16, 8], strides = [1, 1]} : vector<16x32xbf16> to vector<16x8xbf16>
    %112 = vector.shape_cast %111 : vector<16x8xbf16> to vector<2x8x8xbf16>
    "tpu.trace_start"() <{level = 10 : i32, message = "bqd,bkd->bqk"}> : () -> ()
    %cst_31 = arith.constant dense<0.000000e+00> : vector<2x8x8xf32>
    %113 = tpu.matmul %108, %110, %cst_31 {dimension_numbers = #tpu.dot_dimension_numbers<[2], [2], [1], [1], [0, 0, 0, 1, 1, 1], [0], [0]>} : vector<2x8x8xbf16>, vector<2x8x8xbf16>, vector<2x8x8xf32> -> vector<2x8x8xf32>
    "tpu.trace_stop"() : () -> ()
    %cst_32 = arith.constant 0.353553385 : f32
    %114 = vector.broadcast %cst_32 : f32 to vector<2x8x8xf32>
    %115 = arith.mulf %113, %114 : vector<2x8x8xf32>
    %116 = arith.addf %115, %18 : vector<2x8x8xf32>
    %cst_33 = arith.constant dense<0xFF800000> : vector<2x8xf32>
    %117 = vector.multi_reduction <maximumf>, %116, %cst_33 [2] : vector<2x8x8xf32> to vector<2x8xf32>
    %118 = vector.shape_cast %117 : vector<2x8xf32> to vector<2x8x1xf32>
    %119 = vector.broadcast %118 : vector<2x8x1xf32> to vector<2x8x8xf32>
    %120 = arith.subf %116, %119 : vector<2x8x8xf32>
    %121 = math.exp %120 : vector<2x8x8xf32>
    %cst_34 = arith.constant dense<0.000000e+00> : vector<2x8xf32>
    %122 = vector.multi_reduction <add>, %121, %cst_34 [2] : vector<2x8x8xf32> to vector<2x8xf32>
    %123 = vector.shape_cast %122 : vector<2x8xf32> to vector<2x8x1xf32>
    %124 = tpu.reciprocal %123 {approx = true} : vector<2x8x1xf32> -> vector<2x8x1xf32>
    %125 = vector.broadcast %124 : vector<2x8x1xf32> to vector<2x8x8xf32>
    %126 = arith.mulf %121, %125 : vector<2x8x8xf32>
    %127 = arith.truncf %126 : vector<2x8x8xf32> to vector<2x8x8xbf16>
    "tpu.trace_start"() <{level = 10 : i32, message = "bqk,bkd->bqd"}> : () -> ()
    %cst_35 = arith.constant dense<0.000000e+00> : vector<2x8x8xf32>
    %128 = tpu.matmul %127, %112, %cst_35 {dimension_numbers = #tpu.dot_dimension_numbers<[2], [1], [1], [2], [0, 0, 0, 1, 1, 2], [0], [0]>} : vector<2x8x8xbf16>, vector<2x8x8xbf16>, vector<2x8x8xf32> -> vector<2x8x8xf32>
    "tpu.trace_stop"() : () -> ()
    %129 = vector.shape_cast %128 : vector<2x8x8xf32> to vector<16x8xf32>
    %130 = tpu.concatenate %60, %83, %106, %129 in 1 : vector<16x8xf32>, vector<16x8xf32>, vector<16x8xf32>, vector<16x8xf32> -> vector<16x32xf32>
    %131 = arith.truncf %130 : vector<16x32xf32> to vector<16x32xbf16>
    %c0_36 = arith.constant 0 : index
    %c0_37 = arith.constant 0 : index
    %c0_38 = arith.constant 0 : index
    %132 = vector.load %arg9[%c0_36, %c0_37, %c0_38] : memref<1x32x32xf32, #tpu.memory_space<vmem>>, vector<1x32x32xf32>
    %133 = vector.shape_cast %132 : vector<1x32x32xf32> to vector<32x32xf32>
    %134 = arith.truncf %133 : vector<32x32xf32> to vector<32x32xbf16>
    %cst_39 = arith.constant dense<0.000000e+00> : vector<16x32xf32>
    %135 = tpu.matmul %131, %134, %cst_39 {dimension_numbers = #tpu.dot_dimension_numbers<[1], [0], [0], [1], [0, 0, 1, 1], [], []>} : vector<16x32xbf16>, vector<32x32xbf16>, vector<16x32xf32> -> vector<16x32xf32>
    %c0_40 = arith.constant 0 : index
    %c0_41 = arith.constant 0 : index
    %c0_42 = arith.constant 0 : index
    %136 = vector.load %arg10[%c0_40, %c0_41, %c0_42] : memref<1x1x32xf32, #tpu.memory_space<vmem>>, vector<1x1x32xf32>
    %137 = vector.shape_cast %136 : vector<1x1x32xf32> to vector<1x32xf32>
    %138 = vector.broadcast %137 : vector<1x32xf32> to vector<16x32xf32>
    %139 = arith.addf %135, %138 : vector<16x32xf32>
    %140 = arith.addf %139, %4 : vector<16x32xf32>
    %c0_43 = arith.constant 0 : index
    %c0_44 = arith.constant 0 : index
    %c0_45 = arith.constant 0 : index
    %141 = vector.load %arg11[%c0_43, %c0_44, %c0_45] : memref<1x1x32xf32, #tpu.memory_space<vmem>>, vector<1x1x32xf32>
    %142 = vector.shape_cast %141 : vector<1x1x32xf32> to vector<1x32xf32>
    %c0_46 = arith.constant 0 : index
    %c0_47 = arith.constant 0 : index
    %c0_48 = arith.constant 0 : index
    %143 = vector.load %arg12[%c0_46, %c0_47, %c0_48] : memref<1x1x32xf32, #tpu.memory_space<vmem>>, vector<1x1x32xf32>
    %144 = vector.shape_cast %143 : vector<1x1x32xf32> to vector<1x32xf32>
    %cst_49 = arith.constant dense<0.000000e+00> : vector<16xf32>
    %145 = vector.multi_reduction <add>, %140, %cst_49 [1] : vector<16x32xf32> to vector<16xf32>
    %146 = vector.shape_cast %145 : vector<16xf32> to vector<16x1xf32>
    %cst_50 = arith.constant 3.200000e+01 : f32
    %147 = vector.broadcast %cst_50 : f32 to vector<16x1xf32>
    %148 = arith.divf %146, %147 : vector<16x1xf32>
    %149 = vector.broadcast %148 : vector<16x1xf32> to vector<16x32xf32>
    %150 = arith.subf %140, %149 : vector<16x32xf32>
    %151 = arith.mulf %150, %150 : vector<16x32xf32>
    %cst_51 = arith.constant dense<0.000000e+00> : vector<16xf32>
    %152 = vector.multi_reduction <add>, %151, %cst_51 [1] : vector<16x32xf32> to vector<16xf32>
    %153 = vector.shape_cast %152 : vector<16xf32> to vector<16x1xf32>
    %cst_52 = arith.constant 3.200000e+01 : f32
    %154 = vector.broadcast %cst_52 : f32 to vector<16x1xf32>
    %155 = arith.divf %153, %154 : vector<16x1xf32>
    %156 = vector.broadcast %148 : vector<16x1xf32> to vector<16x32xf32>
    %157 = arith.subf %140, %156 : vector<16x32xf32>
    %cst_53 = arith.constant 9.99999996E-13 : f32
    %158 = vector.broadcast %cst_53 : f32 to vector<16x1xf32>
    %159 = arith.addf %155, %158 : vector<16x1xf32>
    %160 = math.rsqrt %159 : vector<16x1xf32>
    %161 = vector.broadcast %160 : vector<16x1xf32> to vector<16x32xf32>
    %162 = arith.mulf %157, %161 : vector<16x32xf32>
    %163 = vector.broadcast %142 : vector<1x32xf32> to vector<16x32xf32>
    %164 = arith.mulf %162, %163 : vector<16x32xf32>
    %165 = vector.broadcast %144 : vector<1x32xf32> to vector<16x32xf32>
    %166 = arith.addf %164, %165 : vector<16x32xf32>
    %c0_54 = arith.constant 0 : index
    %c0_55 = arith.constant 0 : index
    %c0_56 = arith.constant 0 : index
    %167 = vector.load %arg5[%c0_54, %c0_55, %c0_56] : memref<2x8x32xf32, #tpu.memory_space<vmem>>, vector<2x8x32xf32>
    %168 = arith.truncf %167 : vector<2x8x32xf32> to vector<2x8x32xbf16>
    %169 = vector.shape_cast %168 : vector<2x8x32xbf16> to vector<16x32xbf16>
    %170 = arith.truncf %166 : vector<16x32xf32> to vector<16x32xbf16>
    %c0_57 = arith.constant 0 : index
    %c0_58 = arith.constant 0 : index
    %c0_59 = arith.constant 0 : index
    %171 = vector.load %arg13[%c0_57, %c0_58, %c0_59] : memref<1x32x32xf32, #tpu.memory_space<vmem>>, vector<1x32x32xf32>
    %172 = vector.shape_cast %171 : vector<1x32x32xf32> to vector<32x32xf32>
    %173 = arith.truncf %172 : vector<32x32xf32> to vector<32x32xbf16>
    %cst_60 = arith.constant dense<0.000000e+00> : vector<16x32xf32>
    %174 = tpu.matmul %170, %173, %cst_60 {dimension_numbers = #tpu.dot_dimension_numbers<[1], [0], [0], [1], [0, 0, 1, 1], [], []>} : vector<16x32xbf16>, vector<32x32xbf16>, vector<16x32xf32> -> vector<16x32xf32>
    %c0_61 = arith.constant 0 : index
    %c0_62 = arith.constant 0 : index
    %c0_63 = arith.constant 0 : index
    %175 = vector.load %arg14[%c0_61, %c0_62, %c0_63] : memref<1x1x32xf32, #tpu.memory_space<vmem>>, vector<1x1x32xf32>
    %176 = vector.shape_cast %175 : vector<1x1x32xf32> to vector<1x32xf32>
    %177 = vector.broadcast %176 : vector<1x32xf32> to vector<16x32xf32>
    %178 = arith.addf %174, %177 : vector<16x32xf32>
    %179 = arith.truncf %178 : vector<16x32xf32> to vector<16x32xbf16>
    %c0_64 = arith.constant 0 : index
    %c0_65 = arith.constant 0 : index
    %c0_66 = arith.constant 0 : index
    %180 = vector.load %arg15[%c0_64, %c0_65, %c0_66] : memref<1x32x64xf32, #tpu.memory_space<vmem>>, vector<1x32x64xf32>
    %181 = vector.shape_cast %180 : vector<1x32x64xf32> to vector<32x64xf32>
    %182 = arith.truncf %181 : vector<32x64xf32> to vector<32x64xbf16>
    %cst_67 = arith.constant dense<0.000000e+00> : vector<16x64xf32>
    %183 = tpu.matmul %169, %182, %cst_67 {dimension_numbers = #tpu.dot_dimension_numbers<[1], [0], [0], [1], [0, 0, 1, 1], [], []>} : vector<16x32xbf16>, vector<32x64xbf16>, vector<16x64xf32> -> vector<16x64xf32>
    %c0_68 = arith.constant 0 : index
    %c0_69 = arith.constant 0 : index
    %c0_70 = arith.constant 0 : index
    %184 = vector.load %arg16[%c0_68, %c0_69, %c0_70] : memref<1x1x64xf32, #tpu.memory_space<vmem>>, vector<1x1x64xf32>
    %185 = vector.shape_cast %184 : vector<1x1x64xf32> to vector<1x64xf32>
    %186 = vector.broadcast %185 : vector<1x64xf32> to vector<16x64xf32>
    %187 = arith.addf %183, %186 : vector<16x64xf32>
    %188 = arith.truncf %187 : vector<16x64xf32> to vector<16x64xbf16>
    %189 = vector.extract_strided_slice %188 {offsets = [0, 0], sizes = [16, 32], strides = [1, 1]} : vector<16x64xbf16> to vector<16x32xbf16>
    %190 = vector.extract_strided_slice %188 {offsets = [0, 32], sizes = [16, 32], strides = [1, 1]} : vector<16x64xbf16> to vector<16x32xbf16>
    %191 = vector.extract_strided_slice %179 {offsets = [0, 0], sizes = [16, 8], strides = [1, 1]} : vector<16x32xbf16> to vector<16x8xbf16>
    %192 = vector.shape_cast %191 : vector<16x8xbf16> to vector<2x8x8xbf16>
    %193 = vector.extract_strided_slice %189 {offsets = [0, 0], sizes = [16, 8], strides = [1, 1]} : vector<16x32xbf16> to vector<16x8xbf16>
    %194 = vector.shape_cast %193 : vector<16x8xbf16> to vector<2x8x8xbf16>
    %195 = vector.extract_strided_slice %190 {offsets = [0, 0], sizes = [16, 8], strides = [1, 1]} : vector<16x32xbf16> to vector<16x8xbf16>
    %196 = vector.shape_cast %195 : vector<16x8xbf16> to vector<2x8x8xbf16>
    "tpu.trace_start"() <{level = 10 : i32, message = "bqd,bkd->bqk"}> : () -> ()
    %cst_71 = arith.constant dense<0.000000e+00> : vector<2x8x8xf32>
    %197 = tpu.matmul %192, %194, %cst_71 {dimension_numbers = #tpu.dot_dimension_numbers<[2], [2], [1], [1], [0, 0, 0, 1, 1, 1], [0], [0]>} : vector<2x8x8xbf16>, vector<2x8x8xbf16>, vector<2x8x8xf32> -> vector<2x8x8xf32>
    "tpu.trace_stop"() : () -> ()
    %cst_72 = arith.constant 0.353553385 : f32
    %198 = vector.broadcast %cst_72 : f32 to vector<2x8x8xf32>
    %199 = arith.mulf %197, %198 : vector<2x8x8xf32>
    %200 = vector.broadcast %24 : vector<1x1x8xf32> to vector<2x8x8xf32>
    %201 = arith.addf %199, %200 : vector<2x8x8xf32>
    %cst_73 = arith.constant dense<0xFF800000> : vector<2x8xf32>
    %202 = vector.multi_reduction <maximumf>, %201, %cst_73 [2] : vector<2x8x8xf32> to vector<2x8xf32>
    %203 = vector.shape_cast %202 : vector<2x8xf32> to vector<2x8x1xf32>
    %204 = vector.broadcast %203 : vector<2x8x1xf32> to vector<2x8x8xf32>
    %205 = arith.subf %201, %204 : vector<2x8x8xf32>
    %206 = math.exp %205 : vector<2x8x8xf32>
    %cst_74 = arith.constant dense<0.000000e+00> : vector<2x8xf32>
    %207 = vector.multi_reduction <add>, %206, %cst_74 [2] : vector<2x8x8xf32> to vector<2x8xf32>
    %208 = vector.shape_cast %207 : vector<2x8xf32> to vector<2x8x1xf32>
    %209 = tpu.reciprocal %208 {approx = true} : vector<2x8x1xf32> -> vector<2x8x1xf32>
    %210 = vector.broadcast %209 : vector<2x8x1xf32> to vector<2x8x8xf32>
    %211 = arith.mulf %206, %210 : vector<2x8x8xf32>
    %212 = arith.truncf %211 : vector<2x8x8xf32> to vector<2x8x8xbf16>
    "tpu.trace_start"() <{level = 10 : i32, message = "bqk,bkd->bqd"}> : () -> ()
    %cst_75 = arith.constant dense<0.000000e+00> : vector<2x8x8xf32>
    %213 = tpu.matmul %212, %196, %cst_75 {dimension_numbers = #tpu.dot_dimension_numbers<[2], [1], [1], [2], [0, 0, 0, 1, 1, 2], [0], [0]>} : vector<2x8x8xbf16>, vector<2x8x8xbf16>, vector<2x8x8xf32> -> vector<2x8x8xf32>
    "tpu.trace_stop"() : () -> ()
    %214 = vector.shape_cast %213 : vector<2x8x8xf32> to vector<16x8xf32>
    %215 = vector.extract_strided_slice %179 {offsets = [0, 8], sizes = [16, 8], strides = [1, 1]} : vector<16x32xbf16> to vector<16x8xbf16>
    %216 = vector.shape_cast %215 : vector<16x8xbf16> to vector<2x8x8xbf16>
    %217 = vector.extract_strided_slice %189 {offsets = [0, 8], sizes = [16, 8], strides = [1, 1]} : vector<16x32xbf16> to vector<16x8xbf16>
    %218 = vector.shape_cast %217 : vector<16x8xbf16> to vector<2x8x8xbf16>
    %219 = vector.extract_strided_slice %190 {offsets = [0, 8], sizes = [16, 8], strides = [1, 1]} : vector<16x32xbf16> to vector<16x8xbf16>
    %220 = vector.shape_cast %219 : vector<16x8xbf16> to vector<2x8x8xbf16>
    "tpu.trace_start"() <{level = 10 : i32, message = "bqd,bkd->bqk"}> : () -> ()
    %cst_76 = arith.constant dense<0.000000e+00> : vector<2x8x8xf32>
    %221 = tpu.matmul %216, %218, %cst_76 {dimension_numbers = #tpu.dot_dimension_numbers<[2], [2], [1], [1], [0, 0, 0, 1, 1, 1], [0], [0]>} : vector<2x8x8xbf16>, vector<2x8x8xbf16>, vector<2x8x8xf32> -> vector<2x8x8xf32>
    "tpu.trace_stop"() : () -> ()
    %cst_77 = arith.constant 0.353553385 : f32
    %222 = vector.broadcast %cst_77 : f32 to vector<2x8x8xf32>
    %223 = arith.mulf %221, %222 : vector<2x8x8xf32>
    %224 = vector.broadcast %24 : vector<1x1x8xf32> to vector<2x8x8xf32>
    %225 = arith.addf %223, %224 : vector<2x8x8xf32>
    %cst_78 = arith.constant dense<0xFF800000> : vector<2x8xf32>
    %226 = vector.multi_reduction <maximumf>, %225, %cst_78 [2] : vector<2x8x8xf32> to vector<2x8xf32>
    %227 = vector.shape_cast %226 : vector<2x8xf32> to vector<2x8x1xf32>
    %228 = vector.broadcast %227 : vector<2x8x1xf32> to vector<2x8x8xf32>
    %229 = arith.subf %225, %228 : vector<2x8x8xf32>
    %230 = math.exp %229 : vector<2x8x8xf32>
    %cst_79 = arith.constant dense<0.000000e+00> : vector<2x8xf32>
    %231 = vector.multi_reduction <add>, %230, %cst_79 [2] : vector<2x8x8xf32> to vector<2x8xf32>
    %232 = vector.shape_cast %231 : vector<2x8xf32> to vector<2x8x1xf32>
    %233 = tpu.reciprocal %232 {approx = true} : vector<2x8x1xf32> -> vector<2x8x1xf32>
    %234 = vector.broadcast %233 : vector<2x8x1xf32> to vector<2x8x8xf32>
    %235 = arith.mulf %230, %234 : vector<2x8x8xf32>
    %236 = arith.truncf %235 : vector<2x8x8xf32> to vector<2x8x8xbf16>
    "tpu.trace_start"() <{level = 10 : i32, message = "bqk,bkd->bqd"}> : () -> ()
    %cst_80 = arith.constant dense<0.000000e+00> : vector<2x8x8xf32>
    %237 = tpu.matmul %236, %220, %cst_80 {dimension_numbers = #tpu.dot_dimension_numbers<[2], [1], [1], [2], [0, 0, 0, 1, 1, 2], [0], [0]>} : vector<2x8x8xbf16>, vector<2x8x8xbf16>, vector<2x8x8xf32> -> vector<2x8x8xf32>
    "tpu.trace_stop"() : () -> ()
    %238 = vector.shape_cast %237 : vector<2x8x8xf32> to vector<16x8xf32>
    %239 = vector.extract_strided_slice %179 {offsets = [0, 16], sizes = [16, 8], strides = [1, 1]} : vector<16x32xbf16> to vector<16x8xbf16>
    %240 = vector.shape_cast %239 : vector<16x8xbf16> to vector<2x8x8xbf16>
    %241 = vector.extract_strided_slice %189 {offsets = [0, 16], sizes = [16, 8], strides = [1, 1]} : vector<16x32xbf16> to vector<16x8xbf16>
    %242 = vector.shape_cast %241 : vector<16x8xbf16> to vector<2x8x8xbf16>
    %243 = vector.extract_strided_slice %190 {offsets = [0, 16], sizes = [16, 8], strides = [1, 1]} : vector<16x32xbf16> to vector<16x8xbf16>
    %244 = vector.shape_cast %243 : vector<16x8xbf16> to vector<2x8x8xbf16>
    "tpu.trace_start"() <{level = 10 : i32, message = "bqd,bkd->bqk"}> : () -> ()
    %cst_81 = arith.constant dense<0.000000e+00> : vector<2x8x8xf32>
    %245 = tpu.matmul %240, %242, %cst_81 {dimension_numbers = #tpu.dot_dimension_numbers<[2], [2], [1], [1], [0, 0, 0, 1, 1, 1], [0], [0]>} : vector<2x8x8xbf16>, vector<2x8x8xbf16>, vector<2x8x8xf32> -> vector<2x8x8xf32>
    "tpu.trace_stop"() : () -> ()
    %cst_82 = arith.constant 0.353553385 : f32
    %246 = vector.broadcast %cst_82 : f32 to vector<2x8x8xf32>
    %247 = arith.mulf %245, %246 : vector<2x8x8xf32>
    %248 = vector.broadcast %24 : vector<1x1x8xf32> to vector<2x8x8xf32>
    %249 = arith.addf %247, %248 : vector<2x8x8xf32>
    %cst_83 = arith.constant dense<0xFF800000> : vector<2x8xf32>
    %250 = vector.multi_reduction <maximumf>, %249, %cst_83 [2] : vector<2x8x8xf32> to vector<2x8xf32>
    %251 = vector.shape_cast %250 : vector<2x8xf32> to vector<2x8x1xf32>
    %252 = vector.broadcast %251 : vector<2x8x1xf32> to vector<2x8x8xf32>
    %253 = arith.subf %249, %252 : vector<2x8x8xf32>
    %254 = math.exp %253 : vector<2x8x8xf32>
    %cst_84 = arith.constant dense<0.000000e+00> : vector<2x8xf32>
    %255 = vector.multi_reduction <add>, %254, %cst_84 [2] : vector<2x8x8xf32> to vector<2x8xf32>
    %256 = vector.shape_cast %255 : vector<2x8xf32> to vector<2x8x1xf32>
    %257 = tpu.reciprocal %256 {approx = true} : vector<2x8x1xf32> -> vector<2x8x1xf32>
    %258 = vector.broadcast %257 : vector<2x8x1xf32> to vector<2x8x8xf32>
    %259 = arith.mulf %254, %258 : vector<2x8x8xf32>
    %260 = arith.truncf %259 : vector<2x8x8xf32> to vector<2x8x8xbf16>
    "tpu.trace_start"() <{level = 10 : i32, message = "bqk,bkd->bqd"}> : () -> ()
    %cst_85 = arith.constant dense<0.000000e+00> : vector<2x8x8xf32>
    %261 = tpu.matmul %260, %244, %cst_85 {dimension_numbers = #tpu.dot_dimension_numbers<[2], [1], [1], [2], [0, 0, 0, 1, 1, 2], [0], [0]>} : vector<2x8x8xbf16>, vector<2x8x8xbf16>, vector<2x8x8xf32> -> vector<2x8x8xf32>
    "tpu.trace_stop"() : () -> ()
    %262 = vector.shape_cast %261 : vector<2x8x8xf32> to vector<16x8xf32>
    %263 = vector.extract_strided_slice %179 {offsets = [0, 24], sizes = [16, 8], strides = [1, 1]} : vector<16x32xbf16> to vector<16x8xbf16>
    %264 = vector.shape_cast %263 : vector<16x8xbf16> to vector<2x8x8xbf16>
    %265 = vector.extract_strided_slice %189 {offsets = [0, 24], sizes = [16, 8], strides = [1, 1]} : vector<16x32xbf16> to vector<16x8xbf16>
    %266 = vector.shape_cast %265 : vector<16x8xbf16> to vector<2x8x8xbf16>
    %267 = vector.extract_strided_slice %190 {offsets = [0, 24], sizes = [16, 8], strides = [1, 1]} : vector<16x32xbf16> to vector<16x8xbf16>
    %268 = vector.shape_cast %267 : vector<16x8xbf16> to vector<2x8x8xbf16>
    "tpu.trace_start"() <{level = 10 : i32, message = "bqd,bkd->bqk"}> : () -> ()
    %cst_86 = arith.constant dense<0.000000e+00> : vector<2x8x8xf32>
    %269 = tpu.matmul %264, %266, %cst_86 {dimension_numbers = #tpu.dot_dimension_numbers<[2], [2], [1], [1], [0, 0, 0, 1, 1, 1], [0], [0]>} : vector<2x8x8xbf16>, vector<2x8x8xbf16>, vector<2x8x8xf32> -> vector<2x8x8xf32>
    "tpu.trace_stop"() : () -> ()
    %cst_87 = arith.constant 0.353553385 : f32
    %270 = vector.broadcast %cst_87 : f32 to vector<2x8x8xf32>
    %271 = arith.mulf %269, %270 : vector<2x8x8xf32>
    %272 = vector.broadcast %24 : vector<1x1x8xf32> to vector<2x8x8xf32>
    %273 = arith.addf %271, %272 : vector<2x8x8xf32>
    %cst_88 = arith.constant dense<0xFF800000> : vector<2x8xf32>
    %274 = vector.multi_reduction <maximumf>, %273, %cst_88 [2] : vector<2x8x8xf32> to vector<2x8xf32>
    %275 = vector.shape_cast %274 : vector<2x8xf32> to vector<2x8x1xf32>
    %276 = vector.broadcast %275 : vector<2x8x1xf32> to vector<2x8x8xf32>
    %277 = arith.subf %273, %276 : vector<2x8x8xf32>
    %278 = math.exp %277 : vector<2x8x8xf32>
    %cst_89 = arith.constant dense<0.000000e+00> : vector<2x8xf32>
    %279 = vector.multi_reduction <add>, %278, %cst_89 [2] : vector<2x8x8xf32> to vector<2x8xf32>
    %280 = vector.shape_cast %279 : vector<2x8xf32> to vector<2x8x1xf32>
    %281 = tpu.reciprocal %280 {approx = true} : vector<2x8x1xf32> -> vector<2x8x1xf32>
    %282 = vector.broadcast %281 : vector<2x8x1xf32> to vector<2x8x8xf32>
    %283 = arith.mulf %278, %282 : vector<2x8x8xf32>
    %284 = arith.truncf %283 : vector<2x8x8xf32> to vector<2x8x8xbf16>
    "tpu.trace_start"() <{level = 10 : i32, message = "bqk,bkd->bqd"}> : () -> ()
    %cst_90 = arith.constant dense<0.000000e+00> : vector<2x8x8xf32>
    %285 = tpu.matmul %284, %268, %cst_90 {dimension_numbers = #tpu.dot_dimension_numbers<[2], [1], [1], [2], [0, 0, 0, 1, 1, 2], [0], [0]>} : vector<2x8x8xbf16>, vector<2x8x8xbf16>, vector<2x8x8xf32> -> vector<2x8x8xf32>
    "tpu.trace_stop"() : () -> ()
    %286 = vector.shape_cast %285 : vector<2x8x8xf32> to vector<16x8xf32>
    %287 = tpu.concatenate %214, %238, %262, %286 in 1 : vector<16x8xf32>, vector<16x8xf32>, vector<16x8xf32>, vector<16x8xf32> -> vector<16x32xf32>
    %288 = arith.truncf %287 : vector<16x32xf32> to vector<16x32xbf16>
    %c0_91 = arith.constant 0 : index
    %c0_92 = arith.constant 0 : index
    %c0_93 = arith.constant 0 : index
    %289 = vector.load %arg17[%c0_91, %c0_92, %c0_93] : memref<1x32x32xf32, #tpu.memory_space<vmem>>, vector<1x32x32xf32>
    %290 = vector.shape_cast %289 : vector<1x32x32xf32> to vector<32x32xf32>
    %291 = arith.truncf %290 : vector<32x32xf32> to vector<32x32xbf16>
    %cst_94 = arith.constant dense<0.000000e+00> : vector<16x32xf32>
    %292 = tpu.matmul %288, %291, %cst_94 {dimension_numbers = #tpu.dot_dimension_numbers<[1], [0], [0], [1], [0, 0, 1, 1], [], []>} : vector<16x32xbf16>, vector<32x32xbf16>, vector<16x32xf32> -> vector<16x32xf32>
    %c0_95 = arith.constant 0 : index
    %c0_96 = arith.constant 0 : index
    %c0_97 = arith.constant 0 : index
    %293 = vector.load %arg18[%c0_95, %c0_96, %c0_97] : memref<1x1x32xf32, #tpu.memory_space<vmem>>, vector<1x1x32xf32>
    %294 = vector.shape_cast %293 : vector<1x1x32xf32> to vector<1x32xf32>
    %295 = vector.broadcast %294 : vector<1x32xf32> to vector<16x32xf32>
    %296 = arith.addf %292, %295 : vector<16x32xf32>
    %297 = arith.addf %296, %166 : vector<16x32xf32>
    %c0_98 = arith.constant 0 : index
    %c0_99 = arith.constant 0 : index
    %c0_100 = arith.constant 0 : index
    %298 = vector.load %arg19[%c0_98, %c0_99, %c0_100] : memref<1x1x32xf32, #tpu.memory_space<vmem>>, vector<1x1x32xf32>
    %299 = vector.shape_cast %298 : vector<1x1x32xf32> to vector<1x32xf32>
    %c0_101 = arith.constant 0 : index
    %c0_102 = arith.constant 0 : index
    %c0_103 = arith.constant 0 : index
    %300 = vector.load %arg20[%c0_101, %c0_102, %c0_103] : memref<1x1x32xf32, #tpu.memory_space<vmem>>, vector<1x1x32xf32>
    %301 = vector.shape_cast %300 : vector<1x1x32xf32> to vector<1x32xf32>
    %cst_104 = arith.constant dense<0.000000e+00> : vector<16xf32>
    %302 = vector.multi_reduction <add>, %297, %cst_104 [1] : vector<16x32xf32> to vector<16xf32>
    %303 = vector.shape_cast %302 : vector<16xf32> to vector<16x1xf32>
    %cst_105 = arith.constant 3.200000e+01 : f32
    %304 = vector.broadcast %cst_105 : f32 to vector<16x1xf32>
    %305 = arith.divf %303, %304 : vector<16x1xf32>
    %306 = vector.broadcast %305 : vector<16x1xf32> to vector<16x32xf32>
    %307 = arith.subf %297, %306 : vector<16x32xf32>
    %308 = arith.mulf %307, %307 : vector<16x32xf32>
    %cst_106 = arith.constant dense<0.000000e+00> : vector<16xf32>
    %309 = vector.multi_reduction <add>, %308, %cst_106 [1] : vector<16x32xf32> to vector<16xf32>
    %310 = vector.shape_cast %309 : vector<16xf32> to vector<16x1xf32>
    %cst_107 = arith.constant 3.200000e+01 : f32
    %311 = vector.broadcast %cst_107 : f32 to vector<16x1xf32>
    %312 = arith.divf %310, %311 : vector<16x1xf32>
    %313 = vector.broadcast %305 : vector<16x1xf32> to vector<16x32xf32>
    %314 = arith.subf %297, %313 : vector<16x32xf32>
    %cst_108 = arith.constant 9.99999996E-13 : f32
    %315 = vector.broadcast %cst_108 : f32 to vector<16x1xf32>
    %316 = arith.addf %312, %315 : vector<16x1xf32>
    %317 = math.rsqrt %316 : vector<16x1xf32>
    %318 = vector.broadcast %317 : vector<16x1xf32> to vector<16x32xf32>
    %319 = arith.mulf %314, %318 : vector<16x32xf32>
    %320 = vector.broadcast %299 : vector<1x32xf32> to vector<16x32xf32>
    %321 = arith.mulf %319, %320 : vector<16x32xf32>
    %322 = vector.broadcast %301 : vector<1x32xf32> to vector<16x32xf32>
    %323 = arith.addf %321, %322 : vector<16x32xf32>
    %324 = arith.truncf %323 : vector<16x32xf32> to vector<16x32xbf16>
    %c0_109 = arith.constant 0 : index
    %c0_110 = arith.constant 0 : index
    %c0_111 = arith.constant 0 : index
    %325 = vector.load %arg21[%c0_109, %c0_110, %c0_111] : memref<1x32x64xf32, #tpu.memory_space<vmem>>, vector<1x32x64xf32>
    %326 = vector.shape_cast %325 : vector<1x32x64xf32> to vector<32x64xf32>
    %327 = arith.truncf %326 : vector<32x64xf32> to vector<32x64xbf16>
    %cst_112 = arith.constant dense<0.000000e+00> : vector<16x64xf32>
    %328 = tpu.matmul %324, %327, %cst_112 {dimension_numbers = #tpu.dot_dimension_numbers<[1], [0], [0], [1], [0, 0, 1, 1], [], []>} : vector<16x32xbf16>, vector<32x64xbf16>, vector<16x64xf32> -> vector<16x64xf32>
    %c0_113 = arith.constant 0 : index
    %c0_114 = arith.constant 0 : index
    %c0_115 = arith.constant 0 : index
    %329 = vector.load %arg22[%c0_113, %c0_114, %c0_115] : memref<1x1x64xf32, #tpu.memory_space<vmem>>, vector<1x1x64xf32>
    %330 = vector.shape_cast %329 : vector<1x1x64xf32> to vector<1x64xf32>
    %331 = vector.broadcast %330 : vector<1x64xf32> to vector<16x64xf32>
    %332 = arith.addf %328, %331 : vector<16x64xf32>
    %333 = arith.mulf %332, %332 : vector<16x64xf32>
    %334 = arith.mulf %332, %333 : vector<16x64xf32>
    %cst_116 = arith.constant 4.471500e-02 : f32
    %335 = vector.broadcast %cst_116 : f32 to vector<16x64xf32>
    %336 = arith.mulf %335, %334 : vector<16x64xf32>
    %337 = arith.addf %332, %336 : vector<16x64xf32>
    %cst_117 = arith.constant 0.797884583 : f32
    %338 = vector.broadcast %cst_117 : f32 to vector<16x64xf32>
    %339 = arith.mulf %338, %337 : vector<16x64xf32>
    %340 = math.tanh %339 : vector<16x64xf32>
    %cst_118 = arith.constant 1.000000e+00 : f32
    %341 = vector.broadcast %cst_118 : f32 to vector<16x64xf32>
    %342 = arith.addf %341, %340 : vector<16x64xf32>
    %cst_119 = arith.constant 5.000000e-01 : f32
    %343 = vector.broadcast %cst_119 : f32 to vector<16x64xf32>
    %344 = arith.mulf %343, %342 : vector<16x64xf32>
    %345 = arith.mulf %332, %344 : vector<16x64xf32>
    %346 = arith.truncf %345 : vector<16x64xf32> to vector<16x64xbf16>
    %c0_120 = arith.constant 0 : index
    %c0_121 = arith.constant 0 : index
    %c0_122 = arith.constant 0 : index
    %347 = vector.load %arg23[%c0_120, %c0_121, %c0_122] : memref<1x64x32xf32, #tpu.memory_space<vmem>>, vector<1x64x32xf32>
    %348 = vector.shape_cast %347 : vector<1x64x32xf32> to vector<64x32xf32>
    %349 = arith.truncf %348 : vector<64x32xf32> to vector<64x32xbf16>
    %cst_123 = arith.constant dense<0.000000e+00> : vector<16x32xf32>
    %350 = tpu.matmul %346, %349, %cst_123 {dimension_numbers = #tpu.dot_dimension_numbers<[1], [0], [0], [1], [0, 0, 1, 1], [], []>} : vector<16x64xbf16>, vector<64x32xbf16>, vector<16x32xf32> -> vector<16x32xf32>
    %c0_124 = arith.constant 0 : index
    %c0_125 = arith.constant 0 : index
    %c0_126 = arith.constant 0 : index
    %351 = vector.load %arg24[%c0_124, %c0_125, %c0_126] : memref<1x1x32xf32, #tpu.memory_space<vmem>>, vector<1x1x32xf32>
    %352 = vector.shape_cast %351 : vector<1x1x32xf32> to vector<1x32xf32>
    %353 = vector.broadcast %352 : vector<1x32xf32> to vector<16x32xf32>
    %354 = arith.addf %350, %353 : vector<16x32xf32>
    %355 = arith.addf %354, %323 : vector<16x32xf32>
    %c0_127 = arith.constant 0 : index
    %c0_128 = arith.constant 0 : index
    %c0_129 = arith.constant 0 : index
    %356 = vector.load %arg25[%c0_127, %c0_128, %c0_129] : memref<1x1x32xf32, #tpu.memory_space<vmem>>, vector<1x1x32xf32>
    %357 = vector.shape_cast %356 : vector<1x1x32xf32> to vector<1x32xf32>
    %c0_130 = arith.constant 0 : index
    %c0_131 = arith.constant 0 : index
    %c0_132 = arith.constant 0 : index
    %358 = vector.load %arg26[%c0_130, %c0_131, %c0_132] : memref<1x1x32xf32, #tpu.memory_space<vmem>>, vector<1x1x32xf32>
    %359 = vector.shape_cast %358 : vector<1x1x32xf32> to vector<1x32xf32>
    %cst_133 = arith.constant dense<0.000000e+00> : vector<16xf32>
    %360 = vector.multi_reduction <add>, %355, %cst_133 [1] : vector<16x32xf32> to vector<16xf32>
    %361 = vector.shape_cast %360 : vector<16xf32> to vector<16x1xf32>
    %cst_134 = arith.constant 3.200000e+01 : f32
    %362 = vector.broadcast %cst_134 : f32 to vector<16x1xf32>
    %363 = arith.divf %361, %362 : vector<16x1xf32>
    %364 = vector.broadcast %363 : vector<16x1xf32> to vector<16x32xf32>
    %365 = arith.subf %355, %364 : vector<16x32xf32>
    %366 = arith.mulf %365, %365 : vector<16x32xf32>
    %cst_135 = arith.constant dense<0.000000e+00> : vector<16xf32>
    %367 = vector.multi_reduction <add>, %366, %cst_135 [1] : vector<16x32xf32> to vector<16xf32>
    %368 = vector.shape_cast %367 : vector<16xf32> to vector<16x1xf32>
    %cst_136 = arith.constant 3.200000e+01 : f32
    %369 = vector.broadcast %cst_136 : f32 to vector<16x1xf32>
    %370 = arith.divf %368, %369 : vector<16x1xf32>
    %371 = vector.broadcast %363 : vector<16x1xf32> to vector<16x32xf32>
    %372 = arith.subf %355, %371 : vector<16x32xf32>
    %cst_137 = arith.constant 9.99999996E-13 : f32
    %373 = vector.broadcast %cst_137 : f32 to vector<16x1xf32>
    %374 = arith.addf %370, %373 : vector<16x1xf32>
    %375 = math.rsqrt %374 : vector<16x1xf32>
    %376 = vector.broadcast %375 : vector<16x1xf32> to vector<16x32xf32>
    %377 = arith.mulf %372, %376 : vector<16x32xf32>
    %378 = vector.broadcast %357 : vector<1x32xf32> to vector<16x32xf32>
    %379 = arith.mulf %377, %378 : vector<16x32xf32>
    %380 = vector.broadcast %359 : vector<1x32xf32> to vector<16x32xf32>
    %381 = arith.addf %379, %380 : vector<16x32xf32>
    %382 = vector.shape_cast %381 : vector<16x32xf32> to vector<2x8x32xf32>
    %c0_138 = arith.constant 0 : index
    %c0_139 = arith.constant 0 : index
    %c0_140 = arith.constant 0 : index
    %383 = vector.load %arg35[%c0_138, %c0_139, %c0_140] : memref<2x8x32xf32, #tpu.memory_space<vmem>>, vector<2x8x32xf32>
    tpu.vector_store %arg35[%c0_138, %c0_139, %c0_140], %382 {strides = array<i32>} : memref<2x8x32xf32, #tpu.memory_space<vmem>>, vector<2x8x32xf32>,
    %c1_i32 = arith.constant 1 : i32
    %384 = arith.cmpi eq, %arg0, %c1_i32 : i32
    %385 = arith.extui %384 : i1 to i32
    %c0_i32_141 = arith.constant 0 : i32
    %386 = arith.cmpi ne, %385, %c0_i32_141 : i32
    scf.if %386 {
      %387 = arith.truncf %381 : vector<16x32xf32> to vector<16x32xbf16>
      %c0_142 = arith.constant 0 : index
      %c0_143 = arith.constant 0 : index
      %388 = vector.load %arg27[%c0_142, %c0_143] : memref<32x32xf32, #tpu.memory_space<vmem>>, vector<32x32xf32>
      %389 = arith.truncf %388 : vector<32x32xf32> to vector<32x32xbf16>
      %cst_144 = arith.constant dense<0.000000e+00> : vector<16x32xf32>
      %390 = tpu.matmul %387, %389, %cst_144 {dimension_numbers = #tpu.dot_dimension_numbers<[1], [0], [0], [1], [0, 0, 1, 1], [], []>} : vector<16x32xbf16>, vector<32x32xbf16>, vector<16x32xf32> -> vector<16x32xf32>
      %c0_145 = arith.constant 0 : index
      %c0_146 = arith.constant 0 : index
      %391 = vector.load %arg28[%c0_145, %c0_146] : memref<1x32xf32, #tpu.memory_space<vmem>>, vector<1x32xf32>
      %392 = vector.broadcast %391 : vector<1x32xf32> to vector<16x32xf32>
      %393 = arith.addf %390, %392 : vector<16x32xf32>
      %394 = arith.mulf %393, %393 : vector<16x32xf32>
      %395 = arith.mulf %393, %394 : vector<16x32xf32>
      %cst_147 = arith.constant 4.471500e-02 : f32
      %396 = vector.broadcast %cst_147 : f32 to vector<16x32xf32>
      %397 = arith.mulf %396, %395 : vector<16x32xf32>
      %398 = arith.addf %393, %397 : vector<16x32xf32>
      %cst_148 = arith.constant 0.797884583 : f32
      %399 = vector.broadcast %cst_148 : f32 to vector<16x32xf32>
      %400 = arith.mulf %399, %398 : vector<16x32xf32>
      %401 = math.tanh %400 : vector<16x32xf32>
      %cst_149 = arith.constant 1.000000e+00 : f32
      %402 = vector.broadcast %cst_149 : f32 to vector<16x32xf32>
      %403 = arith.addf %402, %401 : vector<16x32xf32>
      %cst_150 = arith.constant 5.000000e-01 : f32
      %404 = vector.broadcast %cst_150 : f32 to vector<16x32xf32>
      %405 = arith.mulf %404, %403 : vector<16x32xf32>
      %406 = arith.mulf %393, %405 : vector<16x32xf32>
      %c0_151 = arith.constant 0 : index
      %c0_152 = arith.constant 0 : index
      %407 = vector.load %arg29[%c0_151, %c0_152] : memref<1x32xf32, #tpu.memory_space<vmem>>, vector<1x32xf32>
      %c0_153 = arith.constant 0 : index
      %c0_154 = arith.constant 0 : index
      %408 = vector.load %arg30[%c0_153, %c0_154] : memref<1x32xf32, #tpu.memory_space<vmem>>, vector<1x32xf32>
      %cst_155 = arith.constant dense<0.000000e+00> : vector<16xf32>
      %409 = vector.multi_reduction <add>, %406, %cst_155 [1] : vector<16x32xf32> to vector<16xf32>
      %410 = vector.shape_cast %409 : vector<16xf32> to vector<16x1xf32>
      %cst_156 = arith.constant 3.200000e+01 : f32
      %411 = vector.broadcast %cst_156 : f32 to vector<16x1xf32>
      %412 = arith.divf %410, %411 : vector<16x1xf32>
      %413 = vector.broadcast %412 : vector<16x1xf32> to vector<16x32xf32>
      %414 = arith.subf %406, %413 : vector<16x32xf32>
      %415 = arith.mulf %414, %414 : vector<16x32xf32>
      %cst_157 = arith.constant dense<0.000000e+00> : vector<16xf32>
      %416 = vector.multi_reduction <add>, %415, %cst_157 [1] : vector<16x32xf32> to vector<16xf32>
      %417 = vector.shape_cast %416 : vector<16xf32> to vector<16x1xf32>
      %cst_158 = arith.constant 3.200000e+01 : f32
      %418 = vector.broadcast %cst_158 : f32 to vector<16x1xf32>
      %419 = arith.divf %417, %418 : vector<16x1xf32>
      %420 = vector.broadcast %412 : vector<16x1xf32> to vector<16x32xf32>
      %421 = arith.subf %406, %420 : vector<16x32xf32>
      %cst_159 = arith.constant 9.99999996E-13 : f32
      %422 = vector.broadcast %cst_159 : f32 to vector<16x1xf32>
      %423 = arith.addf %419, %422 : vector<16x1xf32>
      %424 = math.rsqrt %423 : vector<16x1xf32>
      %425 = vector.broadcast %424 : vector<16x1xf32> to vector<16x32xf32>
      %426 = arith.mulf %421, %425 : vector<16x32xf32>
      %427 = vector.broadcast %407 : vector<1x32xf32> to vector<16x32xf32>
      %428 = arith.mulf %426, %427 : vector<16x32xf32>
      %429 = vector.broadcast %408 : vector<1x32xf32> to vector<16x32xf32>
      %430 = arith.addf %428, %429 : vector<16x32xf32>
      %431 = arith.truncf %430 : vector<16x32xf32> to vector<16x32xbf16>
      %c0_160 = arith.constant 0 : index
      %c0_161 = arith.constant 0 : index
      %432 = vector.load %arg31[%c0_160, %c0_161] : memref<32x128xf32, #tpu.memory_space<vmem>>, vector<32x128xf32>
      %433 = arith.truncf %432 : vector<32x128xf32> to vector<32x128xbf16>
      %cst_162 = arith.constant dense<0.000000e+00> : vector<16x128xf32>
      %434 = tpu.matmul %431, %433, %cst_162 {dimension_numbers = #tpu.dot_dimension_numbers<[1], [0], [0], [1], [0, 0, 1, 1], [], []>} : vector<16x32xbf16>, vector<32x128xbf16>, vector<16x128xf32> -> vector<16x128xf32>
      %c0_163 = arith.constant 0 : index
      %c0_164 = arith.constant 0 : index
      %435 = vector.load %arg32[%c0_163, %c0_164] : memref<1x128xf32, #tpu.memory_space<vmem>>, vector<1x128xf32>
      %436 = vector.broadcast %435 : vector<1x128xf32> to vector<16x128xf32>
      %437 = arith.addf %434, %436 : vector<16x128xf32>
      %438 = tpu.iota {dimensions = array<i32: 1>} : vector<16x128xi32>
      %c100_i32 = arith.constant 100 : i32
      %439 = vector.broadcast %c100_i32 : i32 to vector<16x128xi32>
      %440 = arith.cmpi slt, %438, %439 : vector<16x128xi32>
      %cst_165 = arith.constant -1.000000e+30 : f32
      %441 = vector.broadcast %cst_165 : f32 to vector<16x128xf32>
      %442 = arith.select %440, %437, %441 : vector<16x128xi1>, vector<16x128xf32>
      %cst_166 = arith.constant dense<0xFF800000> : vector<16xf32>
      %443 = vector.multi_reduction <maximumf>, %442, %cst_166 [1] : vector<16x128xf32> to vector<16xf32>
      %444 = vector.shape_cast %443 : vector<16xf32> to vector<16x1xf32>
      %445 = vector.broadcast %444 : vector<16x1xf32> to vector<16x128xf32>
      %446 = arith.subf %442, %445 : vector<16x128xf32>
      %447 = math.exp %446 : vector<16x128xf32>
      %cst_167 = arith.constant dense<0.000000e+00> : vector<16xf32>
      %448 = vector.multi_reduction <add>, %447, %cst_167 [1] : vector<16x128xf32> to vector<16xf32>
      %449 = vector.shape_cast %448 : vector<16xf32> to vector<16x1xf32>
      %450 = math.log %449 : vector<16x1xf32>
      %451 = vector.broadcast %450 : vector<16x1xf32> to vector<16x128xf32>
      %452 = arith.subf %446, %451 : vector<16x128xf32>
      %cst_168 = arith.constant 0.000000e+00 : f32
      %453 = vector.broadcast %cst_168 : f32 to vector<16x128xf32>
      %454 = arith.select %440, %452, %453 : vector<16x128xi1>, vector<16x128xf32>
      %cst_169 = arith.constant dense<0.000000e+00> : vector<16xf32>
      %455 = vector.multi_reduction <add>, %454, %cst_169 [1] : vector<16x128xf32> to vector<16xf32>
      %456 = vector.shape_cast %455 : vector<16xf32> to vector<16x1xf32>
      %cst_170 = arith.constant 0.000000e+00 : f32
      %457 = vector.broadcast %cst_170 : f32 to vector<16x1xf32>
      %458 = arith.subf %457, %456 : vector<16x1xf32>
      %cst_171 = arith.constant 1.000000e+02 : f32
      %459 = vector.broadcast %cst_171 : f32 to vector<16x1xf32>
      %460 = arith.divf %458, %459 : vector<16x1xf32>
      %461 = tpu.iota {dimensions = array<i32: 1>} : vector<1x128xi32>
      %c0_172 = arith.constant 0 : index
      %c1 = arith.constant 1 : index
      %462 = memref.load %arg33[%c0_172, %c1] : memref<2x8xi32, #tpu.memory_space<smem>>
      %463 = vector.broadcast %462 : i32 to vector<1x128xi32>
      %464 = arith.cmpi eq, %461, %463 : vector<1x128xi32>
      %465 = arith.extui %464 : vector<1x128xi1> to vector<1x128xi32>
      %466 = arith.sitofp %465 : vector<1x128xi32> to vector<1x128xf32>
      %c0_i32_173 = arith.constant 0 : i32
      %467 = arith.cmpi sge, %462, %c0_i32_173 : i32
      %468 = arith.extui %467 : i1 to i32
      %469 = arith.sitofp %468 : i32 to f32
      %470 = vector.broadcast %469 : f32 to vector<1x1xf32>
      %c0_174 = arith.constant 0 : index
      %c2 = arith.constant 2 : index
      %471 = memref.load %arg33[%c0_174, %c2] : memref<2x8xi32, #tpu.memory_space<smem>>
      %472 = vector.broadcast %471 : i32 to vector<1x128xi32>
      %473 = arith.cmpi eq, %461, %472 : vector<1x128xi32>
      %474 = arith.extui %473 : vector<1x128xi1> to vector<1x128xi32>
      %475 = arith.sitofp %474 : vector<1x128xi32> to vector<1x128xf32>
      %c0_i32_175 = arith.constant 0 : i32
      %476 = arith.cmpi sge, %471, %c0_i32_175 : i32
      %477 = arith.extui %476 : i1 to i32
      %478 = arith.sitofp %477 : i32 to f32
      %479 = vector.broadcast %478 : f32 to vector<1x1xf32>
      %c0_176 = arith.constant 0 : index
      %c3 = arith.constant 3 : index
      %480 = memref.load %arg33[%c0_176, %c3] : memref<2x8xi32, #tpu.memory_space<smem>>
      %481 = vector.broadcast %480 : i32 to vector<1x128xi32>
      %482 = arith.cmpi eq, %461, %481 : vector<1x128xi32>
      %483 = arith.extui %482 : vector<1x128xi1> to vector<1x128xi32>
      %484 = arith.sitofp %483 : vector<1x128xi32> to vector<1x128xf32>
      %c0_i32_177 = arith.constant 0 : i32
      %485 = arith.cmpi sge, %480, %c0_i32_177 : i32
      %486 = arith.extui %485 : i1 to i32
      %487 = arith.sitofp %486 : i32 to f32
      %488 = vector.broadcast %487 : f32 to vector<1x1xf32>
      %c0_178 = arith.constant 0 : index
      %c4 = arith.constant 4 : index
      %489 = memref.load %arg33[%c0_178, %c4] : memref<2x8xi32, #tpu.memory_space<smem>>
      %490 = vector.broadcast %489 : i32 to vector<1x128xi32>
      %491 = arith.cmpi eq, %461, %490 : vector<1x128xi32>
      %492 = arith.extui %491 : vector<1x128xi1> to vector<1x128xi32>
      %493 = arith.sitofp %492 : vector<1x128xi32> to vector<1x128xf32>
      %c0_i32_179 = arith.constant 0 : i32
      %494 = arith.cmpi sge, %489, %c0_i32_179 : i32
      %495 = arith.extui %494 : i1 to i32
      %496 = arith.sitofp %495 : i32 to f32
      %497 = vector.broadcast %496 : f32 to vector<1x1xf32>
      %c0_180 = arith.constant 0 : index
      %c5 = arith.constant 5 : index
      %498 = memref.load %arg33[%c0_180, %c5] : memref<2x8xi32, #tpu.memory_space<smem>>
      %499 = vector.broadcast %498 : i32 to vector<1x128xi32>
      %500 = arith.cmpi eq, %461, %499 : vector<1x128xi32>
      %501 = arith.extui %500 : vector<1x128xi1> to vector<1x128xi32>
      %502 = arith.sitofp %501 : vector<1x128xi32> to vector<1x128xf32>
      %c0_i32_181 = arith.constant 0 : i32
      %503 = arith.cmpi sge, %498, %c0_i32_181 : i32
      %504 = arith.extui %503 : i1 to i32
      %505 = arith.sitofp %504 : i32 to f32
      %506 = vector.broadcast %505 : f32 to vector<1x1xf32>
      %c0_182 = arith.constant 0 : index
      %c6 = arith.constant 6 : index
      %507 = memref.load %arg33[%c0_182, %c6] : memref<2x8xi32, #tpu.memory_space<smem>>
      %508 = vector.broadcast %507 : i32 to vector<1x128xi32>
      %509 = arith.cmpi eq, %461, %508 : vector<1x128xi32>
      %510 = arith.extui %509 : vector<1x128xi1> to vector<1x128xi32>
      %511 = arith.sitofp %510 : vector<1x128xi32> to vector<1x128xf32>
      %c0_i32_183 = arith.constant 0 : i32
      %512 = arith.cmpi sge, %507, %c0_i32_183 : i32
      %513 = arith.extui %512 : i1 to i32
      %514 = arith.sitofp %513 : i32 to f32
      %515 = vector.broadcast %514 : f32 to vector<1x1xf32>
      %c0_184 = arith.constant 0 : index
      %c7 = arith.constant 7 : index
      %516 = memref.load %arg33[%c0_184, %c7] : memref<2x8xi32, #tpu.memory_space<smem>>
      %517 = vector.broadcast %516 : i32 to vector<1x128xi32>
      %518 = arith.cmpi eq, %461, %517 : vector<1x128xi32>
      %519 = arith.extui %518 : vector<1x128xi1> to vector<1x128xi32>
      %520 = arith.sitofp %519 : vector<1x128xi32> to vector<1x128xf32>
      %c0_i32_185 = arith.constant 0 : i32
      %521 = arith.cmpi sge, %516, %c0_i32_185 : i32
      %522 = arith.extui %521 : i1 to i32
      %523 = arith.sitofp %522 : i32 to f32
      %524 = vector.broadcast %523 : f32 to vector<1x1xf32>
      %cst_186 = arith.constant 0.000000e+00 : f32
      %525 = vector.broadcast %cst_186 : f32 to vector<1x128xf32>
      %cst_187 = arith.constant 0.000000e+00 : f32
      %526 = vector.broadcast %cst_187 : f32 to vector<1x1xf32>
      %c1_188 = arith.constant 1 : index
      %c1_189 = arith.constant 1 : index
      %527 = memref.load %arg33[%c1_188, %c1_189] : memref<2x8xi32, #tpu.memory_space<smem>>
      %528 = vector.broadcast %527 : i32 to vector<1x128xi32>
      %529 = arith.cmpi eq, %461, %528 : vector<1x128xi32>
      %530 = arith.extui %529 : vector<1x128xi1> to vector<1x128xi32>
      %531 = arith.sitofp %530 : vector<1x128xi32> to vector<1x128xf32>
      %c0_i32_190 = arith.constant 0 : i32
      %532 = arith.cmpi sge, %527, %c0_i32_190 : i32
      %533 = arith.extui %532 : i1 to i32
      %534 = arith.sitofp %533 : i32 to f32
      %535 = vector.broadcast %534 : f32 to vector<1x1xf32>
      %c1_191 = arith.constant 1 : index
      %c2_192 = arith.constant 2 : index
      %536 = memref.load %arg33[%c1_191, %c2_192] : memref<2x8xi32, #tpu.memory_space<smem>>
      %537 = vector.broadcast %536 : i32 to vector<1x128xi32>
      %538 = arith.cmpi eq, %461, %537 : vector<1x128xi32>
      %539 = arith.extui %538 : vector<1x128xi1> to vector<1x128xi32>
      %540 = arith.sitofp %539 : vector<1x128xi32> to vector<1x128xf32>
      %c0_i32_193 = arith.constant 0 : i32
      %541 = arith.cmpi sge, %536, %c0_i32_193 : i32
      %542 = arith.extui %541 : i1 to i32
      %543 = arith.sitofp %542 : i32 to f32
      %544 = vector.broadcast %543 : f32 to vector<1x1xf32>
      %c1_194 = arith.constant 1 : index
      %c3_195 = arith.constant 3 : index
      %545 = memref.load %arg33[%c1_194, %c3_195] : memref<2x8xi32, #tpu.memory_space<smem>>
      %546 = vector.broadcast %545 : i32 to vector<1x128xi32>
      %547 = arith.cmpi eq, %461, %546 : vector<1x128xi32>
      %548 = arith.extui %547 : vector<1x128xi1> to vector<1x128xi32>
      %549 = arith.sitofp %548 : vector<1x128xi32> to vector<1x128xf32>
      %c0_i32_196 = arith.constant 0 : i32
      %550 = arith.cmpi sge, %545, %c0_i32_196 : i32
      %551 = arith.extui %550 : i1 to i32
      %552 = arith.sitofp %551 : i32 to f32
      %553 = vector.broadcast %552 : f32 to vector<1x1xf32>
      %c1_197 = arith.constant 1 : index
      %c4_198 = arith.constant 4 : index
      %554 = memref.load %arg33[%c1_197, %c4_198] : memref<2x8xi32, #tpu.memory_space<smem>>
      %555 = vector.broadcast %554 : i32 to vector<1x128xi32>
      %556 = arith.cmpi eq, %461, %555 : vector<1x128xi32>
      %557 = arith.extui %556 : vector<1x128xi1> to vector<1x128xi32>
      %558 = arith.sitofp %557 : vector<1x128xi32> to vector<1x128xf32>
      %c0_i32_199 = arith.constant 0 : i32
      %559 = arith.cmpi sge, %554, %c0_i32_199 : i32
      %560 = arith.extui %559 : i1 to i32
      %561 = arith.sitofp %560 : i32 to f32
      %562 = vector.broadcast %561 : f32 to vector<1x1xf32>
      %c1_200 = arith.constant 1 : index
      %c5_201 = arith.constant 5 : index
      %563 = memref.load %arg33[%c1_200, %c5_201] : memref<2x8xi32, #tpu.memory_space<smem>>
      %564 = vector.broadcast %563 : i32 to vector<1x128xi32>
      %565 = arith.cmpi eq, %461, %564 : vector<1x128xi32>
      %566 = arith.extui %565 : vector<1x128xi1> to vector<1x128xi32>
      %567 = arith.sitofp %566 : vector<1x128xi32> to vector<1x128xf32>
      %c0_i32_202 = arith.constant 0 : i32
      %568 = arith.cmpi sge, %563, %c0_i32_202 : i32
      %569 = arith.extui %568 : i1 to i32
      %570 = arith.sitofp %569 : i32 to f32
      %571 = vector.broadcast %570 : f32 to vector<1x1xf32>
      %c1_203 = arith.constant 1 : index
      %c6_204 = arith.constant 6 : index
      %572 = memref.load %arg33[%c1_203, %c6_204] : memref<2x8xi32, #tpu.memory_space<smem>>
      %573 = vector.broadcast %572 : i32 to vector<1x128xi32>
      %574 = arith.cmpi eq, %461, %573 : vector<1x128xi32>
      %575 = arith.extui %574 : vector<1x128xi1> to vector<1x128xi32>
      %576 = arith.sitofp %575 : vector<1x128xi32> to vector<1x128xf32>
      %c0_i32_205 = arith.constant 0 : i32
      %577 = arith.cmpi sge, %572, %c0_i32_205 : i32
      %578 = arith.extui %577 : i1 to i32
      %579 = arith.sitofp %578 : i32 to f32
      %580 = vector.broadcast %579 : f32 to vector<1x1xf32>
      %c1_206 = arith.constant 1 : index
      %c7_207 = arith.constant 7 : index
      %581 = memref.load %arg33[%c1_206, %c7_207] : memref<2x8xi32, #tpu.memory_space<smem>>
      %582 = vector.broadcast %581 : i32 to vector<1x128xi32>
      %583 = arith.cmpi eq, %461, %582 : vector<1x128xi32>
      %584 = arith.extui %583 : vector<1x128xi1> to vector<1x128xi32>
      %585 = arith.sitofp %584 : vector<1x128xi32> to vector<1x128xf32>
      %c0_i32_208 = arith.constant 0 : i32
      %586 = arith.cmpi sge, %581, %c0_i32_208 : i32
      %587 = arith.extui %586 : i1 to i32
      %588 = arith.sitofp %587 : i32 to f32
      %589 = vector.broadcast %588 : f32 to vector<1x1xf32>
      %cst_209 = arith.constant 0.000000e+00 : f32
      %590 = vector.broadcast %cst_209 : f32 to vector<1x128xf32>
      %cst_210 = arith.constant 0.000000e+00 : f32
      %591 = vector.broadcast %cst_210 : f32 to vector<1x1xf32>
      %592 = tpu.concatenate %466, %475, %484, %493, %502, %511, %520, %525, %531, %540, %549, %558, %567, %576, %585, %590 in 0 : vector<1x128xf32>, vector<1x128xf32>, vector<1x128xf32>, vector<1x128xf32>, vector<1x128xf32>, vector<1x128xf32>, vector<1x128xf32>, vector<1x128xf32>, vector<1x128xf32>, vector<1x128xf32>, vector<1x128xf32>, vector<1x128xf32>, vector<1x128xf32>, vector<1x128xf32>, vector<1x128xf32>, vector<1x128xf32> -> vector<16x128xf32>
      %593 = tpu.concatenate %470, %479, %488, %497, %506, %515, %524, %526, %535, %544, %553, %562, %571, %580, %589, %591 in 0 : vector<1x1xf32>, vector<1x1xf32>, vector<1x1xf32>, vector<1x1xf32>, vector<1x1xf32>, vector<1x1xf32>, vector<1x1xf32>, vector<1x1xf32>, vector<1x1xf32>, vector<1x1xf32>, vector<1x1xf32>, vector<1x1xf32>, vector<1x1xf32>, vector<1x1xf32>, vector<1x1xf32>, vector<1x1xf32> -> vector<16x1xf32>
      %594 = arith.mulf %452, %592 : vector<16x128xf32>
      %cst_211 = arith.constant dense<0.000000e+00> : vector<16xf32>
      %595 = vector.multi_reduction <add>, %594, %cst_211 [1] : vector<16x128xf32> to vector<16xf32>
      %596 = vector.shape_cast %595 : vector<16xf32> to vector<16x1xf32>
      %cst_212 = arith.constant 0.000000e+00 : f32
      %597 = vector.broadcast %cst_212 : f32 to vector<16x1xf32>
      %598 = arith.subf %597, %596 : vector<16x1xf32>
      %cst_213 = arith.constant 0.899999976 : f32
      %599 = vector.broadcast %cst_213 : f32 to vector<16x1xf32>
      %600 = arith.mulf %599, %598 : vector<16x1xf32>
      %cst_214 = arith.constant 1.000000e-01 : f32
      %601 = vector.broadcast %cst_214 : f32 to vector<16x1xf32>
      %602 = arith.mulf %601, %460 : vector<16x1xf32>
      %603 = arith.addf %600, %602 : vector<16x1xf32>
      %604 = arith.mulf %603, %593 : vector<16x1xf32>
      %605 = vector.shape_cast %604 : vector<16x1xf32> to vector<1x16x1xf32>
      %cst_215 = arith.constant dense<0.000000e+00> : vector<1xf32>
      %606 = vector.multi_reduction <add>, %605, %cst_215 [1, 2] : vector<1x16x1xf32> to vector<1xf32>
      %607 = vector.shape_cast %606 : vector<1xf32> to vector<1x1x1xf32>
      %608 = vector.extract %607[0, 0, 0] : f32 from vector<1x1x1xf32>
      %609 = vector.broadcast %608 : f32 to vector<1x1xf32>
      %610 = vector.shape_cast %593 : vector<16x1xf32> to vector<1x16x1xf32>
      %cst_216 = arith.constant dense<0.000000e+00> : vector<1xf32>
      %611 = vector.multi_reduction <add>, %610, %cst_216 [1, 2] : vector<1x16x1xf32> to vector<1xf32>
      %612 = vector.shape_cast %611 : vector<1xf32> to vector<1x1x1xf32>
      %613 = vector.extract %612[0, 0, 0] : f32 from vector<1x1x1xf32>
      %614 = vector.broadcast %613 : f32 to vector<1x1xf32>
      %cst_217 = arith.constant 1.000000e+00 : f32
      %615 = vector.broadcast %cst_217 : f32 to vector<1x1xf32>
      %616 = arith.maximumf %614, %615 : vector<1x1xf32>
      %617 = arith.divf %609, %616 : vector<1x1xf32>
      %c0_218 = arith.constant 0 : index
      %c0_219 = arith.constant 0 : index
      %618 = vector.load %arg34[%c0_218, %c0_219] : memref<1x1xf32, #tpu.memory_space<vmem>>, vector<1x1xf32>
      tpu.vector_store %arg34[%c0_218, %c0_219], %617 {strides = array<i32>} : memref<1x1xf32, #tpu.memory_space<vmem>>, vector<1x1xf32>,
    } else {
    }
    return
  }
  func.func @transform_0(%arg0: i32) -> (i32, i32, i32) {
    %c0_i32 = arith.constant 0 : i32
    %c0_i32_0 = arith.constant 0 : i32
    %c0_i32_1 = arith.constant 0 : i32
    %c0_i32_2 = arith.constant 0 : i32
    return %c0_i32, %c0_i32_0, %c0_i32_1 : i32, i32, i32
  }
  func.func @transform_1(%arg0: i32) -> (i32, i32) {
    %c0_i32 = arith.constant 0 : i32
    %c0_i32_0 = arith.constant 0 : i32
    %c0_i32_1 = arith.constant 0 : i32
    return %c0_i32, %c0_i32_0 : i32, i32
  }
  func.func @transform_2(%arg0: i32) -> (i32, i32) {
    %c0_i32 = arith.constant 0 : i32
    %c0_i32_0 = arith.constant 0 : i32
    %c0_i32_1 = arith.constant 0 : i32
    return %c0_i32, %c0_i32_0 : i32, i32
  }
  func.func @transform_3(%arg0: i32) -> (i32, i32) {
    %c0_i32 = arith.constant 0 : i32
    %c0_i32_0 = arith.constant 0 : i32
    %c0_i32_1 = arith.constant 0 : i32
    return %c0_i32, %c0_i32_0 : i32, i32
  }
  func.func @transform_4(%arg0: i32) -> (i32, i32, i32) {
    %c0_i32 = arith.constant 0 : i32
    %c0_i32_0 = arith.constant 0 : i32
    %c0_i32_1 = arith.constant 0 : i32
    %c0_i32_2 = arith.constant 0 : i32
    return %c0_i32, %c0_i32_0, %c0_i32_1 : i32, i32, i32
  }
  func.func @transform_5(%arg0: i32) -> (i32, i32) {
    %c0_i32 = arith.constant 0 : i32
    %c0_i32_0 = arith.constant 0 : i32
    %c0_i32_1 = arith.constant 0 : i32
    return %c0_i32, %c0_i32_0 : i32, i32
  }
  func.func @transform_6(%arg0: i32) -> (i32, i32, i32) {
    %c0_i32 = arith.constant 0 : i32
    %c0_i32_0 = arith.constant 0 : i32
    %c0_i32_1 = arith.constant 0 : i32
    return %arg0, %c0_i32, %c0_i32_0 : i32, i32, i32
  }
  func.func @transform_7(%arg0: i32) -> (i32, i32, i32) {
    %c0_i32 = arith.constant 0 : i32
    %c0_i32_0 = arith.constant 0 : i32
    %c0_i32_1 = arith.constant 0 : i32
    return %arg0, %c0_i32, %c0_i32_0 : i32, i32, i32
  }
  func.func @transform_8(%arg0: i32) -> (i32, i32, i32) {
    %c0_i32 = arith.constant 0 : i32
    %c0_i32_0 = arith.constant 0 : i32
    %c0_i32_1 = arith.constant 0 : i32
    return %arg0, %c0_i32, %c0_i32_0 : i32, i32, i32
  }
  func.func @transform_9(%arg0: i32) -> (i32, i32, i32) {
    %c0_i32 = arith.constant 0 : i32
    %c0_i32_0 = arith.constant 0 : i32
    %c0_i32_1 = arith.constant 0 : i32
    return %arg0, %c0_i32, %c0_i32_0 : i32, i32, i32
  }
  func.func @transform_10(%arg0: i32) -> (i32, i32, i32) {
    %c0_i32 = arith.constant 0 : i32
    %c0_i32_0 = arith.constant 0 : i32
    %c0_i32_1 = arith.constant 0 : i32
    return %arg0, %c0_i32, %c0_i32_0 : i32, i32, i32
  }
  func.func @transform_11(%arg0: i32) -> (i32, i32, i32) {
    %c0_i32 = arith.constant 0 : i32
    %c0_i32_0 = arith.constant 0 : i32
    %c0_i32_1 = arith.constant 0 : i32
    return %arg0, %c0_i32, %c0_i32_0 : i32, i32, i32
  }
  func.func @transform_12(%arg0: i32) -> (i32, i32, i32) {
    %c0_i32 = arith.constant 0 : i32
    %c0_i32_0 = arith.constant 0 : i32
    %c0_i32_1 = arith.constant 0 : i32
    return %arg0, %c0_i32, %c0_i32_0 : i32, i32, i32
  }
  func.func @transform_13(%arg0: i32) -> (i32, i32, i32) {
    %c0_i32 = arith.constant 0 : i32
    %c0_i32_0 = arith.constant 0 : i32
    %c0_i32_1 = arith.constant 0 : i32
    return %arg0, %c0_i32, %c0_i32_0 : i32, i32, i32
  }
  func.func @transform_14(%arg0: i32) -> (i32, i32, i32) {
    %c0_i32 = arith.constant 0 : i32
    %c0_i32_0 = arith.constant 0 : i32
    %c0_i32_1 = arith.constant 0 : i32
    return %arg0, %c0_i32, %c0_i32_0 : i32, i32, i32
  }
  func.func @transform_15(%arg0: i32) -> (i32, i32, i32) {
    %c0_i32 = arith.constant 0 : i32
    %c0_i32_0 = arith.constant 0 : i32
    %c0_i32_1 = arith.constant 0 : i32
    return %arg0, %c0_i32, %c0_i32_0 : i32, i32, i32
  }
  func.func @transform_16(%arg0: i32) -> (i32, i32, i32) {
    %c0_i32 = arith.constant 0 : i32
    %c0_i32_0 = arith.constant 0 : i32
    %c0_i32_1 = arith.constant 0 : i32
    return %arg0, %c0_i32, %c0_i32_0 : i32, i32, i32
  }
  func.func @transform_17(%arg0: i32) -> (i32, i32, i32) {
    %c0_i32 = arith.constant 0 : i32
    %c0_i32_0 = arith.constant 0 : i32
    %c0_i32_1 = arith.constant 0 : i32
    return %arg0, %c0_i32, %c0_i32_0 : i32, i32, i32
  }
  func.func @transform_18(%arg0: i32) -> (i32, i32, i32) {
    %c0_i32 = arith.constant 0 : i32
    %c0_i32_0 = arith.constant 0 : i32
    %c0_i32_1 = arith.constant 0 : i32
    return %arg0, %c0_i32, %c0_i32_0 : i32, i32, i32
  }
  func.func @transform_19(%arg0: i32) -> (i32, i32, i32) {
    %c0_i32 = arith.constant 0 : i32
    %c0_i32_0 = arith.constant 0 : i32
    %c0_i32_1 = arith.constant 0 : i32
    return %arg0, %c0_i32, %c0_i32_0 : i32, i32, i32
  }
  func.func @transform_20(%arg0: i32) -> (i32, i32, i32) {
    %c0_i32 = arith.constant 0 : i32
    %c0_i32_0 = arith.constant 0 : i32
    %c0_i32_1 = arith.constant 0 : i32
    return %arg0, %c0_i32, %c0_i32_0 : i32, i32, i32
  }
  func.func @transform_21(%arg0: i32) -> (i32, i32, i32) {
    %c0_i32 = arith.constant 0 : i32
    %c0_i32_0 = arith.constant 0 : i32
    %c0_i32_1 = arith.constant 0 : i32
    return %arg0, %c0_i32, %c0_i32_0 : i32, i32, i32
  }
  func.func @transform_22(%arg0: i32) -> (i32, i32, i32) {
    %c0_i32 = arith.constant 0 : i32
    %c0_i32_0 = arith.constant 0 : i32
    %c0_i32_1 = arith.constant 0 : i32
    return %arg0, %c0_i32, %c0_i32_0 : i32, i32, i32
  }
  func.func @transform_23(%arg0: i32) -> (i32, i32, i32) {
    %c0_i32 = arith.constant 0 : i32
    %c0_i32_0 = arith.constant 0 : i32
    %c0_i32_1 = arith.constant 0 : i32
    return %arg0, %c0_i32, %c0_i32_0 : i32, i32, i32
  }
  func.func @transform_24(%arg0: i32) -> (i32, i32, i32) {
    %c0_i32 = arith.constant 0 : i32
    %c0_i32_0 = arith.constant 0 : i32
    %c0_i32_1 = arith.constant 0 : i32
    return %arg0, %c0_i32, %c0_i32_0 : i32, i32, i32
  }
  func.func @transform_25(%arg0: i32) -> (i32, i32, i32) {
    %c0_i32 = arith.constant 0 : i32
    %c0_i32_0 = arith.constant 0 : i32
    %c0_i32_1 = arith.constant 0 : i32
    return %arg0, %c0_i32, %c0_i32_0 : i32, i32, i32
  }
  func.func @transform_26(%arg0: i32) -> (i32, i32) {
    %c0_i32 = arith.constant 0 : i32
    %c0_i32_0 = arith.constant 0 : i32
    %c0_i32_1 = arith.constant 0 : i32
    return %c0_i32, %c0_i32_0 : i32, i32
  }
  func.func @transform_27(%arg0: i32) -> (i32, i32) {
    %c0_i32 = arith.constant 0 : i32
    %c0_i32_0 = arith.constant 0 : i32
    %c0_i32_1 = arith.constant 0 : i32
    return %c0_i32, %c0_i32_0 : i32, i32
  }
  func.func @transform_28(%arg0: i32) -> (i32, i32) {
    %c0_i32 = arith.constant 0 : i32
    %c0_i32_0 = arith.constant 0 : i32
    %c0_i32_1 = arith.constant 0 : i32
    return %c0_i32, %c0_i32_0 : i32, i32
  }
  func.func @transform_29(%arg0: i32) -> (i32, i32) {
    %c0_i32 = arith.constant 0 : i32
    %c0_i32_0 = arith.constant 0 : i32
    %c0_i32_1 = arith.constant 0 : i32
    return %c0_i32, %c0_i32_0 : i32, i32
  }
  func.func @transform_30(%arg0: i32) -> (i32, i32) {
    %c0_i32 = arith.constant 0 : i32
    %c0_i32_0 = arith.constant 0 : i32
    %c0_i32_1 = arith.constant 0 : i32
    return %c0_i32, %c0_i32_0 : i32, i32
  }
  func.func @transform_31(%arg0: i32) -> (i32, i32) {
    %c0_i32 = arith.constant 0 : i32
    %c0_i32_0 = arith.constant 0 : i32
    %c0_i32_1 = arith.constant 0 : i32
    return %c0_i32, %c0_i32_0 : i32, i32
  }
  func.func @transform_32(%arg0: i32) -> (i32, i32) {
    %c0_i32 = arith.constant 0 : i32
    %c0_i32_0 = arith.constant 0 : i32
    %c0_i32_1 = arith.constant 0 : i32
    return %c0_i32, %c0_i32_0 : i32, i32
  }
  func.func @transform_33(%arg0: i32) -> (i32, i32) {
    %c0_i32 = arith.constant 0 : i32
    %c0_i32_0 = arith.constant 0 : i32
    %c0_i32_1 = arith.constant 0 : i32
    return %c0_i32, %c0_i32_0 : i32, i32
  }
}

</mosaic_0001>

<bundles_post_ra>
// kernel: blip_decoder_forward.2
= control target key start
LH: loop header
LB: loop body
LE: loop exit
PB: predicated region body
PF: predicated region fallthrough
CT: control target
= control target key end

     0   :  { %s2794_s27 = smov 0   ;;  %s3262_s0 = inlined_call_operand.vmem [shape: f32[8,192], index: 0, kind: input, shape index: {}]   ;;  %s3263_s1 = inlined_call_operand.vmem [shape: f32[192,32], index: 1, kind: input, shape index: {}]   ;;  %s3264_s2 = inlined_call_operand.vmem [shape: f32[1,32], index: 2, kind: input, shape index: {}]   ;;  %s3265_s3 = inlined_call_operand.vmem [shape: f32[8,32], index: 3, kind: input, shape index: {}]   ;;  %s3266_s4 = inlined_call_operand.vmem [shape: f32[1,32], index: 4, kind: input, shape index: {}]   ;;  %s3267_s5 = inlined_call_operand.vmem [shape: f32[1,32], index: 5, kind: input, shape index: {}]   ;;  %s3268_s6 = inlined_call_operand.vmem [shape: f32[2,1,32], index: 6, kind: input, shape index: {}]   ;;  %s3269_s7 = inlined_call_operand.vmem [shape: f32[2,1,32], index: 7, kind: input, shape index: {}]   ;;  %s3270_s8 = inlined_call_operand.vmem [shape: f32[2,32,96], index: 8, kind: input, shape index: {}]   ;;  %s3271_s9 = inlined_call_operand.vmem [shape: f32[2,1,96], index: 9, kind: input, shape index: {}]   ;;  %s3272_s10 = inlined_call_operand.vmem [shape: f32[2,32,32], index: 10, kind: input, shape index: {}]   ;;  %s3273_s11 = inlined_call_operand.vmem [shape: f32[2,1,32], index: 11, kind: input, shape index: {}]   ;;  %s3274_s12 = inlined_call_operand.vmem [shape: f32[2,1,32], index: 12, kind: input, shape index: {}]   ;;  %s3275_s13 = inlined_call_operand.vmem [shape: f32[2,1,32], index: 13, kind: input, shape index: {}]   ;;  %s3276_s14 = inlined_call_operand.vmem [shape: f32[2,32,128], index: 14, kind: input, shape index: {}]   ;;  %s3277_s15 = inlined_call_operand.vmem [shape: f32[2,1,128], index: 15, kind: input, shape index: {}]   ;;  %s3278_s16 = inlined_call_operand.vmem [shape: f32[2,128,32], index: 16, kind: input, shape index: {}]   ;;  %s3279_s17 = inlined_call_operand.vmem [shape: f32[2,1,32], index: 17, kind: input, shape index: {}]   ;;  %s3280_s18 = inlined_call_operand.vmem [shape: f32[2,8,32], index: 18, kind: output, shape index: {}]  }
   0x1   :  { %3285 = sst [smem:[#allocation4_spill]] %s3262_s0 }
   0x2   :  { %3286 = sst [smem:[#allocation5_spill]] %s3263_s1 }
   0x3   :  { %3287 = sst [smem:[#allocation6_spill]] %s3264_s2 }
   0x4   :  { %3288 = sst [smem:[#allocation7_spill]] %s3266_s4 }
   0x5   :  { %3289 = sst [smem:[#allocation8_spill]] %s3267_s5 }
   0x6   :  { %3290 = sst [smem:[#allocation9_spill]] %s3269_s7 }
   0x7   :  { %3291 = sst [smem:[#allocation10_spill]] %s3270_s8 }
   0x8   :  { %3292 = sst [smem:[#allocation11_spill]] %s3272_s10 }
   0x9 LB: > { %3293 = sst [smem:[#allocation2_spill]] %s2679_s27  ;;  %s2800_s28 = sadd.s32 4294967295, %s2679_s27   ;;  %s2679_s27 = sphi %s2794_s27, %s28_s27  }
   0xa   : > { %p2341_p0 = scmp.ge.s32.totalorder %s2679_s27, 1  ;;  %p601_p1 = scmp.lt.s32.totalorder %s2679_s27, 3 }
   0xc   : > { %p602_p2 = pnand %p2341_p0, %p601_p1 }
   0xe   : > { %605 = sbr.rel (%p602_p2) target bundleno = 4579 (0x11e3), region = 92 }
  0x13   : > { %p689_p3 = scmp.lt.s32.totalorder %s2800_s28, 1  ;;  %s3295_s8 = sld [smem:[#allocation10_spill]] }
  0x14   : > { %s3296_s10 = sld [smem:[#allocation11_spill]]  ;;  %p2350_p4 = scmp.ne.s32.totalorder %s2800_s28, 0 }
  0x15   : > { %s2806_s29 = scalar_select %p689_p3, %s2800_s28, 1 }
  0x16   : > { %s3298_s25 = sld [smem:[#allocation5_spill]] (!%p2350_p4) }
  0x17   : > { %s2388_s22 = sshll.u32 %s2806_s29, 5  ;;  %s713_s7 = scalar_lea.vmem %s3274_s12, %s2806_s29 }
  0x18   : > { %s716_s24 = scalar_lea.vmem %s3275_s13, %s2806_s29  ;;  %s732_s2 = scalar_lea.vmem %s3279_s17, %s2806_s29 }
  0x19   : > { %s2824_s30 = scalar_lea.vmem %s3295_s8, %s2388_s22  ;;  %s2846_s8 = scalar_lea.vmem %s3276_s14, %s2388_s22 }
  0x1a   : > { %s2829_s5 = scalar_lea.vmem %s3296_s10, %s2388_s22  ;;  %737 = sbr.rel (%p2350_p4) target bundleno = 285 (0x11d), region = 96 }
  0x1b   : > { %3297 = sst [smem:[#allocation3_spill]] %s2829_s5  ;;  %s2391_s5 = sshll.u32 %s2806_s29, 7 }
  0x1c   : > { %s2856_s1 = scalar_lea.vmem %s3278_s16, %s2391_s5  ;;  %s3299_s4 = sld [smem:[#allocation4_spill]] (!%p2350_p4) }
  0x1d   : > { %s3300_s26 = sld [smem:[#allocation6_spill]] (!%p2350_p4) }
  0x1f   : > { %v756_v0 = vld [vmem:[%s3298_s25 + $0x70] sm:$0xff]  ;;  %v757_v1 = vld [vmem:[%s3298_s25 + $0x78] sm:$0xff]  ;;  %v754_v2 = vld [vmem:[%s3298_s25 + $0x60] sm:$0xff]  ;;  %v2681_v3 = vmov 0   ;;  %vm785_vm0 = vcmask 523264   ;;  %vm835_vm1 = vcmask 1040384  }
  0x20   : > { %789 = vmatprep.subr.bf16.mxu0 %v2681_v3  ;;  %v773_v4 = vpack.c.bf16 %v757_v1, %v756_v0  ;;  %v755_v5 = vld [vmem:[%s3298_s25 + $0x68] sm:$0xff]  ;;  %v752_v7 = vld [vmem:[%s3298_s25 + $0x50] sm:$0xff]  ;;  %v753_v8 = vld [vmem:[%s3298_s25 + $0x58] sm:$0xff]  ;;  %vm838_vm2 = vcmask 1044480   ;;  %vm844_vm3 = vcmask 261120  }
  0x21   : > { %v772_v6 = vpack.c.bf16 %v755_v5, %v754_v2  ;;  %v771_v9 = vpack.c.bf16 %v753_v8, %v752_v7  ;;  %v750_v10 = vld [vmem:[%s3298_s25 + $0x40] sm:$0xff]  ;;  %v751_v11 = vld [vmem:[%s3298_s25 + $0x48] sm:$0xff]  ;;  %v748_v15 = vld [vmem:[%s3298_s25 + $0x30] sm:$0xff] }
  0x22   : > { %790 = vmatpush1.bf16.msra.mxu0 %v773_v4  ;;  %v739_v12 = vld [vmem:[%s3299_s4 + $0x8] sm:$0xff]  ;;  %v770_v14 = vpack.c.bf16 %v751_v11, %v750_v10  ;;  %v749_v16 = vld [vmem:[%s3298_s25 + $0x38] sm:$0xff]  ;;  %v746_v18 = vld [vmem:[%s3298_s25 + $0x20] sm:$0xff] }
  0x23   : > { %791 = vmatprep.subr.bf16.mxu0 %v2681_v3  ;;  %v741_v13 = vpack.c.bf16 %v739_v12, %v739_v12  ;;  %v769_v17 = vpack.c.bf16 %v749_v16, %v748_v15  ;;  %v747_v19 = vld [vmem:[%s3298_s25 + $0x28] sm:$0xff]  ;;  %v744_v21 = vld [vmem:[%s3298_s25 + $0x10] sm:$0xff]  ;;  %v745_v22 = vld [vmem:[%s3298_s25 + $0x18] sm:$0xff] }
  0x24   : > { %v768_v20 = vpack.c.bf16 %v747_v19, %v746_v18  ;;  %v767_v23 = vpack.c.bf16 %v745_v22, %v744_v21  ;;  %v742_v24 = vld [vmem:[%s3298_s25] sm:$0xff]  ;;  %v743_v25 = vld [vmem:[%s3298_s25 + $0x8] sm:$0xff]  ;;  %v764_v27 = vld [vmem:[%s3298_s25 + $0xb0] sm:$0xff] }
  0x25   : > { %2352 = vmatprep.mubr.msk.bf16.mxu0 %vm785_vm0, %v741_v13  ;;  %v766_v26 = vpack.c.bf16 %v743_v25, %v742_v24  ;;  %v765_v28 = vld [vmem:[%s3298_s25 + $0xb8] sm:$0xff]  ;;  %v762_v30 = vld [vmem:[%s3298_s25 + $0xa0] sm:$0xff]  ;;  %v763_v31 = vld [vmem:[%s3298_s25 + $0xa8] sm:$0xff] }
  0x26   : > { %792 = vmatpush1.bf16.msra.mxu0 %v772_v6  ;;  %v777_v29 = vpack.c.bf16 %v765_v28, %v764_v27  ;;  %v776_v32 = vpack.c.bf16 %v763_v31, %v762_v30  ;;  %v760_v33 = vld [vmem:[%s3298_s25 + $0x90] sm:$0xff]  ;;  %v761_v34 = vld [vmem:[%s3298_s25 + $0x98] sm:$0xff]  ;;  %v758_v36 = vld [vmem:[%s3298_s25 + $0x80] sm:$0xff] }
  0x27   : > { %793 = vmatprep.subr.bf16.mxu0 %v2681_v3  ;;  %v775_v35 = vpack.c.bf16 %v761_v34, %v760_v33  ;;  %v759_v37 = vld [vmem:[%s3298_s25 + $0x88] sm:$0xff]  ;;  %v738_v39 = vld [vmem:[%s3299_s4] sm:$0xff] }
  0x28   : > { %v774_v38 = vpack.c.bf16 %v759_v37, %v758_v36  ;;  %v740_v40 = vpack.c.bf16 %v738_v39, %v738_v39  ;;  %v2351_v41 = vld [vmem:[%s3300_s26] ss:$0 sm:$0xff] }
  0x29   : > { %v841_v47 = vld [vmem:[%s3265_s3] sm:$0xff] }
  0x2a   : > { %794 = vmatpush1.bf16.msra.mxu0 %v771_v9 }
  0x2b   : > { %795 = vmatprep.subr.bf16.mxu0 %v2681_v3 }
  0x2e   : > { %796 = vmatpush1.bf16.msra.mxu0 %v770_v14 }
  0x2f   : > { %797 = vmatprep.subr.bf16.mxu0 %v2681_v3 }
  0x32   : > { %798 = vmatpush1.bf16.msra.mxu0 %v769_v17 }
  0x33   : > { %799 = vmatprep.subr.bf16.mxu0 %v2681_v3 }
  0x36   : > { %800 = vmatpush1.bf16.msra.mxu0 %v768_v20 }
  0x37   : > { %801 = vmatprep.subr.bf16.mxu0 %v2681_v3 }
  0x3a   : > { %802 = vmatpush1.bf16.msra.mxu0 %v767_v23 }
  0x3b   : > { %803 = vmatprep.subr.bf16.mxu0 %v2681_v3 }
  0x3e   : > { %804 = vmatpush1.bf16.msra.mxu0 %v766_v26 }
  0x3f   : > { %813 = vmatprep.subr.bf16.mxu0 %v2681_v3 }
  0x42   : > { %814 = vmatpush2.bf16.msra.mxu0 %v777_v29 }
  0x43   : > { %815 = vmatprep.subr.bf16.mxu0 %v2681_v3 }
  0x46   : > { %816 = vmatpush2.bf16.msra.mxu0 %v776_v32 }
  0x47   : > { %817 = vmatprep.subr.bf16.mxu0 %v2681_v3 }
  0x4a   : > { %818 = vmatpush2.bf16.msra.mxu0 %v775_v35 }
  0x4b   : > { %819 = vmatprep.subr.bf16.mxu0 %v2681_v3 }
  0x4e   : > { %820 = vmatpush2.bf16.msra.mxu0 %v774_v38 }
  0x51   : > { %822 = vmatmul.mubr.bf16.vlgmr.msra.gmra.mxu0 %v740_v40 }
 0x111   : > { %v823_v42 = vpop.f32.mrf.mxu0 }
 0x112   : > { %v824_v43 = vadd.f32 %v2351_v41, %v823_v42 }
 0x113   : > { %v825_v44 = vpop.f32.mrf.mxu0 }
 0x114   : > { %v830_v45 = vcombine.high %v824_v43, %v824_v43  ;;  %v831_v46 = vrot.slane %v824_v43, 7 }
 0x115   : > { %v826_v48 = vpop.f32.mrf.mxu0 }
 0x116   : > { %v832_v49 = vrot.slane %v830_v45, 7  ;;  %v836_v50 = vsel %vm835_vm1, 0.0, %v831_v46 }
 0x117   : > { %v839_v51 = vsel %vm838_vm2, %v836_v50, 0.0  ;;  %v827_v52 = vpop.f32.mrf.mxu0 }
 0x118   : > { %v837_v53 = vsel %vm835_vm1, 0.0, %v832_v49  ;;  %v842_v54 = vadd.f32 %v841_v47, %v839_v51 }
 0x119   : > { %v840_v55 = vsel %vm838_vm2, %v837_v53, 0.0 }
 0x11a   : > { %v843_v56 = vadd.f32 %v841_v47, %v840_v55  ;;  %845 = vst.msk [vmem:[%s3280_s18] sm:$0xff] %vm844_vm3, %v842_v54 }
 0x11c   : > { %846 = vst.msk [vmem:[%s3280_s18 + $0x8] sm:$0xff] %vm844_vm3, %v843_v56 }
 0x11d PF: > { %vm855_vm4 = vcmask 261120   ;;  %v902_v7 = vld [vmem:[%s2824_s30 + $0x10] sm:$0xff]  ;;  %v903_v8 = vld [vmem:[%s2824_s30 + $0x18] sm:$0xff]  ;;  %v900_v9 = vld [vmem:[%s2824_s30] sm:$0xff]  ;;  %v2682_v10 = vmov 0.0   ;;  %vm2683_vm5 = vmmov 0   ;;  %s3301_s0 = scalar_lea.vmem %s3268_s6, %s2806_s29  ;;  %s3304_s22 = scalar_lea.vmem %s3271_s9, %s2806_s29  ;;  %v849_v44 = vlaneseq }
 0x11e   : > { %2444 = vmatprep.subr.bf16.mxu0 %v2682_v10  ;;  %v905_v11 = vpack.c.bf16 %v903_v8, %v902_v7  ;;  %v901_v12 = vld [vmem:[%s2824_s30 + $0x8] sm:$0xff]  ;;  %2448 = vmatprep.mubr.msk.bf16.mxu0 %vm2683_vm5, %v2682_v10  ;;  %v2353_v22 = vld [vmem:[%s3301_s0] ss:$0 sm:$0xff]  ;;  %s3302_s21 = sld [smem:[#allocation9_spill]]  ;;  %s2684_s26 = smov 96   ;;  %vm965_vm6 = vcmask 64512  }
 0x11f   : > { %2464 = vmatprep.subr.bf16.mxu1 %v2682_v10  ;;  %2466 = vmatprep.mubr.msk.bf16.mxu1 %vm2683_vm5, %v2682_v10  ;;  %v904_v13 = vpack.c.bf16 %v901_v12, %v900_v9  ;;  %v2355_v31 = vld [vmem:[%s3304_s22] ss:$0 sm:$0xff]  ;;  %v850_v45 = vand.u32 127, %v849_v44  ;;  %v2685_v47 = vmov -1e+09   ;;  %s2686_s30 = smov 64  }
 0x120   : > { %2445 = vmatpush3.bf16.msra.mxu0 %v905_v11  ;;  %s2687_s27 = smov 88   ;;  %vm1093_vm8 = vcmask 1043456   ;;  %s2688_s0 = smov 120   ;;  %vm1883_vm9 = vcmask 130048   ;;  %vm1886_vm10 = vcmask 195584  }
 0x121   : > { %v2956_v57 = vld [vmem:[%s3280_s18] sm:$0xff]  ;;  %2446 = vmatprep.subr.bf16.mxu0 %v2682_v10  ;;  %vm851_vm7 = vcmp.lt.s32.totalorder %v850_v45, 5  ;;  %s2689_s5 = smov 56   ;;  %s2690_s19 = smov 80  }
 0x122   : > { %v856_v59 = vsel %vm855_vm4, %v2956_v57, 0.0  ;;  %v3019_v48 = vsel %vm851_vm7, 0.0, %v2685_v47  ;;  %s2693_s23 = smov 72   ;;  %s2694_s10 = smov 104  }
 0x123   : > { %v2961_v58 = vld [vmem:[%s3280_s18 + $0x8] sm:$0xff]  ;;  %857 = vadd.xlane.f32.xlu0 %v856_v59  ;;  %s2695_s22 = smov 40   ;;  %p2382_p5 = scmp.ge.s32.totalorder %s2800_s28, 1 }
 0x124   : > { %v859_v60 = vsel %vm855_vm4, %v2961_v58, 0.0  ;;  %2447 = vmatpush3.bf16.msra.mxu0 %v904_v13  ;;  %s3303_s20 = scalar_lea.vmem %s3302_s21, %s2806_s29  ;;  %s2691_s21 = smov 112  }
 0x125   : > { %2452 = vmatprep.subr.bf16.mxu0 %v2682_v10  ;;  %v2354_v26 = vld [vmem:[%s3303_s20] ss:$0 sm:$0xff]  ;;  %s2692_s20 = smov 48  }
 0x127   : > { %860 = vadd.xlane.f32.xlu0 %v859_v60 }
 0x1ac   : > { %v858_v61 = vpop.xlane.xlu0 %857 }
 0x1ad   : > { %v863_v62 = vmul.f32 0.03125, %v858_v61 }
 0x1af   : > { %v865_v63 = vsub.f32 %v2956_v57, %v863_v62 }
 0x1b0   : > { %v861_v0 = vpop.xlane.xlu0 %860 }
 0x1b1   : > { %v864_v1 = vmul.f32 0.03125, %v861_v0  ;;  %v867_v2 = vmul.f32 %v865_v63, %v865_v63 }
 0x1b3   : > { %v866_v3 = vsub.f32 %v2961_v58, %v864_v1  ;;  %v869_v4 = vsel %vm855_vm4, %v867_v2, 0.0 }
 0x1b4   : > { %870 = vadd.xlane.f32.xlu1 %v869_v4 }
 0x1b5   : > { %v868_v5 = vmul.f32 %v866_v3, %v866_v3 }
 0x1b7   : > { %v872_v6 = vsel %vm855_vm4, %v868_v5, 0.0 }
 0x1b8   : > { %873 = vadd.xlane.f32.xlu1 %v872_v6 }
 0x23d   : > { %v871_v14 = vpop.xlane.xlu1 %870 }
 0x23e   : > { %v875_v15 = vmul.f32 0.03125, %v871_v14 }
 0x240   : > { %v877_v16 = vadd.f32 1e-06, %v875_v15 }
 0x241   : > { %v874_v17 = vpop.xlane.xlu1 %873 }
 0x242   : > { %2625 = vrsqrt.f32 %v877_v16  ;;  %v876_v18 = vmul.f32 0.03125, %v874_v17 }
 0x244   : > { %v878_v19 = vadd.f32 1e-06, %v876_v18 }
 0x246   : > { %2627 = vrsqrt.f32 %v878_v19 }
 0x24f   : > { %v2626_v20 = vpop.eup %2625 }
 0x250   : > { %v881_v21 = vmul.f32 %v2626_v20, %v865_v63 }
 0x252   : > { %v889_v25 = vmul.f32 %v2353_v22, %v881_v21 }
 0x253   : > { %v2628_v23 = vpop.eup %2627 }
 0x254   : > { %v882_v24 = vmul.f32 %v2628_v23, %v866_v3  ;;  %v897_v28 = vadd.f32 %v2354_v26, %v889_v25 }
 0x256   : > { %v890_v27 = vmul.f32 %v2353_v22, %v882_v24 }
 0x258   : > { %v898_v29 = vadd.f32 %v2354_v26, %v890_v27 }
 0x25a   : > { %v899_v30 = vpack.c.bf16 %v898_v29, %v897_v28 }
 0x25c   : > { %2449 = vmatmul.mubr.msk.bf16.vlgmr.msra.gmra.mxu0 %vm855_vm4, %v899_v30 }
 0x25d   : > { %2454 = vmatprep.mubr.msk.bf16.mxu0 %vm2683_vm5, %v2682_v10 }
 0x31c   : > { %v950_v32 = vpop.f32.mrf.mxu0 }
 0x31d   : > { %v951_v33 = vadd.f32 %v2355_v31, %v950_v32 }
 0x31e   : > { %v2450_v34 = vpop.f32.mrf.mxu0 }
 0x31f   : > { %v3001_v35 = vpack.c.bf16 %v951_v33, %v951_v33 }
 0x320   : > { %v953_v36 = vpop.f32.mrf.mxu0 }
 0x321   : > { %v954_v37 = vadd.f32 %v2355_v31, %v953_v36  ;;  %963 = vrot.lane.b32.xlu0 %v3001_v35, %s2684_s26 }
 0x322   : > { %v2451_v38 = vpop.f32.mrf.mxu0 }
 0x323   : > { %v3004_v39 = vpack.c.bf16 %v954_v37, %v954_v37 }
 0x325   : > { %1012 = vrot.lane.b32.xlu1 %v3004_v39, %s2684_s26  ;;  %s2696_s26 = smov 8  }
 0x393   : > { %v964_v40 = vpop.permute.xlu0 %963 }
 0x394   : > { %v970_v41 = vsel %vm965_vm6, %v964_v40, 0 }
 0x395   : > { %2453 = vmatpush3.bf16.xpose.msra.mxu0 %v970_v41 }
 0x396   : > { %2458 = vmatprep.subr.bf16.mxu0 %v2682_v10 }
 0x397   : > { %v1013_v42 = vpop.permute.xlu1 %1012 }
 0x398   : > { %v1018_v43 = vsel %vm965_vm6, %v1013_v42, 0 }
 0x39c   : > { %2455 = vmatmul.mubr.msk.bf16.vlgmr.msra.gmra.mxu0 %vm965_vm6, %v3001_v35 }
 0x39d   : > { %2459 = vmatpush3.bf16.xpose.msra.mxu0 %v1018_v43  ;;  %2460 = vmatprep.mubr.msk.bf16.mxu0 %vm2683_vm5, %v2682_v10 }
 0x39e   : > { %2470 = vmatprep.subr.bf16.mxu0 %v2682_v10 }
 0x3a4   : > { %2461 = vmatmul.mubr.msk.bf16.vlgmr.msra.gmra.mxu0 %vm965_vm6, %v3004_v39 }
 0x3a5   : > { %2472 = vmatprep.mubr.msk.bf16.mxu0 %vm2683_vm5, %v2682_v10 }
 0x45c   : > { %v1006_v46 = vpop.f32.mrf.mxu0 }
 0x45d   : > { %v1060_v49 = vmul.f32 0.35355338, %v1006_v46 }
 0x45e   : > { %v2456_v50 = vpop.f32.mrf.mxu0 }
 0x45f   : > { %v1062_v51 = vadd.f32 %v1060_v49, %v3019_v48 }
 0x460   : > { %v1009_v52 = vpop.f32.mrf.mxu0 }
 0x461   : > { %v1064_v53 = vsel %vm965_vm6, %v1062_v51, -inf }
 0x462   : > { %1065 = vmax.xlane.f32.xlu1 %v1064_v53  ;;  %v2457_v54 = vpop.f32.mrf.mxu0 }
 0x464   : > { %v1054_v55 = vpop.f32.mrf.mxu0 }
 0x465   : > { %v1061_v56 = vmul.f32 0.35355338, %v1054_v55 }
 0x466   : > { %v2462_v59 = vpop.f32.mrf.mxu0 }
 0x467   : > { %v1063_v60 = vadd.f32 %v1061_v56, %v3019_v48 }
 0x468   : > { %v1057_v61 = vpop.f32.mrf.mxu0 }
 0x469   : > { %v1067_v62 = vsel %vm965_vm6, %v1063_v60, -inf }
 0x46a   : > { %1068 = vmax.xlane.f32.xlu0 %v1067_v62  ;;  %v2463_v63 = vpop.f32.mrf.mxu0 }
 0x473   : > { %1137 = vrot.lane.b32.xlu1 %v3004_v39, %s2686_s30 }
 0x477   : > { %1187 = vrot.lane.b32.xlu1 %v3001_v35, %s2687_s27 }
 0x4eb   : > { %v1066_v0 = vpop.xlane.xlu1 %1065 }
 0x4ec   : > { %v1070_v1 = vsub.f32 %v1062_v51, %v1066_v0 }
 0x4ee   : > { %v1072_v2 = vmul.f32 1.442695, %v1070_v1 }
 0x4ef   : > { %v1138_v3 = vpop.permute.xlu1 %1137 }
 0x4f0   : > { %2629 = vpow2.f32 %v1072_v2  ;;  %v1143_v4 = vsel %vm1093_vm8, %v1138_v3, 0 }
 0x4f1   : > { %2471 = vmatpush3.bf16.msra.mxu0 %v1143_v4 }
 0x4f2   : > { %2482 = vmatprep.subr.bf16.mxu0 %v2682_v10 }
 0x4f3   : > { %v1069_v5 = vpop.xlane.xlu0 %1068  ;;  %v1188_v14 = vpop.permute.xlu1 %1187 }
 0x4f4   : > { %v1071_v6 = vsub.f32 %v1063_v60, %v1069_v5  ;;  %v1193_v21 = vsel %vm965_vm6, %v1188_v14, 0 }
 0x4f6   : > { %v1074_v7 = vmul.f32 1.442695, %v1071_v6 }
 0x4f8   : > { %2631 = vpow2.f32 %v1074_v7 }
 0x4fd   : > { %v2630_v8 = vpop.eup %2629 }
 0x4fe   : > { %v1076_v9 = vsel %vm965_vm6, %v2630_v8, 0.0 }
 0x4ff   : > { %1077 = vadd.xlane.f32.xlu0 %v1076_v9 }
 0x505   : > { %v2632_v11 = vpop.eup %2631 }
 0x506   : > { %v1079_v12 = vsel %vm965_vm6, %v2632_v11, 0.0 }
 0x507   : > { %1080 = vadd.xlane.f32.xlu1 %v1079_v12 }
 0x515   : > { %1088 = vrot.lane.b32.xlu0 %v3001_v35, %s2686_s30  ;;  %s2697_s30 = smov 16  }
 0x518   : > { %1237 = vrot.lane.b32.xlu1 %v3004_v39, %s2687_s27  ;;  %s3305_s27 = sld [smem:[#allocation3_spill]] }
 0x519   : > { %1185 = vrot.lane.b32.xlu0 %v3001_v35, %s2688_s0 }
 0x51c   : > { %1235 = vrot.lane.b32.xlu1 %v3004_v39, %s2688_s0  ;;  %s2698_s0 = smov 24  }
 0x588   : > { %v1078_v13 = vpop.xlane.xlu0 %1077 }
 0x589   : > { %2633 = vrcp.f32 %v1078_v13 }
 0x58c   : > { %v1089_v15 = vpop.permute.xlu0 %1088 }
 0x58d   : > { %v1095_v16 = vsel %vm1093_vm8, %v1089_v15, 0 }
 0x58e   : > { %2465 = vmatpush3.bf16.msra.mxu1 %v1095_v16 }
 0x58f   : > { %2476 = vmatprep.subr.bf16.mxu1 %v2682_v10 }
 0x590   : > { %v1081_v17 = vpop.xlane.xlu1 %1080  ;;  %v1186_v26 = vpop.permute.xlu0 %1185 }
 0x591   : > { %2635 = vrcp.f32 %v1081_v17 }
 0x594   : > { %v1238_v24 = vpop.permute.xlu1 %1237 }
 0x595   : > { %v1243_v27 = vsel %vm965_vm6, %v1238_v24, 0 }
 0x596   : > { %v2634_v18 = vpop.eup %2633 }
 0x597   : > { %v1084_v19 = vmul.f32 %v2634_v18, %v2630_v8 }
 0x598   : > { %v1236_v28 = vpop.permute.xlu1 %1235 }
 0x599   : > { %v1086_v20 = vpack.c.bf16 %v1084_v19, %v1084_v19 }
 0x59b   : > { %2467 = vmatmul.mubr.msk.bf16.vlgmr.msra.gmra.mxu1 %vm965_vm6, %v1086_v20 }
 0x59c   : > { %2477 = vmatpush3.bf16.xpose.msra.mxu1 %v1193_v21  ;;  %2478 = vmatprep.mubr.msk.bf16.mxu1 %vm2683_vm5, %v2682_v10 }
 0x59d   : > { %2488 = vmatprep.subr.bf16.mxu1 %v2682_v10 }
 0x59e   : > { %v2636_v22 = vpop.eup %2635 }
 0x59f   : > { %v1085_v23 = vmul.f32 %v2636_v22, %v2632_v11 }
 0x5a1   : > { %v1087_v25 = vpack.c.bf16 %v1085_v23, %v1085_v23 }
 0x5a3   : > { %2473 = vmatmul.mubr.msk.bf16.vlgmr.msra.gmra.mxu0 %vm965_vm6, %v1087_v25  ;;  %2479 = vmatmul.mubr.msk.bf16.vlgmr.msra.gmra.mxu1 %vm965_vm6, %v1186_v26 }
 0x5a4   : > { %2483 = vmatpush3.bf16.xpose.msra.mxu0 %v1243_v27  ;;  %2484 = vmatprep.mubr.msk.bf16.mxu0 %vm2683_vm5, %v2682_v10 }
 0x5a5   : > { %2494 = vmatprep.subr.bf16.mxu0 %v2682_v10  ;;  %2490 = vmatprep.mubr.msk.bf16.mxu1 %vm2683_vm5, %v2682_v10 }
 0x5ab   : > { %2485 = vmatmul.mubr.msk.bf16.vlgmr.msra.gmra.mxu0 %vm965_vm6, %v1236_v28 }
 0x5ac   : > { %2496 = vmatprep.mubr.msk.bf16.mxu0 %vm2683_vm5, %v2682_v10 }
 0x65b   : > { %v3053_v29 = vpop.f32.mrf.mxu1 }
 0x65d   : > { %v2468_v30 = vpop.f32.mrf.mxu1 }
 0x65f   : > { %v1134_v31 = vpop.f32.mrf.mxu1 }
 0x661   : > { %v2469_v32 = vpop.f32.mrf.mxu1 }
 0x663   : > { %v3055_v33 = vpop.f32.mrf.mxu0  ;;  %v1229_v34 = vpop.f32.mrf.mxu1 }
 0x664   : > { %v1285_v36 = vmul.f32 0.35355338, %v1229_v34 }
 0x665   : > { %v2474_v37 = vpop.f32.mrf.mxu0  ;;  %v2480_v38 = vpop.f32.mrf.mxu1 }
 0x666   : > { %v1287_v40 = vadd.f32 %v1285_v36, %v3019_v48 }
 0x667   : > { %v1182_v41 = vpop.f32.mrf.mxu0  ;;  %v1232_v42 = vpop.f32.mrf.mxu1 }
 0x668   : > { %v1289_v43 = vsel %vm965_vm6, %v1287_v40, -inf }
 0x669   : > { %1290 = vmax.xlane.f32.xlu0 %v1289_v43  ;;  %v2475_v44 = vpop.f32.mrf.mxu0  ;;  %v2481_v45 = vpop.f32.mrf.mxu1 }
 0x66b   : > { %v1279_v46 = vpop.f32.mrf.mxu0 }
 0x66c   : > { %v1286_v47 = vmul.f32 0.35355338, %v1279_v46 }
 0x66d   : > { %v2486_v49 = vpop.f32.mrf.mxu0 }
 0x66e   : > { %v1288_v50 = vadd.f32 %v1286_v47, %v3019_v48 }
 0x66f   : > { %v1282_v51 = vpop.f32.mrf.mxu0 }
 0x670   : > { %v1292_v52 = vsel %vm965_vm6, %v1288_v50, -inf }
 0x671   : > { %1293 = vmax.xlane.f32.xlu1 %v1292_v52  ;;  %v2487_v53 = vpop.f32.mrf.mxu0 }
 0x682   : > { %1361 = vrot.lane.b32.xlu1 %v3004_v39, %s2689_s5 }
 0x686   : > { %1411 = vrot.lane.b32.xlu1 %v3001_v35, %s2690_s19 }
 0x68a   : > { %1461 = vrot.lane.b32.xlu1 %v3004_v39, %s2690_s19 }
 0x68e   : > { %1459 = vrot.lane.b32.xlu1 %v3004_v39, %s2691_s21 }
 0x6f2   : > { %v1291_v54 = vpop.xlane.xlu0 %1290 }
 0x6f3   : > { %v1295_v55 = vsub.f32 %v1287_v40, %v1291_v54 }
 0x6f5   : > { %v1297_v56 = vmul.f32 1.442695, %v1295_v55 }
 0x6f7   : > { %2637 = vpow2.f32 %v1297_v56 }
 0x6fa   : > { %v1294_v59 = vpop.xlane.xlu1 %1293 }
 0x6fb   : > { %v1296_v60 = vsub.f32 %v1288_v50, %v1294_v59 }
 0x6fd   : > { %v1299_v61 = vmul.f32 1.442695, %v1296_v60 }
 0x6fe   : > { %v1362_v62 = vpop.permute.xlu1 %1361 }
 0x6ff   : > { %2639 = vpow2.f32 %v1299_v61  ;;  %v1367_v63 = vsel %vm1093_vm8, %v1362_v62, 0 }
 0x700   : > { %2495 = vmatpush3.bf16.msra.mxu0 %v1367_v63 }
 0x701   : > { %2506 = vmatprep.subr.bf16.mxu0 %v2682_v10 }
 0x702   : > { %v1412_v11 = vpop.permute.xlu1 %1411 }
 0x703   : > { %v1417_v13 = vsel %vm965_vm6, %v1412_v11, 0 }
 0x704   : > { %v2638_v0 = vpop.eup %2637 }
 0x705   : > { %v1301_v1 = vsel %vm965_vm6, %v2638_v0, 0.0 }
 0x706   : > { %1302 = vadd.xlane.f32.xlu0 %v1301_v1  ;;  %v1462_v16 = vpop.permute.xlu1 %1461 }
 0x707   : > { %v1467_v19 = vsel %vm965_vm6, %v1462_v16, 0 }
 0x70a   : > { %v1460_v20 = vpop.permute.xlu1 %1459 }
 0x70c   : > { %v2640_v2 = vpop.eup %2639 }
 0x70d   : > { %v1304_v3 = vsel %vm965_vm6, %v2640_v2, 0.0 }
 0x70e   : > { %1305 = vadd.xlane.f32.xlu0 %v1304_v3 }
 0x724   : > { %1313 = vrot.lane.b32.xlu0 %v3001_v35, %s2689_s5 }
 0x728   : > { %1409 = vrot.lane.b32.xlu0 %v3001_v35, %s2691_s21  ;;  %s3306_s21 = scalar_lea.vmem %s3273_s11, %s2806_s29 }
 0x78f   : > { %v1303_v4 = vpop.xlane.xlu0 %1302 }
 0x790   : > { %2641 = vrcp.f32 %v1303_v4 }
 0x797   : > { %v1306_v5 = vpop.xlane.xlu0 %1305 }
 0x798   : > { %2643 = vrcp.f32 %v1306_v5 }
 0x79b   : > { %v1314_v6 = vpop.permute.xlu0 %1313 }
 0x79c   : > { %v1319_v7 = vsel %vm1093_vm8, %v1314_v6, 0 }
 0x79d   : > { %v2642_v8 = vpop.eup %2641  ;;  %2489 = vmatpush3.bf16.msra.mxu1 %v1319_v7 }
 0x79e   : > { %2500 = vmatprep.subr.bf16.mxu1 %v2682_v10  ;;  %v1309_v9 = vmul.f32 %v2642_v8, %v2638_v0 }
 0x79f   : > { %v1410_v18 = vpop.permute.xlu0 %1409 }
 0x7a0   : > { %v1311_v12 = vpack.c.bf16 %v1309_v9, %v1309_v9 }
 0x7a2   : > { %2491 = vmatmul.mubr.msk.bf16.vlgmr.msra.gmra.mxu1 %vm965_vm6, %v1311_v12 }
 0x7a3   : > { %2501 = vmatpush3.bf16.xpose.msra.mxu1 %v1417_v13  ;;  %2502 = vmatprep.mubr.msk.bf16.mxu1 %vm2683_vm5, %v2682_v10 }
 0x7a4   : > { %2512 = vmatprep.subr.bf16.mxu1 %v2682_v10 }
 0x7a5   : > { %v2644_v14 = vpop.eup %2643 }
 0x7a6   : > { %v1310_v15 = vmul.f32 %v2644_v14, %v2640_v2 }
 0x7a8   : > { %v1312_v17 = vpack.c.bf16 %v1310_v15, %v1310_v15 }
 0x7aa   : > { %2497 = vmatmul.mubr.msk.bf16.vlgmr.msra.gmra.mxu0 %vm965_vm6, %v1312_v17  ;;  %2503 = vmatmul.mubr.msk.bf16.vlgmr.msra.gmra.mxu1 %vm965_vm6, %v1410_v18 }
 0x7ab   : > { %2507 = vmatpush3.bf16.xpose.msra.mxu0 %v1467_v19  ;;  %2508 = vmatprep.mubr.msk.bf16.mxu0 %vm2683_vm5, %v2682_v10 }
 0x7ac   : > { %2518 = vmatprep.subr.bf16.mxu0 %v2682_v10  ;;  %2514 = vmatprep.mubr.msk.bf16.mxu1 %vm2683_vm5, %v2682_v10 }
 0x7b2   : > { %2509 = vmatmul.mubr.msk.bf16.vlgmr.msra.gmra.mxu0 %vm965_vm6, %v1460_v20 }
 0x7b3   : > { %2520 = vmatprep.mubr.msk.bf16.mxu0 %vm2683_vm5, %v2682_v10 }
 0x862   : > { %v3089_v21 = vpop.f32.mrf.mxu1 }
 0x864   : > { %v2492_v22 = vpop.f32.mrf.mxu1 }
 0x866   : > { %v1358_v23 = vpop.f32.mrf.mxu1 }
 0x868   : > { %v2493_v24 = vpop.f32.mrf.mxu1 }
 0x86a   : > { %v3091_v25 = vpop.f32.mrf.mxu0  ;;  %v1453_v26 = vpop.f32.mrf.mxu1 }
 0x86b   : > { %v2610_v27 = vpack.i.bf16 %v3091_v25, %v3089_v21  ;;  %v1509_v28 = vmul.f32 0.35355338, %v1453_v26 }
 0x86c   : > { %v2498_v30 = vpop.f32.mrf.mxu0  ;;  %v2504_v31 = vpop.f32.mrf.mxu1 }
 0x86d   : > { %v1511_v32 = vadd.f32 %v1509_v28, %v3019_v48 }
 0x86e   : > { %v1406_v34 = vpop.f32.mrf.mxu0  ;;  %v1456_v36 = vpop.f32.mrf.mxu1 }
 0x86f   : > { %v1513_v37 = vsel %vm965_vm6, %v1511_v32, -inf }
 0x870   : > { %1514 = vmax.xlane.f32.xlu0 %v1513_v37  ;;  %v2499_v38 = vpop.f32.mrf.mxu0  ;;  %v2505_v40 = vpop.f32.mrf.mxu1 }
 0x872   : > { %v1503_v41 = vpop.f32.mrf.mxu0 }
 0x873   : > { %v1510_v42 = vmul.f32 0.35355338, %v1503_v41 }
 0x874   : > { %v2510_v43 = vpop.f32.mrf.mxu0 }
 0x875   : > { %v1512_v44 = vadd.f32 %v1510_v42, %v3019_v48 }
 0x876   : > { %v1506_v45 = vpop.f32.mrf.mxu0 }
 0x877   : > { %v1516_v46 = vsel %vm965_vm6, %v1512_v44, -inf }
 0x878   : > { %1517 = vmax.xlane.f32.xlu1 %v1516_v46  ;;  %v2511_v47 = vpop.f32.mrf.mxu0 }
 0x889   : > { %1585 = vrot.lane.b32.xlu1 %v3004_v39, %s2692_s20 }
 0x88d   : > { %1635 = vrot.lane.b32.xlu1 %v3001_v35, %s2693_s23 }
 0x891   : > { %1685 = vrot.lane.b32.xlu1 %v3004_v39, %s2693_s23 }
 0x895   : > { %1683 = vrot.lane.b32.xlu1 %v3004_v39, %s2694_s10 }
 0x8f9   : > { %v1515_v49 = vpop.xlane.xlu0 %1514 }
 0x8fa   : > { %v1519_v50 = vsub.f32 %v1511_v32, %v1515_v49 }
 0x8fc   : > { %v1521_v51 = vmul.f32 1.442695, %v1519_v50 }
 0x8fe   : > { %2645 = vpow2.f32 %v1521_v51 }
 0x901   : > { %v1518_v52 = vpop.xlane.xlu1 %1517 }
 0x902   : > { %v1520_v53 = vsub.f32 %v1512_v44, %v1518_v52 }
 0x904   : > { %v1523_v54 = vmul.f32 1.442695, %v1520_v53 }
 0x905   : > { %v1586_v55 = vpop.permute.xlu1 %1585 }
 0x906   : > { %2647 = vpow2.f32 %v1523_v54  ;;  %v1591_v56 = vsel %vm1093_vm8, %v1586_v55, 0 }
 0x907   : > { %2519 = vmatpush3.bf16.msra.mxu0 %v1591_v56 }
 0x908   : > { %2530 = vmatprep.subr.bf16.mxu0 %v2682_v10 }
 0x909   : > { %v1636_v5 = vpop.permute.xlu1 %1635 }
 0x90a   : > { %v1641_v7 = vsel %vm965_vm6, %v1636_v5, 0  ;;  %v1891_v5 = vld [vmem:[%s3305_s27 + $0x8] sm:$0xff] }
 0x90b   : > { %v2646_v59 = vpop.eup %2645 }
 0x90c   : > { %v1525_v60 = vsel %vm965_vm6, %v2646_v59, 0.0 }
 0x90d   : > { %1526 = vadd.xlane.f32.xlu0 %v1525_v60  ;;  %v1686_v11 = vpop.permute.xlu1 %1685 }
 0x90e   : > { %v1691_v14 = vsel %vm965_vm6, %v1686_v11, 0 }
 0x911   : > { %v1684_v15 = vpop.permute.xlu1 %1683 }
 0x913   : > { %v2648_v61 = vpop.eup %2647 }
 0x914   : > { %v1528_v62 = vsel %vm965_vm6, %v2648_v61, 0.0 }
 0x915   : > { %1529 = vadd.xlane.f32.xlu0 %v1528_v62 }
 0x92b   : > { %1537 = vrot.lane.b32.xlu0 %v3001_v35, %s2692_s20 }
 0x92f   : > { %1633 = vrot.lane.b32.xlu0 %v3001_v35, %s2694_s10 }
 0x996   : > { %v1527_v63 = vpop.xlane.xlu0 %1526 }
 0x997   : > { %2649 = vrcp.f32 %v1527_v63 }
 0x99e   : > { %v1530_v0 = vpop.xlane.xlu0 %1529 }
 0x99f   : > { %2651 = vrcp.f32 %v1530_v0 }
 0x9a2   : > { %v1538_v1 = vpop.permute.xlu0 %1537 }
 0x9a3   : > { %v1543_v2 = vsel %vm1093_vm8, %v1538_v1, 0  ;;  %v1892_v1 = vld [vmem:[%s3305_s27 + $0x10] sm:$0xff] }
 0x9a4   : > { %v2650_v3 = vpop.eup %2649  ;;  %2513 = vmatpush3.bf16.msra.mxu1 %v1543_v2  ;;  %v1893_v2 = vld [vmem:[%s3305_s27 + $0x18] sm:$0xff] }
 0x9a5   : > { %2524 = vmatprep.subr.bf16.mxu1 %v2682_v10  ;;  %v1533_v4 = vmul.f32 %v2650_v3, %v2646_v59  ;;  %v1895_v3 = vpack.c.bf16 %v1893_v2, %v1892_v1 }
 0x9a6   : > { %v1634_v13 = vpop.permute.xlu0 %1633 }
 0x9a7   : > { %v1535_v6 = vpack.c.bf16 %v1533_v4, %v1533_v4  ;;  %v1890_v4 = vld [vmem:[%s3305_s27] sm:$0xff] }
 0x9a9   : > { %2515 = vmatmul.mubr.msk.bf16.vlgmr.msra.gmra.mxu1 %vm965_vm6, %v1535_v6  ;;  %v1894_v6 = vpack.c.bf16 %v1891_v5, %v1890_v4  ;;  %v2377_v4 = vld [vmem:[%s713_s7] ss:$0 sm:$0xff] }
 0x9aa   : > { %2525 = vmatpush3.bf16.xpose.msra.mxu1 %v1641_v7  ;;  %2526 = vmatprep.mubr.msk.bf16.mxu1 %vm2683_vm5, %v2682_v10 }
 0x9ab   : > { %2536 = vmatprep.subr.bf16.mxu1 %v2682_v10 }
 0x9ac   : > { %v2652_v8 = vpop.eup %2651 }
 0x9ad   : > { %v1534_v9 = vmul.f32 %v2652_v8, %v2648_v61 }
 0x9af   : > { %v1536_v12 = vpack.c.bf16 %v1534_v9, %v1534_v9 }
 0x9b1   : > { %2521 = vmatmul.mubr.msk.bf16.vlgmr.msra.gmra.mxu0 %vm965_vm6, %v1536_v12  ;;  %2527 = vmatmul.mubr.msk.bf16.vlgmr.msra.gmra.mxu1 %vm965_vm6, %v1634_v13 }
 0x9b2   : > { %2531 = vmatpush3.bf16.xpose.msra.mxu0 %v1691_v14  ;;  %2532 = vmatprep.mubr.msk.bf16.mxu0 %vm2683_vm5, %v2682_v10 }
 0x9b3   : > { %2542 = vmatprep.subr.bf16.mxu0 %v2682_v10  ;;  %2538 = vmatprep.mubr.msk.bf16.mxu1 %vm2683_vm5, %v2682_v10 }
 0x9b9   : > { %2533 = vmatmul.mubr.msk.bf16.vlgmr.msra.gmra.mxu0 %vm965_vm6, %v1684_v15 }
 0x9ba   : > { %2544 = vmatprep.mubr.msk.bf16.mxu0 %vm2683_vm5, %v2682_v10 }
 0xa69   : > { %v1579_v16 = vpop.f32.mrf.mxu1 }
 0xa6b   : > { %v2516_v17 = vpop.f32.mrf.mxu1 }
 0xa6d   : > { %v1582_v18 = vpop.f32.mrf.mxu1 }
 0xa6f   : > { %v2517_v19 = vpop.f32.mrf.mxu1 }
 0xa71   : > { %v1627_v20 = vpop.f32.mrf.mxu0  ;;  %v1677_v22 = vpop.f32.mrf.mxu1 }
 0xa72   : > { %v1733_v23 = vmul.f32 0.35355338, %v1677_v22  ;;  %v2615_v45 = vpack.i.bf16 %v1627_v20, %v1579_v16 }
 0xa73   : > { %v2522_v24 = vpop.f32.mrf.mxu0  ;;  %v2528_v26 = vpop.f32.mrf.mxu1 }
 0xa74   : > { %v1735_v28 = vadd.f32 %v1733_v23, %v3019_v48 }
 0xa75   : > { %v1630_v30 = vpop.f32.mrf.mxu0  ;;  %v1680_v31 = vpop.f32.mrf.mxu1 }
 0xa76   : > { %v1737_v32 = vsel %vm965_vm6, %v1735_v28, -inf }
 0xa77   : > { %1738 = vmax.xlane.f32.xlu0 %v1737_v32  ;;  %v2523_v34 = vpop.f32.mrf.mxu0  ;;  %v2529_v36 = vpop.f32.mrf.mxu1 }
 0xa79   : > { %v1727_v37 = vpop.f32.mrf.mxu0 }
 0xa7a   : > { %v1734_v38 = vmul.f32 0.35355338, %v1727_v37 }
 0xa7b   : > { %v2534_v40 = vpop.f32.mrf.mxu0 }
 0xa7c   : > { %v1736_v41 = vadd.f32 %v1734_v38, %v3019_v48 }
 0xa7d   : > { %v1730_v42 = vpop.f32.mrf.mxu0 }
 0xa7e   : > { %v1740_v43 = vsel %vm965_vm6, %v1736_v41, -inf }
 0xa7f   : > { %1741 = vmax.xlane.f32.xlu1 %v1740_v43  ;;  %v2535_v44 = vpop.f32.mrf.mxu0 }
 0xa90   : > { %1809 = vrot.lane.b32.xlu1 %v3004_v39, %s2695_s22 }
 0xa94   : > { %2611 = vrot.lane.b32.xlu1 %v2610_v27, %s2696_s26 }
 0xa98   : > { %2616 = vrot.lane.b32.xlu1 %v2615_v45, %s2697_s30 }
 0xb00   : > { %v1739_v46 = vpop.xlane.xlu0 %1738 }
 0xb01   : > { %v1743_v47 = vsub.f32 %v1735_v28, %v1739_v46 }
 0xb03   : > { %v1745_v49 = vmul.f32 1.442695, %v1743_v47 }
 0xb05   : > { %2653 = vpow2.f32 %v1745_v49 }
 0xb08   : > { %v1742_v48 = vpop.xlane.xlu1 %1741 }
 0xb09   : > { %v1744_v50 = vsub.f32 %v1736_v41, %v1742_v48 }
 0xb0b   : > { %v1747_v51 = vmul.f32 1.442695, %v1744_v50 }
 0xb0c   : > { %v1810_v52 = vpop.permute.xlu1 %1809 }
 0xb0d   : > { %2655 = vpow2.f32 %v1747_v51  ;;  %v1815_v53 = vsel %vm1093_vm8, %v1810_v52, 0 }
 0xb0e   : > { %2543 = vmatpush3.bf16.msra.mxu0 %v1815_v53 }
 0xb0f   : > { %2556 = vmatprep.subr.bf16.mxu0 %v2682_v10 }
 0xb10   : > { %v2612_v17 = vpop.permute.xlu1 %2611 }
 0xb11   : > { %v2614_v19 = vunpack.i.h.bf16 %v2612_v17  ;;  %v2613_v20 = vunpack.i.l.bf16 %v2612_v17  ;;  %v2082_v17 = vld [vmem:[%s2856_s1 + $0x60] sm:$0xff] }
 0xb12   : > { %v2654_v39 = vpop.eup %2653 }
 0xb13   : > { %v1749_v21 = vsel %vm965_vm6, %v2654_v39, 0.0  ;;  %v1882_v26 = vsel %vm965_vm6, %v3055_v33, %v2614_v19  ;;  %v1881_v28 = vsel %vm965_vm6, %v3053_v29, %v2613_v20  ;;  %v2375_v33 = vld [vmem:[%s3306_s21] ss:$0 sm:$0xff]  ;;  %v2080_v20 = vld [vmem:[%s2856_s1 + $0x50] sm:$0xff] }
 0xb14   : > { %1750 = vadd.xlane.f32.xlu0 %v1749_v21  ;;  %v2617_v18 = vpop.permute.xlu1 %2616 }
 0xb15   : > { %v2619_v22 = vunpack.i.h.bf16 %v2617_v18  ;;  %v2618_v23 = vunpack.i.l.bf16 %v2617_v18  ;;  %v2083_v18 = vld [vmem:[%s2856_s1 + $0x68] sm:$0xff] }
 0xb16   : > { %v2092_v19 = vpack.c.bf16 %v2083_v18, %v2082_v17 }
 0xb17   : > { %v1884_v32 = vsel %vm1883_vm9, %v1881_v28, %v2618_v23  ;;  %v1885_v34 = vsel %vm1883_vm9, %v1882_v26, %v2619_v22  ;;  %v2081_v22 = vld [vmem:[%s2856_s1 + $0x58] sm:$0xff]  ;;  %v2079_v26 = vld [vmem:[%s2856_s1 + $0x48] sm:$0xff] }
 0xb18   : > { %v2091_v23 = vpack.c.bf16 %v2081_v22, %v2080_v20 }
 0xb1a   : > { %v2656_v25 = vpop.eup %2655 }
 0xb1b   : > { %v1752_v27 = vsel %vm965_vm6, %v2656_v25, 0.0 }
 0xb1c   : > { %1753 = vadd.xlane.f32.xlu0 %v1752_v27  ;;  %v1996_v27 = vld [vmem:[%s2846_s8 + $0x10] sm:$0xff] }
 0xb32   : > { %1761 = vrot.lane.b32.xlu0 %v3001_v35, %s2695_s22  ;;  %s3307_s22 = scalar_lea.vmem %s3277_s15, %s2806_s29 }
 0xb9d   : > { %v1751_v54 = vpop.xlane.xlu0 %1750 }
 0xb9e   : > { %2657 = vrcp.f32 %v1751_v54  ;;  %v1997_v54 = vld [vmem:[%s2846_s8 + $0x18] sm:$0xff] }
 0xba5   : > { %v1754_v55 = vpop.xlane.xlu0 %1753 }
 0xba6   : > { %2659 = vrcp.f32 %v1754_v55  ;;  %v1999_v55 = vpack.c.bf16 %v1997_v54, %v1996_v27 }
 0xba9   : > { %v1762_v56 = vpop.permute.xlu0 %1761 }
 0xbaa   : > { %v1767_v59 = vsel %vm1093_vm8, %v1762_v56, 0  ;;  %v1994_v56 = vld [vmem:[%s2846_s8] sm:$0xff] }
 0xbab   : > { %v2658_v60 = vpop.eup %2657  ;;  %2537 = vmatpush3.bf16.msra.mxu1 %v1767_v59  ;;  %v1995_v59 = vld [vmem:[%s2846_s8 + $0x8] sm:$0xff] }
 0xbac   : > { %v1757_v61 = vmul.f32 %v2658_v60, %v2654_v39  ;;  %2548 = vmatprep.subr.bf16.mxu1 %v2682_v10  ;;  %v1998_v60 = vpack.c.bf16 %v1995_v59, %v1994_v56 }
 0xbae   : > { %v1759_v62 = vpack.c.bf16 %v1757_v61, %v1757_v61 }
 0xbb0   : > { %2539 = vmatmul.mubr.msk.bf16.vlgmr.msra.gmra.mxu1 %vm965_vm6, %v1759_v62 }
 0xbb1   : > { %2552 = vmatprep.mubr.msk.bf16.mxu1 %vm2683_vm5, %v2682_v10  ;;  %2549 = vmatpush3.bf16.msra.mxu1 %v1895_v3 }
 0xbb2   : > { %2550 = vmatprep.subr.bf16.mxu1 %v2682_v10 }
 0xbb3   : > { %v2660_v35 = vpop.eup %2659 }
 0xbb4   : > { %v1758_v63 = vmul.f32 %v2660_v35, %v2656_v25 }
 0xbb5   : > { %2551 = vmatpush3.bf16.msra.mxu1 %v1894_v6 }
 0xbb6   : > { %v1760_v0 = vpack.c.bf16 %v1758_v63, %v1758_v63  ;;  %2564 = vmatprep.subr.bf16.mxu1 %v2682_v10 }
 0xbb8   : > { %2545 = vmatmul.mubr.msk.bf16.vlgmr.msra.gmra.mxu0 %vm965_vm6, %v1760_v0 }
 0xbb9   : > { %2560 = vmatprep.mubr.msk.bf16.mxu0 %vm2683_vm5, %v2682_v10  ;;  %2557 = vmatpush3.bf16.msra.mxu0 %v1999_v55 }
 0xbba   : > { %2558 = vmatprep.subr.bf16.mxu0 %v2682_v10 }
 0xbbd   : > { %2559 = vmatpush3.bf16.msra.mxu0 %v1998_v60 }
 0xc70   : > { %v1803_v7 = vpop.f32.mrf.mxu1 }
 0xc72   : > { %v2540_v8 = vpop.f32.mrf.mxu1 }
 0xc73   : > { %v2378_v8 = vld [vmem:[%s716_s24] ss:$0 sm:$0xff] }
 0xc74   : > { %v1806_v9 = vpop.f32.mrf.mxu1 }
 0xc76   : > { %v2541_v11 = vpop.f32.mrf.mxu1 }
 0xc78   : > { %v1851_v12 = vpop.f32.mrf.mxu0 }
 0xc79   : > { %v2620_v13 = vpack.i.bf16 %v1851_v12, %v1803_v7 }
 0xc7a   : > { %v2546_v14 = vpop.f32.mrf.mxu0 }
 0xc7b   : > { %2621 = vrot.lane.b32.xlu0 %v2620_v13, %s2698_s0  ;;  %v2084_v14 = vld [vmem:[%s2856_s1 + $0x70] sm:$0xff] }
 0xc7c   : > { %v1854_v15 = vpop.f32.mrf.mxu0 }
 0xc7d   : > { %v2085_v15 = vld [vmem:[%s2856_s1 + $0x78] sm:$0xff] }
 0xc7e   : > { %v2547_v16 = vpop.f32.mrf.mxu0 }
 0xc7f   : > { %v2093_v16 = vpack.c.bf16 %v2085_v15, %v2084_v14 }
 0xced   : > { %v2622_v24 = vpop.permute.xlu0 %2621 }
 0xcee   : > { %v2624_v30 = vunpack.i.h.bf16 %v2622_v24  ;;  %v2623_v31 = vunpack.i.l.bf16 %v2622_v24  ;;  %v2078_v24 = vld [vmem:[%s2856_s1 + $0x40] sm:$0xff] }
 0xcef   : > { %v2090_v28 = vpack.c.bf16 %v2079_v26, %v2078_v24 }
 0xcf0   : > { %v1888_v36 = vsel %vm1886_vm10, %v1885_v34, %v2624_v30  ;;  %v1887_v37 = vsel %vm1886_vm10, %v1884_v32, %v2623_v31  ;;  %v2076_v30 = vld [vmem:[%s2856_s1 + $0x30] sm:$0xff]  ;;  %v2077_v31 = vld [vmem:[%s2856_s1 + $0x38] sm:$0xff]  ;;  %v2074_v34 = vld [vmem:[%s2856_s1 + $0x20] sm:$0xff] }
 0xcf1   : > { %v1889_v38 = vpack.c.bf16 %v1888_v36, %v1887_v37  ;;  %v2089_v32 = vpack.c.bf16 %v2077_v31, %v2076_v30  ;;  %v2075_v36 = vld [vmem:[%s2856_s1 + $0x28] sm:$0xff] }
 0xcf2   : > { %v2088_v37 = vpack.c.bf16 %v2075_v36, %v2074_v34 }
 0xcf3   : > { %2553 = vmatmul.mubr.msk.bf16.vlgmr.msra.gmra.mxu1 %vm855_vm4, %v1889_v38  ;;  %v2072_v38 = vld [vmem:[%s2856_s1 + $0x10] sm:$0xff] }
 0xcf4   : > { %2580 = vmatprep.mubr.msk.bf16.mxu1 %vm2683_vm5, %v2682_v10  ;;  %2565 = vmatpush3.bf16.msra.mxu1 %v2093_v16 }
 0xcf5   : > { %2566 = vmatprep.subr.bf16.mxu1 %v2682_v10 }
 0xcf8   : > { %2567 = vmatpush3.bf16.msra.mxu1 %v2092_v19 }
 0xcf9   : > { %2568 = vmatprep.subr.bf16.mxu1 %v2682_v10 }
 0xcfc   : > { %2569 = vmatpush3.bf16.msra.mxu1 %v2091_v23 }
 0xcfd   : > { %2570 = vmatprep.subr.bf16.mxu1 %v2682_v10 }
 0xd00   : > { %2571 = vmatpush3.bf16.msra.mxu1 %v2090_v28 }
 0xd01   : > { %2572 = vmatprep.subr.bf16.mxu1 %v2682_v10 }
 0xd04   : > { %2573 = vmatpush3.bf16.msra.mxu1 %v2089_v32 }
 0xd05   : > { %2574 = vmatprep.subr.bf16.mxu1 %v2682_v10 }
 0xd08   : > { %2575 = vmatpush3.bf16.msra.mxu1 %v2088_v37 }
 0xd09   : > { %2576 = vmatprep.subr.bf16.mxu1 %v2682_v10 }
 0xdb3   : > { %v1940_v40 = vpop.f32.mrf.mxu1 }
 0xdb4   : > { %v1941_v41 = vadd.f32 %v2375_v33, %v1940_v40 }
 0xdb5   : > { %v2554_v29 = vpop.f32.mrf.mxu1 }
 0xdb6   : > { %v3167_v42 = vadd.f32 %v1941_v41, %v2956_v57  ;;  %v2070_v41 = vld [vmem:[%s2856_s1] sm:$0xff]  ;;  %v2071_v29 = vld [vmem:[%s2856_s1 + $0x8] sm:$0xff] }
 0xdb7   : > { %v1943_v43 = vpop.f32.mrf.mxu1 }
 0xdb8   : > { %v1944_v44 = vadd.f32 %v2375_v33, %v1943_v43  ;;  %v1951_v45 = vsel %vm855_vm4, %v3167_v42, 0.0  ;;  %v2073_v33 = vld [vmem:[%s2856_s1 + $0x18] sm:$0xff]  ;;  %v2086_v43 = vpack.c.bf16 %v2071_v29, %v2070_v41 }
 0xdb9   : > { %1952 = vadd.xlane.f32.xlu1 %v1951_v45  ;;  %v2555_v46 = vpop.f32.mrf.mxu1  ;;  %v2087_v40 = vpack.c.bf16 %v2073_v33, %v2072_v38 }
 0xdba   : > { %v3172_v47 = vadd.f32 %v1944_v44, %v2961_v58  ;;  %v2379_v44 = vld [vmem:[%s3307_s22] ss:$0 sm:$0xff] }
 0xdbb   : > { %2577 = vmatpush3.bf16.msra.mxu1 %v2087_v40 }
 0xdbc   : > { %v1954_v49 = vsel %vm855_vm4, %v3172_v47, 0.0  ;;  %2578 = vmatprep.subr.bf16.mxu1 %v2682_v10 }
 0xdbd   : > { %1955 = vadd.xlane.f32.xlu0 %v1954_v49 }
 0xdbf   : > { %2579 = vmatpush3.bf16.msra.mxu1 %v2086_v43 }
 0xe42   : > { %v1953_v48 = vpop.xlane.xlu1 %1952 }
 0xe43   : > { %v1957_v57 = vmul.f32 0.03125, %v1953_v48 }
 0xe45   : > { %v1959_v50 = vsub.f32 %v3167_v42, %v1957_v57 }
 0xe46   : > { %v1956_v51 = vpop.xlane.xlu0 %1955 }
 0xe47   : > { %v1958_v52 = vmul.f32 0.03125, %v1956_v51  ;;  %v1961_v53 = vmul.f32 %v1959_v50, %v1959_v50 }
 0xe49   : > { %v1960_v39 = vsub.f32 %v3172_v47, %v1958_v52  ;;  %v1963_v21 = vsel %vm855_vm4, %v1961_v53, 0.0 }
 0xe4a   : > { %1964 = vadd.xlane.f32.xlu0 %v1963_v21 }
 0xe4b   : > { %v1962_v58 = vmul.f32 %v1960_v39, %v1960_v39 }
 0xe4d   : > { %v1966_v25 = vsel %vm855_vm4, %v1962_v58, 0.0 }
 0xe4e   : > { %1967 = vadd.xlane.f32.xlu0 %v1966_v25 }
 0xed3   : > { %v1965_v61 = vpop.xlane.xlu0 %1964 }
 0xed4   : > { %v1969_v62 = vmul.f32 0.03125, %v1965_v61 }
 0xed6   : > { %v1971_v35 = vadd.f32 1e-06, %v1969_v62 }
 0xed7   : > { %v1968_v63 = vpop.xlane.xlu0 %1967 }
 0xed8   : > { %2661 = vrsqrt.f32 %v1971_v35  ;;  %v1970_v0 = vmul.f32 0.03125, %v1968_v63 }
 0xeda   : > { %v1972_v1 = vadd.f32 1e-06, %v1970_v0 }
 0xedc   : > { %2663 = vrsqrt.f32 %v1972_v1 }
 0xee5   : > { %v2662_v2 = vpop.eup %2661 }
 0xee6   : > { %v1975_v3 = vmul.f32 %v2662_v2, %v1959_v50  ;;  %v2381_v2 = vld [vmem:[%s732_s2] ss:$0 sm:$0xff] }
 0xee8   : > { %v1983_v7 = vmul.f32 %v2377_v4, %v1975_v3 }
 0xee9   : > { %v2664_v5 = vpop.eup %2663 }
 0xeea   : > { %v1976_v6 = vmul.f32 %v2664_v5, %v1960_v39  ;;  %v1991_v11 = vadd.f32 %v2378_v8, %v1983_v7 }
 0xeec   : > { %v1984_v9 = vmul.f32 %v2377_v4, %v1976_v6 }
 0xeee   : > { %v1992_v12 = vadd.f32 %v2378_v8, %v1984_v9 }
 0xef0   : > { %v1993_v13 = vpack.c.bf16 %v1992_v12, %v1991_v11 }
 0xef2   : > { %2561 = vmatmul.mubr.msk.bf16.vlgmr.msra.gmra.mxu0 %vm855_vm4, %v1993_v13 }
 0xfb2   : > { %v2044_v45 = vpop.f32.mrf.mxu0 }
 0xfb3   : > { %v2045_v46 = vadd.f32 %v2379_v44, %v2044_v45 }
 0xfb4   : > { %v2562_v49 = vpop.f32.mrf.mxu0 }
 0xfb5   : > { %v2051_v48 = vmul.f32 %v2045_v46, %v2045_v46 }
 0xfb6   : > { %v2047_v57 = vpop.f32.mrf.mxu0 }
 0xfb7   : > { %v2053_v50 = vmul.f32 %v2051_v48, %v2045_v46  ;;  %v2048_v51 = vadd.f32 %v2379_v44, %v2047_v57 }
 0xfb8   : > { %v2563_v52 = vpop.f32.mrf.mxu0 }
 0xfb9   : > { %v2055_v53 = vmul.f32 0.044715, %v2053_v50  ;;  %v2052_v39 = vmul.f32 %v2048_v51, %v2048_v51 }
 0xfbb   : > { %v2057_v10 = vadd.f32 %v2055_v53, %v2045_v46  ;;  %v2054_v21 = vmul.f32 %v2052_v39, %v2048_v51 }
 0xfbd   : > { %v2059_v58 = vmul.f32 0.7978846, %v2057_v10  ;;  %v2056_v25 = vmul.f32 0.044715, %v2054_v21 }
 0xfbf   : > { %2665 = vtanh.f32 %v2059_v58  ;;  %v2058_v27 = vadd.f32 %v2056_v25, %v2048_v51 }
 0xfc1   : > { %v2060_v54 = vmul.f32 0.7978846, %v2058_v27 }
 0xfc3   : > { %2667 = vtanh.f32 %v2060_v54 }
 0xfcc   : > { %v2666_v55 = vpop.eup %2665 }
 0xfcd   : > { %v2063_v56 = vadd.f32 1.0, %v2666_v55 }
 0xfcf   : > { %v2065_v60 = vmul.f32 0.5, %v2063_v56 }
 0xfd0   : > { %v2668_v59 = vpop.eup %2667 }
 0xfd1   : > { %v2064_v61 = vadd.f32 1.0, %v2668_v59  ;;  %v2067_v35 = vmul.f32 %v2065_v60, %v2045_v46 }
 0xfd3   : > { %v2066_v62 = vmul.f32 0.5, %v2064_v61 }
 0xfd5   : > { %v2068_v63 = vmul.f32 %v2066_v62, %v2048_v51 }
 0xfd7   : > { %v2069_v0 = vpack.c.bf16 %v2068_v63, %v2067_v35 }
 0xfd9   : > { %2581 = vmatmul.mubr.bf16.vlgmr.msra.gmra.mxu1 %v2069_v0 }
0x1099   : > { %v2128_v1 = vpop.f32.mrf.mxu1 }
0x109a   : > { %v2135_v3 = vadd.f32 %v2128_v1, %v3167_v42 }
0x109b   : > { %v2582_v4 = vpop.f32.mrf.mxu1 }
0x109c   : > { %v2144_v5 = vadd.f32 %v2381_v2, %v2135_v3  ;;  %2149 = sbr.rel (%p2382_p5) target bundleno = 4259 (0x10a3), region = 100 }
0x109d   : > { %v2131_v6 = vpop.f32.mrf.mxu1 }
0x109e   : > { %v2136_v7 = vadd.f32 %v2131_v6, %v3172_v47 }
0x109f   : > { %v2583_v8 = vpop.f32.mrf.mxu1 }
0x10a0   : > { %v2145_v9 = vadd.f32 %v2381_v2, %v2136_v7 }
0x10a1   : > { %2150 = vst.msk [vmem:[%s3280_s18] sm:$0xff] %vm855_vm4, %v2144_v5 }
0x10a2   : > { %2151 = vst.msk [vmem:[%s3280_s18 + $0x8] sm:$0xff] %vm855_vm4, %v2145_v9 }
0x10a3 PF: > { %p2383_p6 = scmp.ne.s32.totalorder %s2800_s28, 1 }
0x10a4   : > { %s3308_s5 = sld [smem:[#allocation7_spill]] (!%p2383_p6) }
0x10a5   : > { %2155 = sbr.rel (%p2383_p6) target bundleno = 4579 (0x11e3), region = 104  ;;  %s3309_s20 = sld [smem:[#allocation8_spill]] (!%p2383_p6) }
0x10aa   : > { %v2158_v42 = vsel %vm855_vm4, %v2144_v5, 0.0  ;;  %v2161_v47 = vsel %vm855_vm4, %v2145_v9, 0.0  ;;  %v2384_v32 = vld [vmem:[%s3308_s5] ss:$0 sm:$0xff] }
0x10ab   : > { %2159 = vadd.xlane.f32.xlu0 %v2158_v42  ;;  %v2385_v36 = vld [vmem:[%s3309_s20] ss:$0 sm:$0xff] }
0x10af   : > { %2162 = vadd.xlane.f32.xlu0 %v2161_v47 }
0x1134   : > { %v2160_v11 = vpop.xlane.xlu0 %2159 }
0x1135   : > { %v2164_v12 = vmul.f32 0.03125, %v2160_v11 }
0x1137   : > { %v2166_v13 = vsub.f32 %v2144_v5, %v2164_v12 }
0x1138   : > { %v2163_v14 = vpop.xlane.xlu0 %2162 }
0x1139   : > { %v2165_v15 = vmul.f32 0.03125, %v2163_v14  ;;  %v2168_v16 = vmul.f32 %v2166_v13, %v2166_v13 }
0x113b   : > { %v2167_v17 = vsub.f32 %v2145_v9, %v2165_v15  ;;  %v2170_v18 = vsel %vm855_vm4, %v2168_v16, 0.0 }
0x113c   : > { %2171 = vadd.xlane.f32.xlu1 %v2170_v18 }
0x113d   : > { %v2169_v19 = vmul.f32 %v2167_v17, %v2167_v17 }
0x113f   : > { %v2173_v20 = vsel %vm855_vm4, %v2169_v19, 0.0 }
0x1140   : > { %2174 = vadd.xlane.f32.xlu1 %v2173_v20 }
0x11c5   : > { %v2172_v22 = vpop.xlane.xlu1 %2171 }
0x11c6   : > { %v2176_v23 = vmul.f32 0.03125, %v2172_v22 }
0x11c8   : > { %v2178_v24 = vadd.f32 1e-06, %v2176_v23 }
0x11c9   : > { %v2175_v26 = vpop.xlane.xlu1 %2174 }
0x11ca   : > { %2669 = vrsqrt.f32 %v2178_v24  ;;  %v2177_v28 = vmul.f32 0.03125, %v2175_v26 }
0x11cc   : > { %v2179_v30 = vadd.f32 1e-06, %v2177_v28 }
0x11ce   : > { %2671 = vrsqrt.f32 %v2179_v30 }
0x11d7   : > { %v2670_v31 = vpop.eup %2669 }
0x11d8   : > { %v2182_v34 = vmul.f32 %v2670_v31, %v2166_v13 }
0x11da   : > { %v2190_v37 = vmul.f32 %v2384_v32, %v2182_v34 }
0x11db   : > { %v2672_v38 = vpop.eup %2671 }
0x11dc   : > { %v2198_v33 = vadd.f32 %v2385_v36, %v2190_v37  ;;  %v2183_v40 = vmul.f32 %v2672_v38, %v2167_v17 }
0x11de   : > { %2200 = vst.msk [vmem:[%s3280_s18] sm:$0xff] %vm855_vm4, %v2198_v33  ;;  %v2191_v41 = vmul.f32 %v2384_v32, %v2183_v40 }
0x11e0   : > { %v2199_v29 = vadd.f32 %v2385_v36, %v2191_v41 }
0x11e2   : > { %2201 = vst.msk [vmem:[%s3280_s18 + $0x8] sm:$0xff] %vm855_vm4, %v2199_v29 }
0x11e3 PF: > { %s3310_s24 = sld [smem:[#allocation2_spill]] }
0x11e9   : > { %s28_s27 = sadd.s32 1, %s3310_s24  }
0x11ea   : > { %p25_p7 = scmp.ge.s32.totalorder %s28_s27, 4  }
0x11ec   :  { %27 = sbr.rel (!%p25_p7) target bundleno = 9 (0x9), region = 163 }

// kernel: blip_decoder_forward.3
= control target key start
LH: loop header
LB: loop body
LE: loop exit
PB: predicated region body
PF: predicated region fallthrough
CT: control target
= control target key end

     0   :  { %s5661_s6 = smov 1   ;;  %s5662_s10 = smov 2   ;;  %s6742_s0 = inlined_call_operand.smem [shape: u32[34], index: -1, kind: input, shape index: {}] }
   0x1   :  { %s5731_s5 = sld [smem:[%s6742_s0]]   ;;  %s5663_s14 = smov 3  }
   0x2   :  { %s5736_s9 = sld [smem:[%s6742_s0 + %s5661_s6]]   ;;  %s5664_s18 = smov 4  }
   0x3   :  { %s5741_s13 = sld [smem:[%s6742_s0 + %s5662_s10]]   ;;  %s5665_s22 = smov 5  }
   0x4   :  { %s5746_s17 = sld [smem:[%s6742_s0 + %s5663_s14]]   ;;  %s5666_s26 = smov 6  }
   0x5   :  { %s5751_s21 = sld [smem:[%s6742_s0 + %s5664_s18]]   ;;  %s5667_s30 = smov 7  }
   0x6   :  { %s5756_s25 = sld [smem:[%s6742_s0 + %s5665_s22]]   ;;  %s5668_s4 = smov 8  }
   0x7   :  { %6754 = sst [smem:[#allocation20_spill]] %s5731_s5  ;;  %s5669_s10 = smov 9  }
   0x8   :  { %6755 = sst [smem:[#allocation21_spill]] %s5736_s9  ;;  %s5670_s15 = smov 10  }
   0x9   :  { %6756 = sst [smem:[#allocation22_spill]] %s5741_s13  ;;  %s5671_s20 = smov 11  }
   0xa   :  { %6757 = sst [smem:[#allocation23_spill]] %s5746_s17  ;;  %s5673_s1 = smov 13  }
   0xb   :  { %6758 = sst [smem:[#allocation24_spill]] %s5751_s21  ;;  %s5674_s7 = smov 14  }
   0xc   :  { %6759 = sst [smem:[#allocation25_spill]] %s5756_s25  ;;  %s5676_s22 = smov 16  }
   0xd   :  { %s5761_s29 = sld [smem:[%s6742_s0 + %s5666_s26]]   ;;  %s5672_s26 = smov 12  }
   0xe   :  { %s5766_s3 = sld [smem:[%s6742_s0 + %s5667_s30]]   ;;  %s5677_s28 = smov 17  }
   0xf   :  { %s5771_s8 = sld [smem:[%s6742_s0 + %s5668_s4]]  }
  0x10   :  { %s5776_s14 = sld [smem:[%s6742_s0 + %s5669_s10]]  }
  0x11   :  { %s5781_s19 = sld [smem:[%s6742_s0 + %s5670_s15]]   ;;  %s5675_s15 = smov 15  }
  0x12   :  { %s5786_s24 = sld [smem:[%s6742_s0 + %s5671_s20]]  }
  0x13   :  { %6760 = sst [smem:[#allocation26_spill]] %s5761_s29 }
  0x14   :  { %6761 = sst [smem:[#allocation27_spill]] %s5766_s3 }
  0x15   :  { %6762 = sst [smem:[#allocation28_spill]] %s5771_s8 }
  0x16   :  { %6763 = sst [smem:[#allocation29_spill]] %s5776_s14 }
  0x17   :  { %6764 = sst [smem:[#allocation30_spill]] %s5781_s19 }
  0x18   :  { %6765 = sst [smem:[#allocation31_spill]] %s5786_s24 }
  0x19   :  { %s5791_s30 = sld [smem:[%s6742_s0 + %s5672_s26]]  }
  0x1a   :  { %s5796_s6 = sld [smem:[%s6742_s0 + %s5673_s1]]  }
  0x1b   :  { %s5801_s12 = sld [smem:[%s6742_s0 + %s5674_s7]]   ;;  %s5678_s7 = smov 18  }
  0x1c   :  { %s5806_s20 = sld [smem:[%s6742_s0 + %s5675_s15]]   ;;  %s5679_s15 = smov 19  }
  0x1d   :  { %s5811_s27 = sld [smem:[%s6742_s0 + %s5676_s22]]   ;;  %s5680_s22 = smov 20  }
  0x1e   :  { %s5816_s4 = sld [smem:[%s6742_s0 + %s5677_s28]]   ;;  %s5681_s28 = smov 21  }
  0x1f   :  { %6766 = sst [smem:[#allocation32_spill]] %s5791_s30 }
  0x20   :  { %s5821_s21 = sld [smem:[%s6742_s0 + %s5678_s7]]   ;;  %s5682_s7 = smov 22  }
  0x21   :  { %6767 = sst [smem:[#allocation33_spill]] %s5801_s12 }
  0x22   :  { %6768 = sst [smem:[#allocation34_spill]] %s5806_s20 }
  0x23   :  { %6769 = sst [smem:[#allocation35_spill]] %s5811_s27 }
  0x24   :  { %6770 = sst [smem:[#allocation36_spill]] %s5816_s4 }
  0x25   :  { %s5826_s25 = sld [smem:[%s6742_s0 + %s5679_s15]]   ;;  %s5683_s15 = smov 23  }
  0x26   :  { %6771 = sst [smem:[#allocation37_spill]] %s5821_s21 }
  0x27   :  { %s5831_s9 = sld [smem:[%s6742_s0 + %s5680_s22]]   ;;  %s5684_s22 = smov 24  }
  0x28   :  { %s5836_s5 = sld [smem:[%s6742_s0 + %s5681_s28]]   ;;  %s5685_s28 = smov 25  }
  0x29   :  { %s5841_s21 = sld [smem:[%s6742_s0 + %s5682_s7]]   ;;  %s5686_s7 = smov 26  }
  0x2b   :  { %6772 = sst [smem:[#allocation38_spill]] %s5826_s25 }
  0x2c   :  { %s5846_s25 = sld [smem:[%s6742_s0 + %s5683_s15]]   ;;  %s5687_s15 = smov 27  }
  0x2d   :  { %6773 = sst [smem:[#allocation39_spill]] %s5831_s9 }
  0x2e   :  { %6774 = sst [smem:[#allocation40_spill]] %s5836_s5 }
  0x2f   :  { %6775 = sst [smem:[#allocation41_spill]] %s5841_s21 }
  0x30   :  { %s5851_s9 = sld [smem:[%s6742_s0 + %s5684_s22]]   ;;  %s5688_s22 = smov 28  }
  0x31   :  { %s5856_s5 = sld [smem:[%s6742_s0 + %s5685_s28]]   ;;  %s5689_s28 = smov 29  }
  0x32   :  { %6776 = sst [smem:[#allocation42_spill]] %s5846_s25 }
  0x33   :  { %s5861_s21 = sld [smem:[%s6742_s0 + %s5686_s7]]   ;;  %s5690_s7 = smov 30  }
  0x34   :  { %s5866_s25 = sld [smem:[%s6742_s0 + %s5687_s15]]   ;;  %s5691_s15 = smov 31  }
  0x35   :  { %s5886_s4 = sld [smem:[%s6742_s0 + %s5691_s15]]  }
  0x36   :  { %6777 = sst [smem:[#allocation43_spill]] %s5851_s9 }
  0x37   :  { %6778 = sst [smem:[#allocation44_spill]] %s5856_s5 }
  0x38   :  { %s5871_s9 = sld [smem:[%s6742_s0 + %s5688_s22]]   ;;  %s5692_s22 = smov 32  }
  0x39   :  { %6779 = sst [smem:[#allocation45_spill]] %s5861_s21 }
  0x3a   :  { %6780 = sst [smem:[#allocation46_spill]] %s5866_s25 }
  0x3b   :  { %s5876_s5 = sld [smem:[%s6742_s0 + %s5689_s28]]   ;;  %s5693_s28 = smov 33  }
  0x3c   :  { %s5881_s21 = sld [smem:[%s6742_s0 + %s5690_s7]]  }
  0x3d   :  { %6784 = sst [smem:[#allocation50_spill]] %s5886_s4 }
  0x3e   :  { %6781 = sst [smem:[#allocation47_spill]] %s5871_s9 }
  0x3f   :  { %s5891_s27 = sld [smem:[%s6742_s0 + %s5692_s22]]  }
  0x40   :  { %s5896_s20 = sld [smem:[%s6742_s0 + %s5693_s28]]  }
  0x41   :  { %6782 = sst [smem:[#allocation48_spill]] %s5876_s5 }
  0x42   :  { %6783 = sst [smem:[#allocation49_spill]] %s5881_s21 }
  0x45   :  { %6785 = sst [smem:[#allocation51_spill]] %s5891_s27 }
  0x46   :  { %6786 = sst [smem:[#allocation52_spill]] %s5896_s20 }
  0x47   :  { %72 = vsyncpa [#allocation4], 0 }
  0x48   :  { %73 = vsyncpa [#allocation8], 0 }
  0x49   :  { %74 = vsyncpa [#allocation11], 0 }
  0x4a   :  { %75 = vsyncpa [#allocation6], 0 }
  0x4b   :  { %76 = vsyncpa [#allocation5], 0  ;;  %s5898_s7 = smov 0  }
  0x4c LB: > { %6787 = sst [smem:[#allocation53_spill]] %s5659_s7  ;;  %s5694_s10 = smov [#allocation7]   ;;  %s5659_s7 = sphi %s5898_s7, %s82_s7  }
  0x4d   : > { %s931_s11 = sshll.u32 %s5694_s10, 4  ;;  %s5904_s15 = sadd.s32 4294967295, %s5659_s7   ;;  %s932_s11 = int_to_ptr.vmem [resolvable:$true] %s931_s11 }
  0x4e   : > { %6788 = sst [smem:[#allocation54_spill]] %s5904_s15  ;;  %p4692_p0 = scmp.ge.s32.totalorder %s5659_s7, 1 }
  0x4f   : > { %p901_p1 = scmp.lt.s32.totalorder %s5659_s7, 3  ;;  %p6746_p3 = scmp.eq.s32.totalorder %s5904_s15, 0 }
  0x50   : > { %s5695_s16 = smov [#allocation10]   ;;  %s5696_s22 = smov [#allocation3]  }
  0x51   : > { %p5910_p4 = pnand %p4692_p0, %p901_p1  ;;  %s962_s18 = sshll.u32 %s5695_s16, 4  ;;  %s5916_s18 = int_to_ptr.vmem [resolvable:$true] %s962_s18 }
  0x52   : > { %s920_s23 = sshll.u32 %s5696_s22, 4  ;;  %s5697_s28 = smov [#allocation9]   ;;  %s5924_s23 = int_to_ptr.vmem [resolvable:$true] %s920_s23 }
  0x53   : > { %s6789_s0 = scalar_select %p5910_p4, 1, 0 }
  0x54   : > { %p5229_p5 = pneg %p5910_p4  ;;  %s951_s1 = sshll.u32 %s5697_s28, 4  ;;  %s5926_s1 = int_to_ptr.vmem [resolvable:$true] %s951_s1 }
  0x55   : > { %s5475_s10 = scalar_lea.vmem %s932_s11, 16  ;;  %s5482_s16 = scalar_lea.vmem %s932_s11, 32 }
  0x56   : > { %p5920_p6 = pnand %p6746_p3, %p5229_p5  ;;  %p5476_p8 = scmp.ne.s32.totalorder %s932_s11, %s5475_s10 }
  0x57   : > { %p5483_p11 = scmp.lt.s32.totalorder %s932_s11, %s932_s11  ;;  %p5484_p12 = scmp.lt.s32.totalorder %s5482_s16, %s5475_s10 }
  0x58   : > { %p5930_p7 = pneg %p5920_p6 }
  0x59   : > { %p5485_p13 = por %p5484_p12, %p5483_p11 }
  0x5a   : > { %p5478_p9 = pnand %p5476_p8, %p5930_p7 }
  0x5c   : > { %p5479_p10 = pneg %p5478_p9 }
  0x5e   : > { %p5486_p0 = pnand %p5485_p13, %p5479_p10 }
  0x60   : > { %5489 = shalt.err (!%p5486_p0)
}
  0x61   : > { %s6792_s17 = sld [smem:[#allocation23_spill]]  ;;  %s5501_s22 = scalar_lea.vmem %s5916_s18, 16 }
  0x62   : > { %p5502_p1 = scmp.ne.s32.totalorder %s5916_s18, %s5501_s22  ;;  %s5508_s28 = scalar_lea.vmem %s5916_s18, 32 }
  0x63   : > { %p5509_p9 = scmp.lt.s32.totalorder %s5916_s18, %s5916_s18  ;;  %p5510_p11 = scmp.lt.s32.totalorder %s5508_s28, %s5501_s22 }
  0x64   : > { %p5504_p5 = pnand %p5502_p1, %p5930_p7 }
  0x65   : > { %p5511_p10 = por %p5510_p11, %p5509_p9 }
  0x66   : > { %p5505_p8 = pneg %p5504_p5 }
  0x67   : > { %5235 = dma.hbm_to_vmem [thread:$0]  (!%p5920_p6), %s6792_s17, 16, %s932_s11, [#allocation8]  }
  0x68   : > { %p5512_p12 = pnand %p5511_p10, %p5505_p8 }
  0x6a   : > { %5515 = shalt.err (!%p5512_p12)
}
  0x6b   : > { %s6793_s9 = sld [smem:[#allocation47_spill]]  ;;  %s5527_s11 = scalar_lea.vmem %s5924_s23, 16 }
  0x6c   : > { %p5528_p13 = scmp.ne.s32.totalorder %s5924_s23, %s5527_s11  ;;  %s5534_s10 = scalar_lea.vmem %s5924_s23, 32 }
  0x6d   : > { %p5535_p5 = scmp.lt.s32.totalorder %s5924_s23, %s5924_s23  ;;  %p5536_p8 = scmp.lt.s32.totalorder %s5534_s10, %s5527_s11 }
  0x6e   : > { %p5530_p0 = pnand %p5528_p13, %p5930_p7 }
  0x6f   : > { %p5537_p9 = por %p5536_p8, %p5535_p5 }
  0x70   : > { %p5531_p1 = pneg %p5530_p0 }
  0x71   : > { %5241 = dma.hbm_to_vmem [thread:$0]  (!%p5920_p6), %s6793_s9, 16, %s5916_s18, [#allocation11]  }
  0x72   : > { %p5538_p11 = pnand %p5537_p9, %p5531_p1 }
  0x74   : > { %5541 = shalt.err (!%p5538_p11)
}
  0x75   : > { %s6794_s13 = sld [smem:[#allocation22_spill]]  ;;  %s5553_s18 = scalar_lea.vmem %s5926_s1, 16 }
  0x76   : > { %p5554_p10 = scmp.ne.s32.totalorder %s5926_s1, %s5553_s18  ;;  %s5560_s16 = scalar_lea.vmem %s5926_s1, 32 }
  0x77   : > { %p5561_p0 = scmp.lt.s32.totalorder %s5926_s1, %s5926_s1  ;;  %p5562_p1 = scmp.lt.s32.totalorder %s5560_s16, %s5553_s18 }
  0x78   : > { %p5556_p12 = pnand %p5554_p10, %p5930_p7 }
  0x79   : > { %p5563_p5 = por %p5562_p1, %p5561_p0 }
  0x7a   : > { %p5557_p13 = pneg %p5556_p12 }
  0x7b   : > { %5232 = dma.hbm_to_vmem [thread:$0]  (!%p5920_p6), %s6794_s13, 16, %s5924_s23, [#allocation4]  }
  0x7c   : > { %p5564_p8 = pnand %p5563_p5, %p5557_p13 }
  0x7e   : > { %5567 = shalt.err (!%p5564_p8)
}
  0x7f   : > { %s6795_s25 = sld [smem:[#allocation46_spill]]  ;;  %s5698_s23 = smov [#allocation12]  }
  0x80   : > { %s6796_s27 = sld [smem:[#allocation51_spill]]  ;;  %s973_s22 = sshll.u32 %s5698_s23, 4  ;;  %s974_s22 = int_to_ptr.vmem [resolvable:$true] %s973_s22 }
  0x81   : > { %s5579_s11 = scalar_lea.vmem %s974_s22, 16  ;;  %s5586_s10 = scalar_lea.vmem %s974_s22, 32 }
  0x82   : > { %p5580_p9 = scmp.ne.s32.totalorder %s974_s22, %s5579_s11  ;;  %p5587_p12 = scmp.lt.s32.totalorder %s974_s22, %s974_s22 }
  0x83   : > { %p5588_p13 = scmp.lt.s32.totalorder %s5586_s10, %s5579_s11 }
  0x84   : > { %p5582_p11 = pnand %p5580_p9, %p5930_p7 }
  0x85   : > { %5238 = dma.hbm_to_vmem [thread:$0]  (!%p5920_p6), %s6795_s25, 16, %s5926_s1, [#allocation8]  }
  0x86   : > { %s990_s28 = sshll.u32 %s6796_s27, 4  ;;  %p5583_p10 = pneg %p5582_p11  ;;  %s991_s28 = int_to_ptr.vmem [resolvable:$true] %s990_s28 }
  0x87   : > { %p5589_p0 = por %p5588_p13, %p5587_p12 }
  0x89   : > { %p5590_p1 = pnand %p5589_p0, %p5583_p10 }
  0x8b   : > { %5593 = shalt.err (!%p5590_p1)
}
  0x8c   : > { %s6797_s5 = sld [smem:[#allocation48_spill]]  ;;  %s5594_s1 = scalar_lea.vmem %s991_s28, 32 }
  0x8d   : > { %p5595_p5 = scmp.ne.s32.totalorder %s991_s28, %s5594_s1  ;;  %p5602_p3 = scmp.lt.s32.totalorder %s991_s28, %s991_s28 }
  0x8e   : > { %p5603_p4 = scmp.lt.s32.totalorder %s5594_s1, %s5594_s1 }
  0x8f   : > { %p5597_p8 = pnand %p5595_p5, %p5930_p7 }
  0x90   : > { %p5604_p9 = por %p5603_p4, %p5602_p3 }
  0x91   : > { %p5598_p2 = pneg %p5597_p8 }
  0x92   : > { %5244 = dma.hbm_to_vmem [thread:$0]  (!%p5920_p6), %s6797_s5, 16, %s974_s22, [#allocation11]  }
  0x93   : > { %p5605_p11 = pnand %p5604_p9, %p5598_p2 }
  0x95   : > { %5608 = shalt.err (!%p5605_p11)
}
  0x96   : > { %s5699_s18 = smov [#allocation13]   ;;  %p6798_p10 = scmp.ne.s32.totalorder %s6789_s0, 0 }
  0x97   : > { %5247 = dma.vmem_to_smem (!%p5920_p6), %s991_s28, 32, %s5699_s18, [#allocation6]  }
  0x98   : > { %1137 = sbr.rel (%p6798_p10) target bundleno = 9055 (0x235f), region = 152 }
  0x9d   : > { %p6799_p12 = scmp.eq.s32.totalorder %s5904_s15, 0 }
  0x9f   : > { %5638 = dma.done.wait (%p6799_p12), [#allocation4], 16   ;;  %p6800_p13 = pmov %p6799_p12 }
  0xa0   : > { %p6801_p7 = pmov %p6799_p12 }
  0xa1   : > { %5640 = vsyncadd (%p6800_p13), [#allocation4], 4294967280 }
  0xa2   : > { %5642 = dma.done.wait (%p6801_p7), [#allocation8], 32   ;;  %p6802_p3 = pmov %p6801_p7 }
  0xa4   : > { %5644 = vsyncadd (%p6802_p3), [#allocation8], 4294967264  ;;  %p6803_p2 = pmov %p6802_p3 }
  0xa6   : > { %5646 = dma.done.wait (%p6803_p2), [#allocation11], 32   ;;  %p6804_p4 = pmov %p6803_p2 }
  0xa7   : > { %p6805_p6 = pmov %p6803_p2 }
  0xa8   : > { %5648 = vsyncadd (%p6804_p4), [#allocation11], 4294967264 }
  0xa9   : > { %5650 = dma.done.wait (%p6805_p6), [#allocation6], 32   ;;  %p6806_p0 = pmov %p6803_p2 }
  0xab   : > { %5652 = vsyncadd (%p6806_p0), [#allocation6], 4294967264 }
  0xac   : > { %1163 = sfence }
  0xad   : > { %s6808_s29 = sld [smem:[#allocation26_spill]]  ;;  %p1306_p1 = scmp.lt.s32.totalorder %s5904_s15, 1 }
  0xae   : > { %s6809_s8 = sld [smem:[#allocation28_spill]] }
  0xaf   : > { %s6813_s30 = sld [smem:[#allocation32_spill]] }
  0xb0   : > { %s6814_s12 = sld [smem:[#allocation33_spill]] }
  0xb1   : > { %s6815_s0 = sld [smem:[#allocation34_spill]] }
  0xb2   : > { %s6816_s26 = sld [smem:[#allocation35_spill]] }
  0xb3   : > { %s6817_s2 = sld [smem:[#allocation36_spill]] }
  0xb4   : > { %s6818_s16 = sld [smem:[#allocation37_spill]] }
  0xb5   : > { %s6819_s23 = sld [smem:[#allocation38_spill]] }
  0xb6   : > { %s6002_s22 = scalar_select %p1306_p1, %s5904_s15, 1 }
  0xb7   : > { %s6820_s28 = sld [smem:[#allocation39_spill]] }
  0xb8   : > { %s4822_s11 = sshll.u32 %s6002_s22, 5  ;;  %s6821_s10 = sld [smem:[#allocation40_spill]] }
  0xb9   : > { %s6008_s18 = scalar_lea.vmem %s6808_s29, %s4822_s11  ;;  %s6823_s5 = sld [smem:[#allocation41_spill]] }
  0xba   : > { %6822 = sst [smem:[#allocation55_spill]] %s6008_s18  ;;  %s6011_s9 = scalar_lea.vmem %s6809_s8, %s4822_s11 }
  0xbb   : > { %6824 = sst [smem:[#allocation56_spill]] %s6011_s9  ;;  %s6020_s4 = scalar_lea.vmem %s6813_s30, %s4822_s11 }
  0xbc   : > { %s6825_s13 = sld [smem:[#allocation42_spill]]  ;;  %s6025_s15 = scalar_lea.vmem %s6814_s12, %s4822_s11 }
  0xbd   : > { %s6826_s25 = sld [smem:[#allocation43_spill]]  ;;  %s1343_s1 = scalar_lea.vmem %s6815_s0, %s6002_s22 }
  0xbe   : > { %s6827_s7 = sld [smem:[#allocation44_spill]]  ;;  %s6030_s29 = scalar_lea.vmem %s6816_s26, %s4822_s11 }
  0xbf   : > { %s1351_s3 = scalar_lea.vmem %s6817_s2, %s6002_s22  ;;  %s1354_s8 = scalar_lea.vmem %s6818_s16, %s6002_s22 }
  0xc0   : > { %s1357_s9 = scalar_lea.vmem %s6819_s23, %s6002_s22  ;;  %s6039_s18 = scalar_lea.vmem %s6820_s28, %s4822_s11 }
  0xc1   : > { %s1365_s17 = scalar_lea.vmem %s6821_s10, %s6002_s22  ;;  %s4828_s14 = sshll.u32 %s6002_s22, 6 }
  0xc2   : > { %s6045_s19 = scalar_lea.vmem %s6823_s5, %s4828_s14  ;;  %s1373_s27 = scalar_lea.vmem %s6825_s13, %s6002_s22 }
  0xc3   : > { %s1376_s20 = scalar_lea.vmem %s6826_s25, %s6002_s22  ;;  %s6828_s30 = sld [smem:[#allocation54_spill]] }
  0xc4   : > { %s1379_s24 = scalar_lea.vmem %s6827_s7, %s6002_s22 }
  0xc9   : > { %p6829_p5 = scmp.ne.s32.totalorder %s6828_s30, 0 }
  0xca   : > { %s6830_s21 = sld [smem:[#allocation20_spill]] (!%p6829_p5) }
  0xcb   : > { %1384 = sbr.rel (%p6829_p5) target bundleno = 525 (0x20d), region = 180  ;;  %s6831_s12 = sld [smem:[#allocation21_spill]] (!%p6829_p5) }
  0xd0   : > { %v1385_v0 = vld [vmem:[%s6830_s21] sm:$0xff]  ;;  %vm1392_vm0 = vcmask 261120   ;;  %v1386_v2 = vld [vmem:[%s6830_s21 + $0x8] sm:$0xff]  ;;  %vm1438_vm1 = vcmask 0   ;;  %v5700_v17 = vmov 0.0  }
  0xd1   : > { %v1387_v1 = vld [vmem:[%s6831_s12] sm:$0xff]  ;;  %1439 = vst.msk [vmem:[#allocation14] sm:$0x1] %vm1438_vm1, %v5700_v17  ;;  %v4722_v25 = vld [vmem:[#allocation3] ss:$0 sm:$0xff] }
  0xd2   : > { %v1388_v3 = vadd.f32 %v1387_v1, %v1385_v0  ;;  %v1389_v4 = vadd.f32 %v1387_v1, %v1386_v2  ;;  %v4723_v27 = vld [vmem:[#allocation7] ss:$0 sm:$0xff] }
  0xd4   : > { %v1393_v5 = vsel %vm1392_vm0, %v1388_v3, 0.0  ;;  %v1396_v6 = vsel %vm1392_vm0, %v1389_v4, 0.0 }
  0xd5   : > { %1394 = vadd.xlane.f32.xlu0 %v1393_v5 }
  0xd9   : > { %1397 = vadd.xlane.f32.xlu0 %v1396_v6 }
 0x15e   : > { %v1395_v7 = vpop.xlane.xlu0 %1394 }
 0x15f   : > { %v1400_v8 = vmul.f32 0.03125, %v1395_v7 }
 0x161   : > { %v1402_v9 = vsub.f32 %v1388_v3, %v1400_v8 }
 0x162   : > { %v1398_v10 = vpop.xlane.xlu0 %1397 }
 0x163   : > { %v1401_v11 = vmul.f32 0.03125, %v1398_v10  ;;  %v1404_v12 = vmul.f32 %v1402_v9, %v1402_v9 }
 0x165   : > { %v1403_v13 = vsub.f32 %v1389_v4, %v1401_v11  ;;  %v1406_v14 = vsel %vm1392_vm0, %v1404_v12, 0.0 }
 0x166   : > { %1407 = vadd.xlane.f32.xlu1 %v1406_v14 }
 0x167   : > { %v1405_v15 = vmul.f32 %v1403_v13, %v1403_v13 }
 0x169   : > { %v1409_v16 = vsel %vm1392_vm0, %v1405_v15, 0.0 }
 0x16a   : > { %1410 = vadd.xlane.f32.xlu1 %v1409_v16 }
 0x1ef   : > { %v1408_v18 = vpop.xlane.xlu1 %1407 }
 0x1f0   : > { %v1412_v19 = vmul.f32 0.03125, %v1408_v18 }
 0x1f2   : > { %v1414_v20 = vadd.f32 1e-12, %v1412_v19 }
 0x1f3   : > { %v1411_v21 = vpop.xlane.xlu1 %1410 }
 0x1f4   : > { %5332 = vrsqrt.f32 %v1414_v20  ;;  %v1413_v22 = vmul.f32 0.03125, %v1411_v21 }
 0x1f6   : > { %v1415_v23 = vadd.f32 1e-12, %v1413_v22 }
 0x1f8   : > { %5334 = vrsqrt.f32 %v1415_v23 }
 0x201   : > { %v5333_v24 = vpop.eup %5332 }
 0x202   : > { %v1418_v26 = vmul.f32 %v5333_v24, %v1402_v9 }
 0x204   : > { %v1426_v28 = vmul.f32 %v4722_v25, %v1418_v26 }
 0x205   : > { %v5335_v29 = vpop.eup %5334 }
 0x206   : > { %v1434_v30 = vadd.f32 %v4723_v27, %v1426_v28  ;;  %v1419_v31 = vmul.f32 %v5335_v29, %v1403_v13 }
 0x208   : > { %1436 = vst.msk [vmem:[#allocation2] sm:$0xff] %vm1392_vm0, %v1434_v30  ;;  %v1427_v32 = vmul.f32 %v4722_v25, %v1419_v31 }
 0x20a   : > { %v1435_v33 = vadd.f32 %v4723_v27, %v1427_v32 }
 0x20c   : > { %1437 = vst.msk [vmem:[#allocation2 + $0x8] sm:$0xff] %vm1392_vm0, %v1435_v33 }
 0x20d PF: > { %s6832_s5 = sld [smem:[#allocation55_spill]]  ;;  %v5701_v37 = vmov 0.0   ;;  %vm5702_vm2 = vmmov 0   ;;  %vm1508_vm3 = vcmask 261120   ;;  %s5703_s14 = smov 96   ;;  %vm1561_vm4 = vcmask 64512  }
 0x20e   : > { %4929 = vmatprep.subr.bf16.mxu1 %v5701_v37  ;;  %s6833_s13 = sld [smem:[#allocation27_spill]]  ;;  %4933 = vmatprep.mubr.msk.bf16.mxu1 %vm5702_vm2, %v5701_v37  ;;  %v1442_v57 = vlaneseq  ;;  %v5704_v59 = vmov -1e+09   ;;  %v5705_v61 = vmov 1966171168   ;;  %v5706_v3 = vmov 0  }
 0x20f   : > { %4943 = vmatprep.subr.bf16.mxu0 %v5701_v37  ;;  %4945 = vmatprep.mubr.msk.bf16.mxu0 %vm5702_vm2, %v5701_v37  ;;  %v6074_v41 = vld [vmem:[#allocation2] sm:$0xff]  ;;  %s6835_s30 = sld [smem:[#allocation25_spill]]  ;;  %v1451_v62 = vunpack.c.l.s4 %v5705_v61  ;;  %s5707_s12 = smov 64   ;;  %vm1689_vm14 = vcmask 1043456   ;;  %vm2479_vm15 = vcmask 130048   ;;  %vm2482_vm0 = vcmask 195584  }
 0x210   : > { %v6108_v58 = vand.u32 127, %v1442_v57  ;;  %v1443_v0 = vshrl.u32 %v1442_v57, 7  ;;  %s5708_s7 = smov 88   ;;  %s5709_s0 = smov 120   ;;  %vm3844_vm1 = vcmask 523264  }
 0x211   : > { %v1452_v1 = vunpack.c.0.s8 %v1451_v62  ;;  %s5710_s26 = smov 56   ;;  %s5711_s2 = smov 80  }
 0x212   : > { %vm1492_vm5 = vcmp.lt.s32.totalorder %v6108_v58, 5  ;;  %v1480_v9 = vsub.s32 0, %v1443_v0  ;;  %vm1446_vm9 = vcmp.le.s32.totalorder %v6108_v58, %v1443_v0  ;;  %s5712_s16 = smov 112   ;;  %s5713_s23 = smov 48  }
 0x213   : > { %v1497_v34 = vld [vmem:[%s6832_s5 + $0x10] sm:$0xff]  ;;  %v1498_v35 = vld [vmem:[%s6832_s5 + $0x18] sm:$0xff]  ;;  %v1495_v36 = vld [vmem:[%s6832_s5] sm:$0xff]  ;;  %v6111_v60 = vsel %vm1492_vm5, 0.0, %v5704_v59  ;;  %v1455_v2 = vsub.s32 %v1452_v1, %v1443_v0  ;;  %s5714_s28 = smov 72   ;;  %s5715_s11 = smov 104  }
 0x214   : > { %v1500_v38 = vpack.c.bf16 %v1498_v35, %v1497_v34  ;;  %v1496_v39 = vld [vmem:[%s6832_s5 + $0x8] sm:$0xff]  ;;  %s6834_s25 = scalar_lea.vmem %s6833_s13, %s6002_s22  ;;  %s5716_s10 = smov 40  }
 0x215   : > { %v1499_v40 = vpack.c.bf16 %v1496_v39, %v1495_v36  ;;  %v6076_v42 = vld [vmem:[#allocation2 + $0x8] sm:$0xff]  ;;  %v4724_v44 = vld [vmem:[%s6834_s25] ss:$0 sm:$0xff]  ;;  %s5717_s5 = smov 8   ;;  %s5718_s13 = smov 16  }
 0x216   : > { %4930 = vmatpush3.bf16.msra.mxu1 %v1500_v38  ;;  %v1494_v43 = vpack.c.bf16 %v6076_v42, %v6074_v41  ;;  %v1447_v63 = vld [vmem:[%s6835_s30] sm:$0x3]  ;;  %s6836_s25 = sld [smem:[#allocation56_spill]]  ;;  %s5719_s30 = smov 24  }
 0x217   : > { %4931 = vmatprep.subr.bf16.mxu1 %v5701_v37  ;;  %vm1448_vm6 = vcmp.gt.f32.partialorder %v1447_v63, 0.5 }
 0x218   : > { %v1449_v4 = vsel %vm1448_vm6, 1, %v5706_v3 }
 0x219   : > { %v1456_v5 = vrot.slane %v1449_v4, %v1455_v2 }
 0x21a   : > { %4932 = vmatpush3.bf16.msra.mxu1 %v1499_v40 }
 0x21b   : > { %4937 = vmatprep.subr.bf16.mxu1 %v5701_v37  ;;  %v1464_v6 = vrot.slane %v1456_v5, %v1455_v2  ;;  %v1457_v7 = vcombine.high %v1456_v5, %v1456_v5 }
 0x21d   : > { %4934 = vmatmul.mubr.msk.bf16.vlgmr.msra.gmra.mxu1 %vm1508_vm3, %v1494_v43  ;;  %vm1472_vm7 = vcmp.ne.s32.totalorder %v1464_v6, 0  ;;  %v1471_v8 = vrot.slane %v1457_v7, %v1455_v2 }
 0x21e   : > { %4939 = vmatprep.mubr.msk.bf16.mxu1 %vm5702_vm2, %v5701_v37  ;;  %v1476_v10 = vsel %vm1472_vm7, 1, %v5706_v3 }
 0x21f   : > { %vm1473_vm8 = vcmp.ne.s32.totalorder %v1471_v8, 0  ;;  %v1481_v11 = vrot.slane %v1476_v10, %v1480_v9 }
 0x220   : > { %v1477_v12 = vsel %vm1473_vm8, 1, %v5706_v3 }
 0x221   : > { %vm1486_vm10 = vcmp.eq.s32.totalorder %v1481_v11, 1  ;;  %v1485_v13 = vrot.slane %v1477_v12, %v1480_v9 }
 0x222   : > { %vm1488_vm11 = vmand %vm1446_vm9, %vm1486_vm10 }
 0x223   : > { %vm1487_vm12 = vcmp.eq.s32.totalorder %v1485_v13, 1  ;;  %v6115_v15 = vsel %vm1488_vm11, 0.0, %v5704_v59 }
 0x224   : > { %vm1489_vm13 = vmand %vm1446_vm9, %vm1487_vm12 }
 0x225   : > { %v6118_v21 = vsel %vm1489_vm13, 0.0, %v5704_v59 }
 0x2dd   : > { %v1546_v45 = vpop.f32.mrf.mxu1 }
 0x2de   : > { %v1547_v46 = vadd.f32 %v4724_v44, %v1546_v45 }
 0x2df   : > { %v4935_v47 = vpop.f32.mrf.mxu1 }
 0x2e0   : > { %v6088_v48 = vpack.c.bf16 %v1547_v46, %v1547_v46 }
 0x2e1   : > { %v1549_v49 = vpop.f32.mrf.mxu1 }
 0x2e2   : > { %v1550_v50 = vadd.f32 %v4724_v44, %v1549_v49  ;;  %1559 = vrot.lane.b32.xlu0 %v6088_v48, %s5703_s14 }
 0x2e3   : > { %v4936_v51 = vpop.f32.mrf.mxu1 }
 0x2e4   : > { %v6092_v52 = vpack.c.bf16 %v1550_v50, %v1550_v50 }
 0x2e6   : > { %1608 = vrot.lane.b32.xlu0 %v6092_v52, %s5703_s14 }
 0x354   : > { %v1560_v53 = vpop.permute.xlu0 %1559 }
 0x355   : > { %v1566_v54 = vsel %vm1561_vm4, %v1560_v53, 0 }
 0x356   : > { %4938 = vmatpush3.bf16.xpose.msra.mxu1 %v1566_v54 }
 0x357   : > { %4949 = vmatprep.subr.bf16.mxu1 %v5701_v37 }
 0x358   : > { %v1609_v55 = vpop.permute.xlu0 %1608 }
 0x359   : > { %v1614_v56 = vsel %vm1561_vm4, %v1609_v55, 0 }
 0x35a   : > { %4944 = vmatpush3.bf16.xpose.msra.mxu0 %v1614_v56 }
 0x35b   : > { %4955 = vmatprep.subr.bf16.mxu0 %v5701_v37 }
 0x35d   : > { %4940 = vmatmul.mubr.msk.bf16.vlgmr.msra.gmra.mxu1 %vm1561_vm4, %v6088_v48 }
 0x35e   : > { %4951 = vmatprep.mubr.msk.bf16.mxu1 %vm5702_vm2, %v5701_v37 }
 0x361   : > { %4946 = vmatmul.mubr.msk.bf16.vlgmr.msra.gmra.mxu0 %vm1561_vm4, %v6092_v52 }
 0x362   : > { %4957 = vmatprep.mubr.msk.bf16.mxu0 %vm5702_vm2, %v5701_v37 }
 0x41d   : > { %v1602_v14 = vpop.f32.mrf.mxu1 }
 0x41e   : > { %v1656_v16 = vmul.f32 0.35355338, %v1602_v14 }
 0x41f   : > { %v4941_v17 = vpop.f32.mrf.mxu1 }
 0x420   : > { %v1658_v18 = vadd.f32 %v1656_v16, %v6115_v15 }
 0x421   : > { %v1605_v19 = vpop.f32.mrf.mxu1  ;;  %v1650_v20 = vpop.f32.mrf.mxu0 }
 0x422   : > { %v1657_v22 = vmul.f32 0.35355338, %v1650_v20  ;;  %v1660_v23 = vsel %vm1561_vm4, %v1658_v18, -inf }
 0x423   : > { %v4947_v24 = vpop.f32.mrf.mxu0  ;;  %1661 = vmax.xlane.f32.xlu1 %v1660_v23  ;;  %v4942_v25 = vpop.f32.mrf.mxu1 }
 0x424   : > { %v1659_v26 = vadd.f32 %v1657_v22, %v6118_v21 }
 0x425   : > { %v1653_v27 = vpop.f32.mrf.mxu0 }
 0x426   : > { %v1663_v28 = vsel %vm1561_vm4, %v1659_v26, -inf }
 0x427   : > { %v4948_v29 = vpop.f32.mrf.mxu0  ;;  %1664 = vmax.xlane.f32.xlu1 %v1663_v28 }
 0x438   : > { %1684 = vrot.lane.b32.xlu1 %v6088_v48, %s5707_s12 }
 0x43c   : > { %1733 = vrot.lane.b32.xlu1 %v6092_v52, %s5707_s12  ;;  %s6837_s12 = sld [smem:[#allocation29_spill]] }
 0x440   : > { %1783 = vrot.lane.b32.xlu1 %v6088_v48, %s5708_s7 }
 0x4ac   : > { %v1662_v30 = vpop.xlane.xlu1 %1661 }
 0x4ad   : > { %v1666_v31 = vsub.f32 %v1658_v18, %v1662_v30 }
 0x4af   : > { %v1668_v32 = vmul.f32 1.442695, %v1666_v31 }
 0x4b0   : > { %v1665_v33 = vpop.xlane.xlu1 %1664 }
 0x4b1   : > { %5366 = vpow2.f32 %v1668_v32  ;;  %v1667_v34 = vsub.f32 %v1659_v26, %v1665_v33 }
 0x4b3   : > { %v1670_v35 = vmul.f32 1.442695, %v1667_v34 }
 0x4b4   : > { %v1685_v36 = vpop.permute.xlu1 %1684 }
 0x4b5   : > { %5368 = vpow2.f32 %v1670_v35  ;;  %v1691_v38 = vsel %vm1689_vm14, %v1685_v36, 0 }
 0x4b6   : > { %4950 = vmatpush3.bf16.msra.mxu1 %v1691_v38 }
 0x4b7   : > { %4961 = vmatprep.subr.bf16.mxu1 %v5701_v37 }
 0x4b8   : > { %v1734_v39 = vpop.permute.xlu1 %1733 }
 0x4b9   : > { %v1739_v40 = vsel %vm1689_vm14, %v1734_v39, 0 }
 0x4ba   : > { %4956 = vmatpush3.bf16.msra.mxu0 %v1739_v40 }
 0x4bb   : > { %4967 = vmatprep.subr.bf16.mxu0 %v5701_v37 }
 0x4bc   : > { %v1784_v47 = vpop.permute.xlu1 %1783 }
 0x4bd   : > { %v1789_v56 = vsel %vm1561_vm4, %v1784_v47, 0 }
 0x4be   : > { %v5367_v43 = vpop.eup %5366 }
 0x4bf   : > { %v1672_v44 = vsel %vm1561_vm4, %v5367_v43, 0.0 }
 0x4c0   : > { %1673 = vadd.xlane.f32.xlu0 %v1672_v44 }
 0x4c2   : > { %v5369_v45 = vpop.eup %5368 }
 0x4c3   : > { %v1675_v46 = vsel %vm1561_vm4, %v5369_v45, 0.0 }
 0x4c4   : > { %1676 = vadd.xlane.f32.xlu1 %v1675_v46 }
 0x4d5   : > { %1833 = vrot.lane.b32.xlu1 %v6092_v52, %s5708_s7 }
 0x4d6   : > { %1781 = vrot.lane.b32.xlu0 %v6088_v48, %s5709_s0 }
 0x4d9   : > { %1831 = vrot.lane.b32.xlu1 %v6092_v52, %s5709_s0 }
 0x549   : > { %v1674_v49 = vpop.xlane.xlu0 %1673 }
 0x54a   : > { %5370 = vrcp.f32 %v1674_v49 }
 0x54d   : > { %v1677_v50 = vpop.xlane.xlu1 %1676  ;;  %v1782_v63 = vpop.permute.xlu0 %1781 }
 0x54e   : > { %5372 = vrcp.f32 %v1677_v50 }
 0x551   : > { %v1834_v59 = vpop.permute.xlu1 %1833 }
 0x552   : > { %v1839_v62 = vsel %vm1561_vm4, %v1834_v59, 0 }
 0x555   : > { %v1832_v0 = vpop.permute.xlu1 %1831 }
 0x557   : > { %v5371_v51 = vpop.eup %5370 }
 0x558   : > { %v1680_v53 = vmul.f32 %v5371_v51, %v5367_v43 }
 0x55a   : > { %v1682_v54 = vpack.c.bf16 %v1680_v53, %v1680_v53 }
 0x55b   : > { %v5373_v55 = vpop.eup %5372 }
 0x55c   : > { %4952 = vmatmul.mubr.msk.bf16.vlgmr.msra.gmra.mxu1 %vm1561_vm4, %v1682_v54  ;;  %v1681_v57 = vmul.f32 %v5373_v55, %v5369_v45 }
 0x55d   : > { %4962 = vmatpush3.bf16.xpose.msra.mxu1 %v1789_v56  ;;  %4963 = vmatprep.mubr.msk.bf16.mxu1 %vm5702_vm2, %v5701_v37 }
 0x55e   : > { %v1683_v61 = vpack.c.bf16 %v1681_v57, %v1681_v57  ;;  %4973 = vmatprep.subr.bf16.mxu1 %v5701_v37 }
 0x560   : > { %4958 = vmatmul.mubr.msk.bf16.vlgmr.msra.gmra.mxu0 %vm1561_vm4, %v1683_v61 }
 0x561   : > { %4968 = vmatpush3.bf16.xpose.msra.mxu0 %v1839_v62  ;;  %4969 = vmatprep.mubr.msk.bf16.mxu0 %vm5702_vm2, %v5701_v37 }
 0x562   : > { %4979 = vmatprep.subr.bf16.mxu0 %v5701_v37 }
 0x564   : > { %4964 = vmatmul.mubr.msk.bf16.vlgmr.msra.gmra.mxu1 %vm1561_vm4, %v1782_v63 }
 0x565   : > { %4975 = vmatprep.mubr.msk.bf16.mxu1 %vm5702_vm2, %v5701_v37 }
 0x568   : > { %4970 = vmatmul.mubr.msk.bf16.vlgmr.msra.gmra.mxu0 %vm1561_vm4, %v1832_v0 }
 0x569   : > { %4981 = vmatprep.mubr.msk.bf16.mxu0 %vm5702_vm2, %v5701_v37 }
 0x61c   : > { %v6155_v1 = vpop.f32.mrf.mxu1 }
 0x61e   : > { %v4953_v2 = vpop.f32.mrf.mxu1 }
 0x620   : > { %v1730_v3 = vpop.f32.mrf.mxu1  ;;  %v6157_v4 = vpop.f32.mrf.mxu0 }
 0x622   : > { %v4954_v5 = vpop.f32.mrf.mxu1  ;;  %v4959_v6 = vpop.f32.mrf.mxu0 }
 0x624   : > { %v1778_v7 = vpop.f32.mrf.mxu0  ;;  %v1825_v8 = vpop.f32.mrf.mxu1 }
 0x625   : > { %v1881_v9 = vmul.f32 0.35355338, %v1825_v8 }
 0x626   : > { %v4960_v10 = vpop.f32.mrf.mxu0  ;;  %v4965_v11 = vpop.f32.mrf.mxu1 }
 0x627   : > { %v1883_v12 = vadd.f32 %v1881_v9, %v6115_v15 }
 0x628   : > { %v1828_v13 = vpop.f32.mrf.mxu1  ;;  %v1875_v14 = vpop.f32.mrf.mxu0 }
 0x629   : > { %v1882_v16 = vmul.f32 0.35355338, %v1875_v14  ;;  %v1885_v17 = vsel %vm1561_vm4, %v1883_v12, -inf }
 0x62a   : > { %v4971_v18 = vpop.f32.mrf.mxu0  ;;  %1886 = vmax.xlane.f32.xlu1 %v1885_v17  ;;  %v4966_v19 = vpop.f32.mrf.mxu1 }
 0x62b   : > { %v1884_v20 = vadd.f32 %v1882_v16, %v6118_v21 }
 0x62c   : > { %v1878_v22 = vpop.f32.mrf.mxu0 }
 0x62d   : > { %v1888_v23 = vsel %vm1561_vm4, %v1884_v20, -inf }
 0x62e   : > { %1889 = vmax.xlane.f32.xlu0 %v1888_v23  ;;  %v4972_v24 = vpop.f32.mrf.mxu0 }
 0x63b   : > { %1909 = vrot.lane.b32.xlu1 %v6088_v48, %s5710_s26 }
 0x63f   : > { %2007 = vrot.lane.b32.xlu1 %v6088_v48, %s5711_s2 }
 0x644   : > { %1957 = vrot.lane.b32.xlu0 %v6092_v52, %s5710_s26  ;;  %s6838_s26 = scalar_lea.vmem %s6837_s12, %s6002_s22 }
 0x648   : > { %2005 = vrot.lane.b32.xlu0 %v6088_v48, %s5712_s16 }
 0x6b3   : > { %v1887_v25 = vpop.xlane.xlu1 %1886 }
 0x6b4   : > { %v1891_v26 = vsub.f32 %v1883_v12, %v1887_v25 }
 0x6b6   : > { %v1893_v27 = vmul.f32 1.442695, %v1891_v26 }
 0x6b7   : > { %v1890_v28 = vpop.xlane.xlu0 %1889  ;;  %v1910_v29 = vpop.permute.xlu1 %1909 }
 0x6b8   : > { %5374 = vpow2.f32 %v1893_v27  ;;  %v1892_v30 = vsub.f32 %v1884_v20, %v1890_v28  ;;  %v1915_v31 = vsel %vm1689_vm14, %v1910_v29, 0 }
 0x6b9   : > { %4974 = vmatpush3.bf16.msra.mxu1 %v1915_v31 }
 0x6ba   : > { %v1895_v32 = vmul.f32 1.442695, %v1892_v30  ;;  %4985 = vmatprep.subr.bf16.mxu1 %v5701_v37 }
 0x6bb   : > { %v1958_v33 = vpop.permute.xlu0 %1957  ;;  %v2008_v40 = vpop.permute.xlu1 %2007 }
 0x6bc   : > { %5376 = vpow2.f32 %v1895_v32  ;;  %v1963_v34 = vsel %vm1689_vm14, %v1958_v33, 0  ;;  %v2013_v50 = vsel %vm1561_vm4, %v2008_v40, 0 }
 0x6bd   : > { %4980 = vmatpush3.bf16.msra.mxu0 %v1963_v34 }
 0x6be   : > { %4991 = vmatprep.subr.bf16.mxu0 %v5701_v37 }
 0x6bf   : > { %v2006_v56 = vpop.permute.xlu0 %2005 }
 0x6c5   : > { %v5375_v35 = vpop.eup %5374 }
 0x6c6   : > { %v1897_v36 = vsel %vm1561_vm4, %v5375_v35, 0.0 }
 0x6c7   : > { %1898 = vadd.xlane.f32.xlu1 %v1897_v36 }
 0x6c9   : > { %v5377_v38 = vpop.eup %5376 }
 0x6ca   : > { %v1900_v39 = vsel %vm1561_vm4, %v5377_v38, 0.0 }
 0x6cb   : > { %1901 = vadd.xlane.f32.xlu1 %v1900_v39 }
 0x6dc   : > { %2057 = vrot.lane.b32.xlu1 %v6092_v52, %s5711_s2 }
 0x6e0   : > { %2055 = vrot.lane.b32.xlu1 %v6092_v52, %s5712_s16 }
 0x750   : > { %v1899_v43 = vpop.xlane.xlu1 %1898 }
 0x751   : > { %5378 = vrcp.f32 %v1899_v43 }
 0x754   : > { %v1902_v44 = vpop.xlane.xlu1 %1901 }
 0x755   : > { %5380 = vrcp.f32 %v1902_v44 }
 0x758   : > { %v2058_v53 = vpop.permute.xlu1 %2057 }
 0x759   : > { %v2063_v55 = vsel %vm1561_vm4, %v2058_v53, 0 }
 0x75c   : > { %v2056_v57 = vpop.permute.xlu1 %2055 }
 0x75e   : > { %v5379_v45 = vpop.eup %5378 }
 0x75f   : > { %v1905_v46 = vmul.f32 %v5379_v45, %v5375_v35 }
 0x761   : > { %v1907_v47 = vpack.c.bf16 %v1905_v46, %v1905_v46 }
 0x762   : > { %v5381_v49 = vpop.eup %5380 }
 0x763   : > { %4976 = vmatmul.mubr.msk.bf16.vlgmr.msra.gmra.mxu1 %vm1561_vm4, %v1907_v47  ;;  %v1906_v51 = vmul.f32 %v5381_v49, %v5377_v38 }
 0x764   : > { %4986 = vmatpush3.bf16.xpose.msra.mxu1 %v2013_v50  ;;  %4987 = vmatprep.mubr.msk.bf16.mxu1 %vm5702_vm2, %v5701_v37 }
 0x765   : > { %v1908_v54 = vpack.c.bf16 %v1906_v51, %v1906_v51  ;;  %4997 = vmatprep.subr.bf16.mxu1 %v5701_v37 }
 0x767   : > { %4982 = vmatmul.mubr.msk.bf16.vlgmr.msra.gmra.mxu0 %vm1561_vm4, %v1908_v54 }
 0x768   : > { %4992 = vmatpush3.bf16.xpose.msra.mxu0 %v2063_v55  ;;  %4993 = vmatprep.mubr.msk.bf16.mxu0 %vm5702_vm2, %v5701_v37 }
 0x769   : > { %5003 = vmatprep.subr.bf16.mxu0 %v5701_v37 }
 0x76b   : > { %4988 = vmatmul.mubr.msk.bf16.vlgmr.msra.gmra.mxu1 %vm1561_vm4, %v2006_v56 }
 0x76c   : > { %4999 = vmatprep.mubr.msk.bf16.mxu1 %vm5702_vm2, %v5701_v37 }
 0x76f   : > { %4994 = vmatmul.mubr.msk.bf16.vlgmr.msra.gmra.mxu0 %vm1561_vm4, %v2056_v57 }
 0x770   : > { %5005 = vmatprep.mubr.msk.bf16.mxu0 %vm5702_vm2, %v5701_v37 }
 0x823   : > { %v6195_v59 = vpop.f32.mrf.mxu1 }
 0x825   : > { %v4977_v61 = vpop.f32.mrf.mxu1 }
 0x827   : > { %v1954_v62 = vpop.f32.mrf.mxu1  ;;  %v6197_v63 = vpop.f32.mrf.mxu0 }
 0x828   : > { %v5336_v0 = vpack.i.bf16 %v6197_v63, %v6195_v59 }
 0x829   : > { %v4978_v2 = vpop.f32.mrf.mxu1  ;;  %v4983_v3 = vpop.f32.mrf.mxu0 }
 0x82b   : > { %v2002_v5 = vpop.f32.mrf.mxu0  ;;  %v2049_v6 = vpop.f32.mrf.mxu1 }
 0x82c   : > { %v2105_v7 = vmul.f32 0.35355338, %v2049_v6 }
 0x82d   : > { %v4984_v8 = vpop.f32.mrf.mxu0  ;;  %v4989_v9 = vpop.f32.mrf.mxu1 }
 0x82e   : > { %v2107_v10 = vadd.f32 %v2105_v7, %v6115_v15 }
 0x82f   : > { %v2052_v11 = vpop.f32.mrf.mxu1  ;;  %v2099_v12 = vpop.f32.mrf.mxu0 }
 0x830   : > { %v2106_v13 = vmul.f32 0.35355338, %v2099_v12  ;;  %v2109_v14 = vsel %vm1561_vm4, %v2107_v10, -inf }
 0x831   : > { %v4995_v16 = vpop.f32.mrf.mxu0  ;;  %2110 = vmax.xlane.f32.xlu0 %v2109_v14  ;;  %v4990_v17 = vpop.f32.mrf.mxu1 }
 0x832   : > { %v2108_v18 = vadd.f32 %v2106_v13, %v6118_v21 }
 0x833   : > { %v2102_v19 = vpop.f32.mrf.mxu0 }
 0x834   : > { %v2112_v20 = vsel %vm1561_vm4, %v2108_v18, -inf }
 0x835   : > { %2113 = vmax.xlane.f32.xlu1 %v2112_v20  ;;  %v4996_v22 = vpop.f32.mrf.mxu0 }
 0x846   : > { %2133 = vrot.lane.b32.xlu1 %v6088_v48, %s5713_s23 }
 0x84a   : > { %2231 = vrot.lane.b32.xlu1 %v6088_v48, %s5714_s28 }
 0x84e   : > { %2281 = vrot.lane.b32.xlu1 %v6092_v52, %s5714_s28 }
 0x852   : > { %2279 = vrot.lane.b32.xlu1 %v6092_v52, %s5715_s11 }
 0x8ba   : > { %v2111_v23 = vpop.xlane.xlu0 %2110 }
 0x8bb   : > { %v2115_v24 = vsub.f32 %v2107_v10, %v2111_v23 }
 0x8bd   : > { %v2117_v25 = vmul.f32 1.442695, %v2115_v24 }
 0x8be   : > { %v2114_v26 = vpop.xlane.xlu1 %2113 }
 0x8bf   : > { %5382 = vpow2.f32 %v2117_v25  ;;  %v2116_v27 = vsub.f32 %v2108_v18, %v2114_v26 }
 0x8c1   : > { %v2119_v28 = vmul.f32 1.442695, %v2116_v27 }
 0x8c2   : > { %v2134_v29 = vpop.permute.xlu1 %2133 }
 0x8c3   : > { %5384 = vpow2.f32 %v2119_v28  ;;  %v2139_v30 = vsel %vm1689_vm14, %v2134_v29, 0 }
 0x8c4   : > { %4998 = vmatpush3.bf16.msra.mxu1 %v2139_v30 }
 0x8c5   : > { %5009 = vmatprep.subr.bf16.mxu1 %v5701_v37 }
 0x8c6   : > { %v2232_v43 = vpop.permute.xlu1 %2231 }
 0x8c7   : > { %v2237_v47 = vsel %vm1561_vm4, %v2232_v43, 0  ;;  %v2489_v43 = vld [vmem:[%s6836_s25 + $0x18] sm:$0xff] }
 0x8ca   : > { %v2282_v50 = vpop.permute.xlu1 %2281 }
 0x8cb   : > { %v2287_v53 = vsel %vm1561_vm4, %v2282_v50, 0 }
 0x8cc   : > { %v5383_v31 = vpop.eup %5382 }
 0x8cd   : > { %v2121_v32 = vsel %vm1561_vm4, %v5383_v31, 0.0 }
 0x8ce   : > { %2122 = vadd.xlane.f32.xlu0 %v2121_v32  ;;  %v2280_v55 = vpop.permute.xlu1 %2279 }
 0x8d0   : > { %v5385_v33 = vpop.eup %5384 }
 0x8d1   : > { %v2124_v34 = vsel %vm1561_vm4, %v5385_v33, 0.0 }
 0x8d2   : > { %2125 = vadd.xlane.f32.xlu0 %v2124_v34 }
 0x8e8   : > { %2181 = vrot.lane.b32.xlu0 %v6092_v52, %s5713_s23  ;;  %s6839_s23 = sld [smem:[#allocation24_spill]] }
 0x8ec   : > { %2229 = vrot.lane.b32.xlu0 %v6088_v48, %s5715_s11 }
 0x957   : > { %v2123_v35 = vpop.xlane.xlu0 %2122 }
 0x958   : > { %5386 = vrcp.f32 %v2123_v35 }
 0x95b   : > { %v2126_v36 = vpop.xlane.xlu0 %2125 }
 0x95c   : > { %5388 = vrcp.f32 %v2126_v36 }
 0x95f   : > { %v2182_v38 = vpop.permute.xlu0 %2181 }
 0x960   : > { %v2187_v39 = vsel %vm1689_vm14, %v2182_v38, 0 }
 0x961   : > { %5004 = vmatpush3.bf16.msra.mxu0 %v2187_v39 }
 0x962   : > { %5015 = vmatprep.subr.bf16.mxu0 %v5701_v37 }
 0x963   : > { %v2230_v54 = vpop.permute.xlu0 %2229 }
 0x965   : > { %v5387_v40 = vpop.eup %5386 }
 0x966   : > { %v2129_v44 = vmul.f32 %v5387_v40, %v5383_v31  ;;  %v2488_v40 = vld [vmem:[%s6836_s25 + $0x10] sm:$0xff] }
 0x968   : > { %v2131_v45 = vpack.c.bf16 %v2129_v44, %v2129_v44  ;;  %v2491_v44 = vpack.c.bf16 %v2489_v43, %v2488_v40  ;;  %v2597_v40 = vld [vmem:[%s6020_s4 + $0x10] sm:$0xff]  ;;  %v2598_v43 = vld [vmem:[%s6020_s4 + $0x18] sm:$0xff] }
 0x969   : > { %v5389_v46 = vpop.eup %5388 }
 0x96a   : > { %5000 = vmatmul.mubr.msk.bf16.vlgmr.msra.gmra.mxu1 %vm1561_vm4, %v2131_v45  ;;  %v2130_v49 = vmul.f32 %v5389_v46, %v5385_v33  ;;  %v2486_v45 = vld [vmem:[%s6836_s25] sm:$0xff]  ;;  %v2487_v46 = vld [vmem:[%s6836_s25 + $0x8] sm:$0xff] }
 0x96b   : > { %5010 = vmatpush3.bf16.xpose.msra.mxu1 %v2237_v47  ;;  %5011 = vmatprep.mubr.msk.bf16.mxu1 %vm5702_vm2, %v5701_v37  ;;  %v2490_v47 = vpack.c.bf16 %v2487_v46, %v2486_v45  ;;  %v2595_v45 = vld [vmem:[%s6020_s4] sm:$0xff]  ;;  %v2596_v46 = vld [vmem:[%s6020_s4 + $0x8] sm:$0xff] }
 0x96c   : > { %v2132_v51 = vpack.c.bf16 %v2130_v49, %v2130_v49  ;;  %5021 = vmatprep.subr.bf16.mxu1 %v5701_v37 }
 0x96e   : > { %5006 = vmatmul.mubr.msk.bf16.vlgmr.msra.gmra.mxu0 %vm1561_vm4, %v2132_v51 }
 0x96f   : > { %5016 = vmatpush3.bf16.xpose.msra.mxu0 %v2287_v53  ;;  %5017 = vmatprep.mubr.msk.bf16.mxu0 %vm5702_vm2, %v5701_v37 }
 0x970   : > { %5027 = vmatprep.subr.bf16.mxu0 %v5701_v37 }
 0x972   : > { %5012 = vmatmul.mubr.msk.bf16.vlgmr.msra.gmra.mxu1 %vm1561_vm4, %v2230_v54 }
 0x973   : > { %5023 = vmatprep.mubr.msk.bf16.mxu1 %vm5702_vm2, %v5701_v37 }
 0x976   : > { %5018 = vmatmul.mubr.msk.bf16.vlgmr.msra.gmra.mxu0 %vm1561_vm4, %v2280_v55 }
 0x977   : > { %5029 = vmatprep.mubr.msk.bf16.mxu0 %vm5702_vm2, %v5701_v37 }
 0xa2a   : > { %v2175_v56 = vpop.f32.mrf.mxu1 }
 0xa2c   : > { %v5001_v57 = vpop.f32.mrf.mxu1 }
 0xa2e   : > { %v2178_v61 = vpop.f32.mrf.mxu1  ;;  %v2223_v62 = vpop.f32.mrf.mxu0 }
 0xa30   : > { %v5002_v2 = vpop.f32.mrf.mxu1  ;;  %v5007_v3 = vpop.f32.mrf.mxu0 }
 0xa32   : > { %v2226_v5 = vpop.f32.mrf.mxu0  ;;  %v2273_v6 = vpop.f32.mrf.mxu1 }
 0xa33   : > { %v2329_v7 = vmul.f32 0.35355338, %v2273_v6 }
 0xa34   : > { %v5008_v8 = vpop.f32.mrf.mxu0  ;;  %v5013_v9 = vpop.f32.mrf.mxu1 }
 0xa35   : > { %v2331_v10 = vadd.f32 %v2329_v7, %v6115_v15  ;;  %v5341_v15 = vpack.i.bf16 %v2223_v62, %v2175_v56 }
 0xa36   : > { %v2276_v11 = vpop.f32.mrf.mxu1  ;;  %v2323_v12 = vpop.f32.mrf.mxu0 }
 0xa37   : > { %v2330_v13 = vmul.f32 0.35355338, %v2323_v12  ;;  %v2333_v14 = vsel %vm1561_vm4, %v2331_v10, -inf }
 0xa38   : > { %v5019_v16 = vpop.f32.mrf.mxu0  ;;  %2334 = vmax.xlane.f32.xlu0 %v2333_v14  ;;  %v5014_v17 = vpop.f32.mrf.mxu1 }
 0xa39   : > { %v2332_v18 = vadd.f32 %v2330_v13, %v6118_v21 }
 0xa3a   : > { %v2326_v19 = vpop.f32.mrf.mxu0 }
 0xa3b   : > { %v2336_v20 = vsel %vm1561_vm4, %v2332_v18, -inf }
 0xa3c   : > { %2337 = vmax.xlane.f32.xlu1 %v2336_v20  ;;  %v5020_v22 = vpop.f32.mrf.mxu0 }
 0xa4d   : > { %2357 = vrot.lane.b32.xlu1 %v6088_v48, %s5716_s10 }
 0xa51   : > { %5337 = vrot.lane.b32.xlu1 %v5336_v0, %s5717_s5 }
 0xa55   : > { %5342 = vrot.lane.b32.xlu1 %v5341_v15, %s5718_s13 }
 0xac1   : > { %v2335_v23 = vpop.xlane.xlu0 %2334 }
 0xac2   : > { %v2339_v21 = vsub.f32 %v2331_v10, %v2335_v23 }
 0xac4   : > { %v2341_v24 = vmul.f32 1.442695, %v2339_v21 }
 0xac5   : > { %v2338_v25 = vpop.xlane.xlu1 %2337 }
 0xac6   : > { %5390 = vpow2.f32 %v2341_v24  ;;  %v2340_v26 = vsub.f32 %v2332_v18, %v2338_v25 }
 0xac8   : > { %v2343_v27 = vmul.f32 1.442695, %v2340_v26 }
 0xac9   : > { %v2358_v28 = vpop.permute.xlu1 %2357 }
 0xaca   : > { %5392 = vpow2.f32 %v2343_v27  ;;  %v2363_v48 = vsel %vm1689_vm14, %v2358_v28, 0 }
 0xacb   : > { %5022 = vmatpush3.bf16.msra.mxu1 %v2363_v48 }
 0xacc   : > { %5033 = vmatprep.subr.bf16.mxu1 %v5701_v37 }
 0xacd   : > { %v5338_v62 = vpop.permute.xlu1 %5337 }
 0xace   : > { %v5340_v3 = vunpack.i.h.bf16 %v5338_v62  ;;  %v5339_v5 = vunpack.i.l.bf16 %v5338_v62 }
 0xad0   : > { %v2478_v9 = vsel %vm1561_vm4, %v6157_v4, %v5340_v3  ;;  %v2477_v10 = vsel %vm1561_vm4, %v6155_v1, %v5339_v5  ;;  %v4744_v4 = vld [vmem:[%s6838_s26] ss:$0 sm:$0xff] }
 0xad1   : > { %v5343_v2 = vpop.permute.xlu1 %5342 }
 0xad2   : > { %v5345_v6 = vunpack.i.h.bf16 %v5343_v2  ;;  %v5344_v7 = vunpack.i.l.bf16 %v5343_v2 }
 0xad3   : > { %v5391_v59 = vpop.eup %5390 }
 0xad4   : > { %v2345_v63 = vsel %vm1561_vm4, %v5391_v59, 0.0  ;;  %v2481_v13 = vsel %vm2479_vm15, %v2478_v9, %v5345_v6  ;;  %v2480_v14 = vsel %vm2479_vm15, %v2477_v10, %v5344_v7  ;;  %v4750_v10 = vld [vmem:[%s1343_s1] ss:$0 sm:$0xff]  ;;  %s6845_s1 = scalar_lea.vmem %s5796_s6, %s6002_s22 }
 0xad5   : > { %2346 = vadd.xlane.f32.xlu0 %v2345_v63 }
 0xad7   : > { %v5393_v0 = vpop.eup %5392 }
 0xad8   : > { %v2348_v29 = vsel %vm1561_vm4, %v5393_v0, 0.0 }
 0xad9   : > { %2349 = vadd.xlane.f32.xlu0 %v2348_v29 }
 0xaef   : > { %2405 = vrot.lane.b32.xlu0 %v6092_v52, %s5716_s10  ;;  %s6840_s10 = sld [smem:[#allocation30_spill]] }
 0xaf5   : > { %s6843_s4 = scalar_lea.vmem %s6840_s10, %s6002_s22 }
 0xb5e   : > { %v2347_v30 = vpop.xlane.xlu0 %2346 }
 0xb5f   : > { %5394 = vrcp.f32 %v2347_v30 }
 0xb62   : > { %v2350_v31 = vpop.xlane.xlu0 %2349 }
 0xb63   : > { %5396 = vrcp.f32 %v2350_v31  ;;  %v2655_v31 = vld [vmem:[%s6025_s15 + $0x10] sm:$0xff] }
 0xb66   : > { %v2406_v32 = vpop.permute.xlu0 %2405 }
 0xb67   : > { %v2411_v33 = vsel %vm1689_vm14, %v2406_v32, 0  ;;  %v2656_v32 = vld [vmem:[%s6025_s15 + $0x18] sm:$0xff] }
 0xb68   : > { %5028 = vmatpush3.bf16.msra.mxu0 %v2411_v33  ;;  %v2658_v33 = vpack.c.bf16 %v2656_v32, %v2655_v31 }
 0xb69   : > { %5041 = vmatprep.subr.bf16.mxu0 %v5701_v37 }
 0xb6c   : > { %v5395_v34 = vpop.eup %5394 }
 0xb6d   : > { %v2353_v35 = vmul.f32 %v5395_v34, %v5391_v59  ;;  %v2653_v34 = vld [vmem:[%s6025_s15] sm:$0xff] }
 0xb6f   : > { %v2355_v36 = vpack.c.bf16 %v2353_v35, %v2353_v35  ;;  %v2654_v35 = vld [vmem:[%s6025_s15 + $0x8] sm:$0xff]  ;;  %s6841_s15 = sld [smem:[#allocation31_spill]] }
 0xb70   : > { %v5397_v38 = vpop.eup %5396 }
 0xb71   : > { %5024 = vmatmul.mubr.msk.bf16.vlgmr.msra.gmra.mxu1 %vm1561_vm4, %v2355_v36  ;;  %v2354_v52 = vmul.f32 %v5397_v38, %v5393_v0  ;;  %v2657_v36 = vpack.c.bf16 %v2654_v35, %v2653_v34  ;;  %v2590_v38 = vld [vmem:[%s6839_s23] sm:$0xff] }
 0xb72   : > { %5037 = vmatprep.mubr.msk.bf16.mxu1 %vm5702_vm2, %v5701_v37  ;;  %5034 = vmatpush3.bf16.msra.mxu1 %v2491_v44  ;;  %v2600_v44 = vpack.c.bf16 %v2598_v43, %v2597_v40 }
 0xb73   : > { %v2356_v39 = vpack.c.bf16 %v2354_v52, %v2354_v52  ;;  %5035 = vmatprep.subr.bf16.mxu1 %v5701_v37  ;;  %v2591_v52 = vld [vmem:[%s6839_s23 + $0x8] sm:$0xff] }
 0xb75   : > { %5030 = vmatmul.mubr.msk.bf16.vlgmr.msra.gmra.mxu0 %vm1561_vm4, %v2356_v39  ;;  %v4831_v39 = vpack.c.bf16 %v2591_v52, %v2590_v38  ;;  %s6844_s12 = scalar_lea.vmem %s6841_s15, %s6002_s22 }
 0xb76   : > { %5045 = vmatprep.mubr.msk.bf16.mxu0 %vm5702_vm2, %v5701_v37  ;;  %5036 = vmatpush3.bf16.msra.mxu1 %v2490_v47  ;;  %v2599_v47 = vpack.c.bf16 %v2596_v46, %v2595_v45  ;;  %v4747_v5 = vld [vmem:[%s6844_s12] ss:$0 sm:$0xff] }
 0xb77   : > { %5049 = vmatprep.subr.bf16.mxu1 %v5701_v37  ;;  %5042 = vmatpush3.bf16.msra.mxu0 %v2600_v44 }
 0xb78   : > { %5043 = vmatprep.subr.bf16.mxu0 %v5701_v37 }
 0xb7b   : > { %5044 = vmatpush3.bf16.msra.mxu0 %v2599_v47 }
 0xb7c   : > { %5057 = vmatprep.subr.bf16.mxu0 %v5701_v37 }
 0xc31   : > { %v2399_v49 = vpop.f32.mrf.mxu1 }
 0xc33   : > { %v5025_v50 = vpop.f32.mrf.mxu1 }
 0xc35   : > { %v2402_v51 = vpop.f32.mrf.mxu1  ;;  %v2447_v53 = vpop.f32.mrf.mxu0 }
 0xc36   : > { %v5346_v54 = vpack.i.bf16 %v2447_v53, %v2399_v49 }
 0xc37   : > { %v5026_v55 = vpop.f32.mrf.mxu1  ;;  %v5031_v56 = vpop.f32.mrf.mxu0 }
 0xc38   : > { %5347 = vrot.lane.b32.xlu0 %v5346_v54, %s5719_s30 }
 0xc39   : > { %v2450_v57 = vpop.f32.mrf.mxu0 }
 0xc3b   : > { %v5032_v61 = vpop.f32.mrf.mxu0 }
 0xc3c   : > { %v4746_v61 = vld [vmem:[%s6843_s4] ss:$0 sm:$0xff] }
 0xcaa   : > { %v5348_v8 = vpop.permute.xlu0 %5347 }
 0xcab   : > { %v5350_v11 = vunpack.i.h.bf16 %v5348_v8  ;;  %v5349_v12 = vunpack.i.l.bf16 %v5348_v8 }
 0xcad   : > { %v2484_v16 = vsel %vm2482_vm0, %v2481_v13, %v5350_v11  ;;  %v2483_v17 = vsel %vm2482_vm0, %v2480_v14, %v5349_v12 }
 0xcae   : > { %v2485_v18 = vpack.c.bf16 %v2484_v16, %v2483_v17 }
 0xcb0   : > { %5038 = vmatmul.mubr.msk.bf16.vlgmr.msra.gmra.mxu1 %vm1508_vm3, %v2485_v18 }
 0xcb1   : > { %5053 = vmatprep.mubr.msk.bf16.mxu1 %vm5702_vm2, %v5701_v37  ;;  %5050 = vmatpush3.bf16.msra.mxu1 %v2658_v33 }
 0xcb2   : > { %5051 = vmatprep.subr.bf16.mxu1 %v5701_v37 }
 0xcb5   : > { %5052 = vmatpush3.bf16.msra.mxu1 %v2657_v36 }
 0xcb6   : > { %5063 = vmatprep.subr.bf16.mxu1 %v5701_v37 }
 0xcb8   : > { %5054 = vmatmul.mubr.msk.bf16.vlgmr.msra.gmra.mxu1 %vm1508_vm3, %v4831_v39 }
 0xcb9   : > { %5065 = vmatprep.mubr.msk.bf16.mxu1 %vm5702_vm2, %v5701_v37 }
 0xd70   : > { %v2536_v19 = vpop.f32.mrf.mxu1 }
 0xd71   : > { %v2537_v1 = vadd.f32 %v4744_v4, %v2536_v19 }
 0xd72   : > { %v5039_v20 = vpop.f32.mrf.mxu1 }
 0xd73   : > { %v2543_v22 = vadd.f32 %v2537_v1, %v6074_v41  ;;  %v4748_v20 = vld [vmem:[%s6845_s1] ss:$0 sm:$0xff] }
 0xd74   : > { %v2539_v15 = vpop.f32.mrf.mxu1 }
 0xd75   : > { %v2540_v23 = vadd.f32 %v4744_v4, %v2539_v15  ;;  %v2547_v21 = vsel %vm1508_vm3, %v2543_v22, 0.0 }
 0xd76   : > { %2548 = vadd.xlane.f32.xlu1 %v2547_v21  ;;  %v5040_v24 = vpop.f32.mrf.mxu1 }
 0xd77   : > { %v2544_v25 = vadd.f32 %v2540_v23, %v6076_v42 }
 0xd78   : > { %v2708_v11 = vpop.f32.mrf.mxu1 }
 0xd79   : > { %v2550_v26 = vsel %vm1508_vm3, %v2544_v25, 0.0  ;;  %v2709_v12 = vadd.f32 %v4750_v10, %v2708_v11 }
 0xd7a   : > { %2551 = vadd.xlane.f32.xlu0 %v2550_v26  ;;  %v5055_v13 = vpop.f32.mrf.mxu1 }
 0xd7b   : > { %v6322_v14 = vpack.c.bf16 %v2709_v12, %v2709_v12 }
 0xd7c   : > { %v2711_v16 = vpop.f32.mrf.mxu1 }
 0xd7d   : > { %v2712_v17 = vadd.f32 %v4750_v10, %v2711_v16  ;;  %v2730_v18 = vsel %vm1561_vm4, %v6322_v14, 0 }
 0xd7e   : > { %v5056_v4 = vpop.f32.mrf.mxu1 }
 0xd7f   : > { %v6326_v19 = vpack.c.bf16 %v2712_v17, %v2712_v17 }
 0xd81   : > { %v2776_v1 = vsel %vm1561_vm4, %v6326_v19, 0 }
 0xd82   : > { %5064 = vmatpush3.bf16.xpose.msra.mxu1 %v2776_v1 }
 0xd83   : > { %5075 = vmatprep.subr.bf16.mxu1 %v5701_v37 }
 0xdff   : > { %v2549_v27 = vpop.xlane.xlu1 %2548 }
 0xe00   : > { %v2554_v28 = vmul.f32 0.03125, %v2549_v27 }
 0xe02   : > { %v2556_v48 = vsub.f32 %v2543_v22, %v2554_v28 }
 0xe03   : > { %v2552_v59 = vpop.xlane.xlu0 %2551 }
 0xe04   : > { %v2555_v41 = vmul.f32 0.03125, %v2552_v59  ;;  %v2558_v63 = vmul.f32 %v2556_v48, %v2556_v48 }
 0xe06   : > { %v2557_v0 = vsub.f32 %v2544_v25, %v2555_v41  ;;  %v2560_v29 = vsel %vm1508_vm3, %v2558_v63, 0.0 }
 0xe07   : > { %2561 = vadd.xlane.f32.xlu0 %v2560_v29 }
 0xe08   : > { %v2559_v30 = vmul.f32 %v2557_v0, %v2557_v0 }
 0xe0a   : > { %v2563_v42 = vsel %vm1508_vm3, %v2559_v30, 0.0 }
 0xe0b   : > { %2564 = vadd.xlane.f32.xlu1 %v2563_v42 }
 0xe90   : > { %v2562_v49 = vpop.xlane.xlu0 %2561 }
 0xe91   : > { %v2566_v50 = vmul.f32 0.03125, %v2562_v49 }
 0xe93   : > { %v2568_v51 = vadd.f32 1e-12, %v2566_v50 }
 0xe94   : > { %v2565_v53 = vpop.xlane.xlu1 %2564 }
 0xe95   : > { %5398 = vrsqrt.f32 %v2568_v51  ;;  %v2567_v54 = vmul.f32 0.03125, %v2565_v53 }
 0xe97   : > { %v2569_v55 = vadd.f32 1e-12, %v2567_v54 }
 0xe99   : > { %5400 = vrsqrt.f32 %v2569_v55 }
 0xea2   : > { %v5399_v56 = vpop.eup %5398 }
 0xea3   : > { %v2572_v57 = vmul.f32 %v5399_v56, %v2556_v48 }
 0xea5   : > { %v2580_v3 = vmul.f32 %v4746_v61, %v2572_v57 }
 0xea6   : > { %v5401_v62 = vpop.eup %5400 }
 0xea7   : > { %v2573_v2 = vmul.f32 %v5401_v62, %v2557_v0  ;;  %v6310_v7 = vadd.f32 %v4747_v5, %v2580_v3 }
 0xea9   : > { %v2581_v6 = vmul.f32 %v4746_v61, %v2573_v2 }
 0xeab   : > { %v6312_v8 = vadd.f32 %v4747_v5, %v2581_v6 }
 0xead   : > { %v2594_v9 = vpack.c.bf16 %v6312_v8, %v6310_v7 }
 0xeaf   : > { %5046 = vmatmul.mubr.msk.bf16.vlgmr.msra.gmra.mxu0 %vm1508_vm3, %v2594_v9 }
 0xeb0   : > { %5059 = vmatprep.mubr.msk.bf16.mxu0 %vm5702_vm2, %v5701_v37  ;;  %5058 = vmatpush3.bf16.xpose.msra.mxu0 %v2730_v18 }
 0xeb1   : > { %5069 = vmatprep.subr.bf16.mxu0 %v5701_v37 }
 0xf6f   : > { %v2645_v22 = vpop.f32.mrf.mxu0 }
 0xf70   : > { %v2646_v15 = vadd.f32 %v4748_v20, %v2645_v22 }
 0xf71   : > { %v5047_v23 = vpop.f32.mrf.mxu0 }
 0xf72   : > { %v6335_v21 = vpack.c.bf16 %v2646_v15, %v2646_v15 }
 0xf73   : > { %v2648_v24 = vpop.f32.mrf.mxu0 }
 0xf74   : > { %v2649_v25 = vadd.f32 %v4748_v20, %v2648_v24  ;;  %5060 = vmatmul.mubr.msk.bf16.vlgmr.msra.gmra.mxu0 %vm1561_vm4, %v6335_v21 }
 0xf75   : > { %v5048_v26 = vpop.f32.mrf.mxu0  ;;  %5071 = vmatprep.mubr.msk.bf16.mxu0 %vm5702_vm2, %v5701_v37 }
 0xf76   : > { %v6341_v27 = vpack.c.bf16 %v2649_v25, %v2649_v25 }
 0xf78   : > { %5066 = vmatmul.mubr.msk.bf16.vlgmr.msra.gmra.mxu1 %vm1561_vm4, %v6341_v27 }
 0xf79   : > { %5077 = vmatprep.mubr.msk.bf16.mxu1 %vm5702_vm2, %v5701_v37 }
0x1034   : > { %v2766_v28 = vpop.f32.mrf.mxu0 }
0x1035   : > { %v2818_v48 = vmul.f32 0.35355338, %v2766_v28 }
0x1036   : > { %v5061_v59 = vpop.f32.mrf.mxu0 }
0x1037   : > { %v2820_v41 = vadd.f32 %v2818_v48, %v6111_v60 }
0x1038   : > { %v2769_v63 = vpop.f32.mrf.mxu0  ;;  %v2812_v0 = vpop.f32.mrf.mxu1 }
0x1039   : > { %v2819_v29 = vmul.f32 0.35355338, %v2812_v0  ;;  %v2822_v30 = vsel %vm1561_vm4, %v2820_v41, -inf }
0x103a   : > { %2823 = vmax.xlane.f32.xlu0 %v2822_v30  ;;  %v5062_v42 = vpop.f32.mrf.mxu0  ;;  %v5067_v31 = vpop.f32.mrf.mxu1 }
0x103b   : > { %v2821_v32 = vadd.f32 %v2819_v29, %v6111_v60 }
0x103c   : > { %v2815_v33 = vpop.f32.mrf.mxu1 }
0x103d   : > { %v2825_v34 = vsel %vm1561_vm4, %v2821_v32, -inf }
0x103e   : > { %2826 = vmax.xlane.f32.xlu1 %v2825_v34  ;;  %v5068_v35 = vpop.f32.mrf.mxu1 }
0x104f   : > { %2894 = vrot.lane.b32.xlu1 %v6326_v19, %s5703_s14 }
0x1050   : > { %2846 = vrot.lane.b32.xlu0 %v6322_v14, %s5703_s14 }
0x10c3   : > { %v2824_v36 = vpop.xlane.xlu0 %2823 }
0x10c4   : > { %v2828_v38 = vsub.f32 %v2820_v41, %v2824_v36 }
0x10c6   : > { %v2830_v52 = vmul.f32 1.442695, %v2828_v38 }
0x10c7   : > { %v2847_v39 = vpop.permute.xlu0 %2846  ;;  %v2827_v40 = vpop.xlane.xlu1 %2826 }
0x10c8   : > { %5402 = vpow2.f32 %v2830_v52  ;;  %v2852_v43 = vsel %vm1689_vm14, %v2847_v39, 0  ;;  %v2829_v44 = vsub.f32 %v2821_v32, %v2827_v40 }
0x10c9   : > { %5070 = vmatpush3.bf16.msra.mxu0 %v2852_v43 }
0x10ca   : > { %v2832_v45 = vmul.f32 1.442695, %v2829_v44  ;;  %5081 = vmatprep.subr.bf16.mxu0 %v5701_v37 }
0x10cb   : > { %v2895_v46 = vpop.permute.xlu1 %2894 }
0x10cc   : > { %5404 = vpow2.f32 %v2832_v45  ;;  %v2900_v47 = vsel %vm1689_vm14, %v2895_v46, 0 }
0x10cd   : > { %5076 = vmatpush3.bf16.msra.mxu1 %v2900_v47 }
0x10ce   : > { %5087 = vmatprep.subr.bf16.mxu1 %v5701_v37 }
0x10d5   : > { %v5403_v49 = vpop.eup %5402 }
0x10d6   : > { %v2834_v50 = vsel %vm1561_vm4, %v5403_v49, 0.0 }
0x10d7   : > { %2835 = vadd.xlane.f32.xlu0 %v2834_v50 }
0x10d9   : > { %v5405_v51 = vpop.eup %5404 }
0x10da   : > { %v2837_v53 = vsel %vm1561_vm4, %v5405_v51, 0.0 }
0x10db   : > { %2838 = vadd.xlane.f32.xlu1 %v2837_v53 }
0x10ec   : > { %2944 = vrot.lane.b32.xlu1 %v6322_v14, %s5709_s0 }
0x10ed   : > { %2994 = vrot.lane.b32.xlu0 %v6326_v19, %s5709_s0 }
0x10f0   : > { %2942 = vrot.lane.b32.xlu1 %v6335_v21, %s5709_s0 }
0x10f1   : > { %2992 = vrot.lane.b32.xlu0 %v6341_v27, %s5709_s0 }
0x1160   : > { %v2836_v54 = vpop.xlane.xlu0 %2835 }
0x1161   : > { %5406 = vrcp.f32 %v2836_v54 }
0x1164   : > { %v2839_v55 = vpop.xlane.xlu1 %2838  ;;  %v2995_v6 = vpop.permute.xlu0 %2994 }
0x1165   : > { %5408 = vrcp.f32 %v2839_v55  ;;  %v3000_v10 = vsel %vm1561_vm4, %v2995_v6, 0 }
0x1168   : > { %v2945_v61 = vpop.permute.xlu1 %2944  ;;  %v2993_v12 = vpop.permute.xlu0 %2992 }
0x1169   : > { %v2950_v3 = vsel %vm1561_vm4, %v2945_v61, 0 }
0x116c   : > { %v2943_v11 = vpop.permute.xlu1 %2942 }
0x116e   : > { %v5407_v56 = vpop.eup %5406 }
0x116f   : > { %v2842_v57 = vmul.f32 %v5407_v56, %v5403_v49 }
0x1171   : > { %v2844_v62 = vpack.c.bf16 %v2842_v57, %v2842_v57 }
0x1172   : > { %v5409_v2 = vpop.eup %5408 }
0x1173   : > { %5072 = vmatmul.mubr.msk.bf16.vlgmr.msra.gmra.mxu0 %vm1561_vm4, %v2844_v62  ;;  %v2843_v5 = vmul.f32 %v5409_v2, %v5405_v51 }
0x1174   : > { %5082 = vmatpush3.bf16.xpose.msra.mxu0 %v2950_v3  ;;  %5083 = vmatprep.mubr.msk.bf16.mxu0 %vm5702_vm2, %v5701_v37 }
0x1175   : > { %v2845_v9 = vpack.c.bf16 %v2843_v5, %v2843_v5  ;;  %5093 = vmatprep.subr.bf16.mxu0 %v5701_v37 }
0x1177   : > { %5078 = vmatmul.mubr.msk.bf16.vlgmr.msra.gmra.mxu1 %vm1561_vm4, %v2845_v9 }
0x1178   : > { %5088 = vmatpush3.bf16.xpose.msra.mxu1 %v3000_v10  ;;  %5089 = vmatprep.mubr.msk.bf16.mxu1 %vm5702_vm2, %v5701_v37 }
0x1179   : > { %5099 = vmatprep.subr.bf16.mxu1 %v5701_v37 }
0x117b   : > { %5084 = vmatmul.mubr.msk.bf16.vlgmr.msra.gmra.mxu0 %vm1561_vm4, %v2943_v11 }
0x117c   : > { %5095 = vmatprep.mubr.msk.bf16.mxu0 %vm5702_vm2, %v5701_v37 }
0x117f   : > { %5090 = vmatmul.mubr.msk.bf16.vlgmr.msra.gmra.mxu1 %vm1561_vm4, %v2993_v12 }
0x1180   : > { %5101 = vmatprep.mubr.msk.bf16.mxu1 %vm5702_vm2, %v5701_v37 }
0x1233   : > { %v6385_v13 = vpop.f32.mrf.mxu0 }
0x1235   : > { %v5073_v16 = vpop.f32.mrf.mxu0 }
0x1237   : > { %v2891_v17 = vpop.f32.mrf.mxu0  ;;  %v6387_v18 = vpop.f32.mrf.mxu1 }
0x1239   : > { %v5074_v4 = vpop.f32.mrf.mxu0  ;;  %v5079_v1 = vpop.f32.mrf.mxu1 }
0x123b   : > { %v2939_v20 = vpop.f32.mrf.mxu1  ;;  %v2986_v22 = vpop.f32.mrf.mxu0 }
0x123c   : > { %v3042_v15 = vmul.f32 0.35355338, %v2986_v22 }
0x123d   : > { %v5080_v23 = vpop.f32.mrf.mxu1  ;;  %v5085_v24 = vpop.f32.mrf.mxu0 }
0x123e   : > { %v3044_v25 = vadd.f32 %v3042_v15, %v6111_v60 }
0x123f   : > { %v2989_v26 = vpop.f32.mrf.mxu0  ;;  %v3036_v28 = vpop.f32.mrf.mxu1 }
0x1240   : > { %v3043_v48 = vmul.f32 0.35355338, %v3036_v28  ;;  %v3046_v59 = vsel %vm1561_vm4, %v3044_v25, -inf }
0x1241   : > { %3047 = vmax.xlane.f32.xlu1 %v3046_v59  ;;  %v5086_v41 = vpop.f32.mrf.mxu0  ;;  %v5091_v63 = vpop.f32.mrf.mxu1 }
0x1242   : > { %v3045_v0 = vadd.f32 %v3043_v48, %v6111_v60 }
0x1243   : > { %v3039_v29 = vpop.f32.mrf.mxu1 }
0x1244   : > { %v3049_v30 = vsel %vm1561_vm4, %v3045_v0, -inf }
0x1245   : > { %3050 = vmax.xlane.f32.xlu0 %v3049_v30  ;;  %v5092_v42 = vpop.f32.mrf.mxu1 }
0x1252   : > { %3118 = vrot.lane.b32.xlu1 %v6326_v19, %s5708_s7 }
0x125b   : > { %3070 = vrot.lane.b32.xlu0 %v6322_v14, %s5708_s7 }
0x12ca   : > { %v3048_v31 = vpop.xlane.xlu1 %3047 }
0x12cb   : > { %v3052_v32 = vsub.f32 %v3044_v25, %v3048_v31 }
0x12cd   : > { %v3054_v33 = vmul.f32 1.442695, %v3052_v32 }
0x12ce   : > { %v3119_v34 = vpop.permute.xlu1 %3118  ;;  %v3051_v35 = vpop.xlane.xlu0 %3050 }
0x12cf   : > { %5410 = vpow2.f32 %v3054_v33  ;;  %v3124_v36 = vsel %vm1689_vm14, %v3119_v34, 0  ;;  %v3053_v38 = vsub.f32 %v3045_v0, %v3051_v35 }
0x12d0   : > { %5100 = vmatpush3.bf16.msra.mxu1 %v3124_v36 }
0x12d1   : > { %v3056_v52 = vmul.f32 1.442695, %v3053_v38  ;;  %5111 = vmatprep.subr.bf16.mxu1 %v5701_v37 }
0x12d2   : > { %v3071_v39 = vpop.permute.xlu0 %3070 }
0x12d3   : > { %5412 = vpow2.f32 %v3056_v52  ;;  %v3076_v40 = vsel %vm1689_vm14, %v3071_v39, 0 }
0x12d4   : > { %5094 = vmatpush3.bf16.msra.mxu0 %v3076_v40 }
0x12d5   : > { %5105 = vmatprep.subr.bf16.mxu0 %v5701_v37 }
0x12dc   : > { %v5411_v43 = vpop.eup %5410 }
0x12dd   : > { %v3058_v44 = vsel %vm1561_vm4, %v5411_v43, 0.0 }
0x12de   : > { %3059 = vadd.xlane.f32.xlu0 %v3058_v44 }
0x12e0   : > { %v5413_v45 = vpop.eup %5412 }
0x12e1   : > { %v3061_v46 = vsel %vm1561_vm4, %v5413_v45, 0.0 }
0x12e2   : > { %3062 = vadd.xlane.f32.xlu1 %v3061_v46 }
0x12f3   : > { %3168 = vrot.lane.b32.xlu1 %v6322_v14, %s5712_s16 }
0x12f4   : > { %3218 = vrot.lane.b32.xlu0 %v6326_v19, %s5712_s16 }
0x12f7   : > { %3166 = vrot.lane.b32.xlu1 %v6335_v21, %s5712_s16 }
0x12f8   : > { %3216 = vrot.lane.b32.xlu0 %v6341_v27, %s5712_s16 }
0x1367   : > { %v3060_v47 = vpop.xlane.xlu0 %3059 }
0x1368   : > { %5414 = vrcp.f32 %v3060_v47 }
0x136b   : > { %v3063_v49 = vpop.xlane.xlu1 %3062  ;;  %v3219_v61 = vpop.permute.xlu0 %3218 }
0x136c   : > { %5416 = vrcp.f32 %v3063_v49  ;;  %v3224_v2 = vsel %vm1561_vm4, %v3219_v61, 0 }
0x136f   : > { %v3169_v53 = vpop.permute.xlu1 %3168  ;;  %v3217_v5 = vpop.permute.xlu0 %3216 }
0x1370   : > { %v3174_v56 = vsel %vm1561_vm4, %v3169_v53, 0 }
0x1373   : > { %v3167_v3 = vpop.permute.xlu1 %3166 }
0x1375   : > { %v5415_v50 = vpop.eup %5414 }
0x1376   : > { %v3066_v51 = vmul.f32 %v5415_v50, %v5411_v43 }
0x1378   : > { %v3068_v54 = vpack.c.bf16 %v3066_v51, %v3066_v51 }
0x1379   : > { %v5417_v55 = vpop.eup %5416 }
0x137a   : > { %5096 = vmatmul.mubr.msk.bf16.vlgmr.msra.gmra.mxu0 %vm1561_vm4, %v3068_v54  ;;  %v3067_v57 = vmul.f32 %v5417_v55, %v5413_v45 }
0x137b   : > { %5106 = vmatpush3.bf16.xpose.msra.mxu0 %v3174_v56  ;;  %5107 = vmatprep.mubr.msk.bf16.mxu0 %vm5702_vm2, %v5701_v37 }
0x137c   : > { %v3069_v62 = vpack.c.bf16 %v3067_v57, %v3067_v57  ;;  %5117 = vmatprep.subr.bf16.mxu0 %v5701_v37 }
0x137e   : > { %5102 = vmatmul.mubr.msk.bf16.vlgmr.msra.gmra.mxu1 %vm1561_vm4, %v3069_v62 }
0x137f   : > { %5112 = vmatpush3.bf16.xpose.msra.mxu1 %v3224_v2  ;;  %5113 = vmatprep.mubr.msk.bf16.mxu1 %vm5702_vm2, %v5701_v37 }
0x1380   : > { %5123 = vmatprep.subr.bf16.mxu1 %v5701_v37 }
0x1382   : > { %5108 = vmatmul.mubr.msk.bf16.vlgmr.msra.gmra.mxu0 %vm1561_vm4, %v3167_v3 }
0x1383   : > { %5119 = vmatprep.mubr.msk.bf16.mxu0 %vm5702_vm2, %v5701_v37 }
0x1386   : > { %5114 = vmatmul.mubr.msk.bf16.vlgmr.msra.gmra.mxu1 %vm1561_vm4, %v3217_v5 }
0x1387   : > { %5125 = vmatprep.mubr.msk.bf16.mxu1 %vm5702_vm2, %v5701_v37 }
0x143a   : > { %v6427_v6 = vpop.f32.mrf.mxu0 }
0x143c   : > { %v5097_v9 = vpop.f32.mrf.mxu0 }
0x143e   : > { %v3115_v10 = vpop.f32.mrf.mxu0  ;;  %v6429_v11 = vpop.f32.mrf.mxu1 }
0x143f   : > { %v5351_v12 = vpack.i.bf16 %v6429_v11, %v6427_v6 }
0x1440   : > { %v5098_v16 = vpop.f32.mrf.mxu0  ;;  %v5103_v17 = vpop.f32.mrf.mxu1 }
0x1442   : > { %v3163_v4 = vpop.f32.mrf.mxu1  ;;  %v3210_v1 = vpop.f32.mrf.mxu0 }
0x1443   : > { %v3266_v20 = vmul.f32 0.35355338, %v3210_v1 }
0x1444   : > { %v5104_v22 = vpop.f32.mrf.mxu1  ;;  %v5109_v15 = vpop.f32.mrf.mxu0 }
0x1445   : > { %v3268_v23 = vadd.f32 %v3266_v20, %v6111_v60 }
0x1446   : > { %v3213_v24 = vpop.f32.mrf.mxu0  ;;  %v3260_v25 = vpop.f32.mrf.mxu1 }
0x1447   : > { %v3267_v26 = vmul.f32 0.35355338, %v3260_v25  ;;  %v3270_v28 = vsel %vm1561_vm4, %v3268_v23, -inf }
0x1448   : > { %3271 = vmax.xlane.f32.xlu1 %v3270_v28  ;;  %v5110_v48 = vpop.f32.mrf.mxu0  ;;  %v5115_v59 = vpop.f32.mrf.mxu1 }
0x1449   : > { %v3269_v41 = vadd.f32 %v3267_v26, %v6111_v60 }
0x144a   : > { %v3263_v63 = vpop.f32.mrf.mxu1 }
0x144b   : > { %v3273_v0 = vsel %vm1561_vm4, %v3269_v41, -inf }
0x144c   : > { %3274 = vmax.xlane.f32.xlu0 %v3273_v0  ;;  %v5116_v29 = vpop.f32.mrf.mxu1 }
0x1459   : > { %3342 = vrot.lane.b32.xlu1 %v6326_v19, %s5711_s2 }
0x1462   : > { %3294 = vrot.lane.b32.xlu0 %v6322_v14, %s5711_s2 }
0x14d1   : > { %v3272_v30 = vpop.xlane.xlu1 %3271 }
0x14d2   : > { %v3276_v42 = vsub.f32 %v3268_v23, %v3272_v30 }
0x14d4   : > { %v3278_v31 = vmul.f32 1.442695, %v3276_v42 }
0x14d5   : > { %v3343_v32 = vpop.permute.xlu1 %3342  ;;  %v3275_v33 = vpop.xlane.xlu0 %3274 }
0x14d6   : > { %5418 = vpow2.f32 %v3278_v31  ;;  %v3348_v34 = vsel %vm1689_vm14, %v3343_v32, 0  ;;  %v3277_v35 = vsub.f32 %v3269_v41, %v3275_v33 }
0x14d7   : > { %5124 = vmatpush3.bf16.msra.mxu1 %v3348_v34 }
0x14d8   : > { %v3280_v36 = vmul.f32 1.442695, %v3277_v35  ;;  %5135 = vmatprep.subr.bf16.mxu1 %v5701_v37 }
0x14d9   : > { %v3295_v38 = vpop.permute.xlu0 %3294 }
0x14da   : > { %5420 = vpow2.f32 %v3280_v36  ;;  %v3300_v52 = vsel %vm1689_vm14, %v3295_v38, 0 }
0x14db   : > { %5118 = vmatpush3.bf16.msra.mxu0 %v3300_v52 }
0x14dc   : > { %5129 = vmatprep.subr.bf16.mxu0 %v5701_v37 }
0x14e3   : > { %v5419_v39 = vpop.eup %5418 }
0x14e4   : > { %v3282_v40 = vsel %vm1561_vm4, %v5419_v39, 0.0 }
0x14e5   : > { %3283 = vadd.xlane.f32.xlu0 %v3282_v40 }
0x14e7   : > { %v5421_v43 = vpop.eup %5420 }
0x14e8   : > { %v3285_v44 = vsel %vm1561_vm4, %v5421_v43, 0.0 }
0x14e9   : > { %3286 = vadd.xlane.f32.xlu1 %v3285_v44 }
0x14fa   : > { %3392 = vrot.lane.b32.xlu1 %v6322_v14, %s5715_s11 }
0x14fb   : > { %3442 = vrot.lane.b32.xlu0 %v6326_v19, %s5715_s11 }
0x14fe   : > { %3390 = vrot.lane.b32.xlu1 %v6335_v21, %s5715_s11 }
0x14ff   : > { %3440 = vrot.lane.b32.xlu0 %v6341_v27, %s5715_s11 }
0x156e   : > { %v3284_v45 = vpop.xlane.xlu0 %3283 }
0x156f   : > { %5422 = vrcp.f32 %v3284_v45 }
0x1572   : > { %v3287_v46 = vpop.xlane.xlu1 %3286  ;;  %v3443_v56 = vpop.permute.xlu0 %3442 }
0x1573   : > { %5424 = vrcp.f32 %v3287_v46  ;;  %v3448_v27 = vsel %vm1561_vm4, %v3443_v56, 0  ;;  %v3647_v46 = vld [vmem:[%s6030_s29 + $0x10] sm:$0xff] }
0x1576   : > { %v3393_v50 = vpop.permute.xlu1 %3392  ;;  %v3441_v61 = vpop.permute.xlu0 %3440 }
0x1577   : > { %v3398_v54 = vsel %vm1561_vm4, %v3393_v50, 0  ;;  %v3645_v50 = vld [vmem:[%s6030_s29] sm:$0xff] }
0x157a   : > { %v3391_v57 = vpop.permute.xlu1 %3390 }
0x157c   : > { %v5423_v47 = vpop.eup %5422 }
0x157d   : > { %v3290_v49 = vmul.f32 %v5423_v47, %v5419_v39  ;;  %v3648_v47 = vld [vmem:[%s6030_s29 + $0x18] sm:$0xff] }
0x157f   : > { %v3292_v51 = vpack.c.bf16 %v3290_v49, %v3290_v49  ;;  %v3650_v49 = vpack.c.bf16 %v3648_v47, %v3647_v46 }
0x1580   : > { %v5425_v53 = vpop.eup %5424 }
0x1581   : > { %5120 = vmatmul.mubr.msk.bf16.vlgmr.msra.gmra.mxu0 %vm1561_vm4, %v3292_v51  ;;  %v3291_v55 = vmul.f32 %v5425_v53, %v5421_v43  ;;  %v3646_v51 = vld [vmem:[%s6030_s29 + $0x8] sm:$0xff] }
0x1582   : > { %5130 = vmatpush3.bf16.xpose.msra.mxu0 %v3398_v54  ;;  %5131 = vmatprep.mubr.msk.bf16.mxu0 %vm5702_vm2, %v5701_v37  ;;  %v3649_v53 = vpack.c.bf16 %v3646_v51, %v3645_v50  ;;  %v4775_v51 = vld [vmem:[%s1354_s8] ss:$0 sm:$0xff] }
0x1583   : > { %v3293_v21 = vpack.c.bf16 %v3291_v55, %v3291_v55  ;;  %5141 = vmatprep.subr.bf16.mxu0 %v5701_v37 }
0x1585   : > { %5126 = vmatmul.mubr.msk.bf16.vlgmr.msra.gmra.mxu1 %vm1561_vm4, %v3293_v21 }
0x1586   : > { %5136 = vmatpush3.bf16.xpose.msra.mxu1 %v3448_v27  ;;  %5137 = vmatprep.mubr.msk.bf16.mxu1 %vm5702_vm2, %v5701_v37 }
0x1587   : > { %5147 = vmatprep.subr.bf16.mxu1 %v5701_v37 }
0x1589   : > { %5132 = vmatmul.mubr.msk.bf16.vlgmr.msra.gmra.mxu0 %vm1561_vm4, %v3391_v57 }
0x158a   : > { %5143 = vmatprep.mubr.msk.bf16.mxu0 %vm5702_vm2, %v5701_v37 }
0x158d   : > { %5138 = vmatmul.mubr.msk.bf16.vlgmr.msra.gmra.mxu1 %vm1561_vm4, %v3441_v61 }
0x158e   : > { %5149 = vmatprep.mubr.msk.bf16.mxu1 %vm5702_vm2, %v5701_v37 }
0x1641   : > { %v3336_v62 = vpop.f32.mrf.mxu0 }
0x1643   : > { %v5121_v2 = vpop.f32.mrf.mxu0 }
0x1645   : > { %v3339_v3 = vpop.f32.mrf.mxu0  ;;  %v3384_v5 = vpop.f32.mrf.mxu1 }
0x1646   : > { %v5356_v9 = vpack.i.bf16 %v3384_v5, %v3336_v62 }
0x1647   : > { %v5122_v10 = vpop.f32.mrf.mxu0  ;;  %v5127_v16 = vpop.f32.mrf.mxu1 }
0x1649   : > { %v3387_v17 = vpop.f32.mrf.mxu1  ;;  %v3434_v4 = vpop.f32.mrf.mxu0 }
0x164a   : > { %v3490_v1 = vmul.f32 0.35355338, %v3434_v4 }
0x164b   : > { %v5128_v20 = vpop.f32.mrf.mxu1  ;;  %v5133_v22 = vpop.f32.mrf.mxu0 }
0x164c   : > { %v3492_v15 = vadd.f32 %v3490_v1, %v6111_v60 }
0x164d   : > { %v3437_v23 = vpop.f32.mrf.mxu0  ;;  %v3484_v24 = vpop.f32.mrf.mxu1 }
0x164e   : > { %v3491_v25 = vmul.f32 0.35355338, %v3484_v24  ;;  %v3494_v26 = vsel %vm1561_vm4, %v3492_v15, -inf }
0x164f   : > { %3495 = vmax.xlane.f32.xlu1 %v3494_v26  ;;  %v5134_v28 = vpop.f32.mrf.mxu0  ;;  %v5139_v48 = vpop.f32.mrf.mxu1 }
0x1650   : > { %v3493_v59 = vadd.f32 %v3491_v25, %v6111_v60 }
0x1651   : > { %v3487_v41 = vpop.f32.mrf.mxu1 }
0x1652   : > { %v3497_v63 = vsel %vm1561_vm4, %v3493_v59, -inf }
0x1653   : > { %3498 = vmax.xlane.f32.xlu0 %v3497_v63  ;;  %v5140_v0 = vpop.f32.mrf.mxu1 }
0x16d8   : > { %v3496_v29 = vpop.xlane.xlu1 %3495 }
0x16d9   : > { %v3500_v30 = vsub.f32 %v3492_v15, %v3496_v29 }
0x16db   : > { %v3502_v42 = vmul.f32 1.442695, %v3500_v30 }
0x16dc   : > { %v3499_v31 = vpop.xlane.xlu0 %3498 }
0x16dd   : > { %5426 = vpow2.f32 %v3502_v42  ;;  %v3501_v32 = vsub.f32 %v3493_v59, %v3499_v31 }
0x16df   : > { %v3504_v33 = vmul.f32 1.442695, %v3501_v32 }
0x16e1   : > { %5428 = vpow2.f32 %v3504_v33 }
0x16ea   : > { %v5427_v34 = vpop.eup %5426 }
0x16eb   : > { %v3506_v35 = vsel %vm1561_vm4, %v5427_v34, 0.0 }
0x16ec   : > { %3507 = vadd.xlane.f32.xlu0 %v3506_v35 }
0x16ee   : > { %v5429_v36 = vpop.eup %5428 }
0x16ef   : > { %v3509_v60 = vsel %vm1561_vm4, %v5429_v36, 0.0 }
0x16f0   : > { %3510 = vadd.xlane.f32.xlu1 %v3509_v60 }
0x1701   : > { %3566 = vrot.lane.b32.xlu1 %v6326_v19, %s5714_s28 }
0x1702   : > { %3518 = vrot.lane.b32.xlu0 %v6322_v14, %s5714_s28 }
0x1705   : > { %5352 = vrot.lane.b32.xlu1 %v5351_v12, %s5717_s5 }
0x1706   : > { %5357 = vrot.lane.b32.xlu0 %v5356_v9, %s5718_s13 }
0x1775   : > { %v3508_v38 = vpop.xlane.xlu0 %3507 }
0x1776   : > { %5430 = vrcp.f32 %v3508_v38 }
0x1779   : > { %v3511_v52 = vpop.xlane.xlu1 %3510  ;;  %v3519_v39 = vpop.permute.xlu0 %3518 }
0x177a   : > { %5432 = vrcp.f32 %v3511_v52  ;;  %v3524_v40 = vsel %vm1689_vm14, %v3519_v39, 0 }
0x177b   : > { %5142 = vmatpush3.bf16.msra.mxu0 %v3524_v40  ;;  %v3752_v40 = vld [vmem:[%s6039_s18 + $0x18] sm:$0xff] }
0x177c   : > { %5153 = vmatprep.subr.bf16.mxu0 %v5701_v37 }
0x177d   : > { %v3567_v14 = vpop.permute.xlu1 %3566  ;;  %v5358_v10 = vpop.permute.xlu0 %5357 }
0x177e   : > { %v3572_v19 = vsel %vm1689_vm14, %v3567_v14, 0  ;;  %v5360_v4 = vunpack.i.h.bf16 %v5358_v10  ;;  %v5359_v1 = vunpack.i.l.bf16 %v5358_v10 }
0x177f   : > { %5148 = vmatpush3.bf16.msra.mxu1 %v3572_v19  ;;  %v3749_v19 = vld [vmem:[%s6039_s18] sm:$0xff] }
0x1780   : > { %5161 = vmatprep.subr.bf16.mxu1 %v5701_v37 }
0x1781   : > { %v5353_v3 = vpop.permute.xlu1 %5352 }
0x1782   : > { %v5355_v5 = vunpack.i.h.bf16 %v5353_v3  ;;  %v5354_v9 = vunpack.i.l.bf16 %v5353_v3 }
0x1783   : > { %v5431_v6 = vpop.eup %5430 }
0x1784   : > { %v3514_v11 = vmul.f32 %v5431_v6, %v5427_v34  ;;  %v3639_v16 = vsel %vm1561_vm4, %v6387_v18, %v5355_v5  ;;  %v3638_v17 = vsel %vm1561_vm4, %v6385_v13, %v5354_v9  ;;  %v4773_v13 = vld [vmem:[%s1351_s3] ss:$0 sm:$0xff]  ;;  %v3750_v6 = vld [vmem:[%s6039_s18 + $0x8] sm:$0xff] }
0x1785   : > { %v3640_v23 = vsel %vm2479_vm15, %v3638_v17, %v5359_v1  ;;  %v3641_v24 = vsel %vm2479_vm15, %v3639_v16, %v5360_v4  ;;  %v3829_v5 = vld [vmem:[%s6045_s19 + $0x20] sm:$0xff]  ;;  %v3830_v9 = vld [vmem:[%s6045_s19 + $0x28] sm:$0xff]  ;;  %v3827_v16 = vld [vmem:[%s6045_s19 + $0x10] sm:$0xff] }
0x1786   : > { %v3516_v12 = vpack.c.bf16 %v3514_v11, %v3514_v11  ;;  %v3753_v11 = vpack.c.bf16 %v3750_v6, %v3749_v19  ;;  %v3835_v10 = vpack.c.bf16 %v3830_v9, %v3829_v5  ;;  %v3828_v17 = vld [vmem:[%s6045_s19 + $0x18] sm:$0xff]  ;;  %v3825_v1 = vld [vmem:[%s6045_s19] sm:$0xff] }
0x1787   : > { %v5433_v43 = vpop.eup %5432  ;;  %v3834_v4 = vpack.c.bf16 %v3828_v17, %v3827_v16  ;;  %v4781_v5 = vld [vmem:[%s1376_s20] ss:$0 sm:$0xff] }
0x1788   : > { %5144 = vmatmul.mubr.msk.bf16.vlgmr.msra.gmra.mxu0 %vm1561_vm4, %v3516_v12  ;;  %v3515_v44 = vmul.f32 %v5433_v43, %v5429_v36 }
0x1789   : > { %5157 = vmatprep.mubr.msk.bf16.mxu0 %vm5702_vm2, %v5701_v37  ;;  %5154 = vmatpush3.bf16.msra.mxu0 %v3650_v49 }
0x178a   : > { %v3517_v45 = vpack.c.bf16 %v3515_v44, %v3515_v44  ;;  %5155 = vmatprep.subr.bf16.mxu0 %v5701_v37 }
0x178c   : > { %5150 = vmatmul.mubr.msk.bf16.vlgmr.msra.gmra.mxu1 %vm1561_vm4, %v3517_v45 }
0x178d   : > { %5165 = vmatprep.mubr.msk.bf16.mxu1 %vm5702_vm2, %v5701_v37  ;;  %5156 = vmatpush3.bf16.msra.mxu0 %v3649_v53 }
0x178e   : > { %5169 = vmatprep.subr.bf16.mxu0 %v5701_v37 }
0x1848   : > { %v3560_v54 = vpop.f32.mrf.mxu0 }
0x184a   : > { %v5145_v55 = vpop.f32.mrf.mxu0 }
0x184c   : > { %v3563_v56 = vpop.f32.mrf.mxu0  ;;  %v3608_v21 = vpop.f32.mrf.mxu1 }
0x184d   : > { %v5361_v27 = vpack.i.bf16 %v3608_v21, %v3560_v54  ;;  %v4776_v56 = vld [vmem:[%s1357_s9] ss:$0 sm:$0xff] }
0x184e   : > { %v5146_v57 = vpop.f32.mrf.mxu0  ;;  %v5151_v61 = vpop.f32.mrf.mxu1 }
0x184f   : > { %5362 = vrot.lane.b32.xlu1 %v5361_v27, %s5719_s30 }
0x1850   : > { %v3611_v62 = vpop.f32.mrf.mxu1 }
0x1851   : > { %v3831_v62 = vld [vmem:[%s6045_s19 + $0x30] sm:$0xff] }
0x1852   : > { %v5152_v2 = vpop.f32.mrf.mxu1 }
0x1853   : > { %v3832_v2 = vld [vmem:[%s6045_s19 + $0x38] sm:$0xff] }
0x1854   : > { %v3836_v3 = vpack.c.bf16 %v3832_v2, %v3831_v62 }
0x18c1   : > { %v5363_v20 = vpop.permute.xlu1 %5362 }
0x18c2   : > { %v5365_v22 = vunpack.i.h.bf16 %v5363_v20  ;;  %v5364_v15 = vunpack.i.l.bf16 %v5363_v20  ;;  %v3826_v20 = vld [vmem:[%s6045_s19 + $0x8] sm:$0xff] }
0x18c4   : > { %v3643_v25 = vsel %vm2482_vm0, %v3641_v24, %v5365_v22  ;;  %v3642_v26 = vsel %vm2482_vm0, %v3640_v23, %v5364_v15  ;;  %v3833_v22 = vpack.c.bf16 %v3826_v20, %v3825_v1  ;;  %v4777_v15 = vld [vmem:[%s1365_s17] ss:$0 sm:$0xff] }
0x18c5   : > { %v3644_v28 = vpack.c.bf16 %v3643_v25, %v3642_v26 }
0x18c7   : > { %5158 = vmatmul.mubr.msk.bf16.vlgmr.msra.gmra.mxu0 %vm1508_vm3, %v3644_v28 }
0x18c8   : > { %5177 = vmatprep.mubr.msk.bf16.mxu0 %vm5702_vm2, %v5701_v37  ;;  %5170 = vmatpush3.bf16.msra.mxu0 %v3836_v3 }
0x18c9   : > { %5171 = vmatprep.subr.bf16.mxu0 %v5701_v37 }
0x18cc   : > { %5172 = vmatpush3.bf16.msra.mxu0 %v3835_v10  ;;  %v4782_v10 = vld [vmem:[%s1379_s24] ss:$0 sm:$0xff] }
0x18cd   : > { %5173 = vmatprep.subr.bf16.mxu0 %v5701_v37 }
0x18d0   : > { %5174 = vmatpush3.bf16.msra.mxu0 %v3834_v4 }
0x18d1   : > { %5175 = vmatprep.subr.bf16.mxu0 %v5701_v37 }
0x18d4   : > { %5176 = vmatpush3.bf16.msra.mxu0 %v3833_v22 }
0x1987   : > { %v3695_v18 = vpop.f32.mrf.mxu0 }
0x1988   : > { %v3696_v48 = vadd.f32 %v4773_v13, %v3695_v18 }
0x1989   : > { %v5159_v59 = vpop.f32.mrf.mxu0 }
0x198a   : > { %v3702_v41 = vadd.f32 %v3696_v48, %v6310_v7 }
0x198b   : > { %v3698_v63 = vpop.f32.mrf.mxu0 }
0x198c   : > { %v3699_v0 = vadd.f32 %v4773_v13, %v3698_v63  ;;  %v3706_v29 = vsel %vm1508_vm3, %v3702_v41, 0.0 }
0x198d   : > { %3707 = vadd.xlane.f32.xlu0 %v3706_v29  ;;  %v5160_v30 = vpop.f32.mrf.mxu0 }
0x198e   : > { %v3703_v42 = vadd.f32 %v3699_v0, %v6312_v8  ;;  %v3751_v8 = vld [vmem:[%s6039_s18 + $0x10] sm:$0xff] }
0x198f   : > { %v3754_v14 = vpack.c.bf16 %v3752_v40, %v3751_v8 }
0x1990   : > { %v3709_v31 = vsel %vm1508_vm3, %v3703_v42, 0.0 }
0x1991   : > { %3710 = vadd.xlane.f32.xlu1 %v3709_v31  ;;  %5162 = vmatpush3.bf16.msra.mxu1 %v3754_v14 }
0x1992   : > { %5163 = vmatprep.subr.bf16.mxu1 %v5701_v37 }
0x1995   : > { %5164 = vmatpush3.bf16.msra.mxu1 %v3753_v11 }
0x1a16   : > { %v3708_v32 = vpop.xlane.xlu0 %3707 }
0x1a17   : > { %v3712_v33 = vmul.f32 0.03125, %v3708_v32 }
0x1a19   : > { %v3714_v34 = vsub.f32 %v3702_v41, %v3712_v33 }
0x1a1a   : > { %v3711_v35 = vpop.xlane.xlu1 %3710 }
0x1a1b   : > { %v3713_v7 = vmul.f32 0.03125, %v3711_v35  ;;  %v3716_v36 = vmul.f32 %v3714_v34, %v3714_v34 }
0x1a1d   : > { %v3715_v60 = vsub.f32 %v3703_v42, %v3713_v7  ;;  %v3718_v38 = vsel %vm1508_vm3, %v3716_v36, 0.0 }
0x1a1e   : > { %3719 = vadd.xlane.f32.xlu0 %v3718_v38 }
0x1a1f   : > { %v3717_v52 = vmul.f32 %v3715_v60, %v3715_v60 }
0x1a21   : > { %v3721_v39 = vsel %vm1508_vm3, %v3717_v52, 0.0  ;;  %v4779_v52 = vld [vmem:[%s1373_s27] ss:$0 sm:$0xff]  ;;  %s6853_s27 = sld [smem:[#allocation54_spill]] }
0x1a22   : > { %3722 = vadd.xlane.f32.xlu0 %v3721_v39 }
0x1a27   : > { %p4783_p8 = scmp.ne.s32.totalorder %s6853_s27, 1 }
0x1a28   : > { %s6854_s18 = sld [smem:[#allocation45_spill]] (!%p4783_p8) }
0x1a29   : > { %s6855_s24 = sld [smem:[#allocation49_spill]] (!%p4783_p8) }
0x1a2a   : > { %s6856_s20 = sld [smem:[#allocation50_spill]] (!%p4783_p8) }
0x1a2b   : > { %s6597_s22 = sld [smem:[#allocation13 + $0x1]] (!%p4783_p8) }
0x1a2c   : > { %s6599_s7 = sld [smem:[#allocation13 + $0x2]] (!%p4783_p8) }
0x1a2d   : > { %s6601_s0 = sld [smem:[#allocation13 + $0x3]] (!%p4783_p8) }
0x1a2e   : > { %s6603_s2 = sld [smem:[#allocation13 + $0x81]] (!%p4783_p8) }
0x1a2f   : > { %s6605_s16 = sld [smem:[#allocation13 + $0x82]] (!%p4783_p8) }
0x1a30   : > { %s6607_s28 = sld [smem:[#allocation13 + $0x4]] (!%p4783_p8) }
0x1a31   : > { %s6609_s11 = sld [smem:[#allocation13 + $0x83]] (!%p4783_p8)  ;;  %p4158_p9 = scmp.ge.s32.totalorder (!%p4783_p8), %s6597_s22, 0 }
0x1a32   : > { %s6613_s5 = sld [smem:[#allocation13 + $0x5]] (!%p4783_p8)  ;;  %p4167_p11 = scmp.ge.s32.totalorder (!%p4783_p8), %s6599_s7, 0 }
0x1a33   : > { %s6616_s13 = sld [smem:[#allocation13 + $0x84]] (!%p4783_p8)  ;;  %p4176_p10 = scmp.ge.s32.totalorder (!%p4783_p8), %s6601_s0, 0 }
0x1a34   : > { %s6620_s30 = sld [smem:[#allocation13 + $0x6]] (!%p4783_p8)  ;;  %p4221_p12 = scmp.ge.s32.totalorder (!%p4783_p8), %s6603_s2, 0 }
0x1a35   : > { %s6626_s26 = sld [smem:[#allocation13 + $0x85]] (!%p4783_p8)  ;;  %p4230_p4 = scmp.ge.s32.totalorder (!%p4783_p8), %s6605_s16, 0 }
0x1a36   : > { %s6631_s10 = sld [smem:[#allocation13 + $0x7]] (!%p4783_p8)  ;;  %p4185_p13 = scmp.ge.s32.totalorder (!%p4783_p8), %s6607_s28, 0 }
0x1a37   : > { %s6637_s15 = sld [smem:[#allocation13 + $0x86]] (!%p4783_p8)  ;;  %p4239_p6 = scmp.ge.s32.totalorder (!%p4783_p8), %s6609_s11, 0 }
0x1a38   : > { %s6647_s25 = sld [smem:[#allocation13 + $0x87]] (!%p4783_p8)  ;;  %p4194_p7 = scmp.ge.s32.totalorder (!%p4783_p8), %s6613_s5, 0 }
0x1a39   : > { %p4248_p0 = scmp.ge.s32.totalorder (!%p4783_p8), %s6616_s13, 0 }
0x1a3a   : > { %p4203_p3 = scmp.ge.s32.totalorder (!%p4783_p8), %s6620_s30, 0 }
0x1a3b   : > { %p4257_p1 = scmp.ge.s32.totalorder (!%p4783_p8), %s6626_s26, 0 }
0x1a3c   : > { %p4212_p2 = scmp.ge.s32.totalorder (!%p4783_p8), %s6631_s10, 0 }
0x1a3d   : > { %p4266_p5 = scmp.ge.s32.totalorder (!%p4783_p8), %s6637_s15, 0 }
0x1aa7   : > { %v3720_v12 = vpop.xlane.xlu0 %3719 }
0x1aa8   : > { %v3724_v43 = vmul.f32 0.03125, %v3720_v12 }
0x1aaa   : > { %v3726_v44 = vadd.f32 1e-12, %v3724_v43 }
0x1aab   : > { %v3723_v45 = vpop.xlane.xlu0 %3722 }
0x1aac   : > { %5434 = vrsqrt.f32 %v3726_v44  ;;  %v3725_v46 = vmul.f32 0.03125, %v3723_v45 }
0x1aae   : > { %v3727_v47 = vadd.f32 1e-12, %v3725_v46 }
0x1ab0   : > { %5436 = vrsqrt.f32 %v3727_v47 }
0x1ab9   : > { %v5435_v49 = vpop.eup %5434 }
0x1aba   : > { %v3730_v50 = vmul.f32 %v5435_v49, %v3714_v34 }
0x1abc   : > { %v3738_v55 = vmul.f32 %v4775_v51, %v3730_v50 }
0x1abd   : > { %v5437_v53 = vpop.eup %5436 }
0x1abe   : > { %v3731_v54 = vmul.f32 %v5437_v53, %v3715_v60  ;;  %v3746_v27 = vadd.f32 %v4776_v56, %v3738_v55 }
0x1ac0   : > { %v3739_v21 = vmul.f32 %v4775_v51, %v3731_v54 }
0x1ac2   : > { %v3747_v57 = vadd.f32 %v4776_v56, %v3739_v21 }
0x1ac4   : > { %v3748_v61 = vpack.c.bf16 %v3747_v57, %v3746_v27 }
0x1ac6   : > { %5166 = vmatmul.mubr.msk.bf16.vlgmr.msra.gmra.mxu1 %vm1508_vm3, %v3748_v61 }
0x1b86   : > { %v3799_v23 = vpop.f32.mrf.mxu1 }
0x1b87   : > { %v3800_v24 = vadd.f32 %v4777_v15, %v3799_v23 }
0x1b88   : > { %v5167_v25 = vpop.f32.mrf.mxu1 }
0x1b89   : > { %v3806_v26 = vmul.f32 %v3800_v24, %v3800_v24 }
0x1b8a   : > { %v3802_v28 = vpop.f32.mrf.mxu1 }
0x1b8b   : > { %v3808_v13 = vmul.f32 %v3806_v26, %v3800_v24  ;;  %v3803_v18 = vadd.f32 %v4777_v15, %v3802_v28 }
0x1b8c   : > { %v5168_v48 = vpop.f32.mrf.mxu1 }
0x1b8d   : > { %v3810_v59 = vmul.f32 0.044715, %v3808_v13  ;;  %v3807_v41 = vmul.f32 %v3803_v18, %v3803_v18 }
0x1b8f   : > { %v3812_v63 = vadd.f32 %v3810_v59, %v3800_v24  ;;  %v3809_v0 = vmul.f32 %v3807_v41, %v3803_v18 }
0x1b91   : > { %v3814_v29 = vmul.f32 0.7978846, %v3812_v63  ;;  %v3811_v37 = vmul.f32 0.044715, %v3809_v0 }
0x1b93   : > { %5438 = vtanh.f32 %v3814_v29  ;;  %v3813_v30 = vadd.f32 %v3811_v37, %v3803_v18 }
0x1b95   : > { %v3815_v42 = vmul.f32 0.7978846, %v3813_v30 }
0x1b97   : > { %5440 = vtanh.f32 %v3815_v42 }
0x1ba0   : > { %v5439_v31 = vpop.eup %5438 }
0x1ba1   : > { %v3818_v32 = vadd.f32 1.0, %v5439_v31 }
0x1ba3   : > { %v3820_v34 = vmul.f32 0.5, %v3818_v32 }
0x1ba4   : > { %v5441_v33 = vpop.eup %5440 }
0x1ba5   : > { %v3819_v35 = vadd.f32 1.0, %v5441_v33  ;;  %v3822_v36 = vmul.f32 %v3820_v34, %v3800_v24 }
0x1ba7   : > { %v3821_v7 = vmul.f32 0.5, %v3819_v35 }
0x1ba9   : > { %v3823_v60 = vmul.f32 %v3821_v7, %v3803_v18 }
0x1bab   : > { %v3824_v38 = vpack.c.bf16 %v3823_v60, %v3822_v36 }
0x1bad   : > { %5178 = vmatmul.mubr.msk.bf16.vlgmr.msra.gmra.mxu0 %vm3844_vm1, %v3824_v38 }
0x1c6d   : > { %v3882_v39 = vpop.f32.mrf.mxu0 }
0x1c6e   : > { %v3883_v8 = vadd.f32 %v4779_v52, %v3882_v39 }
0x1c6f   : > { %v5179_v40 = vpop.f32.mrf.mxu0 }
0x1c70   : > { %v3889_v14 = vadd.f32 %v3883_v8, %v3746_v27 }
0x1c71   : > { %v3885_v19 = vpop.f32.mrf.mxu0 }
0x1c72   : > { %v3886_v6 = vadd.f32 %v4779_v52, %v3885_v19  ;;  %v3893_v11 = vsel %vm1508_vm3, %v3889_v14, 0.0 }
0x1c73   : > { %3894 = vadd.xlane.f32.xlu1 %v3893_v11  ;;  %v5180_v12 = vpop.f32.mrf.mxu0 }
0x1c74   : > { %v3890_v43 = vadd.f32 %v3886_v6, %v3747_v57 }
0x1c76   : > { %v3896_v44 = vsel %vm1508_vm3, %v3890_v43, 0.0 }
0x1c77   : > { %3897 = vadd.xlane.f32.xlu0 %v3896_v44 }
0x1cfc   : > { %v3895_v45 = vpop.xlane.xlu1 %3894 }
0x1cfd   : > { %v3899_v46 = vmul.f32 0.03125, %v3895_v45 }
0x1cff   : > { %v3901_v47 = vsub.f32 %v3889_v14, %v3899_v46 }
0x1d00   : > { %v3898_v49 = vpop.xlane.xlu0 %3897 }
0x1d01   : > { %v3900_v50 = vmul.f32 0.03125, %v3898_v49  ;;  %v3903_v51 = vmul.f32 %v3901_v47, %v3901_v47 }
0x1d03   : > { %v3902_v53 = vsub.f32 %v3890_v43, %v3900_v50  ;;  %v3905_v54 = vsel %vm1508_vm3, %v3903_v51, 0.0 }
0x1d04   : > { %3906 = vadd.xlane.f32.xlu1 %v3905_v54 }
0x1d05   : > { %v3904_v55 = vmul.f32 %v3902_v53, %v3902_v53 }
0x1d07   : > { %v3908_v56 = vsel %vm1508_vm3, %v3904_v55, 0.0 }
0x1d08   : > { %3909 = vadd.xlane.f32.xlu0 %v3908_v56 }
0x1d8d   : > { %v3907_v21 = vpop.xlane.xlu1 %3906 }
0x1d8e   : > { %v3911_v27 = vmul.f32 0.03125, %v3907_v21 }
0x1d90   : > { %v3913_v57 = vadd.f32 1e-12, %v3911_v27 }
0x1d91   : > { %v3910_v61 = vpop.xlane.xlu0 %3909 }
0x1d92   : > { %5442 = vrsqrt.f32 %v3913_v57  ;;  %v3912_v62 = vmul.f32 0.03125, %v3910_v61 }
0x1d94   : > { %v3914_v2 = vadd.f32 1e-12, %v3912_v62 }
0x1d96   : > { %5444 = vrsqrt.f32 %v3914_v2 }
0x1d9f   : > { %v5443_v3 = vpop.eup %5442 }
0x1da0   : > { %v3917_v9 = vmul.f32 %v5443_v3, %v3901_v47 }
0x1da2   : > { %v3925_v16 = vmul.f32 %v4781_v5, %v3917_v9 }
0x1da3   : > { %v5445_v17 = vpop.eup %5444 }
0x1da4   : > { %v3933_v4 = vadd.f32 %v4782_v10, %v3925_v16  ;;  %v3918_v1 = vmul.f32 %v5445_v17, %v3902_v53 }
0x1da6   : > { %3935 = vst.msk [vmem:[#allocation2] sm:$0xff] %vm1508_vm3, %v3933_v4  ;;  %v3926_v20 = vmul.f32 %v4781_v5, %v3918_v1  ;;  %3940 = sbr.rel (%p4783_p8) target bundleno = 9031 (0x2347), region = 184  ;;  %p4275_p8 = scmp.ge.s32.totalorder (!%p4783_p8), %s6647_s25, 0 }
0x1da8   : > { %v3934_v22 = vadd.f32 %v4782_v10, %v3926_v20 }
0x1daa   : > { %3936 = vst.msk [vmem:[#allocation2 + $0x8] sm:$0xff] %vm1508_vm3, %v3934_v22 }
0x1dab   : > { %v3944_v15 = vld [vmem:[%s6854_s18 + $0x10] sm:$0xff]  ;;  %v3945_v23 = vld [vmem:[%s6854_s18 + $0x18] sm:$0xff]  ;;  %v3942_v24 = vld [vmem:[%s6854_s18] sm:$0xff]  ;;  %v5720_v25 = vmov 0.0   ;;  %vm5721_vm2 = vmmov 0   ;;  %v3941_v18 = vpack.c.bf16 %v3934_v22, %v3933_v4  ;;  %vm4119_vm4 = vcmp.lt.s32.totalorder %v6108_v58, 100 }
0x1dac   : > { %5181 = vmatprep.subr.bf16.mxu0 %v5720_v25  ;;  %v3947_v26 = vpack.c.bf16 %v3945_v23, %v3944_v15  ;;  %v3943_v28 = vld [vmem:[%s6854_s18 + $0x8] sm:$0xff]  ;;  %5185 = vmatprep.mubr.msk.bf16.mxu0 %vm5721_vm2, %v5720_v25  ;;  %v4784_v48 = vld [vmem:[#allocation9] ss:$0 sm:$0xff]  ;;  %v4065_v56 = vld [vmem:[%s6855_s24 + $0x18] sm:$0xff]  ;;  %vm4279_vm7 = vcmask 1040384   ;;  %vm4281_vm11 = vcmask 1041408  }
0x1dad   : > { %5189 = vmatprep.subr.bf16.mxu1 %v5720_v25  ;;  %5193 = vmatprep.mubr.msk.bf16.mxu1 %vm5721_vm2, %v5720_v25  ;;  %v3946_v13 = vpack.c.bf16 %v3943_v28, %v3942_v24  ;;  %v4064_v55 = vld [vmem:[%s6855_s24 + $0x10] sm:$0xff]  ;;  %v4062_v21 = vld [vmem:[%s6855_s24] sm:$0xff]  ;;  %v4063_v57 = vld [vmem:[%s6855_s24 + $0x8] sm:$0xff]  ;;  %vm4283_vm15 = vcmask 1042432   ;;  %s4159_s4 = scalar_select %p4158_p9, 1, 0 }
0x1dae   : > { %5182 = vmatpush3.bf16.msra.mxu0 %v3947_v26  ;;  %v4067_v27 = vpack.c.bf16 %v4065_v56, %v4064_v55  ;;  %v4066_v61 = vpack.c.bf16 %v4063_v57, %v4062_v21  ;;  %v4786_v4 = vld [vmem:[#allocation10] ss:$0 sm:$0xff]  ;;  %v4787_v15 = vld [vmem:[#allocation12] ss:$0 sm:$0xff]  ;;  %v4208_v21 = vstv %s6631_s10  ;;  %s4168_s12 = scalar_select %p4167_p11, 1, 0 }
0x1daf   : > { %5183 = vmatprep.subr.bf16.mxu0 %v5720_v25  ;;  %s4160_s1 = scvt.s32.f32 %s4159_s4 }
0x1db0   : > { %5190 = vmatpush3.bf16.msra.mxu1 %v4067_v27  ;;  %s4169_s14 = scvt.s32.f32 %s4168_s12 }
0x1db1   : > { %5191 = vmatprep.subr.bf16.mxu1 %v5720_v25  ;;  %s4177_s29 = scalar_select %p4176_p10, 1, 0 }
0x1db2   : > { %5184 = vmatpush3.bf16.msra.mxu0 %v3946_v13  ;;  %v4788_v13 = vld [vmem:[%s6856_s20] ss:$0 sm:$0xff]  ;;  %s4186_s3 = scalar_select %p4185_p13, 1, 0 }
0x1db3   : > { %s4178_s8 = scvt.s32.f32 %s4177_s29 }
0x1db4   : > { %5192 = vmatpush3.bf16.msra.mxu1 %v4066_v61  ;;  %v4262_v61 = vstv %s6637_s15  ;;  %s4187_s9 = scvt.s32.f32 %s4186_s3 }
0x1db5   : > { %5186 = vmatmul.mubr.msk.bf16.vlgmr.msra.gmra.mxu0 %vm1508_vm3, %v3941_v18  ;;  %s4195_s17 = scalar_select %p4194_p7, 1, 0 }
0x1db6   : > { %s4204_s19 = scalar_select %p4203_p3, 1, 0 }
0x1db7   : > { %s4196_s27 = scvt.s32.f32 %s4195_s17 }
0x1db8   : > { %s4205_s20 = scvt.s32.f32 %s4204_s19 }
0x1db9   : > { %s4258_s10 = scalar_select %p4257_p1, 1, 0 }
0x1dbb   : > { %s4259_s12 = scvt.s32.f32 %s4258_s10 }
0x1e75   : > { %v3992_v59 = vpop.f32.mrf.mxu0 }
0x1e76   : > { %v3993_v41 = vadd.f32 %v4784_v48, %v3992_v59 }
0x1e77   : > { %v5187_v63 = vpop.f32.mrf.mxu0 }
0x1e78   : > { %v3999_v0 = vmul.f32 %v3993_v41, %v3993_v41 }
0x1e79   : > { %v3995_v29 = vpop.f32.mrf.mxu0 }
0x1e7a   : > { %v4001_v37 = vmul.f32 %v3999_v0, %v3993_v41  ;;  %v3996_v30 = vadd.f32 %v4784_v48, %v3995_v29 }
0x1e7b   : > { %v5188_v42 = vpop.f32.mrf.mxu0 }
0x1e7c   : > { %v4003_v31 = vmul.f32 0.044715, %v4001_v37  ;;  %v4000_v32 = vmul.f32 %v3996_v30, %v3996_v30 }
0x1e7e   : > { %v4005_v33 = vadd.f32 %v4003_v31, %v3993_v41  ;;  %v4002_v34 = vmul.f32 %v4000_v32, %v3996_v30 }
0x1e80   : > { %v4004_v35 = vmul.f32 0.044715, %v4002_v34  ;;  %v4007_v7 = vmul.f32 0.7978846, %v4005_v33 }
0x1e82   : > { %v4006_v36 = vadd.f32 %v4004_v35, %v3996_v30  ;;  %5446 = vtanh.f32 %v4007_v7 }
0x1e84   : > { %v4008_v60 = vmul.f32 0.7978846, %v4006_v36  ;;  %v4154_v36 = vstv %s6597_s22  ;;  %s4213_s22 = scalar_select %p4212_p2, 1, 0 }
0x1e86   : > { %5448 = vtanh.f32 %v4008_v60  ;;  %v4163_v60 = vstv %s6599_s7  ;;  %s4222_s7 = scalar_select %p4221_p12, 1, 0 }
0x1e87   : > { %vm4164_vm5 = vcmp.eq.s32.totalorder %v6108_v58, %v4163_v60 }
0x1e8f   : > { %v5447_v38 = vpop.eup %5446 }
0x1e90   : > { %v4011_v52 = vadd.f32 1.0, %v5447_v38  ;;  %v4172_v38 = vstv %s6601_s0  ;;  %s4214_s0 = scvt.s32.f32 %s4213_s22 }
0x1e91   : > { %vm4173_vm6 = vcmp.eq.s32.totalorder %v6108_v58, %v4172_v38 }
0x1e92   : > { %v4013_v39 = vmul.f32 0.5, %v4011_v52  ;;  %v4217_v52 = vstv %s6603_s2  ;;  %v4215_v38 = vstv %s4214_s0 }
0x1e93   : > { %v5449_v8 = vpop.eup %5448  ;;  %vm4218_vm8 = vcmp.eq.s32.totalorder %v6108_v58, %v4217_v52 }
0x1e94   : > { %v4015_v40 = vmul.f32 %v4013_v39, %v3993_v41  ;;  %v4012_v14 = vadd.f32 1.0, %v5449_v8  ;;  %v4226_v39 = vstv %s6605_s16  ;;  %s4231_s16 = scalar_select %p4230_p4, 1, 0 }
0x1e95   : > { %vm4227_vm9 = vcmp.eq.s32.totalorder %v6108_v58, %v4226_v39 }
0x1e96   : > { %v4019_v19 = vsel %vm1508_vm3, %v4015_v40, 0.0  ;;  %v4014_v6 = vmul.f32 0.5, %v4012_v14  ;;  %v4793_v14 = vsel %vm4164_vm5, 1.0, %v5720_v25  ;;  %vm4286_vm5 = vcmask 1044480  }
0x1e97   : > { %4020 = vadd.xlane.f32.xlu0 %v4019_v19  ;;  %v4235_v19 = vstv %s6609_s11  ;;  %s4232_s11 = scvt.s32.f32 %s4231_s16 }
0x1e98   : > { %v4016_v11 = vmul.f32 %v4014_v6, %v3996_v30  ;;  %vm4236_vm12 = vcmp.eq.s32.totalorder %v6108_v58, %v4235_v19 }
0x1e99   : > { %v4233_v60 = vstv %s4232_s11 }
0x1e9a   : > { %v4022_v12 = vsel %vm1508_vm3, %v4016_v11, 0.0 }
0x1e9b   : > { %4023 = vadd.xlane.f32.xlu0 %v4022_v12  ;;  %v4795_v12 = vsel %vm4173_vm6, 1.0, %v5720_v25  ;;  %vm4263_vm6 = vcmp.eq.s32.totalorder %v6108_v58, %v4262_v61 }
0x1f20   : > { %v4021_v43 = vpop.xlane.xlu0 %4020 }
0x1f21   : > { %v4025_v44 = vmul.f32 0.03125, %v4021_v43 }
0x1f23   : > { %v4027_v45 = vsub.f32 %v4015_v40, %v4025_v44  ;;  %v4181_v40 = vstv %s6607_s28  ;;  %v4805_v44 = vsel %vm4218_vm8, 1.0, %v5720_v25  ;;  %vm4288_vm8 = vcmask 1045504   ;;  %s4223_s28 = scvt.s32.f32 %s4222_s7 }
0x1f24   : > { %v4024_v46 = vpop.xlane.xlu0 %4023  ;;  %vm4182_vm10 = vcmp.eq.s32.totalorder %v6108_v58, %v4181_v40 }
0x1f25   : > { %v4026_v47 = vmul.f32 0.03125, %v4024_v46  ;;  %v4029_v49 = vmul.f32 %v4027_v45, %v4027_v45  ;;  %v4244_v46 = vstv %s6616_s13  ;;  %s4276_s13 = scalar_select %p4275_p8, 1, 0 }
0x1f26   : > { %vm4245_vm0 = vcmp.eq.s32.totalorder %v6108_v58, %v4244_v46 }
0x1f27   : > { %v4028_v50 = vsub.f32 %v4016_v11, %v4026_v47  ;;  %v4031_v51 = vsel %vm1508_vm3, %v4029_v49, 0.0  ;;  %v4190_v11 = vstv %s6613_s5  ;;  %v4797_v47 = vsel %vm4182_vm10, 1.0, %v5720_v25  ;;  %s4240_s5 = scalar_select %p4239_p6, 1, 0 }
0x1f28   : > { %4032 = vadd.xlane.f32.xlu1 %v4031_v51  ;;  %vm4191_vm13 = vcmp.eq.s32.totalorder %v6108_v58, %v4190_v11  ;;  %v4811_v57 = vsel %vm4245_vm0, 1.0, %v5720_v25  ;;  %vm4290_vm10 = vcmask 1046528  }
0x1f29   : > { %v4030_v53 = vmul.f32 %v4028_v50, %v4028_v50  ;;  %v4799_v56 = vsel %vm4191_vm13, 1.0, %v5720_v25  ;;  %s4241_s2 = scvt.s32.f32 %s4240_s5 }
0x1f2b   : > { %v4034_v54 = vsel %vm1508_vm3, %v4030_v53, 0.0  ;;  %v4809_v53 = vsel %vm4236_vm12, 1.0, %v5720_v25  ;;  %v4242_v52 = vstv %s4241_s2 }
0x1f2c   : > { %4035 = vadd.xlane.f32.xlu1 %v4034_v54  ;;  %v4253_v54 = vstv %s6626_s26 }
0x1f2d   : > { %vm4254_vm2 = vcmp.eq.s32.totalorder %v6108_v58, %v4253_v54 }
0x1fb1   : > { %v4033_v62 = vpop.xlane.xlu1 %4032 }
0x1fb2   : > { %v4037_v2 = vmul.f32 0.03125, %v4033_v62 }
0x1fb4   : > { %v4039_v3 = vadd.f32 1e-12, %v4037_v2 }
0x1fb5   : > { %v4036_v5 = vpop.xlane.xlu1 %4035 }
0x1fb6   : > { %5450 = vrsqrt.f32 %v4039_v3  ;;  %v4038_v9 = vmul.f32 0.03125, %v4036_v5  ;;  %v4813_v5 = vsel %vm4254_vm2, 1.0, %v5720_v25 }
0x1fb8   : > { %v4040_v10 = vadd.f32 1e-12, %v4038_v9  ;;  %v4271_v9 = vstv %s6647_s25 }
0x1fba   : > { %5452 = vrsqrt.f32 %v4040_v10 }
0x1fc3   : > { %v5451_v16 = vpop.eup %5450 }
0x1fc4   : > { %v4043_v17 = vmul.f32 %v5451_v16, %v4027_v45  ;;  %v4807_v45 = vsel %vm4227_vm9, 1.0, %v5720_v25  ;;  %vm4272_vm9 = vcmp.eq.s32.totalorder %v6108_v58, %v4271_v9 }
0x1fc5   : > { %v4292_v55 = vsel %vm4279_vm7, %v4805_v44, %v4807_v45 }
0x1fc6   : > { %v4051_v22 = vmul.f32 %v4786_v4, %v4043_v17  ;;  %v4293_v62 = vsel %vm4281_vm11, %v4292_v55, %v4809_v53 }
0x1fc7   : > { %v5453_v1 = vpop.eup %5452  ;;  %v4294_v10 = vsel %vm4283_vm15, %v4293_v62, %v4811_v57 }
0x1fc8   : > { %v4044_v20 = vmul.f32 %v5453_v1, %v4028_v50  ;;  %v4059_v24 = vadd.f32 %v4787_v15, %v4051_v22  ;;  %v4199_v50 = vstv %s6620_s30  ;;  %v4815_v1 = vsel %vm4263_vm6, 1.0, %v5720_v25  ;;  %s4249_s30 = scalar_select %p4248_p0, 1, 0 }
0x1fc9   : > { %vm4200_vm1 = vcmp.eq.s32.totalorder %v6108_v58, %v4199_v50 }
0x1fca   : > { %v4052_v23 = vmul.f32 %v4786_v4, %v4044_v20  ;;  %v4801_v2 = vsel %vm4200_vm1, 1.0, %v5720_v25  ;;  %v4295_v20 = vsel %vm1689_vm14, %v4294_v10, %v4813_v5  ;;  %s4250_s4 = scvt.s32.f32 %s4249_s30 }
0x1fcc   : > { %v4060_v26 = vadd.f32 %v4787_v15, %v4052_v23 }
0x1fce   : > { %v4061_v28 = vpack.c.bf16 %v4060_v26, %v4059_v24  ;;  %v4817_v24 = vsel %vm4272_vm9, 1.0, %v5720_v25  ;;  %v4296_v26 = vsel %vm4286_vm5, %v4295_v20, %v4815_v1 }
0x1fd0   : > { %5194 = vmatmul.mubr.msk.bf16.vlgmr.msra.gmra.mxu1 %vm1508_vm3, %v4061_v28  ;;  %vm4155_vm3 = vcmp.eq.s32.totalorder %v6108_v58, %v4154_v36 }
0x1fd1   : > { %v4791_v8 = vsel %vm4155_vm3, 1.0, %v5720_v25  ;;  %vm4209_vm3 = vcmp.eq.s32.totalorder %v6108_v58, %v4208_v21  ;;  %v4161_v58 = vstv %s4160_s1  ;;  %s4267_s1 = scalar_select %p4266_p5, 1, 0 }
0x1fd2   : > { %v4280_v43 = vsel %vm4279_vm7, %v4791_v8, %v4793_v14  ;;  %v4803_v16 = vsel %vm4209_vm3, 1.0, %v5720_v25  ;;  %v4251_v14 = vstv %s4250_s4 }
0x1fd3   : > { %v4282_v51 = vsel %vm4281_vm11, %v4280_v43, %v4795_v12  ;;  %s4268_s26 = scvt.s32.f32 %s4267_s1 }
0x1fd4   : > { %v4284_v27 = vsel %vm4283_vm15, %v4282_v51, %v4797_v47 }
0x1fd5   : > { %v4285_v3 = vsel %vm1689_vm14, %v4284_v27, %v4799_v56  ;;  %v4269_v44 = vstv %s4268_s26 }
0x1fd6   : > { %v4287_v17 = vsel %vm4286_vm5, %v4285_v3, %v4801_v2 }
0x1fd7   : > { %v4289_v15 = vsel %vm4288_vm8, %v4287_v17, %v4803_v16 }
0x2090   : > { %v4112_v18 = vpop.f32.mrf.mxu1 }
0x2091   : > { %v4113_v48 = vadd.f32 %v4788_v13, %v4112_v18 }
0x2092   : > { %v5195_v59 = vpop.f32.mrf.mxu1 }
0x2093   : > { %v4120_v41 = vsel %vm4119_vm4, %v4113_v48, -1e+30  ;;  %v4291_v48 = vsel %vm4290_vm10, %v4289_v15, 0.0  ;;  %v4297_v59 = vsel %vm4288_vm8, %v4296_v26, %v4817_v24 }
0x2094   : > { %4122 = vmax.xlane.f32.xlu0 %v4120_v41  ;;  %v4115_v63 = vpop.f32.mrf.mxu1 }
0x2095   : > { %v4116_v0 = vadd.f32 %v4788_v13, %v4115_v63 }
0x2096   : > { %v5196_v29 = vpop.f32.mrf.mxu1 }
0x2097   : > { %v4121_v37 = vsel %vm4119_vm4, %v4116_v0, -1e+30  ;;  %v4298_v0 = vsel %vm4290_vm10, %v4297_v59, 0.0 }
0x2098   : > { %4124 = vmax.xlane.f32.xlu1 %v4121_v37 }
0x211d   : > { %v4123_v30 = vpop.xlane.xlu0 %4122 }
0x211e   : > { %v6591_v42 = vsub.f32 %v4120_v41, %v4123_v30  ;;  %v4179_v30 = vstv %s4178_s8 }
0x2120   : > { %v4128_v31 = vmul.f32 1.442695, %v6591_v42 }
0x2121   : > { %v4125_v32 = vpop.xlane.xlu1 %4124 }
0x2122   : > { %5454 = vpow2.f32 %v4128_v31  ;;  %v6594_v33 = vsub.f32 %v4121_v37, %v4125_v32  ;;  %v4170_v37 = vstv %s4169_s14  ;;  %v4188_v31 = vstv %s4187_s9  ;;  %s4277_s14 = scvt.s32.f32 %s4276_s13 }
0x2124   : > { %v4130_v34 = vmul.f32 1.442695, %v6594_v33  ;;  %v4278_v45 = vstv %s4277_s14 }
0x2126   : > { %5456 = vpow2.f32 %v4130_v34 }
0x212f   : > { %v5455_v35 = vpop.eup %5454 }
0x2130   : > { %4132 = vadd.xlane.f32.xlu0 %v5455_v35  ;;  %v4206_v35 = vstv %s4205_s20 }
0x2133   : > { %v5457_v7 = vpop.eup %5456 }
0x2134   : > { %4134 = vadd.xlane.f32.xlu1 %v5457_v7  ;;  %v4224_v7 = vstv %s4223_s28 }
0x2135   : > { %v4306_v8 = vsel %vm4279_vm7, %v4224_v7, %v4233_v60 }
0x2136   : > { %v4307_v40 = vsel %vm4281_vm11, %v4306_v8, %v4242_v52 }
0x2137   : > { %v4308_v11 = vsel %vm4283_vm15, %v4307_v40, %v4251_v14 }
0x21b9   : > { %v4133_v6 = vpop.xlane.xlu0 %4132 }
0x21ba   : > { %5458 = vlog2.f32 %v4133_v6  ;;  %v4260_v6 = vstv %s4259_s12 }
0x21bb   : > { %v4309_v12 = vsel %vm1689_vm14, %v4308_v11, %v4260_v6 }
0x21bc   : > { %v4310_v46 = vsel %vm4286_vm5, %v4309_v12, %v4269_v44 }
0x21bd   : > { %v4135_v49 = vpop.xlane.xlu1 %4134  ;;  %v4311_v47 = vsel %vm4288_vm8, %v4310_v46, %v4278_v45 }
0x21be   : > { %5460 = vlog2.f32 %v4135_v49  ;;  %v4312_v50 = vsel %vm4290_vm10, %v4311_v47, 0.0 }
0x21c7   : > { %v5459_v4 = vpop.eup %5458 }
0x21c8   : > { %v4137_v22 = vmul.f32 0.6931472, %v5459_v4 }
0x21ca   : > { %v4140_v23 = vsub.f32 %v6591_v42, %v4137_v22  ;;  %v4299_v42 = vsel %vm4279_vm7, %v4161_v58, %v4170_v37 }
0x21cb   : > { %v5461_v28 = vpop.eup %5460  ;;  %v4300_v32 = vsel %vm4281_vm11, %v4299_v42, %v4179_v30 }
0x21cc   : > { %v4139_v13 = vmul.f32 0.6931472, %v5461_v28  ;;  %v4142_v18 = vsel %vm4119_vm4, %v4140_v23, 0.0  ;;  %v4313_v63 = vmul.f32 %v4291_v48, %v4140_v23  ;;  %v4301_v34 = vsel %vm4283_vm15, %v4300_v32, %v4188_v31 }
0x21cd   : > { %4144 = vadd.xlane.f32.xlu0 %v4142_v18 }
0x21ce   : > { %v4141_v41 = vsub.f32 %v6594_v33, %v4139_v13  ;;  %v4197_v33 = vstv %s4196_s27 }
0x21cf   : > { %v4302_v36 = vsel %vm1689_vm14, %v4301_v34, %v4197_v33  ;;  %vm4359_vm14 = vcmask 0  }
0x21d0   : > { %v4143_v25 = vsel %vm4119_vm4, %v4141_v41, 0.0  ;;  %v4314_v29 = vmul.f32 %v4298_v0, %v4141_v41  ;;  %v4303_v39 = vsel %vm4286_vm5, %v4302_v36, %v4206_v35  ;;  %vm4329_vm4 = vcmask 7168  }
0x21d1   : > { %4315 = vadd.xlane.f32.xlu0 %v4313_v63  ;;  %4146 = vadd.xlane.f32.xlu1 %v4143_v25  ;;  %v4304_v19 = vsel %vm4288_vm8, %v4303_v39, %v4215_v38  ;;  %v4344_v51 = vsel %vm4329_vm4, %v4312_v50, 0.0 }
0x21d2   : > { %v4305_v43 = vsel %vm4290_vm10, %v4304_v19, 0.0 }
0x21d3   : > { %v4343_v49 = vsel %vm4329_vm4, %v4305_v43, 0.0 }
0x21d4   : > { %v4345_v53 = vadd.f32 %v4344_v51, %v4343_v49 }
0x21d5   : > { %4317 = vadd.xlane.f32.xlu1 %v4314_v29 }
0x21d9   : > { %4346 = vadd.xlane.f32.xlu1 %v4345_v53 }
0x2256   : > { %v4145_v54 = vpop.xlane.xlu0 %4144 }
0x2257   : > { %v4148_v55 = vsub.f32 0.0, %v4145_v54 }
0x2259   : > { %v4151_v56 = vmul.f32 0.01, %v4148_v55 }
0x225a   : > { %v4316_v21 = vpop.xlane.xlu0 %4315  ;;  %v4147_v27 = vpop.xlane.xlu1 %4146 }
0x225b   : > { %v4319_v57 = vsub.f32 0.0, %v4316_v21  ;;  %v4149_v61 = vsub.f32 0.0, %v4147_v27  ;;  %v4323_v62 = vmul.f32 0.1, %v4151_v56 }
0x225d   : > { %v4321_v2 = vmul.f32 0.9, %v4319_v57  ;;  %v4152_v3 = vmul.f32 0.01, %v4149_v61 }
0x225e   : > { %v4318_v5 = vpop.xlane.xlu1 %4317 }
0x225f   : > { %v4325_v9 = vadd.f32 %v4323_v62, %v4321_v2  ;;  %v4320_v10 = vsub.f32 0.0, %v4318_v5  ;;  %v4324_v16 = vmul.f32 0.1, %v4152_v3 }
0x2261   : > { %v4322_v17 = vmul.f32 0.9, %v4320_v10  ;;  %v4327_v1 = vmul.f32 %v4325_v9, %v4305_v43 }
0x2262   : > { %v4347_v24 = vpop.xlane.xlu1 %4346 }
0x2263   : > { %v4326_v4 = vadd.f32 %v4324_v16, %v4322_v17  ;;  %v4330_v22 = vsel %vm4329_vm4, %v4327_v1, 0.0  ;;  %v4348_v26 = vrot.slane %v4347_v24, 4 }
0x2265   : > { %v4328_v20 = vmul.f32 %v4326_v4, %v4312_v50  ;;  %v4349_v28 = vadd.f32 %v4348_v26, %v4347_v24 }
0x2267   : > { %v4331_v15 = vsel %vm4329_vm4, %v4328_v20, 0.0  ;;  %v4350_v13 = vrot.slane %v4349_v28, 2 }
0x2268   : > { %v4332_v23 = vadd.f32 %v4331_v15, %v4330_v22 }
0x2269   : > { %v4351_v41 = vadd.f32 %v4350_v13, %v4349_v28 }
0x226a   : > { %4333 = vadd.xlane.f32.xlu0 %v4332_v23 }
0x226b   : > { %v4352_v0 = vrot.slane %v4351_v41, 1 }
0x226d   : > { %v4353_v37 = vadd.f32 %v4352_v0, %v4351_v41 }
0x22f3   : > { %v4334_v18 = vpop.xlane.xlu0 %4333 }
0x22f4   : > { %v4335_v48 = vrot.slane %v4334_v18, 4 }
0x22f6   : > { %v4336_v59 = vadd.f32 %v4335_v48, %v4334_v18 }
0x22f8   : > { %v4337_v63 = vrot.slane %v4336_v59, 2 }
0x22fa   : > { %v4338_v25 = vadd.f32 %v4337_v63, %v4336_v59 }
0x22fc   : > { %v4339_v29 = vrot.slane %v4338_v25, 1 }
0x22fe   : > { %v4340_v58 = vadd.f32 %v4339_v29, %v4338_v25 }
0x2300   : > { %5197 = vpush %v4340_v58 }
0x2301   : > { %5199 = vpush %v4353_v37 }
0x2331   : > { %s5198_s15 = spop %5197 }
0x2332   : > { %s5200_s25 = spop %5199  ;;  %v4342_v32 = vstv %s5198_s15 }
0x2333   : > { %v4355_v30 = vstv %s5200_s25 }
0x2334   : > { %v4356_v42 = vmax.f32 %v4355_v30, 1.0 }
0x2336   : > { %5462 = vrcp.f32 %v4356_v42 }
0x2343   : > { %v5463_v31 = vpop.eup %5462 }
0x2344   : > { %v4358_v33 = vmul.f32 %v5463_v31, %v4342_v32 }
0x2346   : > { %4360 = vst.msk [vmem:[#allocation14] sm:$0x1] %vm4359_vm14, %v4358_v33 }
0x2347 PF: > { %s6857_s29 = sld [smem:[#allocation54_spill]]  ;;  %s5722_s3 = smov [#allocation14]  }
0x2348   : > { %s4368_s8 = sshll.u32 %s5722_s3, 4  ;;  %s4369_s8 = int_to_ptr.vmem [resolvable:$true] %s4368_s8 }
0x2349   : > { %s5609_s9 = scalar_lea.vmem %s4369_s8, 16  ;;  %s5615_s17 = scalar_lea.vmem %s4369_s8, 32 }
0x234a   : > { %p5610_p11 = scmp.ne.s32.totalorder %s4369_s8, %s5609_s9  ;;  %p5616_p13 = scmp.lt.s32.totalorder %s4369_s8, %s4369_s8 }
0x234b   : > { %p5617_p7 = scmp.lt.s32.totalorder %s5615_s17, %s5609_s9 }
0x234d   : > { %p5260_p9 = scmp.eq.s32.totalorder %s6857_s29, 1  ;;  %p5618_p3 = por %p5617_p7, %p5616_p13 }
0x234f   : > { %p5611_p10 = pnand %p5610_p11, %p5260_p9 }
0x2351   : > { %p5612_p12 = pneg %p5611_p10 }
0x2353   : > { %p5619_p2 = pnand %p5618_p3, %p5612_p12 }
0x2355   : > { %5622 = shalt.err (!%p5619_p2)
}
0x2356   : > { %s6858_s19 = sld [smem:[#allocation52_spill]] }
0x235c   : > { %5226 = dma.vmem_to_hbm [thread:$0]  (%p5260_p9), %s4369_s8, 16, %s6858_s19, [#allocation5]  }
0x235d   : > { %5654 = dma.done.wait (%p5260_p9), [#allocation5], 16  }
0x235e   : > { %5656 = vsyncadd (%p5260_p9), [#allocation5], 4294967280 }
0x235f PF: > { %s6859_s27 = sld [smem:[#allocation53_spill]] }
0x2365   : > { %s82_s7 = sadd.s32 1, %s6859_s27  }
0x2366   : > { %p79_p4 = scmp.ge.s32.totalorder %s82_s7, 4  }
0x2368   :  { %81 = sbr.rel (!%p79_p4) target bundleno = 76 (0x4c), region = 303 }
0x236d   :  { %4381 = vsyncpa [#allocation4], 1 }
0x236e   :  { %4383 = vsyncpa [#allocation4 + $0x1], 1 }
0x236f   :  { %4384 = vsyncpa [#allocation8], 1 }
0x2370   :  { %4385 = vsyncpa [#allocation11], 1 }
0x2371   :  { %4386 = vsyncpa [#allocation5], 1 }
0x2372   :  { %4388 = vsyncpa [#allocation5 + $0x1], 1 }
0x2373   :  { %4389 = vsyncpa [#allocation6], 1 }
0x2374   :  { %4391 = vsyncpa [#allocation6 + $0x1], 1 }

</bundles_post_ra>
